<compile_context>
chip_gen: v7x
topology: tpu7x:2x2x1
jax: 0.10.0
libtpu: 0.0.40
codegen_flags: <defaults>
</compile_context>

<pallas_src>
import jax
import jax.numpy as jnp
from jax import lax
from jax.experimental import pallas as pl
from jax.experimental.pallas import tpu as pltpu

EMB_DIM = 50
POS_OUT = 50
CHUNK_OUT = 50
CAPS_OUT = 20
CHAR_DIM = 20
FEAT = EMB_DIM + POS_OUT + CHUNK_OUT + CAPS_OUT + 3 * CHAR_DIM  # 230
HIDDEN = 50
HP = 128                 # lane-aligned padded hidden size
G4 = 4 * HP              # fused gate width (i,f,g,o at offsets 0/128/256/384)
NUM_LAYERS = 4
NUM_CLASSES = 3


def _vmem():
    return pl.BlockSpec(memory_space=pltpu.MemorySpace.VMEM)


def _pick_row_block(n, target=512):
    """Largest multiple of 8 that divides n and is <= target (or n itself)."""
    if n % 8 != 0:
        return n
    rb = min(target, n)
    rb -= rb % 8
    while n % rb != 0:
        rb -= 8
    return rb


# --------------------------------------------------------------------------
# Kernel 1: layer-0 input projection, gridded & parallel over rows.
# out[r] = s@A_s + sigmoid(tags@Wpos+bpos)@A_t + chunks@A_ch + caps@A_cp
#          + p1@A_p1 + p2@A_p2 + p3@A_p3 + bias0          -> (rows, 4*HP)
# (fc_chunks / fc_caps / the concat are pre-folded into A_* and bias0.)
# --------------------------------------------------------------------------
def input_proj_kernel(s_ref, tags_ref, chunks_ref, caps_ref, p1_ref, p2_ref,
                      p3_ref, wpos_ref, bpos_ref, a_s_ref, a_t_ref, a_ch_ref,
                      a_cp_ref, a_p1_ref, a_p2_ref, a_p3_ref, bias_ref,
                      out_ref):
    f32 = jnp.float32
    t_sig = jax.nn.sigmoid(
        jnp.dot(tags_ref[...], wpos_ref[...], preferred_element_type=f32)
        + bpos_ref[...])
    acc = jnp.dot(s_ref[...], a_s_ref[...], preferred_element_type=f32)
    acc = acc + jnp.dot(t_sig, a_t_ref[...], preferred_element_type=f32)
    acc = acc + jnp.dot(chunks_ref[...], a_ch_ref[...], preferred_element_type=f32)
    acc = acc + jnp.dot(caps_ref[...], a_cp_ref[...], preferred_element_type=f32)
    acc = acc + jnp.dot(p1_ref[...], a_p1_ref[...], preferred_element_type=f32)
    acc = acc + jnp.dot(p2_ref[...], a_p2_ref[...], preferred_element_type=f32)
    acc = acc + jnp.dot(p3_ref[...], a_p3_ref[...], preferred_element_type=f32)
    out_ref[...] = acc + bias_ref[...]


def input_projection(s_emb, tags, chunks, caps, p1e, p2e, p3e, kp):
    n = s_emb.shape[0]
    rb = _pick_row_block(n)

    def row_spec(d):
        return pl.BlockSpec((rb, d), lambda i: (i, 0))

    def full_spec(a):
        return pl.BlockSpec(a.shape, lambda i: (0, 0))

    data = (s_emb, tags, chunks, caps, p1e, p2e, p3e)
    weights = (kp["pos_wT"], kp["pos_b"], kp["A_s"], kp["A_t"], kp["A_ch"],
               kp["A_cp"], kp["A_p1"], kp["A_p2"], kp["A_p3"], kp["bias0"])
    in_specs = [row_spec(a.shape[1]) for a in data] + [full_spec(w) for w in weights]

    return pl.pallas_call(
        input_proj_kernel,
        out_shape=jax.ShapeDtypeStruct((n, G4), jnp.float32),
        grid=(n // rb,),
        in_specs=in_specs,
        out_specs=pl.BlockSpec((rb, G4), lambda i: (i, 0)),
        compiler_params=pltpu.CompilerParams(
            dimension_semantics=("parallel",),
            vmem_limit_bytes=32 * 1024 * 1024),
    )(*data, *weights)


# --------------------------------------------------------------------------
# Kernel 2: fused 4-layer LSTM stack + Linear(50->3) head + log_softmax.
# xp0_ref : (T, BP, 4*HP)  precomputed layer-0 input projection (incl. bias)
# wih_ref : (3, HP, 4*HP)  input weights for layers 1..3 (hoisted matmul)
# whh_ref : (4, HP, 4*HP)  recurrent weights (fused gates, lane-aligned)
# b_ref   : (3, 1, 4*HP)   biases (b_ih+b_hh) for layers 1..3
# Activations stay in VMEM scratch across all layers.
# --------------------------------------------------------------------------
def lstm_stack_kernel(xp0_ref, wih_ref, whh_ref, b_ref, fcw_ref, fcb_ref,
                      out_ref, h_scr, xp_scr):
    T, BP, _ = h_scr.shape
    unroll = True if T <= 32 else 8

    def run_layer(xp_ref, layer):
        def step(t, carry):
            h, c = carry
            # one fused (BP, HP) x (HP, 4*HP) recurrent matmul per step
            g = xp_ref[t] + jnp.dot(h, whh_ref[layer],
                                    preferred_element_type=jnp.float32)
            i = jax.nn.sigmoid(g[:, 0 * HP:1 * HP])
            f = jax.nn.sigmoid(g[:, 1 * HP:2 * HP])
            gg = jnp.tanh(g[:, 2 * HP:3 * HP])
            o = jax.nn.sigmoid(g[:, 3 * HP:4 * HP])
            c_new = f * c + i * gg
            h_new = o * jnp.tanh(c_new)
            h_scr[t] = h_new
            return h_new, c_new

        zeros = jnp.zeros((BP, HP), jnp.float32)
        lax.fori_loop(0, T, step, (zeros, zeros), unroll=unroll)

    # layer 0: input projection came in precomputed (and bias-folded)
    run_layer(xp0_ref, 0)

    # layers 1..3: hoist the input projection out of the recurrence
    for layer in range(1, NUM_LAYERS):
        h_flat = h_scr[...].reshape(T * BP, HP)
        xp = (jnp.dot(h_flat, wih_ref[layer - 1],
                      preferred_element_type=jnp.float32)
              + b_ref[layer - 1])
        xp_scr[...] = xp.reshape(T, BP, G4)
        run_layer(xp_scr, layer)

    # head: Linear(50 -> 3) + log_softmax, fused (no extra HBM round-trip)
    h_flat = h_scr[...].reshape(T * BP, HP)
    z = (jnp.dot(h_flat, fcw_ref[...], preferred_element_type=jnp.float32)
         + fcb_ref[...])
    z = z - jnp.max(z, axis=-1, keepdims=True)
    out_ref[...] = z - jnp.log(jnp.sum(jnp.exp(z), axis=-1, keepdims=True))


def lstm_stack(xp0_tm, wih_rest, whh_all, b_rest, fc_wT, fc_b):
    T, BP, _ = xp0_tm.shape
    return pl.pallas_call(
        lstm_stack_kernel,
        out_shape=jax.ShapeDtypeStruct((T * BP, NUM_CLASSES), jnp.float32),
        in_specs=[_vmem()] * 6,
        out_specs=_vmem(),
        scratch_shapes=[pltpu.VMEM((T, BP, HP), jnp.float32),
                        pltpu.VMEM((T, BP, G4), jnp.float32)],
        compiler_params=pltpu.CompilerParams(
            vmem_limit_bytes=32 * 1024 * 1024),
    )(xp0_tm, wih_rest, whh_all, b_rest, fc_wT, fc_b)


# --------------------------------------------------------------------------
# Full forward (mirrors Net.forward, eval mode)
# --------------------------------------------------------------------------
@jax.jit
def net_forward(kp, s, tags, chunks, caps, p1, p2, p3):
    B, T = s.shape
    BP = ((B + 7) // 8) * 8       # pad batch to a multiple of 8 sublanes

    # embedding lookups (gathers) stay as JAX glue
    s_emb = jnp.take(kp["embedding"], s, axis=0)   # (B, T, 50)
    p1e = jnp.take(kp["p1"], p1, axis=0)           # (B, T, 20)
    p2e = jnp.take(kp["p2"], p2, axis=0)
    p3e = jnp.take(kp["p3"], p3, axis=0)

    def flat_tm(a):  # (B, T, F) -> (T*BP, F), row = t*BP + b, batch zero-padded
        a = jnp.transpose(a, (1, 0, 2))
        a = jnp.pad(a, ((0, 0), (0, BP - B), (0, 0)))
        return a.reshape(T * BP, a.shape[-1])

    xproj0 = input_projection(flat_tm(s_emb), flat_tm(tags), flat_tm(chunks),
                              flat_tm(caps), flat_tm(p1e), flat_tm(p2e),
                              flat_tm(p3e), kp)                # (T*BP, 512)

    logp = lstm_stack(xproj0.reshape(T, BP, G4),
                      kp["wih_rest"], kp["whh_all"], kp["b_rest"],
                      kp["fc_wT"], kp["fc_b"])                 # (T*BP, 3)

    logp = logp.reshape(T, BP, NUM_CLASSES)[:, :B, :]
    return jnp.transpose(logp, (1, 0, 2))                      # (B, T, 3)


# --------------------------------------------------------------------------
# Parameters: PyTorch-layout init + conversion to folded / padded kernel layout
# --------------------------------------------------------------------------
def init_torch_params(key, embedding_size, pos_tags, chunks_dim, caps_dim,
                      char_emb_size):
    ks = iter(jax.random.split(key, 40))

    def nrm(shape, scale=0.1):
        return scale * jax.random.normal(next(ks), shape, dtype=jnp.float32)

    tp = {}
    tp["embedding"] = nrm((embedding_size, EMB_DIM))
    tp["p1"] = nrm((char_emb_size, CHAR_DIM))
    tp["p2"] = nrm((char_emb_size, CHAR_DIM))
    tp["p3"] = nrm((char_emb_size, CHAR_DIM))
    tp["pos_w"] = nrm((POS_OUT, pos_tags));    tp["pos_b"] = nrm((POS_OUT,))
    tp["ch_w"] = nrm((CHUNK_OUT, chunks_dim)); tp["ch_b"] = nrm((CHUNK_OUT,))
    tp["caps_w"] = nrm((CAPS_OUT, caps_dim));  tp["caps_b"] = nrm((CAPS_OUT,))
    tp["fc_w"] = nrm((NUM_CLASSES, HIDDEN));   tp["fc_b"] = nrm((NUM_CLASSES,))
    lstm = []
    for layer in range(NUM_LAYERS):
        din = FEAT if layer == 0 else HIDDEN
        lstm.append((nrm((4 * HIDDEN, din)), nrm((4 * HIDDEN, HIDDEN)),
                     nrm((4 * HIDDEN,)), nrm((4 * HIDDEN,))))
    tp["lstm"] = lstm
    return tp


def _pad_gate_cols(m):
    """(..., 4*HIDDEN) -> (..., 4*HP): each 50-wide gate block at offset k*HP."""
    parts = jnp.split(m, 4, axis=-1)
    pad = [(0, 0)] * (m.ndim - 1) + [(0, HP - HIDDEN)]
    return jnp.concatenate([jnp.pad(p, pad) for p in parts], axis=-1)


def _pad_hidden_rows(m):
    """(HIDDEN, X) -> (HP, X) with zero rows."""
    return jnp.pad(m, ((0, HP - HIDDEN), (0, 0)))


def prepare_kernel_params(tp):
    kp = {"embedding": tp["embedding"], "p1": tp["p1"], "p2": tp["p2"],
          "p3": tp["p3"]}
    kp["pos_wT"] = tp["pos_w"].T                # (pos_tags, 50)
    kp["pos_b"] = tp["pos_b"][None, :]          # (1, 50)

    w_ih0, w_hh0, b_ih0, b_hh0 = tp["lstm"][0]
    wih0T = w_ih0.T                             # (230, 4*HIDDEN)
    # feature layout: [s 0:50 | sig(pos) 50:100 | chunks 100:150 |
    #                  caps 150:170 | p1 170:190 | p2 190:210 | p3 210:230]
    kp["A_s"] = _pad_gate_cols(wih0T[0:50])
    kp["A_t"] = _pad_gate_cols(wih0T[50:100])
    kp["A_ch"] = _pad_gate_cols(tp["ch_w"].T @ wih0T[100:150])      # fold fc_chunks
    kp["A_cp"] = _pad_gate_cols(tp["caps_w"].T @ wih0T[150:170])    # fold fc_caps
    kp["A_p1"] = _pad_gate_cols(wih0T[170:190])
    kp["A_p2"] = _pad_gate_cols(wih0T[190:210])
    kp["A_p3"] = _pad_gate_cols(wih0T[210:230])
    bias0 = (b_ih0 + b_hh0
             + tp["ch_b"] @ wih0T[100:150]
             + tp["caps_b"] @ wih0T[150:170])
    kp["bias0"] = _pad_gate_cols(bias0[None, :])                    # (1, 4*HP)

    whh_all, wih_rest, b_rest = [], [], []
    for layer in range(NUM_LAYERS):
        w_ih, w_hh, b_ih, b_hh = tp["lstm"][layer]
        whh_all.append(_pad_hidden_rows(_pad_gate_cols(w_hh.T)))    # (HP, 4*HP)
        if layer > 0:
            wih_rest.append(_pad_hidden_rows(_pad_gate_cols(w_ih.T)))
            b_rest.append(_pad_gate_cols((b_ih + b_hh)[None, :]))
    kp["whh_all"] = jnp.stack(whh_all)          # (4, HP, 4*HP)
    kp["wih_rest"] = jnp.stack(wih_rest)        # (3, HP, 4*HP)
    kp["b_rest"] = jnp.stack(b_rest)            # (3, 1, 4*HP)

    kp["fc_wT"] = _pad_hidden_rows(tp["fc_w"].T)   # (HP, 3)
    kp["fc_b"] = tp["fc_b"][None, :]               # (1, 3)
    return kp


# --------------------------------------------------------------------------
# Pure-JAX reference (PyTorch eval-mode semantics) for correctness checking
# --------------------------------------------------------------------------
@jax.jit
def reference_forward(tp, s, tags, chunks, caps, p1, p2, p3):
    s_emb = jnp.take(tp["embedding"], s, axis=0)
    t = jax.nn.sigmoid(tags @ tp["pos_w"].T + tp["pos_b"])
    c = chunks @ tp["ch_w"].T + tp["ch_b"]
    cp = caps @ tp["caps_w"].T + tp["caps_b"]
    p1e = jnp.take(tp["p1"], p1, axis=0)
    p2e = jnp.take(tp["p2"], p2, axis=0)
    p3e = jnp.take(tp["p3"], p3, axis=0)
    x = jnp.concatenate([s_emb, t, c, cp, p1e, p2e, p3e], axis=-1)  # (B,T,230)

    B = s.shape[0]
    h_seq = jnp.swapaxes(x, 0, 1)                                   # (T,B,F)
    for (w_ih, w_hh, b_ih, b_hh) in tp["lstm"]:
        def step(carry, x_t, w_ih=w_ih, w_hh=w_hh, b_ih=b_ih, b_hh=b_hh):
            h, cs = carry
            gates = x_t @ w_ih.T + b_ih + h @ w_hh.T + b_hh
            i, f, g, o = jnp.split(gates, 4, axis=-1)
            i = jax.nn.sigmoid(i); f = jax.nn.sigmoid(f)
            g = jnp.tanh(g); o = jax.nn.sigmoid(o)
            cn = f * cs + i * g
            hn = o * jnp.tanh(cn)
            return (hn, cn), hn
        init = (jnp.zeros((B, HIDDEN), jnp.float32),
                jnp.zeros((B, HIDDEN), jnp.float32))
        _, h_seq = lax.scan(step, init, h_seq)
    z = jnp.swapaxes(h_seq, 0, 1) @ tp["fc_w"].T + tp["fc_b"]
    return jax.nn.log_softmax(z, axis=-1)


if __name__ == "__main__":
    embedding_size, pos_tags, chunks_dim, caps_dim, char_emb_size = 100, 12, 8, 4, 30
    B, T = 2, 8

    key = jax.random.PRNGKey(0)
    kpk, k1, k2, k3, k4, k5, k6, k7 = jax.random.split(key, 8)
    tp = init_torch_params(kpk, embedding_size, pos_tags, chunks_dim, caps_dim,
                           char_emb_size)
    kp = prepare_kernel_params(tp)

    s = jax.random.randint(k1, (B, T), 0, embedding_size)
    tags = jax.random.normal(k2, (B, T, pos_tags), jnp.float32)
    chunks = jax.random.normal(k3, (B, T, chunks_dim), jnp.float32)
    caps = jax.random.normal(k4, (B, T, caps_dim), jnp.float32)
    p1 = jax.random.randint(k5, (B, T), 0, char_emb_size)
    p2 = jax.random.randint(k6, (B, T), 0, char_emb_size)
    p3 = jax.random.randint(k7, (B, T), 0, char_emb_size)

    out = jax.block_until_ready(net_forward(kp, s, tags, chunks, caps, p1, p2, p3))
    ref = jax.block_until_ready(reference_forward(tp, s, tags, chunks, caps, p1, p2, p3))

    assert out.shape == (B, T, NUM_CLASSES), out.shape
    assert bool(jnp.all(jnp.isfinite(out)))
    # log_softmax sanity: probabilities sum to 1 along the class axis
    assert bool(jnp.allclose(jnp.sum(jnp.exp(out), axis=-1), 1.0, atol=1e-4))
    # match PyTorch-equivalent reference
    err = float(jnp.max(jnp.abs(out - ref)))
    assert err < 2e-2, f"max abs diff vs reference: {err}"
    print("KERNEL_OK")
</pallas_src>

<mosaic_0001>
module attributes {stable_mosaic.version = 11 : i64} {
  func.func @input_proj_kernel(%arg0: i32, %arg1: memref<64x50xf32, #tpu.memory_space<vmem>>, %arg2: memref<64x12xf32, #tpu.memory_space<vmem>>, %arg3: memref<64x8xf32, #tpu.memory_space<vmem>>, %arg4: memref<64x4xf32, #tpu.memory_space<vmem>>, %arg5: memref<64x20xf32, #tpu.memory_space<vmem>>, %arg6: memref<64x20xf32, #tpu.memory_space<vmem>>, %arg7: memref<64x20xf32, #tpu.memory_space<vmem>>, %arg8: memref<12x50xf32, #tpu.memory_space<vmem>>, %arg9: memref<1x50xf32, #tpu.memory_space<vmem>>, %arg10: memref<50x512xf32, #tpu.memory_space<vmem>>, %arg11: memref<50x512xf32, #tpu.memory_space<vmem>>, %arg12: memref<8x512xf32, #tpu.memory_space<vmem>>, %arg13: memref<4x512xf32, #tpu.memory_space<vmem>>, %arg14: memref<20x512xf32, #tpu.memory_space<vmem>>, %arg15: memref<20x512xf32, #tpu.memory_space<vmem>>, %arg16: memref<20x512xf32, #tpu.memory_space<vmem>>, %arg17: memref<1x512xf32, #tpu.memory_space<vmem>>, %arg18: memref<64x512xf32, #tpu.memory_space<vmem>>) attributes {dimension_semantics = [#tpu.dimension_semantics<parallel>], iteration_bounds = array<i64: 1>, scalar_prefetch = 0 : i64, scratch_operands = 0 : i64, tpu.core_type = #tpu.core_type<tc>, window_params = [{transform_indices = @transform_0, window_bounds = array<i64: 64, 50>}, {transform_indices = @transform_1, window_bounds = array<i64: 64, 12>}, {transform_indices = @transform_2, window_bounds = array<i64: 64, 8>}, {transform_indices = @transform_3, window_bounds = array<i64: 64, 4>}, {transform_indices = @transform_4, window_bounds = array<i64: 64, 20>}, {transform_indices = @transform_5, window_bounds = array<i64: 64, 20>}, {transform_indices = @transform_6, window_bounds = array<i64: 64, 20>}, {pipeline_mode = #tpu.pipeline_mode<synchronous>, transform_indices = @transform_7, window_bounds = array<i64: 12, 50>}, {pipeline_mode = #tpu.pipeline_mode<synchronous>, transform_indices = @transform_8, window_bounds = array<i64: 1, 50>}, {pipeline_mode = #tpu.pipeline_mode<synchronous>, transform_indices = @transform_9, window_bounds = array<i64: 50, 512>}, {pipeline_mode = #tpu.pipeline_mode<synchronous>, transform_indices = @transform_10, window_bounds = array<i64: 50, 512>}, {pipeline_mode = #tpu.pipeline_mode<synchronous>, transform_indices = @transform_11, window_bounds = array<i64: 8, 512>}, {pipeline_mode = #tpu.pipeline_mode<synchronous>, transform_indices = @transform_12, window_bounds = array<i64: 4, 512>}, {pipeline_mode = #tpu.pipeline_mode<synchronous>, transform_indices = @transform_13, window_bounds = array<i64: 20, 512>}, {pipeline_mode = #tpu.pipeline_mode<synchronous>, transform_indices = @transform_14, window_bounds = array<i64: 20, 512>}, {pipeline_mode = #tpu.pipeline_mode<synchronous>, transform_indices = @transform_15, window_bounds = array<i64: 20, 512>}, {pipeline_mode = #tpu.pipeline_mode<synchronous>, transform_indices = @transform_16, window_bounds = array<i64: 1, 512>}, {transform_indices = @transform_17, window_bounds = array<i64: 64, 512>}]} {
    %c0 = arith.constant 0 : index
    %c0_0 = arith.constant 0 : index
    %0 = vector.load %arg2[%c0, %c0_0] : memref<64x12xf32, #tpu.memory_space<vmem>>, vector<64x12xf32>
    %c0_1 = arith.constant 0 : index
    %c0_2 = arith.constant 0 : index
    %1 = vector.load %arg8[%c0_1, %c0_2] : memref<12x50xf32, #tpu.memory_space<vmem>>, vector<12x50xf32>
    %cst = arith.constant dense<0.000000e+00> : vector<64x50xf32>
    %2 = tpu.matmul %0, %1, %cst {dimension_numbers = #tpu.dot_dimension_numbers<[1], [0], [0], [1], [0, 0, 1, 1], [], []>} : vector<64x12xf32>, vector<12x50xf32>, vector<64x50xf32> -> vector<64x50xf32>
    %c0_3 = arith.constant 0 : index
    %c0_4 = arith.constant 0 : index
    %3 = vector.load %arg9[%c0_3, %c0_4] : memref<1x50xf32, #tpu.memory_space<vmem>>, vector<1x50xf32>
    %4 = vector.broadcast %3 : vector<1x50xf32> to vector<64x50xf32>
    %5 = arith.addf %2, %4 : vector<64x50xf32>
    %6 = arith.negf %5 : vector<64x50xf32>
    %7 = math.exp %6 : vector<64x50xf32>
    %cst_5 = arith.constant 1.000000e+00 : f32
    %8 = vector.broadcast %cst_5 : f32 to vector<64x50xf32>
    %9 = arith.addf %8, %7 : vector<64x50xf32>
    %10 = arith.divf %8, %9 : vector<64x50xf32>
    %c0_6 = arith.constant 0 : index
    %c0_7 = arith.constant 0 : index
    %11 = vector.load %arg1[%c0_6, %c0_7] : memref<64x50xf32, #tpu.memory_space<vmem>>, vector<64x50xf32>
    %c0_8 = arith.constant 0 : index
    %c0_9 = arith.constant 0 : index
    %12 = vector.load %arg10[%c0_8, %c0_9] : memref<50x512xf32, #tpu.memory_space<vmem>>, vector<50x512xf32>
    %cst_10 = arith.constant dense<0.000000e+00> : vector<64x512xf32>
    %13 = tpu.matmul %11, %12, %cst_10 {dimension_numbers = #tpu.dot_dimension_numbers<[1], [0], [0], [1], [0, 0, 1, 1], [], []>} : vector<64x50xf32>, vector<50x512xf32>, vector<64x512xf32> -> vector<64x512xf32>
    %c0_11 = arith.constant 0 : index
    %c0_12 = arith.constant 0 : index
    %14 = vector.load %arg11[%c0_11, %c0_12] : memref<50x512xf32, #tpu.memory_space<vmem>>, vector<50x512xf32>
    %cst_13 = arith.constant dense<0.000000e+00> : vector<64x512xf32>
    %15 = tpu.matmul %10, %14, %cst_13 {dimension_numbers = #tpu.dot_dimension_numbers<[1], [0], [0], [1], [0, 0, 1, 1], [], []>} : vector<64x50xf32>, vector<50x512xf32>, vector<64x512xf32> -> vector<64x512xf32>
    %16 = arith.addf %13, %15 : vector<64x512xf32>
    %c0_14 = arith.constant 0 : index
    %c0_15 = arith.constant 0 : index
    %17 = vector.load %arg3[%c0_14, %c0_15] : memref<64x8xf32, #tpu.memory_space<vmem>>, vector<64x8xf32>
    %c0_16 = arith.constant 0 : index
    %c0_17 = arith.constant 0 : index
    %18 = vector.load %arg12[%c0_16, %c0_17] : memref<8x512xf32, #tpu.memory_space<vmem>>, vector<8x512xf32>
    %cst_18 = arith.constant dense<0.000000e+00> : vector<64x512xf32>
    %19 = tpu.matmul %17, %18, %cst_18 {dimension_numbers = #tpu.dot_dimension_numbers<[1], [0], [0], [1], [0, 0, 1, 1], [], []>} : vector<64x8xf32>, vector<8x512xf32>, vector<64x512xf32> -> vector<64x512xf32>
    %20 = arith.addf %16, %19 : vector<64x512xf32>
    %c0_19 = arith.constant 0 : index
    %c0_20 = arith.constant 0 : index
    %21 = vector.load %arg4[%c0_19, %c0_20] : memref<64x4xf32, #tpu.memory_space<vmem>>, vector<64x4xf32>
    %c0_21 = arith.constant 0 : index
    %c0_22 = arith.constant 0 : index
    %22 = vector.load %arg13[%c0_21, %c0_22] : memref<4x512xf32, #tpu.memory_space<vmem>>, vector<4x512xf32>
    %cst_23 = arith.constant dense<0.000000e+00> : vector<64x512xf32>
    %23 = tpu.matmul %21, %22, %cst_23 {dimension_numbers = #tpu.dot_dimension_numbers<[1], [0], [0], [1], [0, 0, 1, 1], [], []>} : vector<64x4xf32>, vector<4x512xf32>, vector<64x512xf32> -> vector<64x512xf32>
    %24 = arith.addf %20, %23 : vector<64x512xf32>
    %c0_24 = arith.constant 0 : index
    %c0_25 = arith.constant 0 : index
    %25 = vector.load %arg5[%c0_24, %c0_25] : memref<64x20xf32, #tpu.memory_space<vmem>>, vector<64x20xf32>
    %c0_26 = arith.constant 0 : index
    %c0_27 = arith.constant 0 : index
    %26 = vector.load %arg14[%c0_26, %c0_27] : memref<20x512xf32, #tpu.memory_space<vmem>>, vector<20x512xf32>
    %cst_28 = arith.constant dense<0.000000e+00> : vector<64x512xf32>
    %27 = tpu.matmul %25, %26, %cst_28 {dimension_numbers = #tpu.dot_dimension_numbers<[1], [0], [0], [1], [0, 0, 1, 1], [], []>} : vector<64x20xf32>, vector<20x512xf32>, vector<64x512xf32> -> vector<64x512xf32>
    %28 = arith.addf %24, %27 : vector<64x512xf32>
    %c0_29 = arith.constant 0 : index
    %c0_30 = arith.constant 0 : index
    %29 = vector.load %arg6[%c0_29, %c0_30] : memref<64x20xf32, #tpu.memory_space<vmem>>, vector<64x20xf32>
    %c0_31 = arith.constant 0 : index
    %c0_32 = arith.constant 0 : index
    %30 = vector.load %arg15[%c0_31, %c0_32] : memref<20x512xf32, #tpu.memory_space<vmem>>, vector<20x512xf32>
    %cst_33 = arith.constant dense<0.000000e+00> : vector<64x512xf32>
    %31 = tpu.matmul %29, %30, %cst_33 {dimension_numbers = #tpu.dot_dimension_numbers<[1], [0], [0], [1], [0, 0, 1, 1], [], []>} : vector<64x20xf32>, vector<20x512xf32>, vector<64x512xf32> -> vector<64x512xf32>
    %32 = arith.addf %28, %31 : vector<64x512xf32>
    %c0_34 = arith.constant 0 : index
    %c0_35 = arith.constant 0 : index
    %33 = vector.load %arg7[%c0_34, %c0_35] : memref<64x20xf32, #tpu.memory_space<vmem>>, vector<64x20xf32>
    %c0_36 = arith.constant 0 : index
    %c0_37 = arith.constant 0 : index
    %34 = vector.load %arg16[%c0_36, %c0_37] : memref<20x512xf32, #tpu.memory_space<vmem>>, vector<20x512xf32>
    %cst_38 = arith.constant dense<0.000000e+00> : vector<64x512xf32>
    %35 = tpu.matmul %33, %34, %cst_38 {dimension_numbers = #tpu.dot_dimension_numbers<[1], [0], [0], [1], [0, 0, 1, 1], [], []>} : vector<64x20xf32>, vector<20x512xf32>, vector<64x512xf32> -> vector<64x512xf32>
    %36 = arith.addf %32, %35 : vector<64x512xf32>
    %c0_39 = arith.constant 0 : index
    %c0_40 = arith.constant 0 : index
    %37 = vector.load %arg17[%c0_39, %c0_40] : memref<1x512xf32, #tpu.memory_space<vmem>>, vector<1x512xf32>
    %38 = vector.broadcast %37 : vector<1x512xf32> to vector<64x512xf32>
    %39 = arith.addf %36, %38 : vector<64x512xf32>
    %c0_41 = arith.constant 0 : index
    %c0_42 = arith.constant 0 : index
    %40 = vector.load %arg18[%c0_41, %c0_42] : memref<64x512xf32, #tpu.memory_space<vmem>>, vector<64x512xf32>
    tpu.vector_store %arg18[%c0_41, %c0_42], %39 {strides = array<i32>} : memref<64x512xf32, #tpu.memory_space<vmem>>, vector<64x512xf32>,
    return
  }
  func.func @transform_0(%arg0: i32) -> (i32, i32) {
    %c0_i32 = arith.constant 0 : i32
    %c0_i32_0 = arith.constant 0 : i32
    return %arg0, %c0_i32 : i32, i32
  }
  func.func @transform_1(%arg0: i32) -> (i32, i32) {
    %c0_i32 = arith.constant 0 : i32
    %c0_i32_0 = arith.constant 0 : i32
    return %arg0, %c0_i32 : i32, i32
  }
  func.func @transform_2(%arg0: i32) -> (i32, i32) {
    %c0_i32 = arith.constant 0 : i32
    %c0_i32_0 = arith.constant 0 : i32
    return %arg0, %c0_i32 : i32, i32
  }
  func.func @transform_3(%arg0: i32) -> (i32, i32) {
    %c0_i32 = arith.constant 0 : i32
    %c0_i32_0 = arith.constant 0 : i32
    return %arg0, %c0_i32 : i32, i32
  }
  func.func @transform_4(%arg0: i32) -> (i32, i32) {
    %c0_i32 = arith.constant 0 : i32
    %c0_i32_0 = arith.constant 0 : i32
    return %arg0, %c0_i32 : i32, i32
  }
  func.func @transform_5(%arg0: i32) -> (i32, i32) {
    %c0_i32 = arith.constant 0 : i32
    %c0_i32_0 = arith.constant 0 : i32
    return %arg0, %c0_i32 : i32, i32
  }
  func.func @transform_6(%arg0: i32) -> (i32, i32) {
    %c0_i32 = arith.constant 0 : i32
    %c0_i32_0 = arith.constant 0 : i32
    return %arg0, %c0_i32 : i32, i32
  }
  func.func @transform_7(%arg0: i32) -> (i32, i32) {
    %c0_i32 = arith.constant 0 : i32
    %c0_i32_0 = arith.constant 0 : i32
    %c0_i32_1 = arith.constant 0 : i32
    return %c0_i32, %c0_i32_0 : i32, i32
  }
  func.func @transform_8(%arg0: i32) -> (i32, i32) {
    %c0_i32 = arith.constant 0 : i32
    %c0_i32_0 = arith.constant 0 : i32
    %c0_i32_1 = arith.constant 0 : i32
    return %c0_i32, %c0_i32_0 : i32, i32
  }
  func.func @transform_9(%arg0: i32) -> (i32, i32) {
    %c0_i32 = arith.constant 0 : i32
    %c0_i32_0 = arith.constant 0 : i32
    %c0_i32_1 = arith.constant 0 : i32
    return %c0_i32, %c0_i32_0 : i32, i32
  }
  func.func @transform_10(%arg0: i32) -> (i32, i32) {
    %c0_i32 = arith.constant 0 : i32
    %c0_i32_0 = arith.constant 0 : i32
    %c0_i32_1 = arith.constant 0 : i32
    return %c0_i32, %c0_i32_0 : i32, i32
  }
  func.func @transform_11(%arg0: i32) -> (i32, i32) {
    %c0_i32 = arith.constant 0 : i32
    %c0_i32_0 = arith.constant 0 : i32
    %c0_i32_1 = arith.constant 0 : i32
    return %c0_i32, %c0_i32_0 : i32, i32
  }
  func.func @transform_12(%arg0: i32) -> (i32, i32) {
    %c0_i32 = arith.constant 0 : i32
    %c0_i32_0 = arith.constant 0 : i32
    %c0_i32_1 = arith.constant 0 : i32
    return %c0_i32, %c0_i32_0 : i32, i32
  }
  func.func @transform_13(%arg0: i32) -> (i32, i32) {
    %c0_i32 = arith.constant 0 : i32
    %c0_i32_0 = arith.constant 0 : i32
    %c0_i32_1 = arith.constant 0 : i32
    return %c0_i32, %c0_i32_0 : i32, i32
  }
  func.func @transform_14(%arg0: i32) -> (i32, i32) {
    %c0_i32 = arith.constant 0 : i32
    %c0_i32_0 = arith.constant 0 : i32
    %c0_i32_1 = arith.constant 0 : i32
    return %c0_i32, %c0_i32_0 : i32, i32
  }
  func.func @transform_15(%arg0: i32) -> (i32, i32) {
    %c0_i32 = arith.constant 0 : i32
    %c0_i32_0 = arith.constant 0 : i32
    %c0_i32_1 = arith.constant 0 : i32
    return %c0_i32, %c0_i32_0 : i32, i32
  }
  func.func @transform_16(%arg0: i32) -> (i32, i32) {
    %c0_i32 = arith.constant 0 : i32
    %c0_i32_0 = arith.constant 0 : i32
    %c0_i32_1 = arith.constant 0 : i32
    return %c0_i32, %c0_i32_0 : i32, i32
  }
  func.func @transform_17(%arg0: i32) -> (i32, i32) {
    %c0_i32 = arith.constant 0 : i32
    %c0_i32_0 = arith.constant 0 : i32
    return %arg0, %c0_i32 : i32, i32
  }
}

module attributes {stable_mosaic.version = 11 : i64} {
  func.func @lstm_stack_kernel(%arg0: memref<8x8x512xf32, #tpu.memory_space<vmem>>, %arg1: memref<3x128x512xf32, #tpu.memory_space<vmem>>, %arg2: memref<4x128x512xf32, #tpu.memory_space<vmem>>, %arg3: memref<3x1x512xf32, #tpu.memory_space<vmem>>, %arg4: memref<128x3xf32, #tpu.memory_space<vmem>>, %arg5: memref<1x3xf32, #tpu.memory_space<vmem>>, %arg6: memref<64x3xf32, #tpu.memory_space<vmem>>, %arg7: memref<8x8x128xf32, #tpu.memory_space<vmem>>, %arg8: memref<8x8x512xf32, #tpu.memory_space<vmem>>) attributes {dimension_semantics = [], scalar_prefetch = 0 : i64, scratch_operands = 2 : i64, tpu.core_type = #tpu.core_type<tc>} {
    %cst = arith.constant 0.000000e+00 : f32
    %0 = vector.broadcast %cst : f32 to vector<8x128xf32>
    %c0_i32 = arith.constant 0 : i32
    %1 = arith.index_cast %c0_i32 : i32 to index
    %c0 = arith.constant 0 : index
    %c0_0 = arith.constant 0 : index
    %2 = vector.load %arg0[%1, %c0, %c0_0] : memref<8x8x512xf32, #tpu.memory_space<vmem>>, vector<1x8x512xf32>
    %3 = vector.shape_cast %2 : vector<1x8x512xf32> to vector<8x512xf32>
    %c0_1 = arith.constant 0 : index
    %c0_2 = arith.constant 0 : index
    %c0_3 = arith.constant 0 : index
    %4 = vector.load %arg2[%c0_1, %c0_2, %c0_3] : memref<4x128x512xf32, #tpu.memory_space<vmem>>, vector<1x128x512xf32>
    %5 = vector.shape_cast %4 : vector<1x128x512xf32> to vector<128x512xf32>
    %cst_4 = arith.constant dense<0.000000e+00> : vector<8x512xf32>
    %6 = tpu.matmul %0, %5, %cst_4 {dimension_numbers = #tpu.dot_dimension_numbers<[1], [0], [0], [1], [0, 0, 1, 1], [], []>} : vector<8x128xf32>, vector<128x512xf32>, vector<8x512xf32> -> vector<8x512xf32>
    %7 = arith.addf %3, %6 : vector<8x512xf32>
    %8 = vector.extract_strided_slice %7 {offsets = [0, 0], sizes = [8, 128], strides = [1, 1]} : vector<8x512xf32> to vector<8x128xf32>
    %9 = arith.negf %8 : vector<8x128xf32>
    %10 = math.exp %9 : vector<8x128xf32>
    %cst_5 = arith.constant 1.000000e+00 : f32
    %11 = vector.broadcast %cst_5 : f32 to vector<8x128xf32>
    %12 = arith.addf %11, %10 : vector<8x128xf32>
    %13 = arith.divf %11, %12 : vector<8x128xf32>
    %14 = vector.extract_strided_slice %7 {offsets = [0, 128], sizes = [8, 128], strides = [1, 1]} : vector<8x512xf32> to vector<8x128xf32>
    %15 = arith.negf %14 : vector<8x128xf32>
    %16 = math.exp %15 : vector<8x128xf32>
    %cst_6 = arith.constant 1.000000e+00 : f32
    %17 = vector.broadcast %cst_6 : f32 to vector<8x128xf32>
    %18 = arith.addf %17, %16 : vector<8x128xf32>
    %19 = arith.divf %17, %18 : vector<8x128xf32>
    %20 = vector.extract_strided_slice %7 {offsets = [0, 256], sizes = [8, 128], strides = [1, 1]} : vector<8x512xf32> to vector<8x128xf32>
    %21 = math.tanh %20 : vector<8x128xf32>
    %22 = vector.extract_strided_slice %7 {offsets = [0, 384], sizes = [8, 128], strides = [1, 1]} : vector<8x512xf32> to vector<8x128xf32>
    %23 = arith.negf %22 : vector<8x128xf32>
    %24 = math.exp %23 : vector<8x128xf32>
    %cst_7 = arith.constant 1.000000e+00 : f32
    %25 = vector.broadcast %cst_7 : f32 to vector<8x128xf32>
    %26 = arith.addf %25, %24 : vector<8x128xf32>
    %27 = arith.divf %25, %26 : vector<8x128xf32>
    %28 = arith.mulf %19, %0 : vector<8x128xf32>
    %29 = arith.mulf %13, %21 : vector<8x128xf32>
    %30 = arith.addf %28, %29 : vector<8x128xf32>
    %31 = math.tanh %30 : vector<8x128xf32>
    %32 = arith.mulf %27, %31 : vector<8x128xf32>
    %33 = arith.index_cast %c0_i32 : i32 to index
    %c0_8 = arith.constant 0 : index
    %c0_9 = arith.constant 0 : index
    %34 = vector.load %arg7[%33, %c0_8, %c0_9] : memref<8x8x128xf32, #tpu.memory_space<vmem>>, vector<1x8x128xf32>
    %35 = vector.shape_cast %34 : vector<1x8x128xf32> to vector<8x128xf32>
    %36 = vector.shape_cast %32 : vector<8x128xf32> to vector<1x8x128xf32>
    tpu.vector_store %arg7[%33, %c0_8, %c0_9], %36 {strides = array<i32>} : memref<8x8x128xf32, #tpu.memory_space<vmem>>, vector<1x8x128xf32>,
    %c1_i32 = arith.constant 1 : i32
    %37 = arith.index_cast %c1_i32 : i32 to index
    %c0_10 = arith.constant 0 : index
    %c0_11 = arith.constant 0 : index
    %38 = vector.load %arg0[%37, %c0_10, %c0_11] : memref<8x8x512xf32, #tpu.memory_space<vmem>>, vector<1x8x512xf32>
    %39 = vector.shape_cast %38 : vector<1x8x512xf32> to vector<8x512xf32>
    %c0_12 = arith.constant 0 : index
    %c0_13 = arith.constant 0 : index
    %c0_14 = arith.constant 0 : index
    %40 = vector.load %arg2[%c0_12, %c0_13, %c0_14] : memref<4x128x512xf32, #tpu.memory_space<vmem>>, vector<1x128x512xf32>
    %41 = vector.shape_cast %40 : vector<1x128x512xf32> to vector<128x512xf32>
    %cst_15 = arith.constant dense<0.000000e+00> : vector<8x512xf32>
    %42 = tpu.matmul %32, %41, %cst_15 {dimension_numbers = #tpu.dot_dimension_numbers<[1], [0], [0], [1], [0, 0, 1, 1], [], []>} : vector<8x128xf32>, vector<128x512xf32>, vector<8x512xf32> -> vector<8x512xf32>
    %43 = arith.addf %39, %42 : vector<8x512xf32>
    %44 = vector.extract_strided_slice %43 {offsets = [0, 0], sizes = [8, 128], strides = [1, 1]} : vector<8x512xf32> to vector<8x128xf32>
    %45 = arith.negf %44 : vector<8x128xf32>
    %46 = math.exp %45 : vector<8x128xf32>
    %cst_16 = arith.constant 1.000000e+00 : f32
    %47 = vector.broadcast %cst_16 : f32 to vector<8x128xf32>
    %48 = arith.addf %47, %46 : vector<8x128xf32>
    %49 = arith.divf %47, %48 : vector<8x128xf32>
    %50 = vector.extract_strided_slice %43 {offsets = [0, 128], sizes = [8, 128], strides = [1, 1]} : vector<8x512xf32> to vector<8x128xf32>
    %51 = arith.negf %50 : vector<8x128xf32>
    %52 = math.exp %51 : vector<8x128xf32>
    %cst_17 = arith.constant 1.000000e+00 : f32
    %53 = vector.broadcast %cst_17 : f32 to vector<8x128xf32>
    %54 = arith.addf %53, %52 : vector<8x128xf32>
    %55 = arith.divf %53, %54 : vector<8x128xf32>
    %56 = vector.extract_strided_slice %43 {offsets = [0, 256], sizes = [8, 128], strides = [1, 1]} : vector<8x512xf32> to vector<8x128xf32>
    %57 = math.tanh %56 : vector<8x128xf32>
    %58 = vector.extract_strided_slice %43 {offsets = [0, 384], sizes = [8, 128], strides = [1, 1]} : vector<8x512xf32> to vector<8x128xf32>
    %59 = arith.negf %58 : vector<8x128xf32>
    %60 = math.exp %59 : vector<8x128xf32>
    %cst_18 = arith.constant 1.000000e+00 : f32
    %61 = vector.broadcast %cst_18 : f32 to vector<8x128xf32>
    %62 = arith.addf %61, %60 : vector<8x128xf32>
    %63 = arith.divf %61, %62 : vector<8x128xf32>
    %64 = arith.mulf %55, %30 : vector<8x128xf32>
    %65 = arith.mulf %49, %57 : vector<8x128xf32>
    %66 = arith.addf %64, %65 : vector<8x128xf32>
    %67 = math.tanh %66 : vector<8x128xf32>
    %68 = arith.mulf %63, %67 : vector<8x128xf32>
    %69 = arith.index_cast %c1_i32 : i32 to index
    %c0_19 = arith.constant 0 : index
    %c0_20 = arith.constant 0 : index
    %70 = vector.load %arg7[%69, %c0_19, %c0_20] : memref<8x8x128xf32, #tpu.memory_space<vmem>>, vector<1x8x128xf32>
    %71 = vector.shape_cast %70 : vector<1x8x128xf32> to vector<8x128xf32>
    %72 = vector.shape_cast %68 : vector<8x128xf32> to vector<1x8x128xf32>
    tpu.vector_store %arg7[%69, %c0_19, %c0_20], %72 {strides = array<i32>} : memref<8x8x128xf32, #tpu.memory_space<vmem>>, vector<1x8x128xf32>,
    %c2_i32 = arith.constant 2 : i32
    %73 = arith.index_cast %c2_i32 : i32 to index
    %c0_21 = arith.constant 0 : index
    %c0_22 = arith.constant 0 : index
    %74 = vector.load %arg0[%73, %c0_21, %c0_22] : memref<8x8x512xf32, #tpu.memory_space<vmem>>, vector<1x8x512xf32>
    %75 = vector.shape_cast %74 : vector<1x8x512xf32> to vector<8x512xf32>
    %c0_23 = arith.constant 0 : index
    %c0_24 = arith.constant 0 : index
    %c0_25 = arith.constant 0 : index
    %76 = vector.load %arg2[%c0_23, %c0_24, %c0_25] : memref<4x128x512xf32, #tpu.memory_space<vmem>>, vector<1x128x512xf32>
    %77 = vector.shape_cast %76 : vector<1x128x512xf32> to vector<128x512xf32>
    %cst_26 = arith.constant dense<0.000000e+00> : vector<8x512xf32>
    %78 = tpu.matmul %68, %77, %cst_26 {dimension_numbers = #tpu.dot_dimension_numbers<[1], [0], [0], [1], [0, 0, 1, 1], [], []>} : vector<8x128xf32>, vector<128x512xf32>, vector<8x512xf32> -> vector<8x512xf32>
    %79 = arith.addf %75, %78 : vector<8x512xf32>
    %80 = vector.extract_strided_slice %79 {offsets = [0, 0], sizes = [8, 128], strides = [1, 1]} : vector<8x512xf32> to vector<8x128xf32>
    %81 = arith.negf %80 : vector<8x128xf32>
    %82 = math.exp %81 : vector<8x128xf32>
    %cst_27 = arith.constant 1.000000e+00 : f32
    %83 = vector.broadcast %cst_27 : f32 to vector<8x128xf32>
    %84 = arith.addf %83, %82 : vector<8x128xf32>
    %85 = arith.divf %83, %84 : vector<8x128xf32>
    %86 = vector.extract_strided_slice %79 {offsets = [0, 128], sizes = [8, 128], strides = [1, 1]} : vector<8x512xf32> to vector<8x128xf32>
    %87 = arith.negf %86 : vector<8x128xf32>
    %88 = math.exp %87 : vector<8x128xf32>
    %cst_28 = arith.constant 1.000000e+00 : f32
    %89 = vector.broadcast %cst_28 : f32 to vector<8x128xf32>
    %90 = arith.addf %89, %88 : vector<8x128xf32>
    %91 = arith.divf %89, %90 : vector<8x128xf32>
    %92 = vector.extract_strided_slice %79 {offsets = [0, 256], sizes = [8, 128], strides = [1, 1]} : vector<8x512xf32> to vector<8x128xf32>
    %93 = math.tanh %92 : vector<8x128xf32>
    %94 = vector.extract_strided_slice %79 {offsets = [0, 384], sizes = [8, 128], strides = [1, 1]} : vector<8x512xf32> to vector<8x128xf32>
    %95 = arith.negf %94 : vector<8x128xf32>
    %96 = math.exp %95 : vector<8x128xf32>
    %cst_29 = arith.constant 1.000000e+00 : f32
    %97 = vector.broadcast %cst_29 : f32 to vector<8x128xf32>
    %98 = arith.addf %97, %96 : vector<8x128xf32>
    %99 = arith.divf %97, %98 : vector<8x128xf32>
    %100 = arith.mulf %91, %66 : vector<8x128xf32>
    %101 = arith.mulf %85, %93 : vector<8x128xf32>
    %102 = arith.addf %100, %101 : vector<8x128xf32>
    %103 = math.tanh %102 : vector<8x128xf32>
    %104 = arith.mulf %99, %103 : vector<8x128xf32>
    %105 = arith.index_cast %c2_i32 : i32 to index
    %c0_30 = arith.constant 0 : index
    %c0_31 = arith.constant 0 : index
    %106 = vector.load %arg7[%105, %c0_30, %c0_31] : memref<8x8x128xf32, #tpu.memory_space<vmem>>, vector<1x8x128xf32>
    %107 = vector.shape_cast %106 : vector<1x8x128xf32> to vector<8x128xf32>
    %108 = vector.shape_cast %104 : vector<8x128xf32> to vector<1x8x128xf32>
    tpu.vector_store %arg7[%105, %c0_30, %c0_31], %108 {strides = array<i32>} : memref<8x8x128xf32, #tpu.memory_space<vmem>>, vector<1x8x128xf32>,
    %c3_i32 = arith.constant 3 : i32
    %109 = arith.index_cast %c3_i32 : i32 to index
    %c0_32 = arith.constant 0 : index
    %c0_33 = arith.constant 0 : index
    %110 = vector.load %arg0[%109, %c0_32, %c0_33] : memref<8x8x512xf32, #tpu.memory_space<vmem>>, vector<1x8x512xf32>
    %111 = vector.shape_cast %110 : vector<1x8x512xf32> to vector<8x512xf32>
    %c0_34 = arith.constant 0 : index
    %c0_35 = arith.constant 0 : index
    %c0_36 = arith.constant 0 : index
    %112 = vector.load %arg2[%c0_34, %c0_35, %c0_36] : memref<4x128x512xf32, #tpu.memory_space<vmem>>, vector<1x128x512xf32>
    %113 = vector.shape_cast %112 : vector<1x128x512xf32> to vector<128x512xf32>
    %cst_37 = arith.constant dense<0.000000e+00> : vector<8x512xf32>
    %114 = tpu.matmul %104, %113, %cst_37 {dimension_numbers = #tpu.dot_dimension_numbers<[1], [0], [0], [1], [0, 0, 1, 1], [], []>} : vector<8x128xf32>, vector<128x512xf32>, vector<8x512xf32> -> vector<8x512xf32>
    %115 = arith.addf %111, %114 : vector<8x512xf32>
    %116 = vector.extract_strided_slice %115 {offsets = [0, 0], sizes = [8, 128], strides = [1, 1]} : vector<8x512xf32> to vector<8x128xf32>
    %117 = arith.negf %116 : vector<8x128xf32>
    %118 = math.exp %117 : vector<8x128xf32>
    %cst_38 = arith.constant 1.000000e+00 : f32
    %119 = vector.broadcast %cst_38 : f32 to vector<8x128xf32>
    %120 = arith.addf %119, %118 : vector<8x128xf32>
    %121 = arith.divf %119, %120 : vector<8x128xf32>
    %122 = vector.extract_strided_slice %115 {offsets = [0, 128], sizes = [8, 128], strides = [1, 1]} : vector<8x512xf32> to vector<8x128xf32>
    %123 = arith.negf %122 : vector<8x128xf32>
    %124 = math.exp %123 : vector<8x128xf32>
    %cst_39 = arith.constant 1.000000e+00 : f32
    %125 = vector.broadcast %cst_39 : f32 to vector<8x128xf32>
    %126 = arith.addf %125, %124 : vector<8x128xf32>
    %127 = arith.divf %125, %126 : vector<8x128xf32>
    %128 = vector.extract_strided_slice %115 {offsets = [0, 256], sizes = [8, 128], strides = [1, 1]} : vector<8x512xf32> to vector<8x128xf32>
    %129 = math.tanh %128 : vector<8x128xf32>
    %130 = vector.extract_strided_slice %115 {offsets = [0, 384], sizes = [8, 128], strides = [1, 1]} : vector<8x512xf32> to vector<8x128xf32>
    %131 = arith.negf %130 : vector<8x128xf32>
    %132 = math.exp %131 : vector<8x128xf32>
    %cst_40 = arith.constant 1.000000e+00 : f32
    %133 = vector.broadcast %cst_40 : f32 to vector<8x128xf32>
    %134 = arith.addf %133, %132 : vector<8x128xf32>
    %135 = arith.divf %133, %134 : vector<8x128xf32>
    %136 = arith.mulf %127, %102 : vector<8x128xf32>
    %137 = arith.mulf %121, %129 : vector<8x128xf32>
    %138 = arith.addf %136, %137 : vector<8x128xf32>
    %139 = math.tanh %138 : vector<8x128xf32>
    %140 = arith.mulf %135, %139 : vector<8x128xf32>
    %141 = arith.index_cast %c3_i32 : i32 to index
    %c0_41 = arith.constant 0 : index
    %c0_42 = arith.constant 0 : index
    %142 = vector.load %arg7[%141, %c0_41, %c0_42] : memref<8x8x128xf32, #tpu.memory_space<vmem>>, vector<1x8x128xf32>
    %143 = vector.shape_cast %142 : vector<1x8x128xf32> to vector<8x128xf32>
    %144 = vector.shape_cast %140 : vector<8x128xf32> to vector<1x8x128xf32>
    tpu.vector_store %arg7[%141, %c0_41, %c0_42], %144 {strides = array<i32>} : memref<8x8x128xf32, #tpu.memory_space<vmem>>, vector<1x8x128xf32>,
    %c4_i32 = arith.constant 4 : i32
    %145 = arith.index_cast %c4_i32 : i32 to index
    %c0_43 = arith.constant 0 : index
    %c0_44 = arith.constant 0 : index
    %146 = vector.load %arg0[%145, %c0_43, %c0_44] : memref<8x8x512xf32, #tpu.memory_space<vmem>>, vector<1x8x512xf32>
    %147 = vector.shape_cast %146 : vector<1x8x512xf32> to vector<8x512xf32>
    %c0_45 = arith.constant 0 : index
    %c0_46 = arith.constant 0 : index
    %c0_47 = arith.constant 0 : index
    %148 = vector.load %arg2[%c0_45, %c0_46, %c0_47] : memref<4x128x512xf32, #tpu.memory_space<vmem>>, vector<1x128x512xf32>
    %149 = vector.shape_cast %148 : vector<1x128x512xf32> to vector<128x512xf32>
    %cst_48 = arith.constant dense<0.000000e+00> : vector<8x512xf32>
    %150 = tpu.matmul %140, %149, %cst_48 {dimension_numbers = #tpu.dot_dimension_numbers<[1], [0], [0], [1], [0, 0, 1, 1], [], []>} : vector<8x128xf32>, vector<128x512xf32>, vector<8x512xf32> -> vector<8x512xf32>
    %151 = arith.addf %147, %150 : vector<8x512xf32>
    %152 = vector.extract_strided_slice %151 {offsets = [0, 0], sizes = [8, 128], strides = [1, 1]} : vector<8x512xf32> to vector<8x128xf32>
    %153 = arith.negf %152 : vector<8x128xf32>
    %154 = math.exp %153 : vector<8x128xf32>
    %cst_49 = arith.constant 1.000000e+00 : f32
    %155 = vector.broadcast %cst_49 : f32 to vector<8x128xf32>
    %156 = arith.addf %155, %154 : vector<8x128xf32>
    %157 = arith.divf %155, %156 : vector<8x128xf32>
    %158 = vector.extract_strided_slice %151 {offsets = [0, 128], sizes = [8, 128], strides = [1, 1]} : vector<8x512xf32> to vector<8x128xf32>
    %159 = arith.negf %158 : vector<8x128xf32>
    %160 = math.exp %159 : vector<8x128xf32>
    %cst_50 = arith.constant 1.000000e+00 : f32
    %161 = vector.broadcast %cst_50 : f32 to vector<8x128xf32>
    %162 = arith.addf %161, %160 : vector<8x128xf32>
    %163 = arith.divf %161, %162 : vector<8x128xf32>
    %164 = vector.extract_strided_slice %151 {offsets = [0, 256], sizes = [8, 128], strides = [1, 1]} : vector<8x512xf32> to vector<8x128xf32>
    %165 = math.tanh %164 : vector<8x128xf32>
    %166 = vector.extract_strided_slice %151 {offsets = [0, 384], sizes = [8, 128], strides = [1, 1]} : vector<8x512xf32> to vector<8x128xf32>
    %167 = arith.negf %166 : vector<8x128xf32>
    %168 = math.exp %167 : vector<8x128xf32>
    %cst_51 = arith.constant 1.000000e+00 : f32
    %169 = vector.broadcast %cst_51 : f32 to vector<8x128xf32>
    %170 = arith.addf %169, %168 : vector<8x128xf32>
    %171 = arith.divf %169, %170 : vector<8x128xf32>
    %172 = arith.mulf %163, %138 : vector<8x128xf32>
    %173 = arith.mulf %157, %165 : vector<8x128xf32>
    %174 = arith.addf %172, %173 : vector<8x128xf32>
    %175 = math.tanh %174 : vector<8x128xf32>
    %176 = arith.mulf %171, %175 : vector<8x128xf32>
    %177 = arith.index_cast %c4_i32 : i32 to index
    %c0_52 = arith.constant 0 : index
    %c0_53 = arith.constant 0 : index
    %178 = vector.load %arg7[%177, %c0_52, %c0_53] : memref<8x8x128xf32, #tpu.memory_space<vmem>>, vector<1x8x128xf32>
    %179 = vector.shape_cast %178 : vector<1x8x128xf32> to vector<8x128xf32>
    %180 = vector.shape_cast %176 : vector<8x128xf32> to vector<1x8x128xf32>
    tpu.vector_store %arg7[%177, %c0_52, %c0_53], %180 {strides = array<i32>} : memref<8x8x128xf32, #tpu.memory_space<vmem>>, vector<1x8x128xf32>,
    %c5_i32 = arith.constant 5 : i32
    %181 = arith.index_cast %c5_i32 : i32 to index
    %c0_54 = arith.constant 0 : index
    %c0_55 = arith.constant 0 : index
    %182 = vector.load %arg0[%181, %c0_54, %c0_55] : memref<8x8x512xf32, #tpu.memory_space<vmem>>, vector<1x8x512xf32>
    %183 = vector.shape_cast %182 : vector<1x8x512xf32> to vector<8x512xf32>
    %c0_56 = arith.constant 0 : index
    %c0_57 = arith.constant 0 : index
    %c0_58 = arith.constant 0 : index
    %184 = vector.load %arg2[%c0_56, %c0_57, %c0_58] : memref<4x128x512xf32, #tpu.memory_space<vmem>>, vector<1x128x512xf32>
    %185 = vector.shape_cast %184 : vector<1x128x512xf32> to vector<128x512xf32>
    %cst_59 = arith.constant dense<0.000000e+00> : vector<8x512xf32>
    %186 = tpu.matmul %176, %185, %cst_59 {dimension_numbers = #tpu.dot_dimension_numbers<[1], [0], [0], [1], [0, 0, 1, 1], [], []>} : vector<8x128xf32>, vector<128x512xf32>, vector<8x512xf32> -> vector<8x512xf32>
    %187 = arith.addf %183, %186 : vector<8x512xf32>
    %188 = vector.extract_strided_slice %187 {offsets = [0, 0], sizes = [8, 128], strides = [1, 1]} : vector<8x512xf32> to vector<8x128xf32>
    %189 = arith.negf %188 : vector<8x128xf32>
    %190 = math.exp %189 : vector<8x128xf32>
    %cst_60 = arith.constant 1.000000e+00 : f32
    %191 = vector.broadcast %cst_60 : f32 to vector<8x128xf32>
    %192 = arith.addf %191, %190 : vector<8x128xf32>
    %193 = arith.divf %191, %192 : vector<8x128xf32>
    %194 = vector.extract_strided_slice %187 {offsets = [0, 128], sizes = [8, 128], strides = [1, 1]} : vector<8x512xf32> to vector<8x128xf32>
    %195 = arith.negf %194 : vector<8x128xf32>
    %196 = math.exp %195 : vector<8x128xf32>
    %cst_61 = arith.constant 1.000000e+00 : f32
    %197 = vector.broadcast %cst_61 : f32 to vector<8x128xf32>
    %198 = arith.addf %197, %196 : vector<8x128xf32>
    %199 = arith.divf %197, %198 : vector<8x128xf32>
    %200 = vector.extract_strided_slice %187 {offsets = [0, 256], sizes = [8, 128], strides = [1, 1]} : vector<8x512xf32> to vector<8x128xf32>
    %201 = math.tanh %200 : vector<8x128xf32>
    %202 = vector.extract_strided_slice %187 {offsets = [0, 384], sizes = [8, 128], strides = [1, 1]} : vector<8x512xf32> to vector<8x128xf32>
    %203 = arith.negf %202 : vector<8x128xf32>
    %204 = math.exp %203 : vector<8x128xf32>
    %cst_62 = arith.constant 1.000000e+00 : f32
    %205 = vector.broadcast %cst_62 : f32 to vector<8x128xf32>
    %206 = arith.addf %205, %204 : vector<8x128xf32>
    %207 = arith.divf %205, %206 : vector<8x128xf32>
    %208 = arith.mulf %199, %174 : vector<8x128xf32>
    %209 = arith.mulf %193, %201 : vector<8x128xf32>
    %210 = arith.addf %208, %209 : vector<8x128xf32>
    %211 = math.tanh %210 : vector<8x128xf32>
    %212 = arith.mulf %207, %211 : vector<8x128xf32>
    %213 = arith.index_cast %c5_i32 : i32 to index
    %c0_63 = arith.constant 0 : index
    %c0_64 = arith.constant 0 : index
    %214 = vector.load %arg7[%213, %c0_63, %c0_64] : memref<8x8x128xf32, #tpu.memory_space<vmem>>, vector<1x8x128xf32>
    %215 = vector.shape_cast %214 : vector<1x8x128xf32> to vector<8x128xf32>
    %216 = vector.shape_cast %212 : vector<8x128xf32> to vector<1x8x128xf32>
    tpu.vector_store %arg7[%213, %c0_63, %c0_64], %216 {strides = array<i32>} : memref<8x8x128xf32, #tpu.memory_space<vmem>>, vector<1x8x128xf32>,
    %c6_i32 = arith.constant 6 : i32
    %217 = arith.index_cast %c6_i32 : i32 to index
    %c0_65 = arith.constant 0 : index
    %c0_66 = arith.constant 0 : index
    %218 = vector.load %arg0[%217, %c0_65, %c0_66] : memref<8x8x512xf32, #tpu.memory_space<vmem>>, vector<1x8x512xf32>
    %219 = vector.shape_cast %218 : vector<1x8x512xf32> to vector<8x512xf32>
    %c0_67 = arith.constant 0 : index
    %c0_68 = arith.constant 0 : index
    %c0_69 = arith.constant 0 : index
    %220 = vector.load %arg2[%c0_67, %c0_68, %c0_69] : memref<4x128x512xf32, #tpu.memory_space<vmem>>, vector<1x128x512xf32>
    %221 = vector.shape_cast %220 : vector<1x128x512xf32> to vector<128x512xf32>
    %cst_70 = arith.constant dense<0.000000e+00> : vector<8x512xf32>
    %222 = tpu.matmul %212, %221, %cst_70 {dimension_numbers = #tpu.dot_dimension_numbers<[1], [0], [0], [1], [0, 0, 1, 1], [], []>} : vector<8x128xf32>, vector<128x512xf32>, vector<8x512xf32> -> vector<8x512xf32>
    %223 = arith.addf %219, %222 : vector<8x512xf32>
    %224 = vector.extract_strided_slice %223 {offsets = [0, 0], sizes = [8, 128], strides = [1, 1]} : vector<8x512xf32> to vector<8x128xf32>
    %225 = arith.negf %224 : vector<8x128xf32>
    %226 = math.exp %225 : vector<8x128xf32>
    %cst_71 = arith.constant 1.000000e+00 : f32
    %227 = vector.broadcast %cst_71 : f32 to vector<8x128xf32>
    %228 = arith.addf %227, %226 : vector<8x128xf32>
    %229 = arith.divf %227, %228 : vector<8x128xf32>
    %230 = vector.extract_strided_slice %223 {offsets = [0, 128], sizes = [8, 128], strides = [1, 1]} : vector<8x512xf32> to vector<8x128xf32>
    %231 = arith.negf %230 : vector<8x128xf32>
    %232 = math.exp %231 : vector<8x128xf32>
    %cst_72 = arith.constant 1.000000e+00 : f32
    %233 = vector.broadcast %cst_72 : f32 to vector<8x128xf32>
    %234 = arith.addf %233, %232 : vector<8x128xf32>
    %235 = arith.divf %233, %234 : vector<8x128xf32>
    %236 = vector.extract_strided_slice %223 {offsets = [0, 256], sizes = [8, 128], strides = [1, 1]} : vector<8x512xf32> to vector<8x128xf32>
    %237 = math.tanh %236 : vector<8x128xf32>
    %238 = vector.extract_strided_slice %223 {offsets = [0, 384], sizes = [8, 128], strides = [1, 1]} : vector<8x512xf32> to vector<8x128xf32>
    %239 = arith.negf %238 : vector<8x128xf32>
    %240 = math.exp %239 : vector<8x128xf32>
    %cst_73 = arith.constant 1.000000e+00 : f32
    %241 = vector.broadcast %cst_73 : f32 to vector<8x128xf32>
    %242 = arith.addf %241, %240 : vector<8x128xf32>
    %243 = arith.divf %241, %242 : vector<8x128xf32>
    %244 = arith.mulf %235, %210 : vector<8x128xf32>
    %245 = arith.mulf %229, %237 : vector<8x128xf32>
    %246 = arith.addf %244, %245 : vector<8x128xf32>
    %247 = math.tanh %246 : vector<8x128xf32>
    %248 = arith.mulf %243, %247 : vector<8x128xf32>
    %249 = arith.index_cast %c6_i32 : i32 to index
    %c0_74 = arith.constant 0 : index
    %c0_75 = arith.constant 0 : index
    %250 = vector.load %arg7[%249, %c0_74, %c0_75] : memref<8x8x128xf32, #tpu.memory_space<vmem>>, vector<1x8x128xf32>
    %251 = vector.shape_cast %250 : vector<1x8x128xf32> to vector<8x128xf32>
    %252 = vector.shape_cast %248 : vector<8x128xf32> to vector<1x8x128xf32>
    tpu.vector_store %arg7[%249, %c0_74, %c0_75], %252 {strides = array<i32>} : memref<8x8x128xf32, #tpu.memory_space<vmem>>, vector<1x8x128xf32>,
    %c7_i32 = arith.constant 7 : i32
    %253 = arith.index_cast %c7_i32 : i32 to index
    %c0_76 = arith.constant 0 : index
    %c0_77 = arith.constant 0 : index
    %254 = vector.load %arg0[%253, %c0_76, %c0_77] : memref<8x8x512xf32, #tpu.memory_space<vmem>>, vector<1x8x512xf32>
    %255 = vector.shape_cast %254 : vector<1x8x512xf32> to vector<8x512xf32>
    %c0_78 = arith.constant 0 : index
    %c0_79 = arith.constant 0 : index
    %c0_80 = arith.constant 0 : index
    %256 = vector.load %arg2[%c0_78, %c0_79, %c0_80] : memref<4x128x512xf32, #tpu.memory_space<vmem>>, vector<1x128x512xf32>
    %257 = vector.shape_cast %256 : vector<1x128x512xf32> to vector<128x512xf32>
    %cst_81 = arith.constant dense<0.000000e+00> : vector<8x512xf32>
    %258 = tpu.matmul %248, %257, %cst_81 {dimension_numbers = #tpu.dot_dimension_numbers<[1], [0], [0], [1], [0, 0, 1, 1], [], []>} : vector<8x128xf32>, vector<128x512xf32>, vector<8x512xf32> -> vector<8x512xf32>
    %259 = arith.addf %255, %258 : vector<8x512xf32>
    %260 = vector.extract_strided_slice %259 {offsets = [0, 0], sizes = [8, 128], strides = [1, 1]} : vector<8x512xf32> to vector<8x128xf32>
    %261 = arith.negf %260 : vector<8x128xf32>
    %262 = math.exp %261 : vector<8x128xf32>
    %cst_82 = arith.constant 1.000000e+00 : f32
    %263 = vector.broadcast %cst_82 : f32 to vector<8x128xf32>
    %264 = arith.addf %263, %262 : vector<8x128xf32>
    %265 = arith.divf %263, %264 : vector<8x128xf32>
    %266 = vector.extract_strided_slice %259 {offsets = [0, 128], sizes = [8, 128], strides = [1, 1]} : vector<8x512xf32> to vector<8x128xf32>
    %267 = arith.negf %266 : vector<8x128xf32>
    %268 = math.exp %267 : vector<8x128xf32>
    %cst_83 = arith.constant 1.000000e+00 : f32
    %269 = vector.broadcast %cst_83 : f32 to vector<8x128xf32>
    %270 = arith.addf %269, %268 : vector<8x128xf32>
    %271 = arith.divf %269, %270 : vector<8x128xf32>
    %272 = vector.extract_strided_slice %259 {offsets = [0, 256], sizes = [8, 128], strides = [1, 1]} : vector<8x512xf32> to vector<8x128xf32>
    %273 = math.tanh %272 : vector<8x128xf32>
    %274 = vector.extract_strided_slice %259 {offsets = [0, 384], sizes = [8, 128], strides = [1, 1]} : vector<8x512xf32> to vector<8x128xf32>
    %275 = arith.negf %274 : vector<8x128xf32>
    %276 = math.exp %275 : vector<8x128xf32>
    %cst_84 = arith.constant 1.000000e+00 : f32
    %277 = vector.broadcast %cst_84 : f32 to vector<8x128xf32>
    %278 = arith.addf %277, %276 : vector<8x128xf32>
    %279 = arith.divf %277, %278 : vector<8x128xf32>
    %280 = arith.mulf %271, %246 : vector<8x128xf32>
    %281 = arith.mulf %265, %273 : vector<8x128xf32>
    %282 = arith.addf %280, %281 : vector<8x128xf32>
    %283 = math.tanh %282 : vector<8x128xf32>
    %284 = arith.mulf %279, %283 : vector<8x128xf32>
    %285 = arith.index_cast %c7_i32 : i32 to index
    %c0_85 = arith.constant 0 : index
    %c0_86 = arith.constant 0 : index
    %286 = vector.load %arg7[%285, %c0_85, %c0_86] : memref<8x8x128xf32, #tpu.memory_space<vmem>>, vector<1x8x128xf32>
    %287 = vector.shape_cast %286 : vector<1x8x128xf32> to vector<8x128xf32>
    %288 = vector.shape_cast %284 : vector<8x128xf32> to vector<1x8x128xf32>
    tpu.vector_store %arg7[%285, %c0_85, %c0_86], %288 {strides = array<i32>} : memref<8x8x128xf32, #tpu.memory_space<vmem>>, vector<1x8x128xf32>,
    %c8_i32 = arith.constant 8 : i32
    %c0_87 = arith.constant 0 : index
    %c0_88 = arith.constant 0 : index
    %c0_89 = arith.constant 0 : index
    %289 = vector.load %arg7[%c0_87, %c0_88, %c0_89] : memref<8x8x128xf32, #tpu.memory_space<vmem>>, vector<8x8x128xf32>
    %290 = vector.shape_cast %289 : vector<8x8x128xf32> to vector<64x128xf32>
    %c0_90 = arith.constant 0 : index
    %c0_91 = arith.constant 0 : index
    %c0_92 = arith.constant 0 : index
    %291 = vector.load %arg1[%c0_90, %c0_91, %c0_92] : memref<3x128x512xf32, #tpu.memory_space<vmem>>, vector<1x128x512xf32>
    %292 = vector.shape_cast %291 : vector<1x128x512xf32> to vector<128x512xf32>
    %cst_93 = arith.constant dense<0.000000e+00> : vector<64x512xf32>
    %293 = tpu.matmul %290, %292, %cst_93 {dimension_numbers = #tpu.dot_dimension_numbers<[1], [0], [0], [1], [0, 0, 1, 1], [], []>} : vector<64x128xf32>, vector<128x512xf32>, vector<64x512xf32> -> vector<64x512xf32>
    %c0_94 = arith.constant 0 : index
    %c0_95 = arith.constant 0 : index
    %c0_96 = arith.constant 0 : index
    %294 = vector.load %arg3[%c0_94, %c0_95, %c0_96] : memref<3x1x512xf32, #tpu.memory_space<vmem>>, vector<1x1x512xf32>
    %295 = vector.shape_cast %294 : vector<1x1x512xf32> to vector<1x512xf32>
    %296 = vector.broadcast %295 : vector<1x512xf32> to vector<64x512xf32>
    %297 = arith.addf %293, %296 : vector<64x512xf32>
    %298 = vector.shape_cast %297 : vector<64x512xf32> to vector<8x8x512xf32>
    %c0_97 = arith.constant 0 : index
    %c0_98 = arith.constant 0 : index
    %c0_99 = arith.constant 0 : index
    %299 = vector.load %arg8[%c0_97, %c0_98, %c0_99] : memref<8x8x512xf32, #tpu.memory_space<vmem>>, vector<8x8x512xf32>
    tpu.vector_store %arg8[%c0_97, %c0_98, %c0_99], %298 {strides = array<i32>} : memref<8x8x512xf32, #tpu.memory_space<vmem>>, vector<8x8x512xf32>,
    %cst_100 = arith.constant 0.000000e+00 : f32
    %300 = vector.broadcast %cst_100 : f32 to vector<8x128xf32>
    %c0_i32_101 = arith.constant 0 : i32
    %301 = arith.index_cast %c0_i32_101 : i32 to index
    %c0_102 = arith.constant 0 : index
    %c0_103 = arith.constant 0 : index
    %302 = vector.load %arg8[%301, %c0_102, %c0_103] : memref<8x8x512xf32, #tpu.memory_space<vmem>>, vector<1x8x512xf32>
    %303 = vector.shape_cast %302 : vector<1x8x512xf32> to vector<8x512xf32>
    %c1 = arith.constant 1 : index
    %c0_104 = arith.constant 0 : index
    %c0_105 = arith.constant 0 : index
    %304 = vector.load %arg2[%c1, %c0_104, %c0_105] : memref<4x128x512xf32, #tpu.memory_space<vmem>>, vector<1x128x512xf32>
    %305 = vector.shape_cast %304 : vector<1x128x512xf32> to vector<128x512xf32>
    %cst_106 = arith.constant dense<0.000000e+00> : vector<8x512xf32>
    %306 = tpu.matmul %300, %305, %cst_106 {dimension_numbers = #tpu.dot_dimension_numbers<[1], [0], [0], [1], [0, 0, 1, 1], [], []>} : vector<8x128xf32>, vector<128x512xf32>, vector<8x512xf32> -> vector<8x512xf32>
    %307 = arith.addf %303, %306 : vector<8x512xf32>
    %308 = vector.extract_strided_slice %307 {offsets = [0, 0], sizes = [8, 128], strides = [1, 1]} : vector<8x512xf32> to vector<8x128xf32>
    %309 = arith.negf %308 : vector<8x128xf32>
    %310 = math.exp %309 : vector<8x128xf32>
    %cst_107 = arith.constant 1.000000e+00 : f32
    %311 = vector.broadcast %cst_107 : f32 to vector<8x128xf32>
    %312 = arith.addf %311, %310 : vector<8x128xf32>
    %313 = arith.divf %311, %312 : vector<8x128xf32>
    %314 = vector.extract_strided_slice %307 {offsets = [0, 128], sizes = [8, 128], strides = [1, 1]} : vector<8x512xf32> to vector<8x128xf32>
    %315 = arith.negf %314 : vector<8x128xf32>
    %316 = math.exp %315 : vector<8x128xf32>
    %cst_108 = arith.constant 1.000000e+00 : f32
    %317 = vector.broadcast %cst_108 : f32 to vector<8x128xf32>
    %318 = arith.addf %317, %316 : vector<8x128xf32>
    %319 = arith.divf %317, %318 : vector<8x128xf32>
    %320 = vector.extract_strided_slice %307 {offsets = [0, 256], sizes = [8, 128], strides = [1, 1]} : vector<8x512xf32> to vector<8x128xf32>
    %321 = math.tanh %320 : vector<8x128xf32>
    %322 = vector.extract_strided_slice %307 {offsets = [0, 384], sizes = [8, 128], strides = [1, 1]} : vector<8x512xf32> to vector<8x128xf32>
    %323 = arith.negf %322 : vector<8x128xf32>
    %324 = math.exp %323 : vector<8x128xf32>
    %cst_109 = arith.constant 1.000000e+00 : f32
    %325 = vector.broadcast %cst_109 : f32 to vector<8x128xf32>
    %326 = arith.addf %325, %324 : vector<8x128xf32>
    %327 = arith.divf %325, %326 : vector<8x128xf32>
    %328 = arith.mulf %319, %300 : vector<8x128xf32>
    %329 = arith.mulf %313, %321 : vector<8x128xf32>
    %330 = arith.addf %328, %329 : vector<8x128xf32>
    %331 = math.tanh %330 : vector<8x128xf32>
    %332 = arith.mulf %327, %331 : vector<8x128xf32>
    %333 = arith.index_cast %c0_i32_101 : i32 to index
    %c0_110 = arith.constant 0 : index
    %c0_111 = arith.constant 0 : index
    %334 = vector.load %arg7[%333, %c0_110, %c0_111] : memref<8x8x128xf32, #tpu.memory_space<vmem>>, vector<1x8x128xf32>
    %335 = vector.shape_cast %334 : vector<1x8x128xf32> to vector<8x128xf32>
    %336 = vector.shape_cast %332 : vector<8x128xf32> to vector<1x8x128xf32>
    tpu.vector_store %arg7[%333, %c0_110, %c0_111], %336 {strides = array<i32>} : memref<8x8x128xf32, #tpu.memory_space<vmem>>, vector<1x8x128xf32>,
    %c1_i32_112 = arith.constant 1 : i32
    %337 = arith.index_cast %c1_i32_112 : i32 to index
    %c0_113 = arith.constant 0 : index
    %c0_114 = arith.constant 0 : index
    %338 = vector.load %arg8[%337, %c0_113, %c0_114] : memref<8x8x512xf32, #tpu.memory_space<vmem>>, vector<1x8x512xf32>
    %339 = vector.shape_cast %338 : vector<1x8x512xf32> to vector<8x512xf32>
    %c1_115 = arith.constant 1 : index
    %c0_116 = arith.constant 0 : index
    %c0_117 = arith.constant 0 : index
    %340 = vector.load %arg2[%c1_115, %c0_116, %c0_117] : memref<4x128x512xf32, #tpu.memory_space<vmem>>, vector<1x128x512xf32>
    %341 = vector.shape_cast %340 : vector<1x128x512xf32> to vector<128x512xf32>
    %cst_118 = arith.constant dense<0.000000e+00> : vector<8x512xf32>
    %342 = tpu.matmul %332, %341, %cst_118 {dimension_numbers = #tpu.dot_dimension_numbers<[1], [0], [0], [1], [0, 0, 1, 1], [], []>} : vector<8x128xf32>, vector<128x512xf32>, vector<8x512xf32> -> vector<8x512xf32>
    %343 = arith.addf %339, %342 : vector<8x512xf32>
    %344 = vector.extract_strided_slice %343 {offsets = [0, 0], sizes = [8, 128], strides = [1, 1]} : vector<8x512xf32> to vector<8x128xf32>
    %345 = arith.negf %344 : vector<8x128xf32>
    %346 = math.exp %345 : vector<8x128xf32>
    %cst_119 = arith.constant 1.000000e+00 : f32
    %347 = vector.broadcast %cst_119 : f32 to vector<8x128xf32>
    %348 = arith.addf %347, %346 : vector<8x128xf32>
    %349 = arith.divf %347, %348 : vector<8x128xf32>
    %350 = vector.extract_strided_slice %343 {offsets = [0, 128], sizes = [8, 128], strides = [1, 1]} : vector<8x512xf32> to vector<8x128xf32>
    %351 = arith.negf %350 : vector<8x128xf32>
    %352 = math.exp %351 : vector<8x128xf32>
    %cst_120 = arith.constant 1.000000e+00 : f32
    %353 = vector.broadcast %cst_120 : f32 to vector<8x128xf32>
    %354 = arith.addf %353, %352 : vector<8x128xf32>
    %355 = arith.divf %353, %354 : vector<8x128xf32>
    %356 = vector.extract_strided_slice %343 {offsets = [0, 256], sizes = [8, 128], strides = [1, 1]} : vector<8x512xf32> to vector<8x128xf32>
    %357 = math.tanh %356 : vector<8x128xf32>
    %358 = vector.extract_strided_slice %343 {offsets = [0, 384], sizes = [8, 128], strides = [1, 1]} : vector<8x512xf32> to vector<8x128xf32>
    %359 = arith.negf %358 : vector<8x128xf32>
    %360 = math.exp %359 : vector<8x128xf32>
    %cst_121 = arith.constant 1.000000e+00 : f32
    %361 = vector.broadcast %cst_121 : f32 to vector<8x128xf32>
    %362 = arith.addf %361, %360 : vector<8x128xf32>
    %363 = arith.divf %361, %362 : vector<8x128xf32>
    %364 = arith.mulf %355, %330 : vector<8x128xf32>
    %365 = arith.mulf %349, %357 : vector<8x128xf32>
    %366 = arith.addf %364, %365 : vector<8x128xf32>
    %367 = math.tanh %366 : vector<8x128xf32>
    %368 = arith.mulf %363, %367 : vector<8x128xf32>
    %369 = arith.index_cast %c1_i32_112 : i32 to index
    %c0_122 = arith.constant 0 : index
    %c0_123 = arith.constant 0 : index
    %370 = vector.load %arg7[%369, %c0_122, %c0_123] : memref<8x8x128xf32, #tpu.memory_space<vmem>>, vector<1x8x128xf32>
    %371 = vector.shape_cast %370 : vector<1x8x128xf32> to vector<8x128xf32>
    %372 = vector.shape_cast %368 : vector<8x128xf32> to vector<1x8x128xf32>
    tpu.vector_store %arg7[%369, %c0_122, %c0_123], %372 {strides = array<i32>} : memref<8x8x128xf32, #tpu.memory_space<vmem>>, vector<1x8x128xf32>,
    %c2_i32_124 = arith.constant 2 : i32
    %373 = arith.index_cast %c2_i32_124 : i32 to index
    %c0_125 = arith.constant 0 : index
    %c0_126 = arith.constant 0 : index
    %374 = vector.load %arg8[%373, %c0_125, %c0_126] : memref<8x8x512xf32, #tpu.memory_space<vmem>>, vector<1x8x512xf32>
    %375 = vector.shape_cast %374 : vector<1x8x512xf32> to vector<8x512xf32>
    %c1_127 = arith.constant 1 : index
    %c0_128 = arith.constant 0 : index
    %c0_129 = arith.constant 0 : index
    %376 = vector.load %arg2[%c1_127, %c0_128, %c0_129] : memref<4x128x512xf32, #tpu.memory_space<vmem>>, vector<1x128x512xf32>
    %377 = vector.shape_cast %376 : vector<1x128x512xf32> to vector<128x512xf32>
    %cst_130 = arith.constant dense<0.000000e+00> : vector<8x512xf32>
    %378 = tpu.matmul %368, %377, %cst_130 {dimension_numbers = #tpu.dot_dimension_numbers<[1], [0], [0], [1], [0, 0, 1, 1], [], []>} : vector<8x128xf32>, vector<128x512xf32>, vector<8x512xf32> -> vector<8x512xf32>
    %379 = arith.addf %375, %378 : vector<8x512xf32>
    %380 = vector.extract_strided_slice %379 {offsets = [0, 0], sizes = [8, 128], strides = [1, 1]} : vector<8x512xf32> to vector<8x128xf32>
    %381 = arith.negf %380 : vector<8x128xf32>
    %382 = math.exp %381 : vector<8x128xf32>
    %cst_131 = arith.constant 1.000000e+00 : f32
    %383 = vector.broadcast %cst_131 : f32 to vector<8x128xf32>
    %384 = arith.addf %383, %382 : vector<8x128xf32>
    %385 = arith.divf %383, %384 : vector<8x128xf32>
    %386 = vector.extract_strided_slice %379 {offsets = [0, 128], sizes = [8, 128], strides = [1, 1]} : vector<8x512xf32> to vector<8x128xf32>
    %387 = arith.negf %386 : vector<8x128xf32>
    %388 = math.exp %387 : vector<8x128xf32>
    %cst_132 = arith.constant 1.000000e+00 : f32
    %389 = vector.broadcast %cst_132 : f32 to vector<8x128xf32>
    %390 = arith.addf %389, %388 : vector<8x128xf32>
    %391 = arith.divf %389, %390 : vector<8x128xf32>
    %392 = vector.extract_strided_slice %379 {offsets = [0, 256], sizes = [8, 128], strides = [1, 1]} : vector<8x512xf32> to vector<8x128xf32>
    %393 = math.tanh %392 : vector<8x128xf32>
    %394 = vector.extract_strided_slice %379 {offsets = [0, 384], sizes = [8, 128], strides = [1, 1]} : vector<8x512xf32> to vector<8x128xf32>
    %395 = arith.negf %394 : vector<8x128xf32>
    %396 = math.exp %395 : vector<8x128xf32>
    %cst_133 = arith.constant 1.000000e+00 : f32
    %397 = vector.broadcast %cst_133 : f32 to vector<8x128xf32>
    %398 = arith.addf %397, %396 : vector<8x128xf32>
    %399 = arith.divf %397, %398 : vector<8x128xf32>
    %400 = arith.mulf %391, %366 : vector<8x128xf32>
    %401 = arith.mulf %385, %393 : vector<8x128xf32>
    %402 = arith.addf %400, %401 : vector<8x128xf32>
    %403 = math.tanh %402 : vector<8x128xf32>
    %404 = arith.mulf %399, %403 : vector<8x128xf32>
    %405 = arith.index_cast %c2_i32_124 : i32 to index
    %c0_134 = arith.constant 0 : index
    %c0_135 = arith.constant 0 : index
    %406 = vector.load %arg7[%405, %c0_134, %c0_135] : memref<8x8x128xf32, #tpu.memory_space<vmem>>, vector<1x8x128xf32>
    %407 = vector.shape_cast %406 : vector<1x8x128xf32> to vector<8x128xf32>
    %408 = vector.shape_cast %404 : vector<8x128xf32> to vector<1x8x128xf32>
    tpu.vector_store %arg7[%405, %c0_134, %c0_135], %408 {strides = array<i32>} : memref<8x8x128xf32, #tpu.memory_space<vmem>>, vector<1x8x128xf32>,
    %c3_i32_136 = arith.constant 3 : i32
    %409 = arith.index_cast %c3_i32_136 : i32 to index
    %c0_137 = arith.constant 0 : index
    %c0_138 = arith.constant 0 : index
    %410 = vector.load %arg8[%409, %c0_137, %c0_138] : memref<8x8x512xf32, #tpu.memory_space<vmem>>, vector<1x8x512xf32>
    %411 = vector.shape_cast %410 : vector<1x8x512xf32> to vector<8x512xf32>
    %c1_139 = arith.constant 1 : index
    %c0_140 = arith.constant 0 : index
    %c0_141 = arith.constant 0 : index
    %412 = vector.load %arg2[%c1_139, %c0_140, %c0_141] : memref<4x128x512xf32, #tpu.memory_space<vmem>>, vector<1x128x512xf32>
    %413 = vector.shape_cast %412 : vector<1x128x512xf32> to vector<128x512xf32>
    %cst_142 = arith.constant dense<0.000000e+00> : vector<8x512xf32>
    %414 = tpu.matmul %404, %413, %cst_142 {dimension_numbers = #tpu.dot_dimension_numbers<[1], [0], [0], [1], [0, 0, 1, 1], [], []>} : vector<8x128xf32>, vector<128x512xf32>, vector<8x512xf32> -> vector<8x512xf32>
    %415 = arith.addf %411, %414 : vector<8x512xf32>
    %416 = vector.extract_strided_slice %415 {offsets = [0, 0], sizes = [8, 128], strides = [1, 1]} : vector<8x512xf32> to vector<8x128xf32>
    %417 = arith.negf %416 : vector<8x128xf32>
    %418 = math.exp %417 : vector<8x128xf32>
    %cst_143 = arith.constant 1.000000e+00 : f32
    %419 = vector.broadcast %cst_143 : f32 to vector<8x128xf32>
    %420 = arith.addf %419, %418 : vector<8x128xf32>
    %421 = arith.divf %419, %420 : vector<8x128xf32>
    %422 = vector.extract_strided_slice %415 {offsets = [0, 128], sizes = [8, 128], strides = [1, 1]} : vector<8x512xf32> to vector<8x128xf32>
    %423 = arith.negf %422 : vector<8x128xf32>
    %424 = math.exp %423 : vector<8x128xf32>
    %cst_144 = arith.constant 1.000000e+00 : f32
    %425 = vector.broadcast %cst_144 : f32 to vector<8x128xf32>
    %426 = arith.addf %425, %424 : vector<8x128xf32>
    %427 = arith.divf %425, %426 : vector<8x128xf32>
    %428 = vector.extract_strided_slice %415 {offsets = [0, 256], sizes = [8, 128], strides = [1, 1]} : vector<8x512xf32> to vector<8x128xf32>
    %429 = math.tanh %428 : vector<8x128xf32>
    %430 = vector.extract_strided_slice %415 {offsets = [0, 384], sizes = [8, 128], strides = [1, 1]} : vector<8x512xf32> to vector<8x128xf32>
    %431 = arith.negf %430 : vector<8x128xf32>
    %432 = math.exp %431 : vector<8x128xf32>
    %cst_145 = arith.constant 1.000000e+00 : f32
    %433 = vector.broadcast %cst_145 : f32 to vector<8x128xf32>
    %434 = arith.addf %433, %432 : vector<8x128xf32>
    %435 = arith.divf %433, %434 : vector<8x128xf32>
    %436 = arith.mulf %427, %402 : vector<8x128xf32>
    %437 = arith.mulf %421, %429 : vector<8x128xf32>
    %438 = arith.addf %436, %437 : vector<8x128xf32>
    %439 = math.tanh %438 : vector<8x128xf32>
    %440 = arith.mulf %435, %439 : vector<8x128xf32>
    %441 = arith.index_cast %c3_i32_136 : i32 to index
    %c0_146 = arith.constant 0 : index
    %c0_147 = arith.constant 0 : index
    %442 = vector.load %arg7[%441, %c0_146, %c0_147] : memref<8x8x128xf32, #tpu.memory_space<vmem>>, vector<1x8x128xf32>
    %443 = vector.shape_cast %442 : vector<1x8x128xf32> to vector<8x128xf32>
    %444 = vector.shape_cast %440 : vector<8x128xf32> to vector<1x8x128xf32>
    tpu.vector_store %arg7[%441, %c0_146, %c0_147], %444 {strides = array<i32>} : memref<8x8x128xf32, #tpu.memory_space<vmem>>, vector<1x8x128xf32>,
    %c4_i32_148 = arith.constant 4 : i32
    %445 = arith.index_cast %c4_i32_148 : i32 to index
    %c0_149 = arith.constant 0 : index
    %c0_150 = arith.constant 0 : index
    %446 = vector.load %arg8[%445, %c0_149, %c0_150] : memref<8x8x512xf32, #tpu.memory_space<vmem>>, vector<1x8x512xf32>
    %447 = vector.shape_cast %446 : vector<1x8x512xf32> to vector<8x512xf32>
    %c1_151 = arith.constant 1 : index
    %c0_152 = arith.constant 0 : index
    %c0_153 = arith.constant 0 : index
    %448 = vector.load %arg2[%c1_151, %c0_152, %c0_153] : memref<4x128x512xf32, #tpu.memory_space<vmem>>, vector<1x128x512xf32>
    %449 = vector.shape_cast %448 : vector<1x128x512xf32> to vector<128x512xf32>
    %cst_154 = arith.constant dense<0.000000e+00> : vector<8x512xf32>
    %450 = tpu.matmul %440, %449, %cst_154 {dimension_numbers = #tpu.dot_dimension_numbers<[1], [0], [0], [1], [0, 0, 1, 1], [], []>} : vector<8x128xf32>, vector<128x512xf32>, vector<8x512xf32> -> vector<8x512xf32>
    %451 = arith.addf %447, %450 : vector<8x512xf32>
    %452 = vector.extract_strided_slice %451 {offsets = [0, 0], sizes = [8, 128], strides = [1, 1]} : vector<8x512xf32> to vector<8x128xf32>
    %453 = arith.negf %452 : vector<8x128xf32>
    %454 = math.exp %453 : vector<8x128xf32>
    %cst_155 = arith.constant 1.000000e+00 : f32
    %455 = vector.broadcast %cst_155 : f32 to vector<8x128xf32>
    %456 = arith.addf %455, %454 : vector<8x128xf32>
    %457 = arith.divf %455, %456 : vector<8x128xf32>
    %458 = vector.extract_strided_slice %451 {offsets = [0, 128], sizes = [8, 128], strides = [1, 1]} : vector<8x512xf32> to vector<8x128xf32>
    %459 = arith.negf %458 : vector<8x128xf32>
    %460 = math.exp %459 : vector<8x128xf32>
    %cst_156 = arith.constant 1.000000e+00 : f32
    %461 = vector.broadcast %cst_156 : f32 to vector<8x128xf32>
    %462 = arith.addf %461, %460 : vector<8x128xf32>
    %463 = arith.divf %461, %462 : vector<8x128xf32>
    %464 = vector.extract_strided_slice %451 {offsets = [0, 256], sizes = [8, 128], strides = [1, 1]} : vector<8x512xf32> to vector<8x128xf32>
    %465 = math.tanh %464 : vector<8x128xf32>
    %466 = vector.extract_strided_slice %451 {offsets = [0, 384], sizes = [8, 128], strides = [1, 1]} : vector<8x512xf32> to vector<8x128xf32>
    %467 = arith.negf %466 : vector<8x128xf32>
    %468 = math.exp %467 : vector<8x128xf32>
    %cst_157 = arith.constant 1.000000e+00 : f32
    %469 = vector.broadcast %cst_157 : f32 to vector<8x128xf32>
    %470 = arith.addf %469, %468 : vector<8x128xf32>
    %471 = arith.divf %469, %470 : vector<8x128xf32>
    %472 = arith.mulf %463, %438 : vector<8x128xf32>
    %473 = arith.mulf %457, %465 : vector<8x128xf32>
    %474 = arith.addf %472, %473 : vector<8x128xf32>
    %475 = math.tanh %474 : vector<8x128xf32>
    %476 = arith.mulf %471, %475 : vector<8x128xf32>
    %477 = arith.index_cast %c4_i32_148 : i32 to index
    %c0_158 = arith.constant 0 : index
    %c0_159 = arith.constant 0 : index
    %478 = vector.load %arg7[%477, %c0_158, %c0_159] : memref<8x8x128xf32, #tpu.memory_space<vmem>>, vector<1x8x128xf32>
    %479 = vector.shape_cast %478 : vector<1x8x128xf32> to vector<8x128xf32>
    %480 = vector.shape_cast %476 : vector<8x128xf32> to vector<1x8x128xf32>
    tpu.vector_store %arg7[%477, %c0_158, %c0_159], %480 {strides = array<i32>} : memref<8x8x128xf32, #tpu.memory_space<vmem>>, vector<1x8x128xf32>,
    %c5_i32_160 = arith.constant 5 : i32
    %481 = arith.index_cast %c5_i32_160 : i32 to index
    %c0_161 = arith.constant 0 : index
    %c0_162 = arith.constant 0 : index
    %482 = vector.load %arg8[%481, %c0_161, %c0_162] : memref<8x8x512xf32, #tpu.memory_space<vmem>>, vector<1x8x512xf32>
    %483 = vector.shape_cast %482 : vector<1x8x512xf32> to vector<8x512xf32>
    %c1_163 = arith.constant 1 : index
    %c0_164 = arith.constant 0 : index
    %c0_165 = arith.constant 0 : index
    %484 = vector.load %arg2[%c1_163, %c0_164, %c0_165] : memref<4x128x512xf32, #tpu.memory_space<vmem>>, vector<1x128x512xf32>
    %485 = vector.shape_cast %484 : vector<1x128x512xf32> to vector<128x512xf32>
    %cst_166 = arith.constant dense<0.000000e+00> : vector<8x512xf32>
    %486 = tpu.matmul %476, %485, %cst_166 {dimension_numbers = #tpu.dot_dimension_numbers<[1], [0], [0], [1], [0, 0, 1, 1], [], []>} : vector<8x128xf32>, vector<128x512xf32>, vector<8x512xf32> -> vector<8x512xf32>
    %487 = arith.addf %483, %486 : vector<8x512xf32>
    %488 = vector.extract_strided_slice %487 {offsets = [0, 0], sizes = [8, 128], strides = [1, 1]} : vector<8x512xf32> to vector<8x128xf32>
    %489 = arith.negf %488 : vector<8x128xf32>
    %490 = math.exp %489 : vector<8x128xf32>
    %cst_167 = arith.constant 1.000000e+00 : f32
    %491 = vector.broadcast %cst_167 : f32 to vector<8x128xf32>
    %492 = arith.addf %491, %490 : vector<8x128xf32>
    %493 = arith.divf %491, %492 : vector<8x128xf32>
    %494 = vector.extract_strided_slice %487 {offsets = [0, 128], sizes = [8, 128], strides = [1, 1]} : vector<8x512xf32> to vector<8x128xf32>
    %495 = arith.negf %494 : vector<8x128xf32>
    %496 = math.exp %495 : vector<8x128xf32>
    %cst_168 = arith.constant 1.000000e+00 : f32
    %497 = vector.broadcast %cst_168 : f32 to vector<8x128xf32>
    %498 = arith.addf %497, %496 : vector<8x128xf32>
    %499 = arith.divf %497, %498 : vector<8x128xf32>
    %500 = vector.extract_strided_slice %487 {offsets = [0, 256], sizes = [8, 128], strides = [1, 1]} : vector<8x512xf32> to vector<8x128xf32>
    %501 = math.tanh %500 : vector<8x128xf32>
    %502 = vector.extract_strided_slice %487 {offsets = [0, 384], sizes = [8, 128], strides = [1, 1]} : vector<8x512xf32> to vector<8x128xf32>
    %503 = arith.negf %502 : vector<8x128xf32>
    %504 = math.exp %503 : vector<8x128xf32>
    %cst_169 = arith.constant 1.000000e+00 : f32
    %505 = vector.broadcast %cst_169 : f32 to vector<8x128xf32>
    %506 = arith.addf %505, %504 : vector<8x128xf32>
    %507 = arith.divf %505, %506 : vector<8x128xf32>
    %508 = arith.mulf %499, %474 : vector<8x128xf32>
    %509 = arith.mulf %493, %501 : vector<8x128xf32>
    %510 = arith.addf %508, %509 : vector<8x128xf32>
    %511 = math.tanh %510 : vector<8x128xf32>
    %512 = arith.mulf %507, %511 : vector<8x128xf32>
    %513 = arith.index_cast %c5_i32_160 : i32 to index
    %c0_170 = arith.constant 0 : index
    %c0_171 = arith.constant 0 : index
    %514 = vector.load %arg7[%513, %c0_170, %c0_171] : memref<8x8x128xf32, #tpu.memory_space<vmem>>, vector<1x8x128xf32>
    %515 = vector.shape_cast %514 : vector<1x8x128xf32> to vector<8x128xf32>
    %516 = vector.shape_cast %512 : vector<8x128xf32> to vector<1x8x128xf32>
    tpu.vector_store %arg7[%513, %c0_170, %c0_171], %516 {strides = array<i32>} : memref<8x8x128xf32, #tpu.memory_space<vmem>>, vector<1x8x128xf32>,
    %c6_i32_172 = arith.constant 6 : i32
    %517 = arith.index_cast %c6_i32_172 : i32 to index
    %c0_173 = arith.constant 0 : index
    %c0_174 = arith.constant 0 : index
    %518 = vector.load %arg8[%517, %c0_173, %c0_174] : memref<8x8x512xf32, #tpu.memory_space<vmem>>, vector<1x8x512xf32>
    %519 = vector.shape_cast %518 : vector<1x8x512xf32> to vector<8x512xf32>
    %c1_175 = arith.constant 1 : index
    %c0_176 = arith.constant 0 : index
    %c0_177 = arith.constant 0 : index
    %520 = vector.load %arg2[%c1_175, %c0_176, %c0_177] : memref<4x128x512xf32, #tpu.memory_space<vmem>>, vector<1x128x512xf32>
    %521 = vector.shape_cast %520 : vector<1x128x512xf32> to vector<128x512xf32>
    %cst_178 = arith.constant dense<0.000000e+00> : vector<8x512xf32>
    %522 = tpu.matmul %512, %521, %cst_178 {dimension_numbers = #tpu.dot_dimension_numbers<[1], [0], [0], [1], [0, 0, 1, 1], [], []>} : vector<8x128xf32>, vector<128x512xf32>, vector<8x512xf32> -> vector<8x512xf32>
    %523 = arith.addf %519, %522 : vector<8x512xf32>
    %524 = vector.extract_strided_slice %523 {offsets = [0, 0], sizes = [8, 128], strides = [1, 1]} : vector<8x512xf32> to vector<8x128xf32>
    %525 = arith.negf %524 : vector<8x128xf32>
    %526 = math.exp %525 : vector<8x128xf32>
    %cst_179 = arith.constant 1.000000e+00 : f32
    %527 = vector.broadcast %cst_179 : f32 to vector<8x128xf32>
    %528 = arith.addf %527, %526 : vector<8x128xf32>
    %529 = arith.divf %527, %528 : vector<8x128xf32>
    %530 = vector.extract_strided_slice %523 {offsets = [0, 128], sizes = [8, 128], strides = [1, 1]} : vector<8x512xf32> to vector<8x128xf32>
    %531 = arith.negf %530 : vector<8x128xf32>
    %532 = math.exp %531 : vector<8x128xf32>
    %cst_180 = arith.constant 1.000000e+00 : f32
    %533 = vector.broadcast %cst_180 : f32 to vector<8x128xf32>
    %534 = arith.addf %533, %532 : vector<8x128xf32>
    %535 = arith.divf %533, %534 : vector<8x128xf32>
    %536 = vector.extract_strided_slice %523 {offsets = [0, 256], sizes = [8, 128], strides = [1, 1]} : vector<8x512xf32> to vector<8x128xf32>
    %537 = math.tanh %536 : vector<8x128xf32>
    %538 = vector.extract_strided_slice %523 {offsets = [0, 384], sizes = [8, 128], strides = [1, 1]} : vector<8x512xf32> to vector<8x128xf32>
    %539 = arith.negf %538 : vector<8x128xf32>
    %540 = math.exp %539 : vector<8x128xf32>
    %cst_181 = arith.constant 1.000000e+00 : f32
    %541 = vector.broadcast %cst_181 : f32 to vector<8x128xf32>
    %542 = arith.addf %541, %540 : vector<8x128xf32>
    %543 = arith.divf %541, %542 : vector<8x128xf32>
    %544 = arith.mulf %535, %510 : vector<8x128xf32>
    %545 = arith.mulf %529, %537 : vector<8x128xf32>
    %546 = arith.addf %544, %545 : vector<8x128xf32>
    %547 = math.tanh %546 : vector<8x128xf32>
    %548 = arith.mulf %543, %547 : vector<8x128xf32>
    %549 = arith.index_cast %c6_i32_172 : i32 to index
    %c0_182 = arith.constant 0 : index
    %c0_183 = arith.constant 0 : index
    %550 = vector.load %arg7[%549, %c0_182, %c0_183] : memref<8x8x128xf32, #tpu.memory_space<vmem>>, vector<1x8x128xf32>
    %551 = vector.shape_cast %550 : vector<1x8x128xf32> to vector<8x128xf32>
    %552 = vector.shape_cast %548 : vector<8x128xf32> to vector<1x8x128xf32>
    tpu.vector_store %arg7[%549, %c0_182, %c0_183], %552 {strides = array<i32>} : memref<8x8x128xf32, #tpu.memory_space<vmem>>, vector<1x8x128xf32>,
    %c7_i32_184 = arith.constant 7 : i32
    %553 = arith.index_cast %c7_i32_184 : i32 to index
    %c0_185 = arith.constant 0 : index
    %c0_186 = arith.constant 0 : index
    %554 = vector.load %arg8[%553, %c0_185, %c0_186] : memref<8x8x512xf32, #tpu.memory_space<vmem>>, vector<1x8x512xf32>
    %555 = vector.shape_cast %554 : vector<1x8x512xf32> to vector<8x512xf32>
    %c1_187 = arith.constant 1 : index
    %c0_188 = arith.constant 0 : index
    %c0_189 = arith.constant 0 : index
    %556 = vector.load %arg2[%c1_187, %c0_188, %c0_189] : memref<4x128x512xf32, #tpu.memory_space<vmem>>, vector<1x128x512xf32>
    %557 = vector.shape_cast %556 : vector<1x128x512xf32> to vector<128x512xf32>
    %cst_190 = arith.constant dense<0.000000e+00> : vector<8x512xf32>
    %558 = tpu.matmul %548, %557, %cst_190 {dimension_numbers = #tpu.dot_dimension_numbers<[1], [0], [0], [1], [0, 0, 1, 1], [], []>} : vector<8x128xf32>, vector<128x512xf32>, vector<8x512xf32> -> vector<8x512xf32>
    %559 = arith.addf %555, %558 : vector<8x512xf32>
    %560 = vector.extract_strided_slice %559 {offsets = [0, 0], sizes = [8, 128], strides = [1, 1]} : vector<8x512xf32> to vector<8x128xf32>
    %561 = arith.negf %560 : vector<8x128xf32>
    %562 = math.exp %561 : vector<8x128xf32>
    %cst_191 = arith.constant 1.000000e+00 : f32
    %563 = vector.broadcast %cst_191 : f32 to vector<8x128xf32>
    %564 = arith.addf %563, %562 : vector<8x128xf32>
    %565 = arith.divf %563, %564 : vector<8x128xf32>
    %566 = vector.extract_strided_slice %559 {offsets = [0, 128], sizes = [8, 128], strides = [1, 1]} : vector<8x512xf32> to vector<8x128xf32>
    %567 = arith.negf %566 : vector<8x128xf32>
    %568 = math.exp %567 : vector<8x128xf32>
    %cst_192 = arith.constant 1.000000e+00 : f32
    %569 = vector.broadcast %cst_192 : f32 to vector<8x128xf32>
    %570 = arith.addf %569, %568 : vector<8x128xf32>
    %571 = arith.divf %569, %570 : vector<8x128xf32>
    %572 = vector.extract_strided_slice %559 {offsets = [0, 256], sizes = [8, 128], strides = [1, 1]} : vector<8x512xf32> to vector<8x128xf32>
    %573 = math.tanh %572 : vector<8x128xf32>
    %574 = vector.extract_strided_slice %559 {offsets = [0, 384], sizes = [8, 128], strides = [1, 1]} : vector<8x512xf32> to vector<8x128xf32>
    %575 = arith.negf %574 : vector<8x128xf32>
    %576 = math.exp %575 : vector<8x128xf32>
    %cst_193 = arith.constant 1.000000e+00 : f32
    %577 = vector.broadcast %cst_193 : f32 to vector<8x128xf32>
    %578 = arith.addf %577, %576 : vector<8x128xf32>
    %579 = arith.divf %577, %578 : vector<8x128xf32>
    %580 = arith.mulf %571, %546 : vector<8x128xf32>
    %581 = arith.mulf %565, %573 : vector<8x128xf32>
    %582 = arith.addf %580, %581 : vector<8x128xf32>
    %583 = math.tanh %582 : vector<8x128xf32>
    %584 = arith.mulf %579, %583 : vector<8x128xf32>
    %585 = arith.index_cast %c7_i32_184 : i32 to index
    %c0_194 = arith.constant 0 : index
    %c0_195 = arith.constant 0 : index
    %586 = vector.load %arg7[%585, %c0_194, %c0_195] : memref<8x8x128xf32, #tpu.memory_space<vmem>>, vector<1x8x128xf32>
    %587 = vector.shape_cast %586 : vector<1x8x128xf32> to vector<8x128xf32>
    %588 = vector.shape_cast %584 : vector<8x128xf32> to vector<1x8x128xf32>
    tpu.vector_store %arg7[%585, %c0_194, %c0_195], %588 {strides = array<i32>} : memref<8x8x128xf32, #tpu.memory_space<vmem>>, vector<1x8x128xf32>,
    %c8_i32_196 = arith.constant 8 : i32
    %c0_197 = arith.constant 0 : index
    %c0_198 = arith.constant 0 : index
    %c0_199 = arith.constant 0 : index
    %589 = vector.load %arg7[%c0_197, %c0_198, %c0_199] : memref<8x8x128xf32, #tpu.memory_space<vmem>>, vector<8x8x128xf32>
    %590 = vector.shape_cast %589 : vector<8x8x128xf32> to vector<64x128xf32>
    %c1_200 = arith.constant 1 : index
    %c0_201 = arith.constant 0 : index
    %c0_202 = arith.constant 0 : index
    %591 = vector.load %arg1[%c1_200, %c0_201, %c0_202] : memref<3x128x512xf32, #tpu.memory_space<vmem>>, vector<1x128x512xf32>
    %592 = vector.shape_cast %591 : vector<1x128x512xf32> to vector<128x512xf32>
    %cst_203 = arith.constant dense<0.000000e+00> : vector<64x512xf32>
    %593 = tpu.matmul %590, %592, %cst_203 {dimension_numbers = #tpu.dot_dimension_numbers<[1], [0], [0], [1], [0, 0, 1, 1], [], []>} : vector<64x128xf32>, vector<128x512xf32>, vector<64x512xf32> -> vector<64x512xf32>
    %c1_204 = arith.constant 1 : index
    %c0_205 = arith.constant 0 : index
    %c0_206 = arith.constant 0 : index
    %594 = vector.load %arg3[%c1_204, %c0_205, %c0_206] : memref<3x1x512xf32, #tpu.memory_space<vmem>>, vector<1x1x512xf32>
    %595 = vector.shape_cast %594 : vector<1x1x512xf32> to vector<1x512xf32>
    %596 = vector.broadcast %595 : vector<1x512xf32> to vector<64x512xf32>
    %597 = arith.addf %593, %596 : vector<64x512xf32>
    %598 = vector.shape_cast %597 : vector<64x512xf32> to vector<8x8x512xf32>
    %c0_207 = arith.constant 0 : index
    %c0_208 = arith.constant 0 : index
    %c0_209 = arith.constant 0 : index
    %599 = vector.load %arg8[%c0_207, %c0_208, %c0_209] : memref<8x8x512xf32, #tpu.memory_space<vmem>>, vector<8x8x512xf32>
    tpu.vector_store %arg8[%c0_207, %c0_208, %c0_209], %598 {strides = array<i32>} : memref<8x8x512xf32, #tpu.memory_space<vmem>>, vector<8x8x512xf32>,
    %cst_210 = arith.constant 0.000000e+00 : f32
    %600 = vector.broadcast %cst_210 : f32 to vector<8x128xf32>
    %c0_i32_211 = arith.constant 0 : i32
    %601 = arith.index_cast %c0_i32_211 : i32 to index
    %c0_212 = arith.constant 0 : index
    %c0_213 = arith.constant 0 : index
    %602 = vector.load %arg8[%601, %c0_212, %c0_213] : memref<8x8x512xf32, #tpu.memory_space<vmem>>, vector<1x8x512xf32>
    %603 = vector.shape_cast %602 : vector<1x8x512xf32> to vector<8x512xf32>
    %c2 = arith.constant 2 : index
    %c0_214 = arith.constant 0 : index
    %c0_215 = arith.constant 0 : index
    %604 = vector.load %arg2[%c2, %c0_214, %c0_215] : memref<4x128x512xf32, #tpu.memory_space<vmem>>, vector<1x128x512xf32>
    %605 = vector.shape_cast %604 : vector<1x128x512xf32> to vector<128x512xf32>
    %cst_216 = arith.constant dense<0.000000e+00> : vector<8x512xf32>
    %606 = tpu.matmul %600, %605, %cst_216 {dimension_numbers = #tpu.dot_dimension_numbers<[1], [0], [0], [1], [0, 0, 1, 1], [], []>} : vector<8x128xf32>, vector<128x512xf32>, vector<8x512xf32> -> vector<8x512xf32>
    %607 = arith.addf %603, %606 : vector<8x512xf32>
    %608 = vector.extract_strided_slice %607 {offsets = [0, 0], sizes = [8, 128], strides = [1, 1]} : vector<8x512xf32> to vector<8x128xf32>
    %609 = arith.negf %608 : vector<8x128xf32>
    %610 = math.exp %609 : vector<8x128xf32>
    %cst_217 = arith.constant 1.000000e+00 : f32
    %611 = vector.broadcast %cst_217 : f32 to vector<8x128xf32>
    %612 = arith.addf %611, %610 : vector<8x128xf32>
    %613 = arith.divf %611, %612 : vector<8x128xf32>
    %614 = vector.extract_strided_slice %607 {offsets = [0, 128], sizes = [8, 128], strides = [1, 1]} : vector<8x512xf32> to vector<8x128xf32>
    %615 = arith.negf %614 : vector<8x128xf32>
    %616 = math.exp %615 : vector<8x128xf32>
    %cst_218 = arith.constant 1.000000e+00 : f32
    %617 = vector.broadcast %cst_218 : f32 to vector<8x128xf32>
    %618 = arith.addf %617, %616 : vector<8x128xf32>
    %619 = arith.divf %617, %618 : vector<8x128xf32>
    %620 = vector.extract_strided_slice %607 {offsets = [0, 256], sizes = [8, 128], strides = [1, 1]} : vector<8x512xf32> to vector<8x128xf32>
    %621 = math.tanh %620 : vector<8x128xf32>
    %622 = vector.extract_strided_slice %607 {offsets = [0, 384], sizes = [8, 128], strides = [1, 1]} : vector<8x512xf32> to vector<8x128xf32>
    %623 = arith.negf %622 : vector<8x128xf32>
    %624 = math.exp %623 : vector<8x128xf32>
    %cst_219 = arith.constant 1.000000e+00 : f32
    %625 = vector.broadcast %cst_219 : f32 to vector<8x128xf32>
    %626 = arith.addf %625, %624 : vector<8x128xf32>
    %627 = arith.divf %625, %626 : vector<8x128xf32>
    %628 = arith.mulf %619, %600 : vector<8x128xf32>
    %629 = arith.mulf %613, %621 : vector<8x128xf32>
    %630 = arith.addf %628, %629 : vector<8x128xf32>
    %631 = math.tanh %630 : vector<8x128xf32>
    %632 = arith.mulf %627, %631 : vector<8x128xf32>
    %633 = arith.index_cast %c0_i32_211 : i32 to index
    %c0_220 = arith.constant 0 : index
    %c0_221 = arith.constant 0 : index
    %634 = vector.load %arg7[%633, %c0_220, %c0_221] : memref<8x8x128xf32, #tpu.memory_space<vmem>>, vector<1x8x128xf32>
    %635 = vector.shape_cast %634 : vector<1x8x128xf32> to vector<8x128xf32>
    %636 = vector.shape_cast %632 : vector<8x128xf32> to vector<1x8x128xf32>
    tpu.vector_store %arg7[%633, %c0_220, %c0_221], %636 {strides = array<i32>} : memref<8x8x128xf32, #tpu.memory_space<vmem>>, vector<1x8x128xf32>,
    %c1_i32_222 = arith.constant 1 : i32
    %637 = arith.index_cast %c1_i32_222 : i32 to index
    %c0_223 = arith.constant 0 : index
    %c0_224 = arith.constant 0 : index
    %638 = vector.load %arg8[%637, %c0_223, %c0_224] : memref<8x8x512xf32, #tpu.memory_space<vmem>>, vector<1x8x512xf32>
    %639 = vector.shape_cast %638 : vector<1x8x512xf32> to vector<8x512xf32>
    %c2_225 = arith.constant 2 : index
    %c0_226 = arith.constant 0 : index
    %c0_227 = arith.constant 0 : index
    %640 = vector.load %arg2[%c2_225, %c0_226, %c0_227] : memref<4x128x512xf32, #tpu.memory_space<vmem>>, vector<1x128x512xf32>
    %641 = vector.shape_cast %640 : vector<1x128x512xf32> to vector<128x512xf32>
    %cst_228 = arith.constant dense<0.000000e+00> : vector<8x512xf32>
    %642 = tpu.matmul %632, %641, %cst_228 {dimension_numbers = #tpu.dot_dimension_numbers<[1], [0], [0], [1], [0, 0, 1, 1], [], []>} : vector<8x128xf32>, vector<128x512xf32>, vector<8x512xf32> -> vector<8x512xf32>
    %643 = arith.addf %639, %642 : vector<8x512xf32>
    %644 = vector.extract_strided_slice %643 {offsets = [0, 0], sizes = [8, 128], strides = [1, 1]} : vector<8x512xf32> to vector<8x128xf32>
    %645 = arith.negf %644 : vector<8x128xf32>
    %646 = math.exp %645 : vector<8x128xf32>
    %cst_229 = arith.constant 1.000000e+00 : f32
    %647 = vector.broadcast %cst_229 : f32 to vector<8x128xf32>
    %648 = arith.addf %647, %646 : vector<8x128xf32>
    %649 = arith.divf %647, %648 : vector<8x128xf32>
    %650 = vector.extract_strided_slice %643 {offsets = [0, 128], sizes = [8, 128], strides = [1, 1]} : vector<8x512xf32> to vector<8x128xf32>
    %651 = arith.negf %650 : vector<8x128xf32>
    %652 = math.exp %651 : vector<8x128xf32>
    %cst_230 = arith.constant 1.000000e+00 : f32
    %653 = vector.broadcast %cst_230 : f32 to vector<8x128xf32>
    %654 = arith.addf %653, %652 : vector<8x128xf32>
    %655 = arith.divf %653, %654 : vector<8x128xf32>
    %656 = vector.extract_strided_slice %643 {offsets = [0, 256], sizes = [8, 128], strides = [1, 1]} : vector<8x512xf32> to vector<8x128xf32>
    %657 = math.tanh %656 : vector<8x128xf32>
    %658 = vector.extract_strided_slice %643 {offsets = [0, 384], sizes = [8, 128], strides = [1, 1]} : vector<8x512xf32> to vector<8x128xf32>
    %659 = arith.negf %658 : vector<8x128xf32>
    %660 = math.exp %659 : vector<8x128xf32>
    %cst_231 = arith.constant 1.000000e+00 : f32
    %661 = vector.broadcast %cst_231 : f32 to vector<8x128xf32>
    %662 = arith.addf %661, %660 : vector<8x128xf32>
    %663 = arith.divf %661, %662 : vector<8x128xf32>
    %664 = arith.mulf %655, %630 : vector<8x128xf32>
    %665 = arith.mulf %649, %657 : vector<8x128xf32>
    %666 = arith.addf %664, %665 : vector<8x128xf32>
    %667 = math.tanh %666 : vector<8x128xf32>
    %668 = arith.mulf %663, %667 : vector<8x128xf32>
    %669 = arith.index_cast %c1_i32_222 : i32 to index
    %c0_232 = arith.constant 0 : index
    %c0_233 = arith.constant 0 : index
    %670 = vector.load %arg7[%669, %c0_232, %c0_233] : memref<8x8x128xf32, #tpu.memory_space<vmem>>, vector<1x8x128xf32>
    %671 = vector.shape_cast %670 : vector<1x8x128xf32> to vector<8x128xf32>
    %672 = vector.shape_cast %668 : vector<8x128xf32> to vector<1x8x128xf32>
    tpu.vector_store %arg7[%669, %c0_232, %c0_233], %672 {strides = array<i32>} : memref<8x8x128xf32, #tpu.memory_space<vmem>>, vector<1x8x128xf32>,
    %c2_i32_234 = arith.constant 2 : i32
    %673 = arith.index_cast %c2_i32_234 : i32 to index
    %c0_235 = arith.constant 0 : index
    %c0_236 = arith.constant 0 : index
    %674 = vector.load %arg8[%673, %c0_235, %c0_236] : memref<8x8x512xf32, #tpu.memory_space<vmem>>, vector<1x8x512xf32>
    %675 = vector.shape_cast %674 : vector<1x8x512xf32> to vector<8x512xf32>
    %c2_237 = arith.constant 2 : index
    %c0_238 = arith.constant 0 : index
    %c0_239 = arith.constant 0 : index
    %676 = vector.load %arg2[%c2_237, %c0_238, %c0_239] : memref<4x128x512xf32, #tpu.memory_space<vmem>>, vector<1x128x512xf32>
    %677 = vector.shape_cast %676 : vector<1x128x512xf32> to vector<128x512xf32>
    %cst_240 = arith.constant dense<0.000000e+00> : vector<8x512xf32>
    %678 = tpu.matmul %668, %677, %cst_240 {dimension_numbers = #tpu.dot_dimension_numbers<[1], [0], [0], [1], [0, 0, 1, 1], [], []>} : vector<8x128xf32>, vector<128x512xf32>, vector<8x512xf32> -> vector<8x512xf32>
    %679 = arith.addf %675, %678 : vector<8x512xf32>
    %680 = vector.extract_strided_slice %679 {offsets = [0, 0], sizes = [8, 128], strides = [1, 1]} : vector<8x512xf32> to vector<8x128xf32>
    %681 = arith.negf %680 : vector<8x128xf32>
    %682 = math.exp %681 : vector<8x128xf32>
    %cst_241 = arith.constant 1.000000e+00 : f32
    %683 = vector.broadcast %cst_241 : f32 to vector<8x128xf32>
    %684 = arith.addf %683, %682 : vector<8x128xf32>
    %685 = arith.divf %683, %684 : vector<8x128xf32>
    %686 = vector.extract_strided_slice %679 {offsets = [0, 128], sizes = [8, 128], strides = [1, 1]} : vector<8x512xf32> to vector<8x128xf32>
    %687 = arith.negf %686 : vector<8x128xf32>
    %688 = math.exp %687 : vector<8x128xf32>
    %cst_242 = arith.constant 1.000000e+00 : f32
    %689 = vector.broadcast %cst_242 : f32 to vector<8x128xf32>
    %690 = arith.addf %689, %688 : vector<8x128xf32>
    %691 = arith.divf %689, %690 : vector<8x128xf32>
    %692 = vector.extract_strided_slice %679 {offsets = [0, 256], sizes = [8, 128], strides = [1, 1]} : vector<8x512xf32> to vector<8x128xf32>
    %693 = math.tanh %692 : vector<8x128xf32>
    %694 = vector.extract_strided_slice %679 {offsets = [0, 384], sizes = [8, 128], strides = [1, 1]} : vector<8x512xf32> to vector<8x128xf32>
    %695 = arith.negf %694 : vector<8x128xf32>
    %696 = math.exp %695 : vector<8x128xf32>
    %cst_243 = arith.constant 1.000000e+00 : f32
    %697 = vector.broadcast %cst_243 : f32 to vector<8x128xf32>
    %698 = arith.addf %697, %696 : vector<8x128xf32>
    %699 = arith.divf %697, %698 : vector<8x128xf32>
    %700 = arith.mulf %691, %666 : vector<8x128xf32>
    %701 = arith.mulf %685, %693 : vector<8x128xf32>
    %702 = arith.addf %700, %701 : vector<8x128xf32>
    %703 = math.tanh %702 : vector<8x128xf32>
    %704 = arith.mulf %699, %703 : vector<8x128xf32>
    %705 = arith.index_cast %c2_i32_234 : i32 to index
    %c0_244 = arith.constant 0 : index
    %c0_245 = arith.constant 0 : index
    %706 = vector.load %arg7[%705, %c0_244, %c0_245] : memref<8x8x128xf32, #tpu.memory_space<vmem>>, vector<1x8x128xf32>
    %707 = vector.shape_cast %706 : vector<1x8x128xf32> to vector<8x128xf32>
    %708 = vector.shape_cast %704 : vector<8x128xf32> to vector<1x8x128xf32>
    tpu.vector_store %arg7[%705, %c0_244, %c0_245], %708 {strides = array<i32>} : memref<8x8x128xf32, #tpu.memory_space<vmem>>, vector<1x8x128xf32>,
    %c3_i32_246 = arith.constant 3 : i32
    %709 = arith.index_cast %c3_i32_246 : i32 to index
    %c0_247 = arith.constant 0 : index
    %c0_248 = arith.constant 0 : index
    %710 = vector.load %arg8[%709, %c0_247, %c0_248] : memref<8x8x512xf32, #tpu.memory_space<vmem>>, vector<1x8x512xf32>
    %711 = vector.shape_cast %710 : vector<1x8x512xf32> to vector<8x512xf32>
    %c2_249 = arith.constant 2 : index
    %c0_250 = arith.constant 0 : index
    %c0_251 = arith.constant 0 : index
    %712 = vector.load %arg2[%c2_249, %c0_250, %c0_251] : memref<4x128x512xf32, #tpu.memory_space<vmem>>, vector<1x128x512xf32>
    %713 = vector.shape_cast %712 : vector<1x128x512xf32> to vector<128x512xf32>
    %cst_252 = arith.constant dense<0.000000e+00> : vector<8x512xf32>
    %714 = tpu.matmul %704, %713, %cst_252 {dimension_numbers = #tpu.dot_dimension_numbers<[1], [0], [0], [1], [0, 0, 1, 1], [], []>} : vector<8x128xf32>, vector<128x512xf32>, vector<8x512xf32> -> vector<8x512xf32>
    %715 = arith.addf %711, %714 : vector<8x512xf32>
    %716 = vector.extract_strided_slice %715 {offsets = [0, 0], sizes = [8, 128], strides = [1, 1]} : vector<8x512xf32> to vector<8x128xf32>
    %717 = arith.negf %716 : vector<8x128xf32>
    %718 = math.exp %717 : vector<8x128xf32>
    %cst_253 = arith.constant 1.000000e+00 : f32
    %719 = vector.broadcast %cst_253 : f32 to vector<8x128xf32>
    %720 = arith.addf %719, %718 : vector<8x128xf32>
    %721 = arith.divf %719, %720 : vector<8x128xf32>
    %722 = vector.extract_strided_slice %715 {offsets = [0, 128], sizes = [8, 128], strides = [1, 1]} : vector<8x512xf32> to vector<8x128xf32>
    %723 = arith.negf %722 : vector<8x128xf32>
    %724 = math.exp %723 : vector<8x128xf32>
    %cst_254 = arith.constant 1.000000e+00 : f32
    %725 = vector.broadcast %cst_254 : f32 to vector<8x128xf32>
    %726 = arith.addf %725, %724 : vector<8x128xf32>
    %727 = arith.divf %725, %726 : vector<8x128xf32>
    %728 = vector.extract_strided_slice %715 {offsets = [0, 256], sizes = [8, 128], strides = [1, 1]} : vector<8x512xf32> to vector<8x128xf32>
    %729 = math.tanh %728 : vector<8x128xf32>
    %730 = vector.extract_strided_slice %715 {offsets = [0, 384], sizes = [8, 128], strides = [1, 1]} : vector<8x512xf32> to vector<8x128xf32>
    %731 = arith.negf %730 : vector<8x128xf32>
    %732 = math.exp %731 : vector<8x128xf32>
    %cst_255 = arith.constant 1.000000e+00 : f32
    %733 = vector.broadcast %cst_255 : f32 to vector<8x128xf32>
    %734 = arith.addf %733, %732 : vector<8x128xf32>
    %735 = arith.divf %733, %734 : vector<8x128xf32>
    %736 = arith.mulf %727, %702 : vector<8x128xf32>
    %737 = arith.mulf %721, %729 : vector<8x128xf32>
    %738 = arith.addf %736, %737 : vector<8x128xf32>
    %739 = math.tanh %738 : vector<8x128xf32>
    %740 = arith.mulf %735, %739 : vector<8x128xf32>
    %741 = arith.index_cast %c3_i32_246 : i32 to index
    %c0_256 = arith.constant 0 : index
    %c0_257 = arith.constant 0 : index
    %742 = vector.load %arg7[%741, %c0_256, %c0_257] : memref<8x8x128xf32, #tpu.memory_space<vmem>>, vector<1x8x128xf32>
    %743 = vector.shape_cast %742 : vector<1x8x128xf32> to vector<8x128xf32>
    %744 = vector.shape_cast %740 : vector<8x128xf32> to vector<1x8x128xf32>
    tpu.vector_store %arg7[%741, %c0_256, %c0_257], %744 {strides = array<i32>} : memref<8x8x128xf32, #tpu.memory_space<vmem>>, vector<1x8x128xf32>,
    %c4_i32_258 = arith.constant 4 : i32
    %745 = arith.index_cast %c4_i32_258 : i32 to index
    %c0_259 = arith.constant 0 : index
    %c0_260 = arith.constant 0 : index
    %746 = vector.load %arg8[%745, %c0_259, %c0_260] : memref<8x8x512xf32, #tpu.memory_space<vmem>>, vector<1x8x512xf32>
    %747 = vector.shape_cast %746 : vector<1x8x512xf32> to vector<8x512xf32>
    %c2_261 = arith.constant 2 : index
    %c0_262 = arith.constant 0 : index
    %c0_263 = arith.constant 0 : index
    %748 = vector.load %arg2[%c2_261, %c0_262, %c0_263] : memref<4x128x512xf32, #tpu.memory_space<vmem>>, vector<1x128x512xf32>
    %749 = vector.shape_cast %748 : vector<1x128x512xf32> to vector<128x512xf32>
    %cst_264 = arith.constant dense<0.000000e+00> : vector<8x512xf32>
    %750 = tpu.matmul %740, %749, %cst_264 {dimension_numbers = #tpu.dot_dimension_numbers<[1], [0], [0], [1], [0, 0, 1, 1], [], []>} : vector<8x128xf32>, vector<128x512xf32>, vector<8x512xf32> -> vector<8x512xf32>
    %751 = arith.addf %747, %750 : vector<8x512xf32>
    %752 = vector.extract_strided_slice %751 {offsets = [0, 0], sizes = [8, 128], strides = [1, 1]} : vector<8x512xf32> to vector<8x128xf32>
    %753 = arith.negf %752 : vector<8x128xf32>
    %754 = math.exp %753 : vector<8x128xf32>
    %cst_265 = arith.constant 1.000000e+00 : f32
    %755 = vector.broadcast %cst_265 : f32 to vector<8x128xf32>
    %756 = arith.addf %755, %754 : vector<8x128xf32>
    %757 = arith.divf %755, %756 : vector<8x128xf32>
    %758 = vector.extract_strided_slice %751 {offsets = [0, 128], sizes = [8, 128], strides = [1, 1]} : vector<8x512xf32> to vector<8x128xf32>
    %759 = arith.negf %758 : vector<8x128xf32>
    %760 = math.exp %759 : vector<8x128xf32>
    %cst_266 = arith.constant 1.000000e+00 : f32
    %761 = vector.broadcast %cst_266 : f32 to vector<8x128xf32>
    %762 = arith.addf %761, %760 : vector<8x128xf32>
    %763 = arith.divf %761, %762 : vector<8x128xf32>
    %764 = vector.extract_strided_slice %751 {offsets = [0, 256], sizes = [8, 128], strides = [1, 1]} : vector<8x512xf32> to vector<8x128xf32>
    %765 = math.tanh %764 : vector<8x128xf32>
    %766 = vector.extract_strided_slice %751 {offsets = [0, 384], sizes = [8, 128], strides = [1, 1]} : vector<8x512xf32> to vector<8x128xf32>
    %767 = arith.negf %766 : vector<8x128xf32>
    %768 = math.exp %767 : vector<8x128xf32>
    %cst_267 = arith.constant 1.000000e+00 : f32
    %769 = vector.broadcast %cst_267 : f32 to vector<8x128xf32>
    %770 = arith.addf %769, %768 : vector<8x128xf32>
    %771 = arith.divf %769, %770 : vector<8x128xf32>
    %772 = arith.mulf %763, %738 : vector<8x128xf32>
    %773 = arith.mulf %757, %765 : vector<8x128xf32>
    %774 = arith.addf %772, %773 : vector<8x128xf32>
    %775 = math.tanh %774 : vector<8x128xf32>
    %776 = arith.mulf %771, %775 : vector<8x128xf32>
    %777 = arith.index_cast %c4_i32_258 : i32 to index
    %c0_268 = arith.constant 0 : index
    %c0_269 = arith.constant 0 : index
    %778 = vector.load %arg7[%777, %c0_268, %c0_269] : memref<8x8x128xf32, #tpu.memory_space<vmem>>, vector<1x8x128xf32>
    %779 = vector.shape_cast %778 : vector<1x8x128xf32> to vector<8x128xf32>
    %780 = vector.shape_cast %776 : vector<8x128xf32> to vector<1x8x128xf32>
    tpu.vector_store %arg7[%777, %c0_268, %c0_269], %780 {strides = array<i32>} : memref<8x8x128xf32, #tpu.memory_space<vmem>>, vector<1x8x128xf32>,
    %c5_i32_270 = arith.constant 5 : i32
    %781 = arith.index_cast %c5_i32_270 : i32 to index
    %c0_271 = arith.constant 0 : index
    %c0_272 = arith.constant 0 : index
    %782 = vector.load %arg8[%781, %c0_271, %c0_272] : memref<8x8x512xf32, #tpu.memory_space<vmem>>, vector<1x8x512xf32>
    %783 = vector.shape_cast %782 : vector<1x8x512xf32> to vector<8x512xf32>
    %c2_273 = arith.constant 2 : index
    %c0_274 = arith.constant 0 : index
    %c0_275 = arith.constant 0 : index
    %784 = vector.load %arg2[%c2_273, %c0_274, %c0_275] : memref<4x128x512xf32, #tpu.memory_space<vmem>>, vector<1x128x512xf32>
    %785 = vector.shape_cast %784 : vector<1x128x512xf32> to vector<128x512xf32>
    %cst_276 = arith.constant dense<0.000000e+00> : vector<8x512xf32>
    %786 = tpu.matmul %776, %785, %cst_276 {dimension_numbers = #tpu.dot_dimension_numbers<[1], [0], [0], [1], [0, 0, 1, 1], [], []>} : vector<8x128xf32>, vector<128x512xf32>, vector<8x512xf32> -> vector<8x512xf32>
    %787 = arith.addf %783, %786 : vector<8x512xf32>
    %788 = vector.extract_strided_slice %787 {offsets = [0, 0], sizes = [8, 128], strides = [1, 1]} : vector<8x512xf32> to vector<8x128xf32>
    %789 = arith.negf %788 : vector<8x128xf32>
    %790 = math.exp %789 : vector<8x128xf32>
    %cst_277 = arith.constant 1.000000e+00 : f32
    %791 = vector.broadcast %cst_277 : f32 to vector<8x128xf32>
    %792 = arith.addf %791, %790 : vector<8x128xf32>
    %793 = arith.divf %791, %792 : vector<8x128xf32>
    %794 = vector.extract_strided_slice %787 {offsets = [0, 128], sizes = [8, 128], strides = [1, 1]} : vector<8x512xf32> to vector<8x128xf32>
    %795 = arith.negf %794 : vector<8x128xf32>
    %796 = math.exp %795 : vector<8x128xf32>
    %cst_278 = arith.constant 1.000000e+00 : f32
    %797 = vector.broadcast %cst_278 : f32 to vector<8x128xf32>
    %798 = arith.addf %797, %796 : vector<8x128xf32>
    %799 = arith.divf %797, %798 : vector<8x128xf32>
    %800 = vector.extract_strided_slice %787 {offsets = [0, 256], sizes = [8, 128], strides = [1, 1]} : vector<8x512xf32> to vector<8x128xf32>
    %801 = math.tanh %800 : vector<8x128xf32>
    %802 = vector.extract_strided_slice %787 {offsets = [0, 384], sizes = [8, 128], strides = [1, 1]} : vector<8x512xf32> to vector<8x128xf32>
    %803 = arith.negf %802 : vector<8x128xf32>
    %804 = math.exp %803 : vector<8x128xf32>
    %cst_279 = arith.constant 1.000000e+00 : f32
    %805 = vector.broadcast %cst_279 : f32 to vector<8x128xf32>
    %806 = arith.addf %805, %804 : vector<8x128xf32>
    %807 = arith.divf %805, %806 : vector<8x128xf32>
    %808 = arith.mulf %799, %774 : vector<8x128xf32>
    %809 = arith.mulf %793, %801 : vector<8x128xf32>
    %810 = arith.addf %808, %809 : vector<8x128xf32>
    %811 = math.tanh %810 : vector<8x128xf32>
    %812 = arith.mulf %807, %811 : vector<8x128xf32>
    %813 = arith.index_cast %c5_i32_270 : i32 to index
    %c0_280 = arith.constant 0 : index
    %c0_281 = arith.constant 0 : index
    %814 = vector.load %arg7[%813, %c0_280, %c0_281] : memref<8x8x128xf32, #tpu.memory_space<vmem>>, vector<1x8x128xf32>
    %815 = vector.shape_cast %814 : vector<1x8x128xf32> to vector<8x128xf32>
    %816 = vector.shape_cast %812 : vector<8x128xf32> to vector<1x8x128xf32>
    tpu.vector_store %arg7[%813, %c0_280, %c0_281], %816 {strides = array<i32>} : memref<8x8x128xf32, #tpu.memory_space<vmem>>, vector<1x8x128xf32>,
    %c6_i32_282 = arith.constant 6 : i32
    %817 = arith.index_cast %c6_i32_282 : i32 to index
    %c0_283 = arith.constant 0 : index
    %c0_284 = arith.constant 0 : index
    %818 = vector.load %arg8[%817, %c0_283, %c0_284] : memref<8x8x512xf32, #tpu.memory_space<vmem>>, vector<1x8x512xf32>
    %819 = vector.shape_cast %818 : vector<1x8x512xf32> to vector<8x512xf32>
    %c2_285 = arith.constant 2 : index
    %c0_286 = arith.constant 0 : index
    %c0_287 = arith.constant 0 : index
    %820 = vector.load %arg2[%c2_285, %c0_286, %c0_287] : memref<4x128x512xf32, #tpu.memory_space<vmem>>, vector<1x128x512xf32>
    %821 = vector.shape_cast %820 : vector<1x128x512xf32> to vector<128x512xf32>
    %cst_288 = arith.constant dense<0.000000e+00> : vector<8x512xf32>
    %822 = tpu.matmul %812, %821, %cst_288 {dimension_numbers = #tpu.dot_dimension_numbers<[1], [0], [0], [1], [0, 0, 1, 1], [], []>} : vector<8x128xf32>, vector<128x512xf32>, vector<8x512xf32> -> vector<8x512xf32>
    %823 = arith.addf %819, %822 : vector<8x512xf32>
    %824 = vector.extract_strided_slice %823 {offsets = [0, 0], sizes = [8, 128], strides = [1, 1]} : vector<8x512xf32> to vector<8x128xf32>
    %825 = arith.negf %824 : vector<8x128xf32>
    %826 = math.exp %825 : vector<8x128xf32>
    %cst_289 = arith.constant 1.000000e+00 : f32
    %827 = vector.broadcast %cst_289 : f32 to vector<8x128xf32>
    %828 = arith.addf %827, %826 : vector<8x128xf32>
    %829 = arith.divf %827, %828 : vector<8x128xf32>
    %830 = vector.extract_strided_slice %823 {offsets = [0, 128], sizes = [8, 128], strides = [1, 1]} : vector<8x512xf32> to vector<8x128xf32>
    %831 = arith.negf %830 : vector<8x128xf32>
    %832 = math.exp %831 : vector<8x128xf32>
    %cst_290 = arith.constant 1.000000e+00 : f32
    %833 = vector.broadcast %cst_290 : f32 to vector<8x128xf32>
    %834 = arith.addf %833, %832 : vector<8x128xf32>
    %835 = arith.divf %833, %834 : vector<8x128xf32>
    %836 = vector.extract_strided_slice %823 {offsets = [0, 256], sizes = [8, 128], strides = [1, 1]} : vector<8x512xf32> to vector<8x128xf32>
    %837 = math.tanh %836 : vector<8x128xf32>
    %838 = vector.extract_strided_slice %823 {offsets = [0, 384], sizes = [8, 128], strides = [1, 1]} : vector<8x512xf32> to vector<8x128xf32>
    %839 = arith.negf %838 : vector<8x128xf32>
    %840 = math.exp %839 : vector<8x128xf32>
    %cst_291 = arith.constant 1.000000e+00 : f32
    %841 = vector.broadcast %cst_291 : f32 to vector<8x128xf32>
    %842 = arith.addf %841, %840 : vector<8x128xf32>
    %843 = arith.divf %841, %842 : vector<8x128xf32>
    %844 = arith.mulf %835, %810 : vector<8x128xf32>
    %845 = arith.mulf %829, %837 : vector<8x128xf32>
    %846 = arith.addf %844, %845 : vector<8x128xf32>
    %847 = math.tanh %846 : vector<8x128xf32>
    %848 = arith.mulf %843, %847 : vector<8x128xf32>
    %849 = arith.index_cast %c6_i32_282 : i32 to index
    %c0_292 = arith.constant 0 : index
    %c0_293 = arith.constant 0 : index
    %850 = vector.load %arg7[%849, %c0_292, %c0_293] : memref<8x8x128xf32, #tpu.memory_space<vmem>>, vector<1x8x128xf32>
    %851 = vector.shape_cast %850 : vector<1x8x128xf32> to vector<8x128xf32>
    %852 = vector.shape_cast %848 : vector<8x128xf32> to vector<1x8x128xf32>
    tpu.vector_store %arg7[%849, %c0_292, %c0_293], %852 {strides = array<i32>} : memref<8x8x128xf32, #tpu.memory_space<vmem>>, vector<1x8x128xf32>,
    %c7_i32_294 = arith.constant 7 : i32
    %853 = arith.index_cast %c7_i32_294 : i32 to index
    %c0_295 = arith.constant 0 : index
    %c0_296 = arith.constant 0 : index
    %854 = vector.load %arg8[%853, %c0_295, %c0_296] : memref<8x8x512xf32, #tpu.memory_space<vmem>>, vector<1x8x512xf32>
    %855 = vector.shape_cast %854 : vector<1x8x512xf32> to vector<8x512xf32>
    %c2_297 = arith.constant 2 : index
    %c0_298 = arith.constant 0 : index
    %c0_299 = arith.constant 0 : index
    %856 = vector.load %arg2[%c2_297, %c0_298, %c0_299] : memref<4x128x512xf32, #tpu.memory_space<vmem>>, vector<1x128x512xf32>
    %857 = vector.shape_cast %856 : vector<1x128x512xf32> to vector<128x512xf32>
    %cst_300 = arith.constant dense<0.000000e+00> : vector<8x512xf32>
    %858 = tpu.matmul %848, %857, %cst_300 {dimension_numbers = #tpu.dot_dimension_numbers<[1], [0], [0], [1], [0, 0, 1, 1], [], []>} : vector<8x128xf32>, vector<128x512xf32>, vector<8x512xf32> -> vector<8x512xf32>
    %859 = arith.addf %855, %858 : vector<8x512xf32>
    %860 = vector.extract_strided_slice %859 {offsets = [0, 0], sizes = [8, 128], strides = [1, 1]} : vector<8x512xf32> to vector<8x128xf32>
    %861 = arith.negf %860 : vector<8x128xf32>
    %862 = math.exp %861 : vector<8x128xf32>
    %cst_301 = arith.constant 1.000000e+00 : f32
    %863 = vector.broadcast %cst_301 : f32 to vector<8x128xf32>
    %864 = arith.addf %863, %862 : vector<8x128xf32>
    %865 = arith.divf %863, %864 : vector<8x128xf32>
    %866 = vector.extract_strided_slice %859 {offsets = [0, 128], sizes = [8, 128], strides = [1, 1]} : vector<8x512xf32> to vector<8x128xf32>
    %867 = arith.negf %866 : vector<8x128xf32>
    %868 = math.exp %867 : vector<8x128xf32>
    %cst_302 = arith.constant 1.000000e+00 : f32
    %869 = vector.broadcast %cst_302 : f32 to vector<8x128xf32>
    %870 = arith.addf %869, %868 : vector<8x128xf32>
    %871 = arith.divf %869, %870 : vector<8x128xf32>
    %872 = vector.extract_strided_slice %859 {offsets = [0, 256], sizes = [8, 128], strides = [1, 1]} : vector<8x512xf32> to vector<8x128xf32>
    %873 = math.tanh %872 : vector<8x128xf32>
    %874 = vector.extract_strided_slice %859 {offsets = [0, 384], sizes = [8, 128], strides = [1, 1]} : vector<8x512xf32> to vector<8x128xf32>
    %875 = arith.negf %874 : vector<8x128xf32>
    %876 = math.exp %875 : vector<8x128xf32>
    %cst_303 = arith.constant 1.000000e+00 : f32
    %877 = vector.broadcast %cst_303 : f32 to vector<8x128xf32>
    %878 = arith.addf %877, %876 : vector<8x128xf32>
    %879 = arith.divf %877, %878 : vector<8x128xf32>
    %880 = arith.mulf %871, %846 : vector<8x128xf32>
    %881 = arith.mulf %865, %873 : vector<8x128xf32>
    %882 = arith.addf %880, %881 : vector<8x128xf32>
    %883 = math.tanh %882 : vector<8x128xf32>
    %884 = arith.mulf %879, %883 : vector<8x128xf32>
    %885 = arith.index_cast %c7_i32_294 : i32 to index
    %c0_304 = arith.constant 0 : index
    %c0_305 = arith.constant 0 : index
    %886 = vector.load %arg7[%885, %c0_304, %c0_305] : memref<8x8x128xf32, #tpu.memory_space<vmem>>, vector<1x8x128xf32>
    %887 = vector.shape_cast %886 : vector<1x8x128xf32> to vector<8x128xf32>
    %888 = vector.shape_cast %884 : vector<8x128xf32> to vector<1x8x128xf32>
    tpu.vector_store %arg7[%885, %c0_304, %c0_305], %888 {strides = array<i32>} : memref<8x8x128xf32, #tpu.memory_space<vmem>>, vector<1x8x128xf32>,
    %c8_i32_306 = arith.constant 8 : i32
    %c0_307 = arith.constant 0 : index
    %c0_308 = arith.constant 0 : index
    %c0_309 = arith.constant 0 : index
    %889 = vector.load %arg7[%c0_307, %c0_308, %c0_309] : memref<8x8x128xf32, #tpu.memory_space<vmem>>, vector<8x8x128xf32>
    %890 = vector.shape_cast %889 : vector<8x8x128xf32> to vector<64x128xf32>
    %c2_310 = arith.constant 2 : index
    %c0_311 = arith.constant 0 : index
    %c0_312 = arith.constant 0 : index
    %891 = vector.load %arg1[%c2_310, %c0_311, %c0_312] : memref<3x128x512xf32, #tpu.memory_space<vmem>>, vector<1x128x512xf32>
    %892 = vector.shape_cast %891 : vector<1x128x512xf32> to vector<128x512xf32>
    %cst_313 = arith.constant dense<0.000000e+00> : vector<64x512xf32>
    %893 = tpu.matmul %890, %892, %cst_313 {dimension_numbers = #tpu.dot_dimension_numbers<[1], [0], [0], [1], [0, 0, 1, 1], [], []>} : vector<64x128xf32>, vector<128x512xf32>, vector<64x512xf32> -> vector<64x512xf32>
    %c2_314 = arith.constant 2 : index
    %c0_315 = arith.constant 0 : index
    %c0_316 = arith.constant 0 : index
    %894 = vector.load %arg3[%c2_314, %c0_315, %c0_316] : memref<3x1x512xf32, #tpu.memory_space<vmem>>, vector<1x1x512xf32>
    %895 = vector.shape_cast %894 : vector<1x1x512xf32> to vector<1x512xf32>
    %896 = vector.broadcast %895 : vector<1x512xf32> to vector<64x512xf32>
    %897 = arith.addf %893, %896 : vector<64x512xf32>
    %898 = vector.shape_cast %897 : vector<64x512xf32> to vector<8x8x512xf32>
    %c0_317 = arith.constant 0 : index
    %c0_318 = arith.constant 0 : index
    %c0_319 = arith.constant 0 : index
    %899 = vector.load %arg8[%c0_317, %c0_318, %c0_319] : memref<8x8x512xf32, #tpu.memory_space<vmem>>, vector<8x8x512xf32>
    tpu.vector_store %arg8[%c0_317, %c0_318, %c0_319], %898 {strides = array<i32>} : memref<8x8x512xf32, #tpu.memory_space<vmem>>, vector<8x8x512xf32>,
    %cst_320 = arith.constant 0.000000e+00 : f32
    %900 = vector.broadcast %cst_320 : f32 to vector<8x128xf32>
    %c0_i32_321 = arith.constant 0 : i32
    %901 = arith.index_cast %c0_i32_321 : i32 to index
    %c0_322 = arith.constant 0 : index
    %c0_323 = arith.constant 0 : index
    %902 = vector.load %arg8[%901, %c0_322, %c0_323] : memref<8x8x512xf32, #tpu.memory_space<vmem>>, vector<1x8x512xf32>
    %903 = vector.shape_cast %902 : vector<1x8x512xf32> to vector<8x512xf32>
    %c3 = arith.constant 3 : index
    %c0_324 = arith.constant 0 : index
    %c0_325 = arith.constant 0 : index
    %904 = vector.load %arg2[%c3, %c0_324, %c0_325] : memref<4x128x512xf32, #tpu.memory_space<vmem>>, vector<1x128x512xf32>
    %905 = vector.shape_cast %904 : vector<1x128x512xf32> to vector<128x512xf32>
    %cst_326 = arith.constant dense<0.000000e+00> : vector<8x512xf32>
    %906 = tpu.matmul %900, %905, %cst_326 {dimension_numbers = #tpu.dot_dimension_numbers<[1], [0], [0], [1], [0, 0, 1, 1], [], []>} : vector<8x128xf32>, vector<128x512xf32>, vector<8x512xf32> -> vector<8x512xf32>
    %907 = arith.addf %903, %906 : vector<8x512xf32>
    %908 = vector.extract_strided_slice %907 {offsets = [0, 0], sizes = [8, 128], strides = [1, 1]} : vector<8x512xf32> to vector<8x128xf32>
    %909 = arith.negf %908 : vector<8x128xf32>
    %910 = math.exp %909 : vector<8x128xf32>
    %cst_327 = arith.constant 1.000000e+00 : f32
    %911 = vector.broadcast %cst_327 : f32 to vector<8x128xf32>
    %912 = arith.addf %911, %910 : vector<8x128xf32>
    %913 = arith.divf %911, %912 : vector<8x128xf32>
    %914 = vector.extract_strided_slice %907 {offsets = [0, 128], sizes = [8, 128], strides = [1, 1]} : vector<8x512xf32> to vector<8x128xf32>
    %915 = arith.negf %914 : vector<8x128xf32>
    %916 = math.exp %915 : vector<8x128xf32>
    %cst_328 = arith.constant 1.000000e+00 : f32
    %917 = vector.broadcast %cst_328 : f32 to vector<8x128xf32>
    %918 = arith.addf %917, %916 : vector<8x128xf32>
    %919 = arith.divf %917, %918 : vector<8x128xf32>
    %920 = vector.extract_strided_slice %907 {offsets = [0, 256], sizes = [8, 128], strides = [1, 1]} : vector<8x512xf32> to vector<8x128xf32>
    %921 = math.tanh %920 : vector<8x128xf32>
    %922 = vector.extract_strided_slice %907 {offsets = [0, 384], sizes = [8, 128], strides = [1, 1]} : vector<8x512xf32> to vector<8x128xf32>
    %923 = arith.negf %922 : vector<8x128xf32>
    %924 = math.exp %923 : vector<8x128xf32>
    %cst_329 = arith.constant 1.000000e+00 : f32
    %925 = vector.broadcast %cst_329 : f32 to vector<8x128xf32>
    %926 = arith.addf %925, %924 : vector<8x128xf32>
    %927 = arith.divf %925, %926 : vector<8x128xf32>
    %928 = arith.mulf %919, %900 : vector<8x128xf32>
    %929 = arith.mulf %913, %921 : vector<8x128xf32>
    %930 = arith.addf %928, %929 : vector<8x128xf32>
    %931 = math.tanh %930 : vector<8x128xf32>
    %932 = arith.mulf %927, %931 : vector<8x128xf32>
    %933 = arith.index_cast %c0_i32_321 : i32 to index
    %c0_330 = arith.constant 0 : index
    %c0_331 = arith.constant 0 : index
    %934 = vector.load %arg7[%933, %c0_330, %c0_331] : memref<8x8x128xf32, #tpu.memory_space<vmem>>, vector<1x8x128xf32>
    %935 = vector.shape_cast %934 : vector<1x8x128xf32> to vector<8x128xf32>
    %936 = vector.shape_cast %932 : vector<8x128xf32> to vector<1x8x128xf32>
    tpu.vector_store %arg7[%933, %c0_330, %c0_331], %936 {strides = array<i32>} : memref<8x8x128xf32, #tpu.memory_space<vmem>>, vector<1x8x128xf32>,
    %c1_i32_332 = arith.constant 1 : i32
    %937 = arith.index_cast %c1_i32_332 : i32 to index
    %c0_333 = arith.constant 0 : index
    %c0_334 = arith.constant 0 : index
    %938 = vector.load %arg8[%937, %c0_333, %c0_334] : memref<8x8x512xf32, #tpu.memory_space<vmem>>, vector<1x8x512xf32>
    %939 = vector.shape_cast %938 : vector<1x8x512xf32> to vector<8x512xf32>
    %c3_335 = arith.constant 3 : index
    %c0_336 = arith.constant 0 : index
    %c0_337 = arith.constant 0 : index
    %940 = vector.load %arg2[%c3_335, %c0_336, %c0_337] : memref<4x128x512xf32, #tpu.memory_space<vmem>>, vector<1x128x512xf32>
    %941 = vector.shape_cast %940 : vector<1x128x512xf32> to vector<128x512xf32>
    %cst_338 = arith.constant dense<0.000000e+00> : vector<8x512xf32>
    %942 = tpu.matmul %932, %941, %cst_338 {dimension_numbers = #tpu.dot_dimension_numbers<[1], [0], [0], [1], [0, 0, 1, 1], [], []>} : vector<8x128xf32>, vector<128x512xf32>, vector<8x512xf32> -> vector<8x512xf32>
    %943 = arith.addf %939, %942 : vector<8x512xf32>
    %944 = vector.extract_strided_slice %943 {offsets = [0, 0], sizes = [8, 128], strides = [1, 1]} : vector<8x512xf32> to vector<8x128xf32>
    %945 = arith.negf %944 : vector<8x128xf32>
    %946 = math.exp %945 : vector<8x128xf32>
    %cst_339 = arith.constant 1.000000e+00 : f32
    %947 = vector.broadcast %cst_339 : f32 to vector<8x128xf32>
    %948 = arith.addf %947, %946 : vector<8x128xf32>
    %949 = arith.divf %947, %948 : vector<8x128xf32>
    %950 = vector.extract_strided_slice %943 {offsets = [0, 128], sizes = [8, 128], strides = [1, 1]} : vector<8x512xf32> to vector<8x128xf32>
    %951 = arith.negf %950 : vector<8x128xf32>
    %952 = math.exp %951 : vector<8x128xf32>
    %cst_340 = arith.constant 1.000000e+00 : f32
    %953 = vector.broadcast %cst_340 : f32 to vector<8x128xf32>
    %954 = arith.addf %953, %952 : vector<8x128xf32>
    %955 = arith.divf %953, %954 : vector<8x128xf32>
    %956 = vector.extract_strided_slice %943 {offsets = [0, 256], sizes = [8, 128], strides = [1, 1]} : vector<8x512xf32> to vector<8x128xf32>
    %957 = math.tanh %956 : vector<8x128xf32>
    %958 = vector.extract_strided_slice %943 {offsets = [0, 384], sizes = [8, 128], strides = [1, 1]} : vector<8x512xf32> to vector<8x128xf32>
    %959 = arith.negf %958 : vector<8x128xf32>
    %960 = math.exp %959 : vector<8x128xf32>
    %cst_341 = arith.constant 1.000000e+00 : f32
    %961 = vector.broadcast %cst_341 : f32 to vector<8x128xf32>
    %962 = arith.addf %961, %960 : vector<8x128xf32>
    %963 = arith.divf %961, %962 : vector<8x128xf32>
    %964 = arith.mulf %955, %930 : vector<8x128xf32>
    %965 = arith.mulf %949, %957 : vector<8x128xf32>
    %966 = arith.addf %964, %965 : vector<8x128xf32>
    %967 = math.tanh %966 : vector<8x128xf32>
    %968 = arith.mulf %963, %967 : vector<8x128xf32>
    %969 = arith.index_cast %c1_i32_332 : i32 to index
    %c0_342 = arith.constant 0 : index
    %c0_343 = arith.constant 0 : index
    %970 = vector.load %arg7[%969, %c0_342, %c0_343] : memref<8x8x128xf32, #tpu.memory_space<vmem>>, vector<1x8x128xf32>
    %971 = vector.shape_cast %970 : vector<1x8x128xf32> to vector<8x128xf32>
    %972 = vector.shape_cast %968 : vector<8x128xf32> to vector<1x8x128xf32>
    tpu.vector_store %arg7[%969, %c0_342, %c0_343], %972 {strides = array<i32>} : memref<8x8x128xf32, #tpu.memory_space<vmem>>, vector<1x8x128xf32>,
    %c2_i32_344 = arith.constant 2 : i32
    %973 = arith.index_cast %c2_i32_344 : i32 to index
    %c0_345 = arith.constant 0 : index
    %c0_346 = arith.constant 0 : index
    %974 = vector.load %arg8[%973, %c0_345, %c0_346] : memref<8x8x512xf32, #tpu.memory_space<vmem>>, vector<1x8x512xf32>
    %975 = vector.shape_cast %974 : vector<1x8x512xf32> to vector<8x512xf32>
    %c3_347 = arith.constant 3 : index
    %c0_348 = arith.constant 0 : index
    %c0_349 = arith.constant 0 : index
    %976 = vector.load %arg2[%c3_347, %c0_348, %c0_349] : memref<4x128x512xf32, #tpu.memory_space<vmem>>, vector<1x128x512xf32>
    %977 = vector.shape_cast %976 : vector<1x128x512xf32> to vector<128x512xf32>
    %cst_350 = arith.constant dense<0.000000e+00> : vector<8x512xf32>
    %978 = tpu.matmul %968, %977, %cst_350 {dimension_numbers = #tpu.dot_dimension_numbers<[1], [0], [0], [1], [0, 0, 1, 1], [], []>} : vector<8x128xf32>, vector<128x512xf32>, vector<8x512xf32> -> vector<8x512xf32>
    %979 = arith.addf %975, %978 : vector<8x512xf32>
    %980 = vector.extract_strided_slice %979 {offsets = [0, 0], sizes = [8, 128], strides = [1, 1]} : vector<8x512xf32> to vector<8x128xf32>
    %981 = arith.negf %980 : vector<8x128xf32>
    %982 = math.exp %981 : vector<8x128xf32>
    %cst_351 = arith.constant 1.000000e+00 : f32
    %983 = vector.broadcast %cst_351 : f32 to vector<8x128xf32>
    %984 = arith.addf %983, %982 : vector<8x128xf32>
    %985 = arith.divf %983, %984 : vector<8x128xf32>
    %986 = vector.extract_strided_slice %979 {offsets = [0, 128], sizes = [8, 128], strides = [1, 1]} : vector<8x512xf32> to vector<8x128xf32>
    %987 = arith.negf %986 : vector<8x128xf32>
    %988 = math.exp %987 : vector<8x128xf32>
    %cst_352 = arith.constant 1.000000e+00 : f32
    %989 = vector.broadcast %cst_352 : f32 to vector<8x128xf32>
    %990 = arith.addf %989, %988 : vector<8x128xf32>
    %991 = arith.divf %989, %990 : vector<8x128xf32>
    %992 = vector.extract_strided_slice %979 {offsets = [0, 256], sizes = [8, 128], strides = [1, 1]} : vector<8x512xf32> to vector<8x128xf32>
    %993 = math.tanh %992 : vector<8x128xf32>
    %994 = vector.extract_strided_slice %979 {offsets = [0, 384], sizes = [8, 128], strides = [1, 1]} : vector<8x512xf32> to vector<8x128xf32>
    %995 = arith.negf %994 : vector<8x128xf32>
    %996 = math.exp %995 : vector<8x128xf32>
    %cst_353 = arith.constant 1.000000e+00 : f32
    %997 = vector.broadcast %cst_353 : f32 to vector<8x128xf32>
    %998 = arith.addf %997, %996 : vector<8x128xf32>
    %999 = arith.divf %997, %998 : vector<8x128xf32>
    %1000 = arith.mulf %991, %966 : vector<8x128xf32>
    %1001 = arith.mulf %985, %993 : vector<8x128xf32>
    %1002 = arith.addf %1000, %1001 : vector<8x128xf32>
    %1003 = math.tanh %1002 : vector<8x128xf32>
    %1004 = arith.mulf %999, %1003 : vector<8x128xf32>
    %1005 = arith.index_cast %c2_i32_344 : i32 to index
    %c0_354 = arith.constant 0 : index
    %c0_355 = arith.constant 0 : index
    %1006 = vector.load %arg7[%1005, %c0_354, %c0_355] : memref<8x8x128xf32, #tpu.memory_space<vmem>>, vector<1x8x128xf32>
    %1007 = vector.shape_cast %1006 : vector<1x8x128xf32> to vector<8x128xf32>
    %1008 = vector.shape_cast %1004 : vector<8x128xf32> to vector<1x8x128xf32>
    tpu.vector_store %arg7[%1005, %c0_354, %c0_355], %1008 {strides = array<i32>} : memref<8x8x128xf32, #tpu.memory_space<vmem>>, vector<1x8x128xf32>,
    %c3_i32_356 = arith.constant 3 : i32
    %1009 = arith.index_cast %c3_i32_356 : i32 to index
    %c0_357 = arith.constant 0 : index
    %c0_358 = arith.constant 0 : index
    %1010 = vector.load %arg8[%1009, %c0_357, %c0_358] : memref<8x8x512xf32, #tpu.memory_space<vmem>>, vector<1x8x512xf32>
    %1011 = vector.shape_cast %1010 : vector<1x8x512xf32> to vector<8x512xf32>
    %c3_359 = arith.constant 3 : index
    %c0_360 = arith.constant 0 : index
    %c0_361 = arith.constant 0 : index
    %1012 = vector.load %arg2[%c3_359, %c0_360, %c0_361] : memref<4x128x512xf32, #tpu.memory_space<vmem>>, vector<1x128x512xf32>
    %1013 = vector.shape_cast %1012 : vector<1x128x512xf32> to vector<128x512xf32>
    %cst_362 = arith.constant dense<0.000000e+00> : vector<8x512xf32>
    %1014 = tpu.matmul %1004, %1013, %cst_362 {dimension_numbers = #tpu.dot_dimension_numbers<[1], [0], [0], [1], [0, 0, 1, 1], [], []>} : vector<8x128xf32>, vector<128x512xf32>, vector<8x512xf32> -> vector<8x512xf32>
    %1015 = arith.addf %1011, %1014 : vector<8x512xf32>
    %1016 = vector.extract_strided_slice %1015 {offsets = [0, 0], sizes = [8, 128], strides = [1, 1]} : vector<8x512xf32> to vector<8x128xf32>
    %1017 = arith.negf %1016 : vector<8x128xf32>
    %1018 = math.exp %1017 : vector<8x128xf32>
    %cst_363 = arith.constant 1.000000e+00 : f32
    %1019 = vector.broadcast %cst_363 : f32 to vector<8x128xf32>
    %1020 = arith.addf %1019, %1018 : vector<8x128xf32>
    %1021 = arith.divf %1019, %1020 : vector<8x128xf32>
    %1022 = vector.extract_strided_slice %1015 {offsets = [0, 128], sizes = [8, 128], strides = [1, 1]} : vector<8x512xf32> to vector<8x128xf32>
    %1023 = arith.negf %1022 : vector<8x128xf32>
    %1024 = math.exp %1023 : vector<8x128xf32>
    %cst_364 = arith.constant 1.000000e+00 : f32
    %1025 = vector.broadcast %cst_364 : f32 to vector<8x128xf32>
    %1026 = arith.addf %1025, %1024 : vector<8x128xf32>
    %1027 = arith.divf %1025, %1026 : vector<8x128xf32>
    %1028 = vector.extract_strided_slice %1015 {offsets = [0, 256], sizes = [8, 128], strides = [1, 1]} : vector<8x512xf32> to vector<8x128xf32>
    %1029 = math.tanh %1028 : vector<8x128xf32>
    %1030 = vector.extract_strided_slice %1015 {offsets = [0, 384], sizes = [8, 128], strides = [1, 1]} : vector<8x512xf32> to vector<8x128xf32>
    %1031 = arith.negf %1030 : vector<8x128xf32>
    %1032 = math.exp %1031 : vector<8x128xf32>
    %cst_365 = arith.constant 1.000000e+00 : f32
    %1033 = vector.broadcast %cst_365 : f32 to vector<8x128xf32>
    %1034 = arith.addf %1033, %1032 : vector<8x128xf32>
    %1035 = arith.divf %1033, %1034 : vector<8x128xf32>
    %1036 = arith.mulf %1027, %1002 : vector<8x128xf32>
    %1037 = arith.mulf %1021, %1029 : vector<8x128xf32>
    %1038 = arith.addf %1036, %1037 : vector<8x128xf32>
    %1039 = math.tanh %1038 : vector<8x128xf32>
    %1040 = arith.mulf %1035, %1039 : vector<8x128xf32>
    %1041 = arith.index_cast %c3_i32_356 : i32 to index
    %c0_366 = arith.constant 0 : index
    %c0_367 = arith.constant 0 : index
    %1042 = vector.load %arg7[%1041, %c0_366, %c0_367] : memref<8x8x128xf32, #tpu.memory_space<vmem>>, vector<1x8x128xf32>
    %1043 = vector.shape_cast %1042 : vector<1x8x128xf32> to vector<8x128xf32>
    %1044 = vector.shape_cast %1040 : vector<8x128xf32> to vector<1x8x128xf32>
    tpu.vector_store %arg7[%1041, %c0_366, %c0_367], %1044 {strides = array<i32>} : memref<8x8x128xf32, #tpu.memory_space<vmem>>, vector<1x8x128xf32>,
    %c4_i32_368 = arith.constant 4 : i32
    %1045 = arith.index_cast %c4_i32_368 : i32 to index
    %c0_369 = arith.constant 0 : index
    %c0_370 = arith.constant 0 : index
    %1046 = vector.load %arg8[%1045, %c0_369, %c0_370] : memref<8x8x512xf32, #tpu.memory_space<vmem>>, vector<1x8x512xf32>
    %1047 = vector.shape_cast %1046 : vector<1x8x512xf32> to vector<8x512xf32>
    %c3_371 = arith.constant 3 : index
    %c0_372 = arith.constant 0 : index
    %c0_373 = arith.constant 0 : index
    %1048 = vector.load %arg2[%c3_371, %c0_372, %c0_373] : memref<4x128x512xf32, #tpu.memory_space<vmem>>, vector<1x128x512xf32>
    %1049 = vector.shape_cast %1048 : vector<1x128x512xf32> to vector<128x512xf32>
    %cst_374 = arith.constant dense<0.000000e+00> : vector<8x512xf32>
    %1050 = tpu.matmul %1040, %1049, %cst_374 {dimension_numbers = #tpu.dot_dimension_numbers<[1], [0], [0], [1], [0, 0, 1, 1], [], []>} : vector<8x128xf32>, vector<128x512xf32>, vector<8x512xf32> -> vector<8x512xf32>
    %1051 = arith.addf %1047, %1050 : vector<8x512xf32>
    %1052 = vector.extract_strided_slice %1051 {offsets = [0, 0], sizes = [8, 128], strides = [1, 1]} : vector<8x512xf32> to vector<8x128xf32>
    %1053 = arith.negf %1052 : vector<8x128xf32>
    %1054 = math.exp %1053 : vector<8x128xf32>
    %cst_375 = arith.constant 1.000000e+00 : f32
    %1055 = vector.broadcast %cst_375 : f32 to vector<8x128xf32>
    %1056 = arith.addf %1055, %1054 : vector<8x128xf32>
    %1057 = arith.divf %1055, %1056 : vector<8x128xf32>
    %1058 = vector.extract_strided_slice %1051 {offsets = [0, 128], sizes = [8, 128], strides = [1, 1]} : vector<8x512xf32> to vector<8x128xf32>
    %1059 = arith.negf %1058 : vector<8x128xf32>
    %1060 = math.exp %1059 : vector<8x128xf32>
    %cst_376 = arith.constant 1.000000e+00 : f32
    %1061 = vector.broadcast %cst_376 : f32 to vector<8x128xf32>
    %1062 = arith.addf %1061, %1060 : vector<8x128xf32>
    %1063 = arith.divf %1061, %1062 : vector<8x128xf32>
    %1064 = vector.extract_strided_slice %1051 {offsets = [0, 256], sizes = [8, 128], strides = [1, 1]} : vector<8x512xf32> to vector<8x128xf32>
    %1065 = math.tanh %1064 : vector<8x128xf32>
    %1066 = vector.extract_strided_slice %1051 {offsets = [0, 384], sizes = [8, 128], strides = [1, 1]} : vector<8x512xf32> to vector<8x128xf32>
    %1067 = arith.negf %1066 : vector<8x128xf32>
    %1068 = math.exp %1067 : vector<8x128xf32>
    %cst_377 = arith.constant 1.000000e+00 : f32
    %1069 = vector.broadcast %cst_377 : f32 to vector<8x128xf32>
    %1070 = arith.addf %1069, %1068 : vector<8x128xf32>
    %1071 = arith.divf %1069, %1070 : vector<8x128xf32>
    %1072 = arith.mulf %1063, %1038 : vector<8x128xf32>
    %1073 = arith.mulf %1057, %1065 : vector<8x128xf32>
    %1074 = arith.addf %1072, %1073 : vector<8x128xf32>
    %1075 = math.tanh %1074 : vector<8x128xf32>
    %1076 = arith.mulf %1071, %1075 : vector<8x128xf32>
    %1077 = arith.index_cast %c4_i32_368 : i32 to index
    %c0_378 = arith.constant 0 : index
    %c0_379 = arith.constant 0 : index
    %1078 = vector.load %arg7[%1077, %c0_378, %c0_379] : memref<8x8x128xf32, #tpu.memory_space<vmem>>, vector<1x8x128xf32>
    %1079 = vector.shape_cast %1078 : vector<1x8x128xf32> to vector<8x128xf32>
    %1080 = vector.shape_cast %1076 : vector<8x128xf32> to vector<1x8x128xf32>
    tpu.vector_store %arg7[%1077, %c0_378, %c0_379], %1080 {strides = array<i32>} : memref<8x8x128xf32, #tpu.memory_space<vmem>>, vector<1x8x128xf32>,
    %c5_i32_380 = arith.constant 5 : i32
    %1081 = arith.index_cast %c5_i32_380 : i32 to index
    %c0_381 = arith.constant 0 : index
    %c0_382 = arith.constant 0 : index
    %1082 = vector.load %arg8[%1081, %c0_381, %c0_382] : memref<8x8x512xf32, #tpu.memory_space<vmem>>, vector<1x8x512xf32>
    %1083 = vector.shape_cast %1082 : vector<1x8x512xf32> to vector<8x512xf32>
    %c3_383 = arith.constant 3 : index
    %c0_384 = arith.constant 0 : index
    %c0_385 = arith.constant 0 : index
    %1084 = vector.load %arg2[%c3_383, %c0_384, %c0_385] : memref<4x128x512xf32, #tpu.memory_space<vmem>>, vector<1x128x512xf32>
    %1085 = vector.shape_cast %1084 : vector<1x128x512xf32> to vector<128x512xf32>
    %cst_386 = arith.constant dense<0.000000e+00> : vector<8x512xf32>
    %1086 = tpu.matmul %1076, %1085, %cst_386 {dimension_numbers = #tpu.dot_dimension_numbers<[1], [0], [0], [1], [0, 0, 1, 1], [], []>} : vector<8x128xf32>, vector<128x512xf32>, vector<8x512xf32> -> vector<8x512xf32>
    %1087 = arith.addf %1083, %1086 : vector<8x512xf32>
    %1088 = vector.extract_strided_slice %1087 {offsets = [0, 0], sizes = [8, 128], strides = [1, 1]} : vector<8x512xf32> to vector<8x128xf32>
    %1089 = arith.negf %1088 : vector<8x128xf32>
    %1090 = math.exp %1089 : vector<8x128xf32>
    %cst_387 = arith.constant 1.000000e+00 : f32
    %1091 = vector.broadcast %cst_387 : f32 to vector<8x128xf32>
    %1092 = arith.addf %1091, %1090 : vector<8x128xf32>
    %1093 = arith.divf %1091, %1092 : vector<8x128xf32>
    %1094 = vector.extract_strided_slice %1087 {offsets = [0, 128], sizes = [8, 128], strides = [1, 1]} : vector<8x512xf32> to vector<8x128xf32>
    %1095 = arith.negf %1094 : vector<8x128xf32>
    %1096 = math.exp %1095 : vector<8x128xf32>
    %cst_388 = arith.constant 1.000000e+00 : f32
    %1097 = vector.broadcast %cst_388 : f32 to vector<8x128xf32>
    %1098 = arith.addf %1097, %1096 : vector<8x128xf32>
    %1099 = arith.divf %1097, %1098 : vector<8x128xf32>
    %1100 = vector.extract_strided_slice %1087 {offsets = [0, 256], sizes = [8, 128], strides = [1, 1]} : vector<8x512xf32> to vector<8x128xf32>
    %1101 = math.tanh %1100 : vector<8x128xf32>
    %1102 = vector.extract_strided_slice %1087 {offsets = [0, 384], sizes = [8, 128], strides = [1, 1]} : vector<8x512xf32> to vector<8x128xf32>
    %1103 = arith.negf %1102 : vector<8x128xf32>
    %1104 = math.exp %1103 : vector<8x128xf32>
    %cst_389 = arith.constant 1.000000e+00 : f32
    %1105 = vector.broadcast %cst_389 : f32 to vector<8x128xf32>
    %1106 = arith.addf %1105, %1104 : vector<8x128xf32>
    %1107 = arith.divf %1105, %1106 : vector<8x128xf32>
    %1108 = arith.mulf %1099, %1074 : vector<8x128xf32>
    %1109 = arith.mulf %1093, %1101 : vector<8x128xf32>
    %1110 = arith.addf %1108, %1109 : vector<8x128xf32>
    %1111 = math.tanh %1110 : vector<8x128xf32>
    %1112 = arith.mulf %1107, %1111 : vector<8x128xf32>
    %1113 = arith.index_cast %c5_i32_380 : i32 to index
    %c0_390 = arith.constant 0 : index
    %c0_391 = arith.constant 0 : index
    %1114 = vector.load %arg7[%1113, %c0_390, %c0_391] : memref<8x8x128xf32, #tpu.memory_space<vmem>>, vector<1x8x128xf32>
    %1115 = vector.shape_cast %1114 : vector<1x8x128xf32> to vector<8x128xf32>
    %1116 = vector.shape_cast %1112 : vector<8x128xf32> to vector<1x8x128xf32>
    tpu.vector_store %arg7[%1113, %c0_390, %c0_391], %1116 {strides = array<i32>} : memref<8x8x128xf32, #tpu.memory_space<vmem>>, vector<1x8x128xf32>,
    %c6_i32_392 = arith.constant 6 : i32
    %1117 = arith.index_cast %c6_i32_392 : i32 to index
    %c0_393 = arith.constant 0 : index
    %c0_394 = arith.constant 0 : index
    %1118 = vector.load %arg8[%1117, %c0_393, %c0_394] : memref<8x8x512xf32, #tpu.memory_space<vmem>>, vector<1x8x512xf32>
    %1119 = vector.shape_cast %1118 : vector<1x8x512xf32> to vector<8x512xf32>
    %c3_395 = arith.constant 3 : index
    %c0_396 = arith.constant 0 : index
    %c0_397 = arith.constant 0 : index
    %1120 = vector.load %arg2[%c3_395, %c0_396, %c0_397] : memref<4x128x512xf32, #tpu.memory_space<vmem>>, vector<1x128x512xf32>
    %1121 = vector.shape_cast %1120 : vector<1x128x512xf32> to vector<128x512xf32>
    %cst_398 = arith.constant dense<0.000000e+00> : vector<8x512xf32>
    %1122 = tpu.matmul %1112, %1121, %cst_398 {dimension_numbers = #tpu.dot_dimension_numbers<[1], [0], [0], [1], [0, 0, 1, 1], [], []>} : vector<8x128xf32>, vector<128x512xf32>, vector<8x512xf32> -> vector<8x512xf32>
    %1123 = arith.addf %1119, %1122 : vector<8x512xf32>
    %1124 = vector.extract_strided_slice %1123 {offsets = [0, 0], sizes = [8, 128], strides = [1, 1]} : vector<8x512xf32> to vector<8x128xf32>
    %1125 = arith.negf %1124 : vector<8x128xf32>
    %1126 = math.exp %1125 : vector<8x128xf32>
    %cst_399 = arith.constant 1.000000e+00 : f32
    %1127 = vector.broadcast %cst_399 : f32 to vector<8x128xf32>
    %1128 = arith.addf %1127, %1126 : vector<8x128xf32>
    %1129 = arith.divf %1127, %1128 : vector<8x128xf32>
    %1130 = vector.extract_strided_slice %1123 {offsets = [0, 128], sizes = [8, 128], strides = [1, 1]} : vector<8x512xf32> to vector<8x128xf32>
    %1131 = arith.negf %1130 : vector<8x128xf32>
    %1132 = math.exp %1131 : vector<8x128xf32>
    %cst_400 = arith.constant 1.000000e+00 : f32
    %1133 = vector.broadcast %cst_400 : f32 to vector<8x128xf32>
    %1134 = arith.addf %1133, %1132 : vector<8x128xf32>
    %1135 = arith.divf %1133, %1134 : vector<8x128xf32>
    %1136 = vector.extract_strided_slice %1123 {offsets = [0, 256], sizes = [8, 128], strides = [1, 1]} : vector<8x512xf32> to vector<8x128xf32>
    %1137 = math.tanh %1136 : vector<8x128xf32>
    %1138 = vector.extract_strided_slice %1123 {offsets = [0, 384], sizes = [8, 128], strides = [1, 1]} : vector<8x512xf32> to vector<8x128xf32>
    %1139 = arith.negf %1138 : vector<8x128xf32>
    %1140 = math.exp %1139 : vector<8x128xf32>
    %cst_401 = arith.constant 1.000000e+00 : f32
    %1141 = vector.broadcast %cst_401 : f32 to vector<8x128xf32>
    %1142 = arith.addf %1141, %1140 : vector<8x128xf32>
    %1143 = arith.divf %1141, %1142 : vector<8x128xf32>
    %1144 = arith.mulf %1135, %1110 : vector<8x128xf32>
    %1145 = arith.mulf %1129, %1137 : vector<8x128xf32>
    %1146 = arith.addf %1144, %1145 : vector<8x128xf32>
    %1147 = math.tanh %1146 : vector<8x128xf32>
    %1148 = arith.mulf %1143, %1147 : vector<8x128xf32>
    %1149 = arith.index_cast %c6_i32_392 : i32 to index
    %c0_402 = arith.constant 0 : index
    %c0_403 = arith.constant 0 : index
    %1150 = vector.load %arg7[%1149, %c0_402, %c0_403] : memref<8x8x128xf32, #tpu.memory_space<vmem>>, vector<1x8x128xf32>
    %1151 = vector.shape_cast %1150 : vector<1x8x128xf32> to vector<8x128xf32>
    %1152 = vector.shape_cast %1148 : vector<8x128xf32> to vector<1x8x128xf32>
    tpu.vector_store %arg7[%1149, %c0_402, %c0_403], %1152 {strides = array<i32>} : memref<8x8x128xf32, #tpu.memory_space<vmem>>, vector<1x8x128xf32>,
    %c7_i32_404 = arith.constant 7 : i32
    %1153 = arith.index_cast %c7_i32_404 : i32 to index
    %c0_405 = arith.constant 0 : index
    %c0_406 = arith.constant 0 : index
    %1154 = vector.load %arg8[%1153, %c0_405, %c0_406] : memref<8x8x512xf32, #tpu.memory_space<vmem>>, vector<1x8x512xf32>
    %1155 = vector.shape_cast %1154 : vector<1x8x512xf32> to vector<8x512xf32>
    %c3_407 = arith.constant 3 : index
    %c0_408 = arith.constant 0 : index
    %c0_409 = arith.constant 0 : index
    %1156 = vector.load %arg2[%c3_407, %c0_408, %c0_409] : memref<4x128x512xf32, #tpu.memory_space<vmem>>, vector<1x128x512xf32>
    %1157 = vector.shape_cast %1156 : vector<1x128x512xf32> to vector<128x512xf32>
    %cst_410 = arith.constant dense<0.000000e+00> : vector<8x512xf32>
    %1158 = tpu.matmul %1148, %1157, %cst_410 {dimension_numbers = #tpu.dot_dimension_numbers<[1], [0], [0], [1], [0, 0, 1, 1], [], []>} : vector<8x128xf32>, vector<128x512xf32>, vector<8x512xf32> -> vector<8x512xf32>
    %1159 = arith.addf %1155, %1158 : vector<8x512xf32>
    %1160 = vector.extract_strided_slice %1159 {offsets = [0, 0], sizes = [8, 128], strides = [1, 1]} : vector<8x512xf32> to vector<8x128xf32>
    %1161 = arith.negf %1160 : vector<8x128xf32>
    %1162 = math.exp %1161 : vector<8x128xf32>
    %cst_411 = arith.constant 1.000000e+00 : f32
    %1163 = vector.broadcast %cst_411 : f32 to vector<8x128xf32>
    %1164 = arith.addf %1163, %1162 : vector<8x128xf32>
    %1165 = arith.divf %1163, %1164 : vector<8x128xf32>
    %1166 = vector.extract_strided_slice %1159 {offsets = [0, 128], sizes = [8, 128], strides = [1, 1]} : vector<8x512xf32> to vector<8x128xf32>
    %1167 = arith.negf %1166 : vector<8x128xf32>
    %1168 = math.exp %1167 : vector<8x128xf32>
    %cst_412 = arith.constant 1.000000e+00 : f32
    %1169 = vector.broadcast %cst_412 : f32 to vector<8x128xf32>
    %1170 = arith.addf %1169, %1168 : vector<8x128xf32>
    %1171 = arith.divf %1169, %1170 : vector<8x128xf32>
    %1172 = vector.extract_strided_slice %1159 {offsets = [0, 256], sizes = [8, 128], strides = [1, 1]} : vector<8x512xf32> to vector<8x128xf32>
    %1173 = math.tanh %1172 : vector<8x128xf32>
    %1174 = vector.extract_strided_slice %1159 {offsets = [0, 384], sizes = [8, 128], strides = [1, 1]} : vector<8x512xf32> to vector<8x128xf32>
    %1175 = arith.negf %1174 : vector<8x128xf32>
    %1176 = math.exp %1175 : vector<8x128xf32>
    %cst_413 = arith.constant 1.000000e+00 : f32
    %1177 = vector.broadcast %cst_413 : f32 to vector<8x128xf32>
    %1178 = arith.addf %1177, %1176 : vector<8x128xf32>
    %1179 = arith.divf %1177, %1178 : vector<8x128xf32>
    %1180 = arith.mulf %1171, %1146 : vector<8x128xf32>
    %1181 = arith.mulf %1165, %1173 : vector<8x128xf32>
    %1182 = arith.addf %1180, %1181 : vector<8x128xf32>
    %1183 = math.tanh %1182 : vector<8x128xf32>
    %1184 = arith.mulf %1179, %1183 : vector<8x128xf32>
    %1185 = arith.index_cast %c7_i32_404 : i32 to index
    %c0_414 = arith.constant 0 : index
    %c0_415 = arith.constant 0 : index
    %1186 = vector.load %arg7[%1185, %c0_414, %c0_415] : memref<8x8x128xf32, #tpu.memory_space<vmem>>, vector<1x8x128xf32>
    %1187 = vector.shape_cast %1186 : vector<1x8x128xf32> to vector<8x128xf32>
    %1188 = vector.shape_cast %1184 : vector<8x128xf32> to vector<1x8x128xf32>
    tpu.vector_store %arg7[%1185, %c0_414, %c0_415], %1188 {strides = array<i32>} : memref<8x8x128xf32, #tpu.memory_space<vmem>>, vector<1x8x128xf32>,
    %c8_i32_416 = arith.constant 8 : i32
    %c0_417 = arith.constant 0 : index
    %c0_418 = arith.constant 0 : index
    %c0_419 = arith.constant 0 : index
    %1189 = vector.load %arg7[%c0_417, %c0_418, %c0_419] : memref<8x8x128xf32, #tpu.memory_space<vmem>>, vector<8x8x128xf32>
    %1190 = vector.shape_cast %1189 : vector<8x8x128xf32> to vector<64x128xf32>
    %c0_420 = arith.constant 0 : index
    %c0_421 = arith.constant 0 : index
    %1191 = vector.load %arg4[%c0_420, %c0_421] : memref<128x3xf32, #tpu.memory_space<vmem>>, vector<128x3xf32>
    %cst_422 = arith.constant dense<0.000000e+00> : vector<64x3xf32>
    %1192 = tpu.matmul %1190, %1191, %cst_422 {dimension_numbers = #tpu.dot_dimension_numbers<[1], [0], [0], [1], [0, 0, 1, 1], [], []>} : vector<64x128xf32>, vector<128x3xf32>, vector<64x3xf32> -> vector<64x3xf32>
    %c0_423 = arith.constant 0 : index
    %c0_424 = arith.constant 0 : index
    %1193 = vector.load %arg5[%c0_423, %c0_424] : memref<1x3xf32, #tpu.memory_space<vmem>>, vector<1x3xf32>
    %1194 = vector.broadcast %1193 : vector<1x3xf32> to vector<64x3xf32>
    %1195 = arith.addf %1192, %1194 : vector<64x3xf32>
    %cst_425 = arith.constant dense<0xFF800000> : vector<64xf32>
    %1196 = vector.multi_reduction <maximumf>, %1195, %cst_425 [1] : vector<64x3xf32> to vector<64xf32>
    %1197 = vector.shape_cast %1196 : vector<64xf32> to vector<64x1xf32>
    %1198 = vector.broadcast %1197 : vector<64x1xf32> to vector<64x3xf32>
    %1199 = arith.subf %1195, %1198 : vector<64x3xf32>
    %1200 = math.exp %1199 : vector<64x3xf32>
    %cst_426 = arith.constant dense<0.000000e+00> : vector<64xf32>
    %1201 = vector.multi_reduction <add>, %1200, %cst_426 [1] : vector<64x3xf32> to vector<64xf32>
    %1202 = vector.shape_cast %1201 : vector<64xf32> to vector<64x1xf32>
    %1203 = math.log %1202 : vector<64x1xf32>
    %1204 = vector.broadcast %1203 : vector<64x1xf32> to vector<64x3xf32>
    %1205 = arith.subf %1199, %1204 : vector<64x3xf32>
    %c0_427 = arith.constant 0 : index
    %c0_428 = arith.constant 0 : index
    %1206 = vector.load %arg6[%c0_427, %c0_428] : memref<64x3xf32, #tpu.memory_space<vmem>>, vector<64x3xf32>
    tpu.vector_store %arg6[%c0_427, %c0_428], %1205 {strides = array<i32>} : memref<64x3xf32, #tpu.memory_space<vmem>>, vector<64x3xf32>,
    return
  }
}

</mosaic_0001>

<bundles_post_ra>
// kernel: net_forward.2
= control target key start
LH: loop header
LB: loop body
LE: loop exit
PB: predicated region body
PF: predicated region fallthrough
CT: control target
= control target key end

     0   :  { %s4146_s0 = inlined_call_operand.vmem [shape: f32[64,50], index: 0, kind: input, shape index: {}]   ;;  %s4147_s1 = inlined_call_operand.vmem [shape: f32[64,12], index: 1, kind: input, shape index: {}]   ;;  %s4148_s2 = inlined_call_operand.vmem [shape: f32[64,8], index: 2, kind: input, shape index: {}]   ;;  %s4149_s3 = inlined_call_operand.vmem [shape: f32[64,4], index: 3, kind: input, shape index: {}]   ;;  %s4150_s4 = inlined_call_operand.vmem [shape: f32[64,20], index: 4, kind: input, shape index: {}]   ;;  %s4151_s5 = inlined_call_operand.vmem [shape: f32[64,20], index: 5, kind: input, shape index: {}]   ;;  %s4152_s6 = inlined_call_operand.vmem [shape: f32[64,20], index: 6, kind: input, shape index: {}]   ;;  %s4153_s7 = inlined_call_operand.hbm [shape: f32[12,50], index: 7, kind: input, shape index: {}]   ;;  %s4154_s8 = inlined_call_operand.hbm [shape: f32[1,50], index: 8, kind: input, shape index: {}]   ;;  %s4155_s9 = inlined_call_operand.hbm [shape: f32[50,512], index: 9, kind: input, shape index: {}]   ;;  %s4156_s10 = inlined_call_operand.hbm [shape: f32[50,512], index: 10, kind: input, shape index: {}]   ;;  %s4157_s11 = inlined_call_operand.hbm [shape: f32[8,512], index: 11, kind: input, shape index: {}]   ;;  %s4158_s12 = inlined_call_operand.hbm [shape: f32[4,512], index: 12, kind: input, shape index: {}]   ;;  %s4159_s13 = inlined_call_operand.hbm [shape: f32[20,512], index: 13, kind: input, shape index: {}]   ;;  %s4160_s14 = inlined_call_operand.hbm [shape: f32[20,512], index: 14, kind: input, shape index: {}]   ;;  %s4161_s15 = inlined_call_operand.hbm [shape: f32[20,512], index: 15, kind: input, shape index: {}]   ;;  %s4162_s16 = inlined_call_operand.hbm [shape: f32[1,512], index: 16, kind: input, shape index: {}]   ;;  %s4163_s17 = inlined_call_operand.vmem [shape: f32[64,512], index: 17, kind: output, shape index: {}]  }
   0x1   :  { %4166 = sst [smem:[#allocation24_spill]] %s4146_s0 }
   0x2   :  { %4167 = sst [smem:[#allocation25_spill]] %s4147_s1 }
   0x3   :  { %22 = vsyncpa [#allocation3], 0 }
   0x4   :  { %23 = vsyncpa [#allocation5], 0 }
   0x5   :  { %24 = vsyncpa [#allocation8], 0 }
   0x6   :  { %25 = vsyncpa [#allocation11], 0 }
   0x7   :  { %26 = vsyncpa [#allocation14], 0 }
   0x8   :  { %27 = vsyncpa [#allocation17], 0  ;;  %s3344_s24 = smov [#allocation4]   ;;  %s3112_s28 = scalar_lea.hbm %s4154_s8, 16 }
   0x9   :  { %s60_s25 = sshll.u32 %s3344_s24, 4  ;;  %p3113_p0 = scmp.ne.s32.totalorder %s4154_s8, %s3112_s28  ;;  %s61_s25 = int_to_ptr.vmem [resolvable:$true] %s60_s25 }
   0xa   :  { %p3116_p1 = scmp.lt.u32.totalorder %s3112_s28, %s4154_s8 }
   0xc   :  { %p3118_p2 = pnand %p3116_p1, %p3113_p0 }
   0xe   :  { %3121 = shalt.err (!%p3118_p2)
}
   0xf   :  { %s3122_s19 = scalar_lea.vmem %s61_s25, 16  ;;  %s3126_s1 = scalar_lea.vmem %s61_s25, 32 }
  0x10   :  { %p3123_p3 = scmp.ne.s32.totalorder %s61_s25, %s3122_s19  ;;  %p3127_p4 = scmp.lt.s32.totalorder %s61_s25, %s61_s25 }
  0x11   :  { %p3128_p5 = scmp.lt.s32.totalorder %s3126_s1, %s3122_s19 }
  0x13   :  { %p3129_p6 = por %p3128_p5, %p3127_p4 }
  0x15   :  { %p3130_p7 = pnand %p3129_p6, %p3123_p3 }
  0x17   :  { %3133 = shalt.err (!%p3130_p7)
}
  0x18   :  { %63 = dma.hbm_to_vmem [thread:$0]  %s4154_s8, 16, %s61_s25, [#allocation5]  }
  0x19   :  { %s3345_s22 = smov [#allocation7]   ;;  %s3346_s24 = smov [#allocation10]  }
  0x1a   :  { %s81_s23 = sshll.u32 %s3345_s22, 4  ;;  %s104_s26 = sshll.u32 %s3346_s24, 4  ;;  %s82_s23 = int_to_ptr.vmem [resolvable:$true] %s81_s23  ;;  %s105_s26 = int_to_ptr.vmem [resolvable:$true] %s104_s26 }
  0x1b   :  { %s3134_s29 = scalar_lea.hbm %s4156_s10, 3584 }
  0x1c   :  { %p3135_p8 = scmp.ne.s32.totalorder %s4156_s10, %s3134_s29  ;;  %p3138_p9 = scmp.lt.u32.totalorder %s3134_s29, %s4156_s10 }
  0x1e   :  { %p3140_p10 = pnand %p3138_p9, %p3135_p8 }
  0x20   :  { %3143 = shalt.err (!%p3140_p10)
}
  0x21   :  { %s3144_s8 = scalar_lea.vmem %s82_s23, 3584  ;;  %p3149_p12 = scmp.lt.s32.totalorder %s82_s23, %s82_s23 }
  0x22   :  { %p3145_p11 = scmp.ne.s32.totalorder %s82_s23, %s3144_s8  ;;  %p3150_p13 = scmp.lt.s32.totalorder %s3144_s8, %s3144_s8 }
  0x24   :  { %p3151_p0 = por %p3150_p13, %p3149_p12 }
  0x26   :  { %p3152_p1 = pnand %p3151_p0, %p3145_p11 }
  0x28   :  { %3155 = shalt.err (!%p3152_p1)
}
  0x29   :  { %s3347_s25 = smov 512   ;;  %s3348_s1 = smov 32  }
  0x2a   :  { %87 = dma.hbm_to_vmem [thread:$0]  %s4156_s10, 3584, %s82_s23, [#allocation8], %s3347_s25, %s3347_s25, %s3348_s1  }
  0x2b   :  { %s3156_s27 = scalar_lea.hbm %s4158_s12, 256 }
  0x2c   :  { %p3157_p2 = scmp.ne.s32.totalorder %s4158_s12, %s3156_s27  ;;  %p3160_p3 = scmp.lt.u32.totalorder %s3156_s27, %s4158_s12 }
  0x2e   :  { %p3162_p4 = pnand %p3160_p3, %p3157_p2 }
  0x30   :  { %3165 = shalt.err (!%p3162_p4)
}
  0x31   :  { %s3166_s18 = scalar_lea.vmem %s105_s26, 256  ;;  %p3171_p6 = scmp.lt.s32.totalorder %s105_s26, %s105_s26 }
  0x32   :  { %p3167_p5 = scmp.ne.s32.totalorder %s105_s26, %s3166_s18  ;;  %p3172_p7 = scmp.lt.s32.totalorder %s3166_s18, %s3166_s18 }
  0x34   :  { %p3173_p8 = por %p3172_p7, %p3171_p6 }
  0x36   :  { %p3174_p9 = pnand %p3173_p8, %p3167_p5 }
  0x38   :  { %3177 = shalt.err (!%p3174_p9)
}
  0x39   :  { %107 = dma.hbm_to_vmem [thread:$0]  %s4158_s12, 256, %s105_s26, [#allocation11]  }
  0x3a   :  { %s3349_s19 = smov [#allocation13]   ;;  %s3350_s20 = smov [#allocation2]  }
  0x3b   :  { %s125_s8 = sshll.u32 %s3349_s19, 4  ;;  %s47_s21 = sshll.u32 %s3350_s20, 4  ;;  %s126_s8 = int_to_ptr.vmem [resolvable:$true] %s125_s8  ;;  %s48_s21 = int_to_ptr.vmem [resolvable:$true] %s47_s21 }
  0x3c   :  { %s3178_s27 = scalar_lea.hbm %s4160_s14, 1536 }
  0x3d   :  { %p3179_p10 = scmp.ne.s32.totalorder %s4160_s14, %s3178_s27  ;;  %p3182_p11 = scmp.lt.u32.totalorder %s3178_s27, %s4160_s14 }
  0x3f   :  { %p3184_p12 = pnand %p3182_p11, %p3179_p10 }
  0x41   :  { %3187 = shalt.err (!%p3184_p12)
}
  0x42   :  { %s3188_s12 = scalar_lea.vmem %s126_s8, 1536  ;;  %p3193_p0 = scmp.lt.s32.totalorder %s126_s8, %s126_s8 }
  0x43   :  { %p3189_p13 = scmp.ne.s32.totalorder %s126_s8, %s3188_s12  ;;  %p3194_p1 = scmp.lt.s32.totalorder %s3188_s12, %s3188_s12 }
  0x45   :  { %p3195_p2 = por %p3194_p1, %p3193_p0 }
  0x47   :  { %p3196_p3 = pnand %p3195_p2, %p3189_p13 }
  0x49   :  { %3199 = shalt.err (!%p3196_p3)
}
  0x4a   :  { %131 = dma.hbm_to_vmem [thread:$0]  %s4160_s14, 1536, %s126_s8, [#allocation14], %s3347_s25, %s3347_s25, %s3348_s1  }
  0x4b   :  { %s3200_s19 = scalar_lea.hbm %s4153_s7, 256 }
  0x4c   :  { %p3201_p4 = scmp.ne.s32.totalorder %s4153_s7, %s3200_s19  ;;  %p3204_p5 = scmp.lt.u32.totalorder %s3200_s19, %s4153_s7 }
  0x4e   :  { %p3206_p6 = pnand %p3204_p5, %p3201_p4 }
  0x50   :  { %3209 = shalt.err (!%p3206_p6)
}
  0x51   :  { %s3210_s28 = scalar_lea.vmem %s48_s21, 256  ;;  %p3215_p8 = scmp.lt.s32.totalorder %s48_s21, %s48_s21 }
  0x52   :  { %p3211_p7 = scmp.ne.s32.totalorder %s48_s21, %s3210_s28  ;;  %p3216_p9 = scmp.lt.s32.totalorder %s3210_s28, %s3210_s28 }
  0x54   :  { %p3217_p10 = por %p3216_p9, %p3215_p8 }
  0x56   :  { %p3218_p11 = pnand %p3217_p10, %p3211_p7 }
  0x58   :  { %3221 = shalt.err (!%p3218_p11)
}
  0x59   :  { %s3351_s14 = smov 128   ;;  %s3352_s8 = smov 8  }
  0x5a   :  { %53 = dma.hbm_to_vmem [thread:$0]  %s4153_s7, 256, %s48_s21, [#allocation3], %s3351_s14, %s3351_s14, %s3352_s8  }
  0x5b   :  { %s3353_s30 = smov [#allocation6]   ;;  %s3354_s26 = smov [#allocation9]  }
  0x5c   :  { %s69_s12 = sshll.u32 %s3353_s30, 4  ;;  %s94_s18 = sshll.u32 %s3354_s26, 4  ;;  %s70_s12 = int_to_ptr.vmem [resolvable:$true] %s69_s12  ;;  %s95_s18 = int_to_ptr.vmem [resolvable:$true] %s94_s18 }
  0x5d   :  { %s3222_s19 = scalar_lea.hbm %s4155_s9, 3584 }
  0x5e   :  { %p3223_p12 = scmp.ne.s32.totalorder %s4155_s9, %s3222_s19  ;;  %p3226_p13 = scmp.lt.u32.totalorder %s3222_s19, %s4155_s9 }
  0x60   :  { %p3228_p0 = pnand %p3226_p13, %p3223_p12 }
  0x62   :  { %3231 = shalt.err (!%p3228_p0)
}
  0x63   :  { %s3232_s7 = scalar_lea.vmem %s70_s12, 3584  ;;  %p3237_p2 = scmp.lt.s32.totalorder %s70_s12, %s70_s12 }
  0x64   :  { %p3233_p1 = scmp.ne.s32.totalorder %s70_s12, %s3232_s7  ;;  %p3238_p3 = scmp.lt.s32.totalorder %s3232_s7, %s3232_s7 }
  0x66   :  { %p3239_p4 = por %p3238_p3, %p3237_p2 }
  0x68   :  { %p3240_p5 = pnand %p3239_p4, %p3233_p1 }
  0x6a   :  { %3243 = shalt.err (!%p3240_p5)
}
  0x6b   :  { %75 = dma.hbm_to_vmem [thread:$0]  %s4155_s9, 3584, %s70_s12, [#allocation5], %s3347_s25, %s3347_s25, %s3348_s1  }
  0x6c   :  { %s3244_s29 = scalar_lea.hbm %s4157_s11, 512 }
  0x6d   :  { %p3245_p6 = scmp.ne.s32.totalorder %s4157_s11, %s3244_s29  ;;  %p3248_p7 = scmp.lt.u32.totalorder %s3244_s29, %s4157_s11 }
  0x6f   :  { %p3250_p8 = pnand %p3248_p7, %p3245_p6 }
  0x71   :  { %3253 = shalt.err (!%p3250_p8)
}
  0x72   :  { %s3254_s23 = scalar_lea.vmem %s95_s18, 512  ;;  %p3259_p10 = scmp.lt.s32.totalorder %s95_s18, %s95_s18 }
  0x73   :  { %p3255_p9 = scmp.ne.s32.totalorder %s95_s18, %s3254_s23  ;;  %p3260_p11 = scmp.lt.s32.totalorder %s3254_s23, %s3254_s23 }
  0x75   :  { %p3261_p12 = por %p3260_p11, %p3259_p10 }
  0x77   :  { %p3262_p13 = pnand %p3261_p12, %p3255_p9 }
  0x79   :  { %3265 = shalt.err (!%p3262_p13)
}
  0x7a   :  { %97 = dma.hbm_to_vmem [thread:$0]  %s4157_s11, 512, %s95_s18, [#allocation8]  }
  0x7b   :  { %s3355_s19 = smov [#allocation12]   ;;  %s3356_s22 = smov [#allocation15]  }
  0x7c   :  { %s113_s20 = sshll.u32 %s3355_s19, 4  ;;  %s137_s24 = sshll.u32 %s3356_s22, 4  ;;  %s114_s20 = int_to_ptr.vmem [resolvable:$true] %s113_s20  ;;  %s138_s24 = int_to_ptr.vmem [resolvable:$true] %s137_s24 }
  0x7d   :  { %s3266_s21 = scalar_lea.hbm %s4159_s13, 1536 }
  0x7e   :  { %p3267_p0 = scmp.ne.s32.totalorder %s4159_s13, %s3266_s21  ;;  %p3270_p1 = scmp.lt.u32.totalorder %s3266_s21, %s4159_s13 }
  0x80   :  { %p3272_p2 = pnand %p3270_p1, %p3267_p0 }
  0x82   :  { %3275 = shalt.err (!%p3272_p2)
}
  0x83   :  { %s3276_s11 = scalar_lea.vmem %s114_s20, 1536  ;;  %p3281_p4 = scmp.lt.s32.totalorder %s114_s20, %s114_s20 }
  0x84   :  { %p3277_p3 = scmp.ne.s32.totalorder %s114_s20, %s3276_s11  ;;  %p3282_p5 = scmp.lt.s32.totalorder %s3276_s11, %s3276_s11 }
  0x86   :  { %p3283_p6 = por %p3282_p5, %p3281_p4 }
  0x88   :  { %p3284_p7 = pnand %p3283_p6, %p3277_p3 }
  0x8a   :  { %3287 = shalt.err (!%p3284_p7)
}
  0x8b   :  { %119 = dma.hbm_to_vmem [thread:$0]  %s4159_s13, 1536, %s114_s20, [#allocation11], %s3347_s25, %s3347_s25, %s3348_s1  }
  0x8c   :  { %s3288_s10 = scalar_lea.hbm %s4161_s15, 1536 }
  0x8d   :  { %p3289_p8 = scmp.ne.s32.totalorder %s4161_s15, %s3288_s10  ;;  %p3292_p9 = scmp.lt.u32.totalorder %s3288_s10, %s4161_s15 }
  0x8f   :  { %p3294_p10 = pnand %p3292_p9, %p3289_p8 }
  0x91   :  { %3297 = shalt.err (!%p3294_p10)
}
  0x92   :  { %s3298_s22 = scalar_lea.vmem %s138_s24, 1536  ;;  %p3303_p12 = scmp.lt.s32.totalorder %s138_s24, %s138_s24 }
  0x93   :  { %p3299_p11 = scmp.ne.s32.totalorder %s138_s24, %s3298_s22  ;;  %p3304_p13 = scmp.lt.s32.totalorder %s3298_s22, %s3298_s22 }
  0x95   :  { %p3305_p0 = por %p3304_p13, %p3303_p12 }
  0x97   :  { %p3306_p1 = pnand %p3305_p0, %p3299_p11 }
  0x99   :  { %3309 = shalt.err (!%p3306_p1)
}
  0x9a   :  { %143 = dma.hbm_to_vmem [thread:$0]  %s4161_s15, 1536, %s138_s24, [#allocation14], %s3347_s25, %s3347_s25, %s3348_s1  }
  0x9b   :  { %s3357_s27 = smov [#allocation16]   ;;  %s3310_s14 = scalar_lea.hbm %s4162_s16, 64 }
  0x9c   :  { %s150_s7 = sshll.u32 %s3357_s27, 4  ;;  %p3311_p2 = scmp.ne.s32.totalorder %s4162_s16, %s3310_s14  ;;  %s151_s7 = int_to_ptr.vmem [resolvable:$true] %s150_s7 }
  0x9d   :  { %p3314_p3 = scmp.lt.u32.totalorder %s3310_s14, %s4162_s16 }
  0x9f   :  { %p3316_p4 = pnand %p3314_p3, %p3311_p2 }
  0xa1   :  { %3319 = shalt.err (!%p3316_p4)
}
  0xa2   :  { %s3320_s0 = scalar_lea.vmem %s151_s7, 64  ;;  %p3325_p6 = scmp.lt.s32.totalorder %s151_s7, %s151_s7 }
  0xa3   :  { %p3321_p5 = scmp.ne.s32.totalorder %s151_s7, %s3320_s0  ;;  %p3326_p7 = scmp.lt.s32.totalorder %s3320_s0, %s3320_s0 }
  0xa5   :  { %p3327_p8 = por %p3326_p7, %p3325_p6 }
  0xa7   :  { %p3328_p9 = pnand %p3327_p8, %p3321_p5 }
  0xa9   :  { %3331 = shalt.err (!%p3328_p9)
}
  0xaa   :  { %153 = dma.hbm_to_vmem [thread:$0]  %s4162_s16, 64, %s151_s7, [#allocation17]  }
  0xab   :  { %3332 = dma.done.wait [#allocation3], 256  }
  0xac   :  { %3333 = vsyncadd [#allocation3], 4294967040 }
  0xad   :  { %3334 = dma.done.wait [#allocation5], 3600  }
  0xae   :  { %3335 = vsyncadd [#allocation5], 4294963696 }
  0xaf   :  { %3336 = dma.done.wait [#allocation8], 4096  }
  0xb0   :  { %3337 = vsyncadd [#allocation8], 4294963200 }
  0xb1   :  { %3338 = dma.done.wait [#allocation11], 1792  }
  0xb2   :  { %3339 = vsyncadd [#allocation11], 4294965504 }
  0xb3   :  { %3340 = dma.done.wait [#allocation14], 3072  }
  0xb4   :  { %3341 = vsyncadd [#allocation14], 4294964224 }
  0xb5   :  { %3342 = dma.done.wait [#allocation17], 64  }
  0xb6   :  { %3343 = vsyncadd [#allocation17], 4294967232  ;;  %vm226_vm0 = vcmask 1043456   ;;  %vm201_vm1 = vcmask 97280   ;;  %vm3358_vm2 = vmmov 1   ;;  %v192_v0 = vld [vmem:[#allocation2] sm:$0xff] }
  0xb7   :  { %vm2793_vm3 = vmpackc.low %vm226_vm0, %vm3358_vm2  ;;  %v193_v1 = vld [vmem:[#allocation2 + $0x8] sm:$0xf]  ;;  %s4168_s24 = sld [smem:[#allocation25_spill]]  ;;  %v420_v13 = vld [vmem:[#allocation7 + $0x8] sm:$0xff]  ;;  %vm472_vm4 = vcmask 1041408   ;;  %v3359_v51 = vmov 0.0  }
  0xb8   :  { %v2792_v3 = vpack.c.bf16 %v193_v1, %v192_v0  ;;  %v422_v11 = vld [vmem:[#allocation7 + $0x18] sm:$0xff]  ;;  %v421_v15 = vld [vmem:[#allocation7 + $0x10] sm:$0xff]  ;;  %v424_v17 = vld [vmem:[#allocation7 + $0x28] sm:$0xff]  ;;  %549 = vmatprep.mubr.f32.mxu1 %v3359_v51  ;;  %vm447_vm5 = vcmask 408576   ;;  %s4169_s29 = sld [smem:[#allocation24_spill]]  ;;  %vm985_vm6 = vcmask 64512  }
  0xb9   :  { %v426_v12 = vld [vmem:[#allocation7 + $0x38] sm:$0xff]  ;;  %v425_v16 = vld [vmem:[#allocation7 + $0x30] sm:$0xff]  ;;  %v2798_v19 = vpack.c.bf16 %v424_v17, %v420_v13  ;;  %v419_v20 = vld [vmem:[#allocation7] sm:$0xff]  ;;  %vm1282_vm7 = vcmask 31744   ;;  %vm1593_vm8 = vcmask 162816  }
  0xba   :  { %2794 = vmatprep.subr.msk.bf16.mxu0 %vm2793_vm3, %v2792_v3  ;;  %v2810_v14 = vpack.c.bf16 %v426_v12, %v422_v11  ;;  %v2812_v18 = vpack.c.bf16 %v425_v16, %v421_v15  ;;  %v423_v21 = vld [vmem:[#allocation7 + $0x20] sm:$0xff]  ;;  %v430_v23 = vld [vmem:[#allocation7 + $0x58] sm:$0xff]  ;;  %v428_v25 = vld [vmem:[#allocation7 + $0x48] sm:$0xff] }
  0xbb   :  { %2797 = vmatpush3.bf16.msk.msra.mxu0 %vm2793_vm3, %v2792_v3  ;;  %v2800_v22 = vpack.c.bf16 %v423_v21, %v419_v20  ;;  %2799 = vmatprep.subr.bf16.mxu1 %v2798_v19  ;;  %v434_v24 = vld [vmem:[#allocation7 + $0x78] sm:$0xff]  ;;  %v429_v27 = vld [vmem:[#allocation7 + $0x50] sm:$0xff]  ;;  %v432_v29 = vld [vmem:[#allocation7 + $0x68] sm:$0xff] }
  0xbc   :  { %2811 = vmatprep.subr.bf16.mxu0 %v2810_v14  ;;  %v2814_v26 = vpack.c.bf16 %v434_v24, %v430_v23  ;;  %v433_v28 = vld [vmem:[#allocation7 + $0x70] sm:$0xff]  ;;  %v2802_v31 = vpack.c.bf16 %v432_v29, %v428_v25  ;;  %v427_v32 = vld [vmem:[#allocation7 + $0x40] sm:$0xff]  ;;  %v438_v35 = vld [vmem:[#allocation7 + $0x98] sm:$0xff] }
  0xbd   :  { %v184_v2 = vld [vmem:[%s4168_s24] sm:$0xff]  ;;  %v185_v4 = vld [vmem:[%s4168_s24 + $0x8] sm:$0xff]  ;;  %v186_v5 = vld [vmem:[%s4168_s24 + $0x10] sm:$0xff]  ;;  %2801 = vmatpush1.bf16.msra.mxu1 %v2800_v22  ;;  %v2816_v30 = vpack.c.bf16 %v433_v28, %v429_v27 }
  0xbe   :  { %2780 = vmatprep.mubr.msk.f32.mxu0 %vm201_vm1, %v184_v2  ;;  %v187_v6 = vld [vmem:[%s4168_s24 + $0x18] sm:$0xff]  ;;  %v188_v7 = vld [vmem:[%s4168_s24 + $0x20] sm:$0xff]  ;;  %v189_v8 = vld [vmem:[%s4168_s24 + $0x28] sm:$0xff]  ;;  %2803 = vmatprep.subr.bf16.mxu1 %v2802_v31 }
  0xbf   :  { %2781 = vmatmul.mubr.msk.f32.vlgmr.msra.gmra.mrb[0].mxu0 %vm201_vm1, %v185_v4  ;;  %v190_v9 = vld [vmem:[%s4168_s24 + $0x30] sm:$0xff]  ;;  %v191_v10 = vld [vmem:[%s4168_s24 + $0x38] sm:$0xff]  ;;  %v437_v39 = vld [vmem:[#allocation7 + $0x90] sm:$0xff] }
  0xc0   :  { %2783 = vmatprep.mubr.msk.f32.mxu0 %vm201_vm1, %v186_v5  ;;  %2813 = vmatpush1.bf16.msra.mxu0 %v2812_v18  ;;  %v431_v33 = vld [vmem:[#allocation7 + $0x60] sm:$0xff]  ;;  %v442_v36 = vld [vmem:[#allocation7 + $0xb8] sm:$0xff]  ;;  %v436_v37 = vld [vmem:[#allocation7 + $0x88] sm:$0xff] }
  0xc1   :  { %2815 = vmatprep.subr.bf16.mxu0 %v2814_v26  ;;  %v2804_v34 = vpack.c.bf16 %v431_v33, %v427_v32  ;;  %v2818_v38 = vpack.c.bf16 %v442_v36, %v438_v35  ;;  %v441_v40 = vld [vmem:[#allocation7 + $0xb0] sm:$0xff]  ;;  %v440_v41 = vld [vmem:[#allocation7 + $0xa8] sm:$0xff]  ;;  %v435_v44 = vld [vmem:[#allocation7 + $0x80] sm:$0xff] }
  0xc2   :  { %v2820_v42 = vpack.c.bf16 %v441_v40, %v437_v39  ;;  %v2806_v43 = vpack.c.bf16 %v440_v41, %v436_v37  ;;  %v439_v45 = vld [vmem:[#allocation7 + $0xa0] sm:$0xff]  ;;  %v446_v47 = vld [vmem:[#allocation7 + $0xd8] sm:$0x3]  ;;  %v444_v48 = vld [vmem:[#allocation7 + $0xc8] sm:$0x3] }
  0xc3   :  { %2784 = vmatmul.mubr.msk.f32.gmra.mrb[2].mxu0 %vm201_vm1, %v187_v6  ;;  %2805 = vmatpush1.bf16.msra.mxu1 %v2804_v34  ;;  %v2808_v46 = vpack.c.bf16 %v439_v45, %v435_v44  ;;  %v445_v49 = vld [vmem:[#allocation7 + $0xd0] sm:$0x3]  ;;  %v443_v50 = vld [vmem:[#allocation7 + $0xc0] sm:$0x3]  ;;  %v392_v52 = vld [vmem:[#allocation6 + $0x8] sm:$0xff] }
  0xc4   :  { %2786 = vmatprep.mubr.msk.f32.mxu0 %vm201_vm1, %v188_v7  ;;  %2817 = vmatpush1.bf16.msra.mxu0 %v2816_v30  ;;  %v396_v53 = vld [vmem:[#allocation6 + $0x28] sm:$0xff]  ;;  %v394_v54 = vld [vmem:[#allocation6 + $0x18] sm:$0xff]  ;;  %v391_v24 = vld [vmem:[#allocation6] sm:$0xff] }
  0xc5   :  { %2819 = vmatprep.subr.bf16.mxu0 %v2818_v38  ;;  %2807 = vmatprep.subr.bf16.mxu1 %v2806_v43  ;;  %v2822_v55 = vpack.c.bf16 %v396_v53, %v392_v52  ;;  %v398_v56 = vld [vmem:[#allocation6 + $0x38] sm:$0xff]  ;;  %v395_v26 = vld [vmem:[#allocation6 + $0x20] sm:$0xff]  ;;  %v393_v27 = vld [vmem:[#allocation6 + $0x10] sm:$0xff] }
  0xc6   :  { %v2834_v57 = vpack.c.bf16 %v398_v56, %v394_v54  ;;  %v2612_v58 = vld [vmem:[#allocation4] ss:$0 sm:$0xff]  ;;  %v397_v28 = vld [vmem:[#allocation6 + $0x30] sm:$0xff]  ;;  %v400_v29 = vld [vmem:[#allocation6 + $0x48] sm:$0xff]  ;;  %v2824_v36 = vpack.c.bf16 %v395_v26, %v391_v24 }
  0xc7   :  { %2787 = vmatmul.mubr.msk.f32.gmra.mrb[4].mxu0 %vm201_vm1, %v189_v8  ;;  %2809 = vmatpush1.bf16.msra.mxu1 %v2808_v46  ;;  %v404_v32 = vld [vmem:[#allocation6 + $0x68] sm:$0xff]  ;;  %v402_v33 = vld [vmem:[#allocation6 + $0x58] sm:$0xff]  ;;  %v2836_v37 = vpack.c.bf16 %v397_v28, %v393_v27  ;;  %v399_v38 = vld [vmem:[#allocation6 + $0x40] sm:$0xff] }
  0xc8   :  { %2789 = vmatprep.mubr.msk.f32.mxu0 %vm201_vm1, %v190_v9  ;;  %2821 = vmatpush1.bf16.msra.mxu0 %v2820_v42  ;;  %v406_v34 = vld [vmem:[#allocation6 + $0x78] sm:$0xff]  ;;  %v403_v39 = vld [vmem:[#allocation6 + $0x60] sm:$0xff]  ;;  %v2826_v42 = vpack.c.bf16 %v404_v32, %v400_v29  ;;  %v401_v44 = vld [vmem:[#allocation6 + $0x50] sm:$0xff] }
  0xc9   :  { %2640 = vmatprep.subr.msk.mxu0 %vm472_vm4, %v446_v47  ;;  %2630 = vmatprep.subr.msk.mxu1 %vm472_vm4, %v444_v48  ;;  %v2838_v43 = vpack.c.bf16 %v406_v34, %v402_v33  ;;  %v405_v45 = vld [vmem:[#allocation6 + $0x70] sm:$0xff]  ;;  %v408_v46 = vld [vmem:[#allocation6 + $0x88] sm:$0xff]  ;;  %v410_v48 = vld [vmem:[#allocation6 + $0x98] sm:$0xff]  ;;  %v2828_v52 = vpack.c.bf16 %v403_v39, %v399_v38 }
  0xca   :  { %v412_v47 = vld [vmem:[#allocation6 + $0xa8] sm:$0xff]  ;;  %v2840_v53 = vpack.c.bf16 %v405_v45, %v401_v44  ;;  %v407_v54 = vld [vmem:[#allocation6 + $0x80] sm:$0xff]  ;;  %v388_v27 = vld [vmem:[%s4169_s29 + $0x28] sm:$0xff] }
  0xcb   :  { %2790 = vmatmul.mubr.msk.f32.gmra.mrb[6].mxu0 %vm201_vm1, %v191_v10  ;;  %2631 = vmatpush1.msk.msra.mxu1 %vm472_vm4, %v443_v50  ;;  %v2830_v56 = vpack.c.bf16 %v412_v47, %v408_v46  ;;  %v385_v24 = vld [vmem:[%s4169_s29 + $0x10] sm:$0xff]  ;;  %v387_v26 = vld [vmem:[%s4169_s29 + $0x20] sm:$0xff]  ;;  %v390_v29 = vld [vmem:[%s4169_s29 + $0x38] sm:$0xff] }
  0xcc   :  { %2641 = vmatpush1.msk.msra.mxu0 %vm472_vm4, %v445_v49  ;;  %662 = vmatprep.mubr.f32.mxu0 %v3359_v51  ;;  %v414_v49 = vld [vmem:[#allocation6 + $0xb8] sm:$0xff]  ;;  %v1584_v32 = vld [vmem:[#allocation12 + $0x18] sm:$0xff]  ;;  %v1581_v44 = vld [vmem:[#allocation12] sm:$0xff] }
  0xcd   :  { %2823 = vmatprep.subr.bf16.mxu1 %v2822_v55  ;;  %2835 = vmatprep.subr.bf16.mxu0 %v2834_v57  ;;  %v2842_v57 = vpack.c.bf16 %v414_v49, %v410_v48  ;;  %v389_v28 = vld [vmem:[%s4169_s29 + $0x30] sm:$0xff]  ;;  %v1588_v33 = vld [vmem:[#allocation12 + $0x38] sm:$0xff]  ;;  %v1585_v45 = vld [vmem:[#allocation12 + $0x20] sm:$0xff] }
  0xce   :  { %v973_v34 = vld [vmem:[%s4148_s2] sm:$0xff]  ;;  %v975_v38 = vld [vmem:[%s4148_s2 + $0x10] sm:$0xff]  ;;  %v976_v39 = vld [vmem:[%s4148_s2 + $0x18] sm:$0xff]  ;;  %v2848_v49 = vpack.c.bf16 %v1585_v45, %v1581_v44 }
  0xcf   :  { %v1583_v46 = vld [vmem:[#allocation12 + $0x10] sm:$0xff]  ;;  %v1268_v48 = vld [vmem:[%s4149_s3] sm:$0xff]  ;;  %v1893_v44 = vld [vmem:[%s4151_s5 + $0x28] sm:$0xff] }
  0xd0   :  { %v1587_v47 = vld [vmem:[#allocation12 + $0x30] sm:$0xff] }
  0xd1   :  { %v1894_v45 = vld [vmem:[%s4151_s5 + $0x30] sm:$0xff] }
 0x192   :  { %v2782_v59 = vpop.f32.mrb[0].mxu0 }
 0x193   :  { %v302_v60 = vadd.f32 %v2782_v59, %v2612_v58  ;;  %v296_v61 = vpop.f32.mrb[1].mxu0  ;;  %v409_v59 = vld [vmem:[#allocation6 + $0x90] sm:$0xff] }
 0x194   :  { %v297_v62 = vadd.f32 %v2612_v58, %v296_v61 }
 0x195   :  { %v2623_v63 = vmul.f32 -1.442695, %v302_v60  ;;  %v413_v60 = vld [vmem:[#allocation6 + $0xb0] sm:$0xff] }
 0x196   :  { %v2622_v0 = vmul.f32 -1.442695, %v297_v62  ;;  %v2785_v1 = vpop.f32.mrb[2].mxu0 }
 0x197   :  { %3080 = vpow2.f32 %v2623_v63  ;;  %v306_v2 = vpop.f32.mrb[3].mxu0  ;;  %v312_v3 = vadd.f32 %v2785_v1, %v2612_v58  ;;  %v2844_v1 = vpack.c.bf16 %v413_v60, %v409_v59  ;;  %v1589_v59 = vld [vmem:[#allocation12 + $0x40] sm:$0xf]  ;;  %v1591_v60 = vld [vmem:[#allocation12 + $0x50] sm:$0xf] }
 0x198   :  { %3082 = vpow2.f32 %v2622_v0  ;;  %v307_v4 = vadd.f32 %v2612_v58, %v306_v2 }
 0x199   :  { %v2625_v8 = vmul.f32 -1.442695, %v312_v3  ;;  %v416_v3 = vld [vmem:[#allocation6 + $0xc8] sm:$0x3] }
 0x19a   :  { %v2624_v5 = vmul.f32 -1.442695, %v307_v4  ;;  %v2788_v6 = vpop.f32.mrb[4].mxu0  ;;  %v418_v4 = vld [vmem:[#allocation6 + $0xd8] sm:$0x3] }
 0x19b   :  { %v316_v7 = vpop.f32.mrb[5].mxu0  ;;  %v322_v13 = vadd.f32 %v2788_v6, %v2612_v58 }
 0x19c   :  { %3084 = vpow2.f32 %v2624_v5  ;;  %v317_v9 = vadd.f32 %v2612_v58, %v316_v7  ;;  %v415_v7 = vld [vmem:[#allocation6 + $0xc0] sm:$0x3] }
 0x19d   :  { %3086 = vpow2.f32 %v2625_v8  ;;  %v2627_v18 = vmul.f32 -1.442695, %v322_v13  ;;  %v417_v8 = vld [vmem:[#allocation6 + $0xd0] sm:$0x3] }
 0x19e   :  { %v2626_v10 = vmul.f32 -1.442695, %v317_v9  ;;  %v2791_v11 = vpop.f32.mrb[6].mxu0  ;;  %v982_v9 = vld [vmem:[#allocation9 + $0x8] sm:$0xff] }
 0x19f   :  { %v326_v12 = vpop.f32.mrb[7].mxu0  ;;  %v332_v23 = vadd.f32 %v2791_v11, %v2612_v58 }
 0x1a0   :  { %3088 = vpow2.f32 %v2626_v10  ;;  %v327_v16 = vadd.f32 %v2612_v58, %v326_v12  ;;  %v411_v58 = vld [vmem:[#allocation6 + $0xa0] sm:$0xff]  ;;  %v984_v10 = vld [vmem:[#allocation9 + $0x18] sm:$0xff] }
 0x1a1   :  { %v3081_v14 = vpop.eup %3080  ;;  %v2629_v31 = vmul.f32 -1.442695, %v332_v23  ;;  %v2832_v0 = vpack.c.bf16 %v411_v58, %v407_v54  ;;  %v384_v23 = vld [vmem:[%s4169_s29 + $0x8] sm:$0xff] }
 0x1a2   :  { %v3083_v15 = vpop.eup %3082  ;;  %v360_v19 = vadd.f32 1.0, %v3081_v14  ;;  %v2628_v21 = vmul.f32 -1.442695, %v327_v16  ;;  %v1276_v16 = vld [vmem:[#allocation10] sm:$0xff]  ;;  %v1897_v54 = vld [vmem:[#allocation13 + $0x8] sm:$0xff] }
 0x1a3   :  { %v359_v17 = vadd.f32 1.0, %v3083_v15  ;;  %v1269_v58 = vld [vmem:[%s4149_s3 + $0x8] sm:$0xff] }
 0x1a5   :  { %3090 = vrcp.f32 %v359_v17  ;;  %v1277_v17 = vld [vmem:[#allocation10 + $0x8] sm:$0xff] }
 0x1a6   :  { %v3085_v20 = vpop.eup %3084  ;;  %3092 = vpow2.f32 %v2627_v18  ;;  %v383_v18 = vld [vmem:[%s4169_s29] sm:$0xff] }
 0x1a7   :  { %v361_v22 = vadd.f32 1.0, %v3085_v20  ;;  %3094 = vrcp.f32 %v360_v19  ;;  %v3087_v25 = vpop.eup %3086  ;;  %v981_v19 = vld [vmem:[#allocation9] sm:$0xff]  ;;  %v983_v20 = vld [vmem:[#allocation9 + $0x10] sm:$0xff] }
 0x1a8   :  { %3096 = vpow2.f32 %v2628_v21  ;;  %v362_v35 = vadd.f32 1.0, %v3087_v25  ;;  %v1280_v21 = vcombine.high %v1276_v16, %v1276_v16  ;;  %v386_v25 = vld [vmem:[%s4169_s29 + $0x18] sm:$0xff] }
 0x1a9   :  { %3098 = vrcp.f32 %v361_v22  ;;  %v1281_v22 = vcombine.high %v1277_v17, %v1277_v17 }
 0x1aa   :  { %v3089_v30 = vpop.eup %3088  ;;  %3100 = vpow2.f32 %v2629_v31  ;;  %v1586_v31 = vld [vmem:[#allocation12 + $0x28] sm:$0xff] }
 0x1ab   :  { %v363_v41 = vadd.f32 1.0, %v3089_v30  ;;  %3102 = vrcp.f32 %v362_v35  ;;  %v1582_v30 = vld [vmem:[#allocation12 + $0x8] sm:$0xff] }
 0x1ac   :  { %v2846_v35 = vpack.c.bf16 %v1586_v31, %v1582_v30  ;;  %v2214_v30 = vld [vmem:[#allocation15 + $0x20] sm:$0xff]  ;;  %v2212_v31 = vld [vmem:[#allocation15 + $0x10] sm:$0xff] }
 0x1ad   :  { %3104 = vrcp.f32 %v363_v41  ;;  %v978_v41 = vld [vmem:[%s4148_s2 + $0x28] sm:$0xff] }
 0x1af   :  { %v3091_v40 = vpop.eup %3090 }
 0x1b0   :  { %2632 = vmatmul.mubr.msk.f32.vlgmr.msra.gmra.mrb[0].mxu1 %vm447_vm5, %v3091_v40  ;;  %2642 = vmatmul.mubr.msk.f32.vlgmr.msra.gmra.mrb[8].mxu0 %vm447_vm5, %v3091_v40  ;;  %v3093_v50 = vpop.eup %3092  ;;  %v977_v40 = vld [vmem:[%s4148_s2 + $0x20] sm:$0xff] }
 0x1b1   :  { %2825 = vmatpush1.bf16.msra.mxu1 %v2824_v36  ;;  %2837 = vmatpush1.bf16.msra.mxu0 %v2836_v37  ;;  %v3095_v55 = vpop.eup %3094  ;;  %v364_v63 = vadd.f32 1.0, %v3093_v50  ;;  %v2850_v36 = vpack.c.bf16 %v1588_v33, %v1584_v32  ;;  %v974_v37 = vld [vmem:[%s4148_s2 + $0x8] sm:$0xff]  ;;  %v2852_v50 = vpack.c.bf16 %v1587_v47, %v1583_v46  ;;  %v2216_v32 = vld [vmem:[#allocation15 + $0x30] sm:$0xff]  ;;  %v1888_v33 = vld [vmem:[%s4151_s5] sm:$0xff] }
 0x1b2   :  { %555 = vmatprep.mubr.f32.mxu1 %v3359_v51  ;;  %668 = vmatprep.mubr.f32.mxu0 %v3359_v51  ;;  %v3097_v61 = vpop.eup %3096  ;;  %v1895_v46 = vld [vmem:[%s4151_s5 + $0x38] sm:$0xff]  ;;  %v2202_v47 = vld [vmem:[%s4152_s6] sm:$0xff] }
 0x1b3   :  { %2827 = vmatprep.subr.bf16.mxu1 %v2826_v42  ;;  %2839 = vmatprep.subr.bf16.mxu0 %v2838_v43  ;;  %v3099_v62 = vpop.eup %3098  ;;  %v365_v2 = vadd.f32 1.0, %v3097_v61  ;;  %3106 = vrcp.f32 %v364_v63  ;;  %v979_v42 = vld [vmem:[%s4148_s2 + $0x30] sm:$0xff]  ;;  %v980_v43 = vld [vmem:[%s4148_s2 + $0x38] sm:$0xff] }
 0x1b4   :  { %2633 = vmatmul.mubr.msk.f32.gmra.mrb[2].mxu1 %vm447_vm5, %v3095_v55  ;;  %2643 = vmatmul.mubr.msk.f32.gmra.mrb[10].mxu0 %vm447_vm5, %v3095_v55  ;;  %v3101_v5 = vpop.eup %3100  ;;  %v1901_v55 = vld [vmem:[#allocation13 + $0x28] sm:$0xff] }
 0x1b5   :  { %561 = vmatprep.mubr.f32.mxu1 %v3359_v51  ;;  %674 = vmatprep.mubr.f32.mxu0 %v3359_v51  ;;  %v3103_v6 = vpop.eup %3102  ;;  %3108 = vrcp.f32 %v365_v2  ;;  %v366_v12 = vadd.f32 1.0, %v3101_v5  ;;  %v2854_v61 = vpack.c.bf16 %v1901_v55, %v1897_v54  ;;  %v1270_v63 = vld [vmem:[%s4149_s3 + $0x10] sm:$0xff]  ;;  %v1273_v2 = vld [vmem:[%s4149_s3 + $0x28] sm:$0xff]  ;;  %v2209_v55 = vld [vmem:[%s4152_s6 + $0x38] sm:$0xff] }
 0x1b6   :  { %2829 = vmatpush1.bf16.msra.mxu1 %v2828_v52  ;;  %2841 = vmatpush1.bf16.msra.mxu0 %v2840_v53  ;;  %v1590_v52 = vld [vmem:[#allocation12 + $0x48] sm:$0xf]  ;;  %v1592_v53 = vld [vmem:[#allocation12 + $0x58] sm:$0xf]  ;;  %v1896_v5 = vld [vmem:[#allocation13] sm:$0xff] }
 0x1b7   :  { %2831 = vmatprep.subr.bf16.mxu1 %v2830_v56  ;;  %2843 = vmatprep.subr.bf16.mxu0 %v2842_v57  ;;  %v3105_v11 = vpop.eup %3104  ;;  %3110 = vrcp.f32 %v366_v12  ;;  %v1899_v56 = vld [vmem:[#allocation13 + $0x18] sm:$0xff]  ;;  %v1905_v12 = vld [vmem:[#allocation13 + $0x48] sm:$0xf]  ;;  %v2208_v54 = vld [vmem:[%s4152_s6 + $0x30] sm:$0xff] }
 0x1b8   :  { %2634 = vmatmul.mubr.msk.f32.gmra.mrb[4].mxu1 %vm447_vm5, %v3099_v62  ;;  %2644 = vmatmul.mubr.msk.f32.gmra.mrb[12].mxu0 %vm447_vm5, %v3099_v62  ;;  %v1903_v57 = vld [vmem:[#allocation13 + $0x38] sm:$0xff] }
 0x1b9   :  { %567 = vmatprep.mubr.f32.mxu1 %v3359_v51  ;;  %680 = vmatprep.mubr.f32.mxu0 %v3359_v51  ;;  %v2858_v62 = vpack.c.bf16 %v1903_v57, %v1899_v56  ;;  %v2518_v56 = vlaneseq }
 0x1ba   :  { %2833 = vmatpush1.bf16.msra.mxu1 %v2832_v0  ;;  %2845 = vmatpush1.bf16.msra.mxu0 %v2844_v1  ;;  %v1271_v0 = vld [vmem:[%s4149_s3 + $0x18] sm:$0xff]  ;;  %v1272_v1 = vld [vmem:[%s4149_s3 + $0x20] sm:$0xff] }
 0x1bb   :  { %2650 = vmatprep.subr.msk.mxu1 %vm472_vm4, %v416_v3  ;;  %2660 = vmatprep.subr.msk.mxu0 %vm472_vm4, %v418_v4  ;;  %v1274_v3 = vld [vmem:[%s4149_s3 + $0x30] sm:$0xff]  ;;  %v1275_v4 = vld [vmem:[%s4149_s3 + $0x38] sm:$0xff]  ;;  %v2519_v57 = vshrl.u32 %v2518_v56, 7 }
 0x1bc   :  { %2635 = vmatmul.mubr.msk.f32.gmra.mrb[6].mxu1 %vm447_vm5, %v3103_v6  ;;  %2645 = vmatmul.mubr.msk.f32.gmra.mrb[14].mxu0 %vm447_vm5, %v3103_v6  ;;  %v1900_v6 = vld [vmem:[#allocation13 + $0x20] sm:$0xff] }
 0x1bd   :  { %573 = vmatprep.mubr.f32.mxu1 %v3359_v51  ;;  %686 = vmatprep.mubr.f32.mxu0 %v3359_v51  ;;  %v3107_v13 = vpop.eup %3106 }
 0x1be   :  { %2651 = vmatpush1.msk.msra.mxu1 %vm472_vm4, %v415_v7  ;;  %2661 = vmatpush1.msk.msra.mxu0 %vm472_vm4, %v417_v8  ;;  %v1898_v7 = vld [vmem:[#allocation13 + $0x10] sm:$0xff] }
 0x1bf   :  { %1010 = vmatprep.subr.mxu1 %v982_v9  ;;  %1123 = vmatprep.subr.mxu0 %v984_v10  ;;  %v3109_v14 = vpop.eup %3108  ;;  %v1902_v8 = vld [vmem:[#allocation13 + $0x30] sm:$0xff]  ;;  %v1573_v9 = vld [vmem:[%s4150_s4] sm:$0xff]  ;;  %v2856_v10 = vpack.c.bf16 %v1900_v6, %v1896_v5 }
 0x1c0   :  { %2636 = vmatmul.mubr.msk.f32.gmra.mrb[8].mxu1 %vm447_vm5, %v3105_v11  ;;  %2646 = vmatmul.mubr.msk.f32.gmra.mrb[16].mxu0 %vm447_vm5, %v3105_v11  ;;  %v2860_v11 = vpack.c.bf16 %v1902_v8, %v1898_v7 }
 0x1c1   :  { %579 = vmatprep.mubr.f32.mxu1 %v3359_v51  ;;  %692 = vmatprep.mubr.f32.mxu0 %v3359_v51  ;;  %v3111_v15 = vpop.eup %3110 }
 0x1c4   :  { %2637 = vmatmul.mubr.msk.f32.gmra.mrb[10].mxu1 %vm447_vm5, %v3107_v13  ;;  %2647 = vmatmul.mubr.msk.f32.gmra.mrb[18].mxu0 %vm447_vm5, %v3107_v13  ;;  %v1907_v13 = vld [vmem:[#allocation13 + $0x58] sm:$0xf] }
 0x1c5   :  { %585 = vmatprep.mubr.f32.mxu1 %v3359_v51  ;;  %698 = vmatprep.mubr.f32.mxu0 %v3359_v51 }
 0x1c8   :  { %2638 = vmatmul.mubr.msk.f32.gmra.mrb[12].mxu1 %vm447_vm5, %v3109_v14  ;;  %2648 = vmatmul.mubr.msk.f32.gmra.mrb[20].mxu0 %vm447_vm5, %v3109_v14  ;;  %v2211_v14 = vld [vmem:[#allocation15 + $0x8] sm:$0xff] }
 0x1c9   :  { %591 = vmatprep.mubr.f32.mxu1 %v3359_v51  ;;  %704 = vmatprep.mubr.f32.mxu0 %v3359_v51 }
 0x1cc   :  { %2639 = vmatmul.mubr.msk.f32.gmra.mrb[14].mxu1 %vm447_vm5, %v3111_v15  ;;  %2649 = vmatmul.mubr.msk.f32.gmra.mrb[22].mxu0 %vm447_vm5, %v3111_v15  ;;  %v2215_v15 = vld [vmem:[#allocation15 + $0x28] sm:$0xff] }
 0x1cd   :  { %811 = vmatprep.mubr.f32.mxu1 %v3359_v51  ;;  %924 = vmatprep.mubr.f32.mxu0 %v3359_v51 }
 0x1d0   :  { %2652 = vmatmul.mubr.msk.f32.vlgmr.msra.gmra.mrb[0].mxu1 %vm447_vm5, %v383_v18  ;;  %2662 = vmatmul.mubr.msk.f32.vlgmr.msra.gmra.mrb[8].mxu0 %vm447_vm5, %v383_v18  ;;  %v1574_v18 = vld [vmem:[%s4150_s4 + $0x8] sm:$0xff] }
 0x1d1   :  { %1011 = vmatpush1.msra.mxu1 %v981_v19  ;;  %1124 = vmatpush1.msra.mxu0 %v983_v20  ;;  %v1904_v19 = vld [vmem:[#allocation13 + $0x40] sm:$0xf]  ;;  %v1906_v20 = vld [vmem:[#allocation13 + $0x50] sm:$0xf] }
 0x1d2   :  { %817 = vmatprep.mubr.f32.mxu1 %v3359_v51  ;;  %930 = vmatprep.mubr.f32.mxu0 %v3359_v51 }
 0x1d3   :  { %2686 = vmatprep.subr.msk.mxu1 %vm226_vm0, %v1280_v21  ;;  %2696 = vmatprep.subr.msk.mxu0 %vm226_vm0, %v1281_v22  ;;  %v2862_v21 = vpack.c.bf16 %v2215_v15, %v2211_v14 }
 0x1d4   :  { %2653 = vmatmul.mubr.msk.f32.gmra.mrb[2].mxu1 %vm447_vm5, %v384_v23  ;;  %2663 = vmatmul.mubr.msk.f32.gmra.mrb[10].mxu0 %vm447_vm5, %v384_v23  ;;  %v1575_v23 = vld [vmem:[%s4150_s4 + $0x10] sm:$0xff] }
 0x1d5   :  { %823 = vmatprep.mubr.f32.mxu1 %v3359_v51  ;;  %936 = vmatprep.mubr.f32.mxu0 %v3359_v51 }
 0x1d8   :  { %2654 = vmatmul.mubr.msk.f32.gmra.mrb[4].mxu1 %vm447_vm5, %v385_v24  ;;  %2664 = vmatmul.mubr.msk.f32.gmra.mrb[12].mxu0 %vm447_vm5, %v385_v24  ;;  %v1576_v24 = vld [vmem:[%s4150_s4 + $0x18] sm:$0xff] }
 0x1d9   :  { %829 = vmatprep.mubr.f32.mxu1 %v3359_v51  ;;  %942 = vmatprep.mubr.f32.mxu0 %v3359_v51 }
 0x1dc   :  { %2655 = vmatmul.mubr.msk.f32.gmra.mrb[6].mxu1 %vm447_vm5, %v386_v25  ;;  %2665 = vmatmul.mubr.msk.f32.gmra.mrb[14].mxu0 %vm447_vm5, %v386_v25  ;;  %v1577_v25 = vld [vmem:[%s4150_s4 + $0x20] sm:$0xff] }
 0x1dd   :  { %835 = vmatprep.mubr.f32.mxu1 %v3359_v51  ;;  %948 = vmatprep.mubr.f32.mxu0 %v3359_v51 }
 0x1e0   :  { %2656 = vmatmul.mubr.msk.f32.gmra.mrb[8].mxu1 %vm447_vm5, %v387_v26  ;;  %2666 = vmatmul.mubr.msk.f32.gmra.mrb[16].mxu0 %vm447_vm5, %v387_v26  ;;  %v1578_v26 = vld [vmem:[%s4150_s4 + $0x28] sm:$0xff] }
 0x1e1   :  { %841 = vmatprep.mubr.f32.mxu1 %v3359_v51  ;;  %954 = vmatprep.mubr.f32.mxu0 %v3359_v51 }
 0x1e4   :  { %2657 = vmatmul.mubr.msk.f32.gmra.mrb[10].mxu1 %vm447_vm5, %v388_v27  ;;  %2667 = vmatmul.mubr.msk.f32.gmra.mrb[18].mxu0 %vm447_vm5, %v388_v27  ;;  %v1579_v27 = vld [vmem:[%s4150_s4 + $0x30] sm:$0xff] }
 0x1e5   :  { %847 = vmatprep.mubr.f32.mxu1 %v3359_v51  ;;  %960 = vmatprep.mubr.f32.mxu0 %v3359_v51 }
 0x1e8   :  { %2658 = vmatmul.mubr.msk.f32.gmra.mrb[12].mxu1 %vm447_vm5, %v389_v28  ;;  %2668 = vmatmul.mubr.msk.f32.gmra.mrb[20].mxu0 %vm447_vm5, %v389_v28  ;;  %v1580_v28 = vld [vmem:[%s4150_s4 + $0x38] sm:$0xff] }
 0x1e9   :  { %853 = vmatprep.mubr.f32.mxu1 %v3359_v51  ;;  %966 = vmatprep.mubr.f32.mxu0 %v3359_v51 }
 0x1ec   :  { %2659 = vmatmul.mubr.msk.f32.gmra.mrb[14].mxu1 %vm447_vm5, %v390_v29  ;;  %2669 = vmatmul.mubr.msk.f32.gmra.mrb[22].mxu0 %vm447_vm5, %v390_v29  ;;  %v2210_v29 = vld [vmem:[#allocation15] sm:$0xff] }
 0x1ed   :  { %1074 = vmatprep.mubr.f32.mxu1 %v3359_v51  ;;  %1187 = vmatprep.mubr.f32.mxu0 %v3359_v51 }
 0x1f0   :  { %2670 = vmatmul.mubr.msk.f32.vlgmr.msra.gmra.mrb[0].mxu1 %vm985_vm6, %v973_v34  ;;  %2678 = vmatmul.mubr.msk.f32.vlgmr.msra.gmra.mrb[8].mxu0 %vm985_vm6, %v973_v34  ;;  %v2864_v34 = vpack.c.bf16 %v2214_v30, %v2210_v29 }
 0x1f1   :  { %2687 = vmatpush1.msk.msra.mxu1 %vm226_vm0, %v1276_v16  ;;  %2697 = vmatpush1.msk.msra.mxu0 %vm226_vm0, %v1277_v17  ;;  %v2213_v16 = vld [vmem:[#allocation15 + $0x18] sm:$0xff] }
 0x1f2   :  { %1080 = vmatprep.mubr.f32.mxu1 %v3359_v51  ;;  %1193 = vmatprep.mubr.f32.mxu0 %v3359_v51  ;;  %v2217_v17 = vld [vmem:[#allocation15 + $0x38] sm:$0xff] }
 0x1f3   :  { %2847 = vmatprep.subr.bf16.mxu1 %v2846_v35  ;;  %2851 = vmatprep.subr.bf16.mxu0 %v2850_v36  ;;  %v2866_v22 = vpack.c.bf16 %v2217_v17, %v2213_v16  ;;  %v2868_v35 = vpack.c.bf16 %v2216_v32, %v2212_v31  ;;  %v2219_v36 = vld [vmem:[#allocation15 + $0x48] sm:$0xf] }
 0x1f4   :  { %2671 = vmatmul.mubr.msk.f32.gmra.mrb[2].mxu1 %vm985_vm6, %v974_v37  ;;  %2679 = vmatmul.mubr.msk.f32.gmra.mrb[10].mxu0 %vm985_vm6, %v974_v37  ;;  %v2221_v37 = vld [vmem:[#allocation15 + $0x58] sm:$0xf] }
 0x1f5   :  { %1086 = vmatprep.mubr.f32.mxu1 %v3359_v51  ;;  %1199 = vmatprep.mubr.f32.mxu0 %v3359_v51 }
 0x1f8   :  { %2672 = vmatmul.mubr.msk.f32.gmra.mrb[4].mxu1 %vm985_vm6, %v975_v38  ;;  %2680 = vmatmul.mubr.msk.f32.gmra.mrb[12].mxu0 %vm985_vm6, %v975_v38  ;;  %v1889_v38 = vld [vmem:[%s4151_s5 + $0x8] sm:$0xff] }
 0x1f9   :  { %1092 = vmatprep.mubr.f32.mxu1 %v3359_v51  ;;  %1205 = vmatprep.mubr.f32.mxu0 %v3359_v51 }
 0x1fc   :  { %2673 = vmatmul.mubr.msk.f32.gmra.mrb[6].mxu1 %vm985_vm6, %v976_v39  ;;  %2681 = vmatmul.mubr.msk.f32.gmra.mrb[14].mxu0 %vm985_vm6, %v976_v39  ;;  %v2218_v39 = vld [vmem:[#allocation15 + $0x40] sm:$0xf] }
 0x1fd   :  { %1098 = vmatprep.mubr.f32.mxu1 %v3359_v51  ;;  %1211 = vmatprep.mubr.f32.mxu0 %v3359_v51 }
 0x200   :  { %2674 = vmatmul.mubr.msk.f32.gmra.mrb[8].mxu1 %vm985_vm6, %v977_v40  ;;  %2682 = vmatmul.mubr.msk.f32.gmra.mrb[16].mxu0 %vm985_vm6, %v977_v40  ;;  %v2220_v40 = vld [vmem:[#allocation15 + $0x50] sm:$0xf] }
 0x201   :  { %1104 = vmatprep.mubr.f32.mxu1 %v3359_v51  ;;  %1217 = vmatprep.mubr.f32.mxu0 %v3359_v51 }
 0x204   :  { %2675 = vmatmul.mubr.msk.f32.gmra.mrb[10].mxu1 %vm985_vm6, %v978_v41  ;;  %2683 = vmatmul.mubr.msk.f32.gmra.mrb[18].mxu0 %vm985_vm6, %v978_v41  ;;  %v1890_v41 = vld [vmem:[%s4151_s5 + $0x10] sm:$0xff] }
 0x205   :  { %1110 = vmatprep.mubr.f32.mxu1 %v3359_v51  ;;  %1223 = vmatprep.mubr.f32.mxu0 %v3359_v51 }
 0x208   :  { %2676 = vmatmul.mubr.msk.f32.gmra.mrb[12].mxu1 %vm985_vm6, %v979_v42  ;;  %2684 = vmatmul.mubr.msk.f32.gmra.mrb[20].mxu0 %vm985_vm6, %v979_v42  ;;  %v1891_v42 = vld [vmem:[%s4151_s5 + $0x18] sm:$0xff] }
 0x209   :  { %1116 = vmatprep.mubr.f32.mxu1 %v3359_v51  ;;  %1229 = vmatprep.mubr.f32.mxu0 %v3359_v51 }
 0x20c   :  { %2677 = vmatmul.mubr.msk.f32.gmra.mrb[14].mxu1 %vm985_vm6, %v980_v43  ;;  %2685 = vmatmul.mubr.msk.f32.gmra.mrb[22].mxu0 %vm985_vm6, %v980_v43  ;;  %v1892_v43 = vld [vmem:[%s4151_s5 + $0x20] sm:$0xff] }
 0x20d   :  { %1379 = vmatprep.mubr.f32.mxu1 %v3359_v51  ;;  %1492 = vmatprep.mubr.f32.mxu0 %v3359_v51 }
 0x210   :  { %2688 = vmatmul.mubr.msk.f32.vlgmr.msra.gmra.mrb[0].mxu1 %vm1282_vm7, %v1268_v48  ;;  %2698 = vmatmul.mubr.msk.f32.vlgmr.msra.gmra.mrb[8].mxu0 %vm1282_vm7, %v1268_v48  ;;  %v2203_v48 = vld [vmem:[%s4152_s6 + $0x8] sm:$0xff] }
 0x211   :  { %2849 = vmatpush1.bf16.msra.mxu1 %v2848_v49  ;;  %2853 = vmatpush1.bf16.msra.mxu0 %v2852_v50  ;;  %v2204_v49 = vld [vmem:[%s4152_s6 + $0x10] sm:$0xff]  ;;  %v2205_v50 = vld [vmem:[%s4152_s6 + $0x18] sm:$0xff] }
 0x212   :  { %1385 = vmatprep.mubr.f32.mxu1 %v3359_v51  ;;  %1498 = vmatprep.mubr.f32.mxu0 %v3359_v51 }
 0x213   :  { %2706 = vmatprep.subr.msk.mxu1 %vm226_vm0, %v1590_v52  ;;  %2716 = vmatprep.subr.msk.mxu0 %vm226_vm0, %v1592_v53  ;;  %v2206_v52 = vld [vmem:[%s4152_s6 + $0x20] sm:$0xff]  ;;  %v2207_v53 = vld [vmem:[%s4152_s6 + $0x28] sm:$0xff] }
 0x214   :  { %2689 = vmatmul.mubr.msk.f32.gmra.mrb[2].mxu1 %vm1282_vm7, %v1269_v58  ;;  %2699 = vmatmul.mubr.msk.f32.gmra.mrb[10].mxu0 %vm1282_vm7, %v1269_v58  ;;  %v2520_v58 = vsub.s32 0, %v2519_v57 }
 0x215   :  { %1391 = vmatprep.mubr.f32.mxu1 %v3359_v51  ;;  %1504 = vmatprep.mubr.f32.mxu0 %v3359_v51 }
 0x216   :  { %2707 = vmatpush1.msk.msra.mxu1 %vm226_vm0, %v1589_v59  ;;  %2717 = vmatpush1.msk.msra.mxu0 %vm226_vm0, %v1591_v60  ;;  %v2528_v59 = vsub.s32 2, %v2519_v57  ;;  %v2516_v60 = vld [vmem:[#allocation16] sm:$0xf] }
 0x217   :  { %2855 = vmatprep.subr.bf16.mxu1 %v2854_v61  ;;  %2859 = vmatprep.subr.bf16.mxu0 %v2858_v62  ;;  %v2524_v61 = vsub.s32 1, %v2519_v57  ;;  %v2532_v62 = vsub.s32 3, %v2519_v57 }
 0x218   :  { %2690 = vmatmul.mubr.msk.f32.gmra.mrb[4].mxu1 %vm1282_vm7, %v1270_v63  ;;  %2700 = vmatmul.mubr.msk.f32.gmra.mrb[12].mxu0 %vm1282_vm7, %v1270_v63  ;;  %v4010_v63 = vrot.slane %v2516_v60, %v2520_v58 }
 0x219   :  { %1397 = vmatprep.mubr.f32.mxu1 %v3359_v51  ;;  %1510 = vmatprep.mubr.f32.mxu0 %v3359_v51 }
 0x21c   :  { %2691 = vmatmul.mubr.msk.f32.gmra.mrb[6].mxu1 %vm1282_vm7, %v1271_v0  ;;  %2701 = vmatmul.mubr.msk.f32.gmra.mrb[14].mxu0 %vm1282_vm7, %v1271_v0  ;;  %v4012_v0 = vrot.slane %v2516_v60, %v2528_v59 }
 0x21d   :  { %1403 = vmatprep.mubr.f32.mxu1 %v3359_v51  ;;  %1516 = vmatprep.mubr.f32.mxu0 %v3359_v51 }
 0x220   :  { %2692 = vmatmul.mubr.msk.f32.gmra.mrb[8].mxu1 %vm1282_vm7, %v1272_v1  ;;  %2702 = vmatmul.mubr.msk.f32.gmra.mrb[16].mxu0 %vm1282_vm7, %v1272_v1  ;;  %v4016_v1 = vrot.slane %v2516_v60, %v2532_v62 }
 0x221   :  { %1409 = vmatprep.mubr.f32.mxu1 %v3359_v51  ;;  %1522 = vmatprep.mubr.f32.mxu0 %v3359_v51 }
 0x224   :  { %2693 = vmatmul.mubr.msk.f32.gmra.mrb[10].mxu1 %vm1282_vm7, %v1273_v2  ;;  %2703 = vmatmul.mubr.msk.f32.gmra.mrb[18].mxu0 %vm1282_vm7, %v1273_v2 }
 0x225   :  { %1415 = vmatprep.mubr.f32.mxu1 %v3359_v51  ;;  %1528 = vmatprep.mubr.f32.mxu0 %v3359_v51 }
 0x228   :  { %2694 = vmatmul.mubr.msk.f32.gmra.mrb[12].mxu1 %vm1282_vm7, %v1274_v3  ;;  %2704 = vmatmul.mubr.msk.f32.gmra.mrb[20].mxu0 %vm1282_vm7, %v1274_v3 }
 0x229   :  { %1421 = vmatprep.mubr.f32.mxu1 %v3359_v51  ;;  %1534 = vmatprep.mubr.f32.mxu0 %v3359_v51 }
 0x22c   :  { %2695 = vmatmul.mubr.msk.f32.gmra.mrb[14].mxu1 %vm1282_vm7, %v1275_v4  ;;  %2705 = vmatmul.mubr.msk.f32.gmra.mrb[22].mxu0 %vm1282_vm7, %v1275_v4 }
 0x22d   :  { %1694 = vmatprep.mubr.f32.mxu1 %v3359_v51  ;;  %1807 = vmatprep.mubr.f32.mxu0 %v3359_v51 }
 0x230   :  { %2708 = vmatmul.mubr.msk.f32.vlgmr.msra.gmra.mrb[0].mxu1 %vm1593_vm8, %v1573_v9  ;;  %2718 = vmatmul.mubr.msk.f32.vlgmr.msra.gmra.mrb[8].mxu0 %vm1593_vm8, %v1573_v9 }
 0x231   :  { %2857 = vmatpush1.bf16.msra.mxu1 %v2856_v10  ;;  %2861 = vmatpush1.bf16.msra.mxu0 %v2860_v11 }
 0x232   :  { %1700 = vmatprep.mubr.f32.mxu1 %v3359_v51  ;;  %1813 = vmatprep.mubr.f32.mxu0 %v3359_v51 }
 0x233   :  { %2726 = vmatprep.subr.msk.mxu1 %vm226_vm0, %v1905_v12  ;;  %2736 = vmatprep.subr.msk.mxu0 %vm226_vm0, %v1907_v13 }
 0x234   :  { %2709 = vmatmul.mubr.msk.f32.gmra.mrb[2].mxu1 %vm1593_vm8, %v1574_v18  ;;  %2719 = vmatmul.mubr.msk.f32.gmra.mrb[10].mxu0 %vm1593_vm8, %v1574_v18 }
 0x235   :  { %1706 = vmatprep.mubr.f32.mxu1 %v3359_v51  ;;  %1819 = vmatprep.mubr.f32.mxu0 %v3359_v51 }
 0x236   :  { %2727 = vmatpush1.msk.msra.mxu1 %vm226_vm0, %v1904_v19  ;;  %2737 = vmatpush1.msk.msra.mxu0 %vm226_vm0, %v1906_v20 }
 0x237   :  { %2863 = vmatprep.subr.bf16.mxu1 %v2862_v21  ;;  %2867 = vmatprep.subr.bf16.mxu0 %v2866_v22 }
 0x238   :  { %2710 = vmatmul.mubr.msk.f32.gmra.mrb[4].mxu1 %vm1593_vm8, %v1575_v23  ;;  %2720 = vmatmul.mubr.msk.f32.gmra.mrb[12].mxu0 %vm1593_vm8, %v1575_v23 }
 0x239   :  { %1712 = vmatprep.mubr.f32.mxu1 %v3359_v51  ;;  %1825 = vmatprep.mubr.f32.mxu0 %v3359_v51 }
 0x23c   :  { %2711 = vmatmul.mubr.msk.f32.gmra.mrb[6].mxu1 %vm1593_vm8, %v1576_v24  ;;  %2721 = vmatmul.mubr.msk.f32.gmra.mrb[14].mxu0 %vm1593_vm8, %v1576_v24 }
 0x23d   :  { %1718 = vmatprep.mubr.f32.mxu1 %v3359_v51  ;;  %1831 = vmatprep.mubr.f32.mxu0 %v3359_v51 }
 0x240   :  { %2712 = vmatmul.mubr.msk.f32.gmra.mrb[8].mxu1 %vm1593_vm8, %v1577_v25  ;;  %2722 = vmatmul.mubr.msk.f32.gmra.mrb[16].mxu0 %vm1593_vm8, %v1577_v25 }
 0x241   :  { %1724 = vmatprep.mubr.f32.mxu1 %v3359_v51  ;;  %1837 = vmatprep.mubr.f32.mxu0 %v3359_v51 }
 0x244   :  { %2713 = vmatmul.mubr.msk.f32.gmra.mrb[10].mxu1 %vm1593_vm8, %v1578_v26  ;;  %2723 = vmatmul.mubr.msk.f32.gmra.mrb[18].mxu0 %vm1593_vm8, %v1578_v26 }
 0x245   :  { %1730 = vmatprep.mubr.f32.mxu1 %v3359_v51  ;;  %1843 = vmatprep.mubr.f32.mxu0 %v3359_v51 }
 0x248   :  { %2714 = vmatmul.mubr.msk.f32.gmra.mrb[12].mxu1 %vm1593_vm8, %v1579_v27  ;;  %2724 = vmatmul.mubr.msk.f32.gmra.mrb[20].mxu0 %vm1593_vm8, %v1579_v27 }
 0x249   :  { %1736 = vmatprep.mubr.f32.mxu1 %v3359_v51  ;;  %1849 = vmatprep.mubr.f32.mxu0 %v3359_v51 }
 0x24c   :  { %2715 = vmatmul.mubr.msk.f32.gmra.mrb[14].mxu1 %vm1593_vm8, %v1580_v28  ;;  %2725 = vmatmul.mubr.msk.f32.gmra.mrb[22].mxu0 %vm1593_vm8, %v1580_v28 }
 0x24d   :  { %2008 = vmatprep.mubr.f32.mxu1 %v3359_v51  ;;  %2121 = vmatprep.mubr.f32.mxu0 %v3359_v51 }
 0x250   :  { %2728 = vmatmul.mubr.msk.f32.vlgmr.msra.gmra.mrb[0].mxu1 %vm1593_vm8, %v1888_v33  ;;  %2738 = vmatmul.mubr.msk.f32.vlgmr.msra.gmra.mrb[8].mxu0 %vm1593_vm8, %v1888_v33 }
 0x251   :  { %2865 = vmatpush1.bf16.msra.mxu1 %v2864_v34  ;;  %2869 = vmatpush1.bf16.msra.mxu0 %v2868_v35 }
 0x252   :  { %2014 = vmatprep.mubr.f32.mxu1 %v3359_v51  ;;  %2127 = vmatprep.mubr.f32.mxu0 %v3359_v51 }
 0x253   :  { %2746 = vmatprep.subr.msk.mxu1 %vm226_vm0, %v2219_v36  ;;  %2756 = vmatprep.subr.msk.mxu0 %vm226_vm0, %v2221_v37 }
 0x254   :  { %2729 = vmatmul.mubr.msk.f32.gmra.mrb[2].mxu1 %vm1593_vm8, %v1889_v38  ;;  %2739 = vmatmul.mubr.msk.f32.gmra.mrb[10].mxu0 %vm1593_vm8, %v1889_v38 }
 0x255   :  { %2020 = vmatprep.mubr.f32.mxu1 %v3359_v51  ;;  %2133 = vmatprep.mubr.f32.mxu0 %v3359_v51 }
 0x256   :  { %2747 = vmatpush1.msk.msra.mxu1 %vm226_vm0, %v2218_v39  ;;  %2757 = vmatpush1.msk.msra.mxu0 %vm226_vm0, %v2220_v40 }
 0x258   :  { %2730 = vmatmul.mubr.msk.f32.gmra.mrb[4].mxu1 %vm1593_vm8, %v1890_v41  ;;  %2740 = vmatmul.mubr.msk.f32.gmra.mrb[12].mxu0 %vm1593_vm8, %v1890_v41 }
 0x259   :  { %2026 = vmatprep.mubr.f32.mxu1 %v3359_v51  ;;  %2139 = vmatprep.mubr.f32.mxu0 %v3359_v51 }
 0x25c   :  { %2731 = vmatmul.mubr.msk.f32.gmra.mrb[6].mxu1 %vm1593_vm8, %v1891_v42  ;;  %2741 = vmatmul.mubr.msk.f32.gmra.mrb[14].mxu0 %vm1593_vm8, %v1891_v42 }
 0x25d   :  { %2032 = vmatprep.mubr.f32.mxu1 %v3359_v51  ;;  %2145 = vmatprep.mubr.f32.mxu0 %v3359_v51 }
 0x260   :  { %2732 = vmatmul.mubr.msk.f32.gmra.mrb[8].mxu1 %vm1593_vm8, %v1892_v43  ;;  %2742 = vmatmul.mubr.msk.f32.gmra.mrb[16].mxu0 %vm1593_vm8, %v1892_v43 }
 0x261   :  { %2038 = vmatprep.mubr.f32.mxu1 %v3359_v51  ;;  %2151 = vmatprep.mubr.f32.mxu0 %v3359_v51 }
 0x264   :  { %2733 = vmatmul.mubr.msk.f32.gmra.mrb[10].mxu1 %vm1593_vm8, %v1893_v44  ;;  %2743 = vmatmul.mubr.msk.f32.gmra.mrb[18].mxu0 %vm1593_vm8, %v1893_v44 }
 0x265   :  { %2044 = vmatprep.mubr.f32.mxu1 %v3359_v51  ;;  %2157 = vmatprep.mubr.f32.mxu0 %v3359_v51 }
 0x268   :  { %2734 = vmatmul.mubr.msk.f32.gmra.mrb[12].mxu1 %vm1593_vm8, %v1894_v45  ;;  %2744 = vmatmul.mubr.msk.f32.gmra.mrb[20].mxu0 %vm1593_vm8, %v1894_v45 }
 0x269   :  { %2050 = vmatprep.mubr.f32.mxu1 %v3359_v51  ;;  %2163 = vmatprep.mubr.f32.mxu0 %v3359_v51 }
 0x26c   :  { %2735 = vmatmul.mubr.msk.f32.gmra.mrb[14].mxu1 %vm1593_vm8, %v1895_v46  ;;  %2745 = vmatmul.mubr.msk.f32.gmra.mrb[22].mxu0 %vm1593_vm8, %v1895_v46 }
 0x26d   :  { %2322 = vmatprep.mubr.f32.mxu1 %v3359_v51  ;;  %2435 = vmatprep.mubr.f32.mxu0 %v3359_v51 }
 0x270   :  { %2748 = vmatmul.mubr.msk.f32.vlgmr.msra.gmra.mrb[0].mxu1 %vm1593_vm8, %v2202_v47  ;;  %2758 = vmatmul.mubr.msk.f32.vlgmr.msra.gmra.mrb[8].mxu0 %vm1593_vm8, %v2202_v47 }
 0x271   :  { %2328 = vmatprep.mubr.f32.mxu1 %v3359_v51  ;;  %2441 = vmatprep.mubr.f32.mxu0 %v3359_v51 }
 0x274   :  { %2749 = vmatmul.mubr.msk.f32.gmra.mrb[2].mxu1 %vm1593_vm8, %v2203_v48  ;;  %2759 = vmatmul.mubr.msk.f32.gmra.mrb[10].mxu0 %vm1593_vm8, %v2203_v48 }
 0x275   :  { %2334 = vmatprep.mubr.f32.mxu1 %v3359_v51  ;;  %2447 = vmatprep.mubr.f32.mxu0 %v3359_v51 }
 0x278   :  { %2750 = vmatmul.mubr.msk.f32.gmra.mrb[4].mxu1 %vm1593_vm8, %v2204_v49  ;;  %2760 = vmatmul.mubr.msk.f32.gmra.mrb[12].mxu0 %vm1593_vm8, %v2204_v49 }
 0x279   :  { %2340 = vmatprep.mubr.f32.mxu1 %v3359_v51  ;;  %2453 = vmatprep.mubr.f32.mxu0 %v3359_v51 }
 0x27c   :  { %2751 = vmatmul.mubr.msk.f32.gmra.mrb[6].mxu1 %vm1593_vm8, %v2205_v50  ;;  %2761 = vmatmul.mubr.msk.f32.gmra.mrb[14].mxu0 %vm1593_vm8, %v2205_v50 }
 0x27d   :  { %2346 = vmatprep.mubr.f32.mxu1 %v3359_v51  ;;  %2459 = vmatprep.mubr.f32.mxu0 %v3359_v51 }
 0x280   :  { %2752 = vmatmul.mubr.msk.f32.gmra.mrb[8].mxu1 %vm1593_vm8, %v2206_v52  ;;  %2762 = vmatmul.mubr.msk.f32.gmra.mrb[16].mxu0 %vm1593_vm8, %v2206_v52 }
 0x281   :  { %2352 = vmatprep.mubr.f32.mxu1 %v3359_v51  ;;  %2465 = vmatprep.mubr.f32.mxu0 %v3359_v51 }
 0x284   :  { %2753 = vmatmul.mubr.msk.f32.gmra.mrb[10].mxu1 %vm1593_vm8, %v2207_v53  ;;  %2763 = vmatmul.mubr.msk.f32.gmra.mrb[18].mxu0 %vm1593_vm8, %v2207_v53 }
 0x285   :  { %2358 = vmatprep.mubr.f32.mxu1 %v3359_v51  ;;  %2471 = vmatprep.mubr.f32.mxu0 %v3359_v51 }
 0x288   :  { %2754 = vmatmul.mubr.msk.f32.gmra.mrb[12].mxu1 %vm1593_vm8, %v2208_v54  ;;  %2764 = vmatmul.mubr.msk.f32.gmra.mrb[20].mxu0 %vm1593_vm8, %v2208_v54 }
 0x289   :  { %2364 = vmatprep.mubr.f32.mxu1 %v3359_v51  ;;  %2477 = vmatprep.mubr.f32.mxu0 %v3359_v51  ;;  %v4014_v51 = vrot.slane %v2516_v60, %v2524_v61 }
 0x28c   :  { %2755 = vmatmul.mubr.msk.f32.gmra.mrb[14].mxu1 %vm1593_vm8, %v2209_v55  ;;  %2765 = vmatmul.mubr.msk.f32.gmra.mrb[22].mxu0 %vm1593_vm8, %v2209_v55 }
 0x343   :  { %v2324_v2 = vpop.f32.mrb[0].mxu1  ;;  %v2437_v3 = vpop.f32.mrb[8].mxu0 }
 0x344   :  { %v2538_v4 = vadd.f32 %v4010_v63, %v2324_v2  ;;  %v2540_v5 = vadd.f32 %v4012_v0, %v2437_v3  ;;  %v2326_v6 = vpop.f32.mrb[1].mxu1  ;;  %v2439_v7 = vpop.f32.mrb[9].mxu0 }
 0x345   :  { %v2539_v8 = vadd.f32 %v4014_v51, %v2326_v6  ;;  %v2541_v9 = vadd.f32 %v4016_v1, %v2439_v7 }
 0x346   :  { %2570 = vst [vmem:[%s4163_s17] sm:$0xff] %v2538_v4  ;;  %2572 = vst [vmem:[%s4163_s17 + $0x10] sm:$0xff] %v2540_v5 }
 0x347   :  { %2571 = vst [vmem:[%s4163_s17 + $0x8] sm:$0xff] %v2539_v8  ;;  %2573 = vst [vmem:[%s4163_s17 + $0x18] sm:$0xff] %v2541_v9  ;;  %v2330_v10 = vpop.f32.mrb[2].mxu1  ;;  %v2443_v11 = vpop.f32.mrb[10].mxu0 }
 0x348   :  { %v2542_v12 = vadd.f32 %v4010_v63, %v2330_v10  ;;  %v2544_v13 = vadd.f32 %v4012_v0, %v2443_v11  ;;  %v2332_v14 = vpop.f32.mrb[3].mxu1  ;;  %v2445_v15 = vpop.f32.mrb[11].mxu0 }
 0x349   :  { %v2543_v16 = vadd.f32 %v4014_v51, %v2332_v14  ;;  %v2545_v17 = vadd.f32 %v4016_v1, %v2445_v15 }
 0x34a   :  { %2574 = vst [vmem:[%s4163_s17 + $0x20] sm:$0xff] %v2542_v12  ;;  %2576 = vst [vmem:[%s4163_s17 + $0x30] sm:$0xff] %v2544_v13 }
 0x34b   :  { %2575 = vst [vmem:[%s4163_s17 + $0x28] sm:$0xff] %v2543_v16  ;;  %2577 = vst [vmem:[%s4163_s17 + $0x38] sm:$0xff] %v2545_v17  ;;  %v2336_v18 = vpop.f32.mrb[4].mxu1  ;;  %v2449_v19 = vpop.f32.mrb[12].mxu0 }
 0x34c   :  { %v2546_v20 = vadd.f32 %v4010_v63, %v2336_v18  ;;  %v2548_v21 = vadd.f32 %v4012_v0, %v2449_v19  ;;  %v2338_v22 = vpop.f32.mrb[5].mxu1  ;;  %v2451_v23 = vpop.f32.mrb[13].mxu0 }
 0x34d   :  { %v2547_v24 = vadd.f32 %v4014_v51, %v2338_v22  ;;  %v2549_v25 = vadd.f32 %v4016_v1, %v2451_v23 }
 0x34e   :  { %2578 = vst [vmem:[%s4163_s17 + $0x40] sm:$0xff] %v2546_v20  ;;  %2580 = vst [vmem:[%s4163_s17 + $0x50] sm:$0xff] %v2548_v21 }
 0x34f   :  { %2579 = vst [vmem:[%s4163_s17 + $0x48] sm:$0xff] %v2547_v24  ;;  %2581 = vst [vmem:[%s4163_s17 + $0x58] sm:$0xff] %v2549_v25  ;;  %v2342_v26 = vpop.f32.mrb[6].mxu1  ;;  %v2455_v27 = vpop.f32.mrb[14].mxu0 }
 0x350   :  { %v2550_v28 = vadd.f32 %v4010_v63, %v2342_v26  ;;  %v2552_v29 = vadd.f32 %v4012_v0, %v2455_v27  ;;  %v2344_v30 = vpop.f32.mrb[7].mxu1  ;;  %v2457_v31 = vpop.f32.mrb[15].mxu0 }
 0x351   :  { %v2551_v32 = vadd.f32 %v4014_v51, %v2344_v30  ;;  %v2553_v33 = vadd.f32 %v4016_v1, %v2457_v31 }
 0x352   :  { %2582 = vst [vmem:[%s4163_s17 + $0x60] sm:$0xff] %v2550_v28  ;;  %2584 = vst [vmem:[%s4163_s17 + $0x70] sm:$0xff] %v2552_v29 }
 0x353   :  { %2583 = vst [vmem:[%s4163_s17 + $0x68] sm:$0xff] %v2551_v32  ;;  %2585 = vst [vmem:[%s4163_s17 + $0x78] sm:$0xff] %v2553_v33  ;;  %v2348_v34 = vpop.f32.mrb[8].mxu1  ;;  %v2461_v35 = vpop.f32.mrb[16].mxu0 }
 0x354   :  { %v2554_v36 = vadd.f32 %v4010_v63, %v2348_v34  ;;  %v2556_v37 = vadd.f32 %v4012_v0, %v2461_v35  ;;  %v2350_v38 = vpop.f32.mrb[9].mxu1  ;;  %v2463_v39 = vpop.f32.mrb[17].mxu0 }
 0x355   :  { %v2555_v40 = vadd.f32 %v4014_v51, %v2350_v38  ;;  %v2557_v41 = vadd.f32 %v4016_v1, %v2463_v39 }
 0x356   :  { %2586 = vst [vmem:[%s4163_s17 + $0x80] sm:$0xff] %v2554_v36  ;;  %2588 = vst [vmem:[%s4163_s17 + $0x90] sm:$0xff] %v2556_v37 }
 0x357   :  { %2587 = vst [vmem:[%s4163_s17 + $0x88] sm:$0xff] %v2555_v40  ;;  %2589 = vst [vmem:[%s4163_s17 + $0x98] sm:$0xff] %v2557_v41  ;;  %v2354_v42 = vpop.f32.mrb[10].mxu1  ;;  %v2467_v43 = vpop.f32.mrb[18].mxu0 }
 0x358   :  { %v2558_v44 = vadd.f32 %v4010_v63, %v2354_v42  ;;  %v2560_v45 = vadd.f32 %v4012_v0, %v2467_v43  ;;  %v2356_v46 = vpop.f32.mrb[11].mxu1  ;;  %v2469_v47 = vpop.f32.mrb[19].mxu0 }
 0x359   :  { %v2559_v48 = vadd.f32 %v4014_v51, %v2356_v46  ;;  %v2561_v49 = vadd.f32 %v4016_v1, %v2469_v47 }
 0x35a   :  { %2590 = vst [vmem:[%s4163_s17 + $0xa0] sm:$0xff] %v2558_v44  ;;  %2592 = vst [vmem:[%s4163_s17 + $0xb0] sm:$0xff] %v2560_v45 }
 0x35b   :  { %2591 = vst [vmem:[%s4163_s17 + $0xa8] sm:$0xff] %v2559_v48  ;;  %2593 = vst [vmem:[%s4163_s17 + $0xb8] sm:$0xff] %v2561_v49  ;;  %v2360_v50 = vpop.f32.mrb[12].mxu1  ;;  %v2473_v52 = vpop.f32.mrb[20].mxu0 }
 0x35c   :  { %v2562_v53 = vadd.f32 %v4010_v63, %v2360_v50  ;;  %v2564_v54 = vadd.f32 %v4012_v0, %v2473_v52  ;;  %v2362_v55 = vpop.f32.mrb[13].mxu1  ;;  %v2475_v56 = vpop.f32.mrb[21].mxu0 }
 0x35d   :  { %v2563_v57 = vadd.f32 %v4014_v51, %v2362_v55  ;;  %v2565_v58 = vadd.f32 %v4016_v1, %v2475_v56 }
 0x35e   :  { %2594 = vst [vmem:[%s4163_s17 + $0xc0] sm:$0xff] %v2562_v53  ;;  %2596 = vst [vmem:[%s4163_s17 + $0xd0] sm:$0xff] %v2564_v54 }
 0x35f   :  { %2595 = vst [vmem:[%s4163_s17 + $0xc8] sm:$0xff] %v2563_v57  ;;  %2597 = vst [vmem:[%s4163_s17 + $0xd8] sm:$0xff] %v2565_v58  ;;  %v2366_v59 = vpop.f32.mrb[14].mxu1  ;;  %v2479_v60 = vpop.f32.mrb[22].mxu0 }
 0x360   :  { %v2566_v61 = vadd.f32 %v4010_v63, %v2366_v59  ;;  %v2568_v62 = vadd.f32 %v4012_v0, %v2479_v60  ;;  %v2368_v2 = vpop.f32.mrb[15].mxu1  ;;  %v2481_v3 = vpop.f32.mrb[23].mxu0 }
 0x361   :  { %v2567_v4 = vadd.f32 %v4014_v51, %v2368_v2  ;;  %v2569_v5 = vadd.f32 %v4016_v1, %v2481_v3 }
 0x362   :  { %2598 = vst [vmem:[%s4163_s17 + $0xe0] sm:$0xff] %v2566_v61  ;;  %2600 = vst [vmem:[%s4163_s17 + $0xf0] sm:$0xff] %v2568_v62 }
 0x363   :  { %2599 = vst [vmem:[%s4163_s17 + $0xe8] sm:$0xff] %v2567_v4  ;;  %2601 = vst [vmem:[%s4163_s17 + $0xf8] sm:$0xff] %v2569_v5 }
 0x364   :  { %2606 = vsyncpa [#allocation3], 1 }
 0x365   :  { %2607 = vsyncpa [#allocation5], 1 }
 0x366   :  { %2608 = vsyncpa [#allocation8], 1 }
 0x367   :  { %2609 = vsyncpa [#allocation11], 1 }
 0x368   :  { %2610 = vsyncpa [#allocation14], 1 }
 0x369   :  { %2611 = vsyncpa [#allocation17], 1 }

// kernel: net_forward.3
= control target key start
LH: loop header
LB: loop body
LE: loop exit
PB: predicated region body
PF: predicated region fallthrough
CT: control target
= control target key end

     0   :  { %11 = vsyncpa [#allocation5], 0  ;;  %s13782_s21 = smov [#allocation4]   ;;  %s17706_s0 = inlined_call_operand.vmem [shape: f32[8,8,512], index: 0, kind: input, shape index: {}]   ;;  %s17707_s1 = inlined_call_operand.hbm [shape: f32[3,128,512], index: 1, kind: input, shape index: {}]   ;;  %s17708_s2 = inlined_call_operand.vmem [shape: f32[4,128,512], index: 2, kind: input, shape index: {}]   ;;  %s17709_s3 = inlined_call_operand.vmem [shape: f32[3,1,512], index: 3, kind: input, shape index: {}]   ;;  %s17710_s4 = inlined_call_operand.vmem [shape: f32[128,3], index: 4, kind: input, shape index: {}]   ;;  %s17711_s5 = inlined_call_operand.vmem [shape: f32[1,3], index: 5, kind: input, shape index: {}]   ;;  %s17712_s6 = inlined_call_operand.vmem [shape: f32[64,3], index: 6, kind: output, shape index: {}]  }
   0x1   :  { %s19_s22 = sshll.u32 %s13782_s21, 4  ;;  %s13758_s25 = scalar_lea.hbm %s17707_s1, 24576  ;;  %s20_s22 = int_to_ptr.vmem [resolvable:$true] %s19_s22 }
   0x2   :  { %p13759_p0 = scmp.ne.s32.totalorder %s17707_s1, %s13758_s25  ;;  %p13762_p1 = scmp.lt.u32.totalorder %s13758_s25, %s17707_s1 }
   0x4   :  { %p13764_p2 = pnand %p13762_p1, %p13759_p0 }
   0x6   :  { %13767 = shalt.err (!%p13764_p2)
}
   0x7   :  { %s13768_s30 = scalar_lea.vmem %s20_s22, 24576  ;;  %p13773_p4 = scmp.lt.s32.totalorder %s20_s22, %s20_s22 }
   0x8   :  { %p13769_p3 = scmp.ne.s32.totalorder %s20_s22, %s13768_s30  ;;  %p13774_p5 = scmp.lt.s32.totalorder %s13768_s30, %s13768_s30 }
   0xa   :  { %p13775_p6 = por %p13774_p5, %p13773_p4 }
   0xc   :  { %p13776_p7 = pnand %p13775_p6, %p13769_p3 }
   0xe   :  { %13779 = shalt.err (!%p13776_p7)
}
   0xf   :  { %s13783_s7 = smov 512   ;;  %s13784_s8 = smov 32  }
  0x10   :  { %25 = dma.hbm_to_vmem [thread:$0]  %s17707_s1, 24576, %s20_s22, [#allocation5], %s13783_s7, %s13783_s7, %s13784_s8  }
  0x11   :  { %13780 = dma.done.wait [#allocation5], 24576  }
  0x12   :  { %13781 = vsyncadd [#allocation5], 4294942720  ;;  %v13785_v0 = vmov 0.0   ;;  %v42_v1 = vld [vmem:[%s17708_s2 + $0x8] sm:$0xff]  ;;  %v41_v3 = vld [vmem:[%s17708_s2] sm:$0xff]  ;;  %vm8905_vm0 = vcmask 23552  }
  0x13   :  { %169 = vmatprep.mubr.f32.mxu1 %v13785_v0  ;;  %409 = vmatprep.mubr.f32.mxu0 %v13785_v0  ;;  %v46_v2 = vld [vmem:[%s17708_s2 + $0x28] sm:$0xff]  ;;  %v45_v5 = vld [vmem:[%s17708_s2 + $0x20] sm:$0xff]  ;;  %v44_v48 = vld [vmem:[%s17708_s2 + $0x18] sm:$0xff] }
  0x14   :  { %v13844_v4 = vpack.c.bf16 %v46_v2, %v42_v1  ;;  %v50_v6 = vld [vmem:[%s17708_s2 + $0x48] sm:$0xff]  ;;  %v13855_v8 = vpack.c.bf16 %v45_v5, %v41_v3  ;;  %v49_v10 = vld [vmem:[%s17708_s2 + $0x40] sm:$0xff]  ;;  %v48_v49 = vld [vmem:[%s17708_s2 + $0x38] sm:$0xff] }
  0x15   :  { %v54_v7 = vld [vmem:[%s17708_s2 + $0x68] sm:$0xff]  ;;  %v53_v11 = vld [vmem:[%s17708_s2 + $0x60] sm:$0xff]  ;;  %v13998_v51 = vpack.c.bf16 %v48_v49, %v44_v48  ;;  %v43_v52 = vld [vmem:[%s17708_s2 + $0x10] sm:$0xff] }
  0x16   :  { %v13857_v9 = vpack.c.bf16 %v54_v7, %v50_v6  ;;  %v58_v12 = vld [vmem:[%s17708_s2 + $0x88] sm:$0xff]  ;;  %10747 = vmatprep.subr.bf16.mxu1 %v13844_v4  ;;  %10811 = vmatprep.subr.bf16.mxu0 %v13844_v4  ;;  %v13874_v14 = vpack.c.bf16 %v53_v11, %v49_v10  ;;  %v57_v16 = vld [vmem:[%s17708_s2 + $0x80] sm:$0xff]  ;;  %v47_v53 = vld [vmem:[%s17708_s2 + $0x30] sm:$0xff] }
  0x17   :  { %v62_v13 = vld [vmem:[%s17708_s2 + $0xa8] sm:$0xff]  ;;  %10749 = vmatpush1.bf16.msra.mxu1 %v13855_v8  ;;  %10813 = vmatpush1.bf16.msra.mxu0 %v13855_v8  ;;  %v61_v17 = vld [vmem:[%s17708_s2 + $0xa0] sm:$0xff]  ;;  %v52_v54 = vld [vmem:[%s17708_s2 + $0x58] sm:$0xff]  ;;  %v14014_v56 = vpack.c.bf16 %v47_v53, %v43_v52 }
  0x18   :  { %10751 = vmatprep.subr.bf16.mxu1 %v13857_v9  ;;  %v13878_v15 = vpack.c.bf16 %v62_v13, %v58_v12  ;;  %10815 = vmatprep.subr.bf16.mxu0 %v13857_v9  ;;  %v66_v18 = vld [vmem:[%s17708_s2 + $0xc8] sm:$0xff]  ;;  %v13894_v20 = vpack.c.bf16 %v61_v17, %v57_v16  ;;  %v65_v22 = vld [vmem:[%s17708_s2 + $0xc0] sm:$0xff]  ;;  %v56_v55 = vld [vmem:[%s17708_s2 + $0x78] sm:$0xff] }
  0x19   :  { %v70_v19 = vld [vmem:[%s17708_s2 + $0xe8] sm:$0xff]  ;;  %v69_v23 = vld [vmem:[%s17708_s2 + $0xe0] sm:$0xff]  ;;  %v14018_v57 = vpack.c.bf16 %v56_v55, %v52_v54  ;;  %v51_v58 = vld [vmem:[%s17708_s2 + $0x50] sm:$0xff] }
  0x1a   :  { %v13898_v21 = vpack.c.bf16 %v70_v19, %v66_v18  ;;  %v74_v24 = vld [vmem:[%s17708_s2 + $0x108] sm:$0xff]  ;;  %v13914_v26 = vpack.c.bf16 %v69_v23, %v65_v22  ;;  %v73_v28 = vld [vmem:[%s17708_s2 + $0x100] sm:$0xff]  ;;  %v55_v59 = vld [vmem:[%s17708_s2 + $0x70] sm:$0xff] }
  0x1b   :  { %10753 = vmatpush1.bf16.msra.mxu1 %v13874_v14  ;;  %10817 = vmatpush1.bf16.msra.mxu0 %v13874_v14  ;;  %v78_v25 = vld [vmem:[%s17708_s2 + $0x128] sm:$0xff]  ;;  %v77_v29 = vld [vmem:[%s17708_s2 + $0x120] sm:$0xff]  ;;  %v60_v60 = vld [vmem:[%s17708_s2 + $0x98] sm:$0xff]  ;;  %v14035_v62 = vpack.c.bf16 %v55_v59, %v51_v58 }
  0x1c   :  { %10755 = vmatprep.subr.bf16.mxu1 %v13878_v15  ;;  %10819 = vmatprep.subr.bf16.mxu0 %v13878_v15  ;;  %v13918_v27 = vpack.c.bf16 %v78_v25, %v74_v24  ;;  %v82_v30 = vld [vmem:[%s17708_s2 + $0x148] sm:$0xff]  ;;  %v13934_v32 = vpack.c.bf16 %v77_v29, %v73_v28  ;;  %v81_v34 = vld [vmem:[%s17708_s2 + $0x140] sm:$0xff]  ;;  %v64_v61 = vld [vmem:[%s17708_s2 + $0xb8] sm:$0xff] }
  0x1d   :  { %v86_v31 = vld [vmem:[%s17708_s2 + $0x168] sm:$0xff]  ;;  %v85_v35 = vld [vmem:[%s17708_s2 + $0x160] sm:$0xff]  ;;  %v14039_v63 = vpack.c.bf16 %v64_v61, %v60_v60  ;;  %v59_v1 = vld [vmem:[%s17708_s2 + $0x90] sm:$0xff] }
  0x1e   :  { %v13938_v33 = vpack.c.bf16 %v86_v31, %v82_v30  ;;  %v90_v36 = vld [vmem:[%s17708_s2 + $0x188] sm:$0xff]  ;;  %v13954_v38 = vpack.c.bf16 %v85_v35, %v81_v34  ;;  %v89_v40 = vld [vmem:[%s17708_s2 + $0x180] sm:$0xff]  ;;  %v63_v2 = vld [vmem:[%s17708_s2 + $0xb0] sm:$0xff] }
  0x1f   :  { %10757 = vmatpush1.bf16.msra.mxu1 %v13894_v20  ;;  %10821 = vmatpush1.bf16.msra.mxu0 %v13894_v20  ;;  %v94_v37 = vld [vmem:[%s17708_s2 + $0x1a8] sm:$0xff]  ;;  %v93_v41 = vld [vmem:[%s17708_s2 + $0x1a0] sm:$0xff]  ;;  %v68_v3 = vld [vmem:[%s17708_s2 + $0xd8] sm:$0xff]  ;;  %v14054_v6 = vpack.c.bf16 %v63_v2, %v59_v1 }
  0x20   :  { %10759 = vmatprep.subr.bf16.mxu1 %v13898_v21  ;;  %10823 = vmatprep.subr.bf16.mxu0 %v13898_v21  ;;  %v13958_v39 = vpack.c.bf16 %v94_v37, %v90_v36  ;;  %v98_v42 = vld [vmem:[%s17708_s2 + $0x1c8] sm:$0xff]  ;;  %v13974_v44 = vpack.c.bf16 %v93_v41, %v89_v40  ;;  %v97_v46 = vld [vmem:[%s17708_s2 + $0x1c0] sm:$0xff]  ;;  %v72_v5 = vld [vmem:[%s17708_s2 + $0xf8] sm:$0xff] }
  0x21   :  { %v102_v43 = vld [vmem:[%s17708_s2 + $0x1e8] sm:$0xff]  ;;  %v101_v47 = vld [vmem:[%s17708_s2 + $0x1e0] sm:$0xff]  ;;  %v14057_v7 = vpack.c.bf16 %v72_v5, %v68_v3  ;;  %v67_v10 = vld [vmem:[%s17708_s2 + $0xd0] sm:$0xff] }
  0x22   :  { %v13978_v45 = vpack.c.bf16 %v102_v43, %v98_v42  ;;  %v13994_v50 = vpack.c.bf16 %v101_v47, %v97_v46  ;;  %v71_v11 = vld [vmem:[%s17708_s2 + $0xf0] sm:$0xff]  ;;  %v76_v12 = vld [vmem:[%s17708_s2 + $0x118] sm:$0xff]  ;;  %v38_v53 = vld [vmem:[%s17706_s0 + $0x8] sm:$0xff] }
  0x23   :  { %10761 = vmatpush1.bf16.msra.mxu1 %v13914_v26  ;;  %10825 = vmatpush1.bf16.msra.mxu0 %v13914_v26  ;;  %v80_v13 = vld [vmem:[%s17708_s2 + $0x138] sm:$0xff]  ;;  %v14072_v16 = vpack.c.bf16 %v71_v11, %v67_v10  ;;  %v75_v18 = vld [vmem:[%s17708_s2 + $0x110] sm:$0xff]  ;;  %v37_v54 = vld [vmem:[%s17706_s0] sm:$0xff] }
  0x24   :  { %10763 = vmatprep.subr.bf16.mxu1 %v13918_v27  ;;  %10827 = vmatprep.subr.bf16.mxu0 %v13918_v27  ;;  %v14075_v17 = vpack.c.bf16 %v80_v13, %v76_v12  ;;  %v79_v19 = vld [vmem:[%s17708_s2 + $0x130] sm:$0xff]  ;;  %v84_v22 = vld [vmem:[%s17708_s2 + $0x158] sm:$0xff] }
  0x25   :  { %v88_v23 = vld [vmem:[%s17708_s2 + $0x178] sm:$0xff]  ;;  %v14090_v24 = vpack.c.bf16 %v79_v19, %v75_v18  ;;  %v83_v28 = vld [vmem:[%s17708_s2 + $0x150] sm:$0xff] }
  0x26   :  { %v14093_v25 = vpack.c.bf16 %v88_v23, %v84_v22  ;;  %v87_v29 = vld [vmem:[%s17708_s2 + $0x170] sm:$0xff]  ;;  %v92_v30 = vld [vmem:[%s17708_s2 + $0x198] sm:$0xff] }
  0x27   :  { %10765 = vmatpush1.bf16.msra.mxu1 %v13934_v32  ;;  %10829 = vmatpush1.bf16.msra.mxu0 %v13934_v32  ;;  %v96_v31 = vld [vmem:[%s17708_s2 + $0x1b8] sm:$0xff]  ;;  %v14108_v34 = vpack.c.bf16 %v87_v29, %v83_v28  ;;  %v91_v36 = vld [vmem:[%s17708_s2 + $0x190] sm:$0xff] }
  0x28   :  { %10767 = vmatprep.subr.bf16.mxu1 %v13938_v33  ;;  %10831 = vmatprep.subr.bf16.mxu0 %v13938_v33  ;;  %v14111_v35 = vpack.c.bf16 %v96_v31, %v92_v30  ;;  %v95_v37 = vld [vmem:[%s17708_s2 + $0x1b0] sm:$0xff]  ;;  %v100_v40 = vld [vmem:[%s17708_s2 + $0x1d8] sm:$0xff] }
  0x29   :  { %v104_v41 = vld [vmem:[%s17708_s2 + $0x1f8] sm:$0xff]  ;;  %v14126_v42 = vpack.c.bf16 %v95_v37, %v91_v36  ;;  %v99_v46 = vld [vmem:[%s17708_s2 + $0x1d0] sm:$0xff] }
  0x2a   :  { %v14129_v43 = vpack.c.bf16 %v104_v41, %v100_v40  ;;  %v103_v47 = vld [vmem:[%s17708_s2 + $0x1f0] sm:$0xff]  ;;  %v40_v10 = vld [vmem:[%s17706_s0 + $0x18] sm:$0xff] }
  0x2b   :  { %10769 = vmatpush1.bf16.msra.mxu1 %v13954_v38  ;;  %10833 = vmatpush1.bf16.msra.mxu0 %v13954_v38  ;;  %v14138_v48 = vpack.c.bf16 %v103_v47, %v99_v46  ;;  %v39_v5 = vld [vmem:[%s17706_s0 + $0x10] sm:$0xff] }
  0x2c   :  { %10771 = vmatprep.subr.bf16.mxu1 %v13958_v39  ;;  %10835 = vmatprep.subr.bf16.mxu0 %v13958_v39 }
  0x2f   :  { %10773 = vmatpush1.bf16.msra.mxu1 %v13974_v44  ;;  %10837 = vmatpush1.bf16.msra.mxu0 %v13974_v44 }
  0x30   :  { %10775 = vmatprep.subr.bf16.mxu1 %v13978_v45  ;;  %10839 = vmatprep.subr.bf16.mxu0 %v13978_v45 }
  0x33   :  { %10777 = vmatpush1.bf16.msra.mxu1 %v13994_v50  ;;  %10841 = vmatpush1.bf16.msra.mxu0 %v13994_v50 }
  0x34   :  { %10779 = vmatprep.subr.bf16.mxu1 %v13998_v51  ;;  %10875 = vmatprep.subr.bf16.mxu0 %v13844_v4 }
  0x36   :  { %170 = vmatmul.mubr.f32.vlgmr.msra.gmra.mrb[0].mxu1 %v13785_v0 }
  0x37   :  { %10781 = vmatpush1.bf16.msra.mxu1 %v14014_v56  ;;  %240 = vmatprep.mubr.f32.mxu1 %v13785_v0 }
  0x38   :  { %10783 = vmatprep.subr.bf16.mxu1 %v14018_v57 }
  0x3b   :  { %10785 = vmatpush1.bf16.msra.mxu1 %v14035_v62 }
  0x3c   :  { %10787 = vmatprep.subr.bf16.mxu1 %v14039_v63 }
  0x3f   :  { %10789 = vmatpush1.bf16.msra.mxu1 %v14054_v6 }
  0x40   :  { %10791 = vmatprep.subr.bf16.mxu1 %v14057_v7 }
  0x43   :  { %10793 = vmatpush1.bf16.msra.mxu1 %v14072_v16 }
  0x44   :  { %10795 = vmatprep.subr.bf16.mxu1 %v14075_v17 }
  0x47   :  { %10797 = vmatpush1.bf16.msra.mxu1 %v14090_v24 }
  0x48   :  { %10799 = vmatprep.subr.bf16.mxu1 %v14093_v25 }
  0x4b   :  { %10801 = vmatpush1.bf16.msra.mxu1 %v14108_v34 }
  0x4c   :  { %10803 = vmatprep.subr.bf16.mxu1 %v14111_v35 }
  0x4f   :  { %10805 = vmatpush1.bf16.msra.mxu1 %v14126_v42 }
  0x50   :  { %10807 = vmatprep.subr.bf16.mxu1 %v14129_v43 }
  0x53   :  { %10809 = vmatpush1.bf16.msra.mxu1 %v14138_v48 }
  0x54   :  { %10843 = vmatprep.subr.bf16.mxu1 %v13998_v51 }
  0x56   :  { %241 = vmatmul.mubr.f32.vlgmr.msra.gmra.mrb[2].mxu1 %v13785_v0 }
  0x57   :  { %10845 = vmatpush1.bf16.msra.mxu1 %v14014_v56  ;;  %480 = vmatprep.mubr.f32.mxu1 %v13785_v0 }
  0x58   :  { %10847 = vmatprep.subr.bf16.mxu1 %v14018_v57 }
  0x5b   :  { %10849 = vmatpush1.bf16.msra.mxu1 %v14035_v62 }
  0x5c   :  { %10851 = vmatprep.subr.bf16.mxu1 %v14039_v63 }
  0x5f   :  { %10853 = vmatpush1.bf16.msra.mxu1 %v14054_v6 }
  0x60   :  { %10855 = vmatprep.subr.bf16.mxu1 %v14057_v7 }
  0x63   :  { %10857 = vmatpush1.bf16.msra.mxu1 %v14072_v16 }
  0x64   :  { %10859 = vmatprep.subr.bf16.mxu1 %v14075_v17 }
  0x67   :  { %10861 = vmatpush1.bf16.msra.mxu1 %v14090_v24 }
  0x68   :  { %10863 = vmatprep.subr.bf16.mxu1 %v14093_v25 }
  0x6b   :  { %10865 = vmatpush1.bf16.msra.mxu1 %v14108_v34 }
  0x6c   :  { %10867 = vmatprep.subr.bf16.mxu1 %v14111_v35 }
  0x6f   :  { %10869 = vmatpush1.bf16.msra.mxu1 %v14126_v42 }
  0x70   :  { %10871 = vmatprep.subr.bf16.mxu1 %v14129_v43 }
  0x73   :  { %10873 = vmatpush1.bf16.msra.mxu1 %v14138_v48 }
  0x74   :  { %10907 = vmatprep.subr.bf16.mxu1 %v13998_v51 }
 0x109   :  { %v171_v49 = vpop.f32.mrb[0].mxu1 }
 0x10a   :  { %v173_v52 = vpop.f32.mrb[1].mxu1  ;;  %v247_v58 = vadd.f32 %v171_v49, %v37_v54  ;;  %v9020_v49 = vld [vmem:[%s17706_s0 + $0x30] sm:$0xff] }
 0x10b   :  { %v248_v55 = vadd.f32 %v173_v52, %v38_v53 }
 0x10c   :  { %v9015_v60 = vmul.f32 -1.442695, %v247_v58 }
 0x10d   :  { %v9016_v59 = vmul.f32 -1.442695, %v248_v55 }
 0x10f   :  { %13214 = vpow2.f32 %v9016_v59 }
 0x110   :  { %13216 = vpow2.f32 %v9015_v60 }
 0x119   :  { %v13215_v61 = vpop.eup %13214 }
 0x11a   :  { %v13217_v1 = vpop.eup %13216  ;;  %v260_v2 = vadd.f32 1.0, %v13215_v61 }
 0x11b   :  { %v254_v3 = vadd.f32 1.0, %v13217_v1 }
 0x11c   :  { %13218 = vrcp.f32 %v260_v2 }
 0x11d   :  { %13220 = vrcp.f32 %v254_v3 }
 0x126   :  { %v13219_v22 = vpop.eup %13218 }
 0x127   :  { %v13221_v23 = vpop.eup %13220  ;;  %v270_v29 = vmul.f32 0.0, %v13219_v22 }
 0x129   :  { %v242_v11 = vpop.f32.mrb[2].mxu1 }
 0x12a   :  { %v249_v12 = vadd.f32 %v242_v11, %v39_v5  ;;  %v244_v13 = vpop.f32.mrb[3].mxu1 }
 0x12b   :  { %v250_v18 = vadd.f32 %v244_v13, %v40_v10 }
 0x12c   :  { %13222 = vtanh.f32 %v249_v12 }
 0x12d   :  { %v9017_v19 = vmul.f32 -1.442695, %v250_v18 }
 0x12f   :  { %13224 = vpow2.f32 %v9017_v19  ;;  %v824_v19 = vld [vmem:[%s17708_s2 + $0x1e8] sm:$0xff] }
 0x136   :  { %v13223_v28 = vpop.eup %13222 }
 0x137   :  { %v271_v30 = vmul.f32 %v13223_v28, %v13221_v23  ;;  %v819_v28 = vld [vmem:[%s17708_s2 + $0x1c0] sm:$0xff] }
 0x139   :  { %v13225_v31 = vpop.eup %13224  ;;  %v14173_v36 = vadd.f32 %v271_v30, %v270_v29  ;;  %v823_v29 = vld [vmem:[%s17708_s2 + $0x1e0] sm:$0xff] }
 0x13a   :  { %v267_v37 = vadd.f32 1.0, %v13225_v31  ;;  %v14334_v30 = vpack.c.bf16 %v823_v29, %v819_v28  ;;  %v9025_v31 = vld [vmem:[%s17706_s0 + $0x40] sm:$0xff]  ;;  %v1014_v29 = vld [vmem:[%s17708_s2 + $0x50] sm:$0xff] }
 0x13b   :  { %13226 = vtanh.f32 %v14173_v36 }
 0x13c   :  { %13228 = vrcp.f32 %v267_v37 }
 0x145   :  { %v13227_v40 = vpop.eup %13226 }
 0x146   :  { %v13229_v41 = vpop.eup %13228 }
 0x147   :  { %v14176_v46 = vmul.f32 %v13229_v41, %v13227_v40 }
 0x149   :  { %410 = vmatmul.mubr.f32.vlgmr.msra.gmra.mrb[0].mxu0 %v14176_v46  ;;  %481 = vmatmul.mubr.f32.vlgmr.msra.gmra.mrb[4].mxu1 %v14176_v46 }
 0x14a   :  { %10877 = vmatpush1.bf16.msra.mxu0 %v13855_v8  ;;  %10909 = vmatpush1.bf16.msra.mxu1 %v14014_v56 }
 0x14b   :  { %10879 = vmatprep.subr.bf16.mxu0 %v13857_v9  ;;  %10911 = vmatprep.subr.bf16.mxu1 %v14018_v57 }
 0x14c   :  { %650 = vmatprep.mubr.f32.mxu0 %v13785_v0  ;;  %721 = vmatprep.mubr.f32.mxu1 %v13785_v0 }
 0x14e   :  { %10881 = vmatpush1.bf16.msra.mxu0 %v13874_v14  ;;  %10913 = vmatpush1.bf16.msra.mxu1 %v14035_v62 }
 0x14f   :  { %10883 = vmatprep.subr.bf16.mxu0 %v13878_v15  ;;  %10915 = vmatprep.subr.bf16.mxu1 %v14039_v63 }
 0x152   :  { %10885 = vmatpush1.bf16.msra.mxu0 %v13894_v20  ;;  %10917 = vmatpush1.bf16.msra.mxu1 %v14054_v6 }
 0x153   :  { %10887 = vmatprep.subr.bf16.mxu0 %v13898_v21  ;;  %10919 = vmatprep.subr.bf16.mxu1 %v14057_v7 }
 0x156   :  { %10889 = vmatpush1.bf16.msra.mxu0 %v13914_v26  ;;  %10921 = vmatpush1.bf16.msra.mxu1 %v14072_v16  ;;  %v9018_v26 = vld [vmem:[%s17706_s0 + $0x20] sm:$0xff] }
 0x157   :  { %10891 = vmatprep.subr.bf16.mxu0 %v13918_v27  ;;  %10923 = vmatprep.subr.bf16.mxu1 %v14075_v17  ;;  %v9019_v27 = vld [vmem:[%s17706_s0 + $0x28] sm:$0xff] }
 0x15a   :  { %10893 = vmatpush1.bf16.msra.mxu0 %v13934_v32  ;;  %10925 = vmatpush1.bf16.msra.mxu1 %v14090_v24 }
 0x15b   :  { %10895 = vmatprep.subr.bf16.mxu0 %v13938_v33  ;;  %10927 = vmatprep.subr.bf16.mxu1 %v14093_v25 }
 0x15e   :  { %10897 = vmatpush1.bf16.msra.mxu0 %v13954_v38  ;;  %10929 = vmatpush1.bf16.msra.mxu1 %v14108_v34 }
 0x15f   :  { %10899 = vmatprep.subr.bf16.mxu0 %v13958_v39  ;;  %10931 = vmatprep.subr.bf16.mxu1 %v14111_v35 }
 0x162   :  { %10901 = vmatpush1.bf16.msra.mxu0 %v13974_v44  ;;  %10933 = vmatpush1.bf16.msra.mxu1 %v14126_v42 }
 0x163   :  { %10903 = vmatprep.subr.bf16.mxu0 %v13978_v45  ;;  %10935 = vmatprep.subr.bf16.mxu1 %v14129_v43 }
 0x166   :  { %10905 = vmatpush1.bf16.msra.mxu0 %v13994_v50  ;;  %10937 = vmatpush1.bf16.msra.mxu1 %v14138_v48 }
 0x167   :  { %10939 = vmatprep.subr.bf16.mxu0 %v13844_v4  ;;  %10971 = vmatprep.subr.bf16.mxu1 %v13998_v51  ;;  %v9021_v4 = vld [vmem:[%s17706_s0 + $0x38] sm:$0xff] }
 0x21c   :  { %v411_v32 = vpop.f32.mrb[0].mxu0  ;;  %v482_v33 = vpop.f32.mrb[4].mxu1 }
 0x21d   :  { %v487_v38 = vadd.f32 %v9018_v26, %v411_v32  ;;  %v413_v39 = vpop.f32.mrb[1].mxu0  ;;  %v484_v44 = vpop.f32.mrb[5].mxu1  ;;  %v489_v53 = vadd.f32 %v9020_v49, %v482_v33 }
 0x21e   :  { %v488_v45 = vadd.f32 %v9019_v27, %v413_v39  ;;  %v490_v51 = vadd.f32 %v9021_v4, %v484_v44  ;;  %v9028_v39 = vld [vmem:[%s17706_s0 + $0x58] sm:$0xff] }
 0x21f   :  { %v9022_v50 = vmul.f32 -1.442695, %v487_v38 }
 0x220   :  { %v9023_v47 = vmul.f32 -1.442695, %v488_v45  ;;  %v9024_v52 = vmul.f32 -1.442695, %v490_v51  ;;  %v9027_v45 = vld [vmem:[%s17706_s0 + $0x50] sm:$0xff] }
 0x221   :  { %13230 = vpow2.f32 %v9022_v50 }
 0x222   :  { %13232 = vpow2.f32 %v9023_v47 }
 0x223   :  { %13234 = vpow2.f32 %v9024_v52 }
 0x224   :  { %13236 = vtanh.f32 %v489_v53 }
 0x22b   :  { %v13231_v54 = vpop.eup %13230 }
 0x22c   :  { %v13233_v55 = vpop.eup %13232  ;;  %v494_v58 = vadd.f32 1.0, %v13231_v54 }
 0x22d   :  { %v500_v59 = vadd.f32 1.0, %v13233_v55  ;;  %v13235_v60 = vpop.eup %13234 }
 0x22e   :  { %13238 = vrcp.f32 %v494_v58  ;;  %v13237_v61 = vpop.eup %13236  ;;  %v507_v5 = vadd.f32 1.0, %v13235_v60 }
 0x22f   :  { %13240 = vrcp.f32 %v500_v59 }
 0x230   :  { %13242 = vrcp.f32 %v507_v5 }
 0x238   :  { %v13239_v1 = vpop.eup %13238 }
 0x239   :  { %v13241_v2 = vpop.eup %13240  ;;  %v511_v3 = vmul.f32 %v13239_v1, %v13237_v61 }
 0x23a   :  { %v510_v10 = vmul.f32 %v13241_v2, %v14173_v36  ;;  %v13243_v12 = vpop.eup %13242  ;;  %v9026_v36 = vld [vmem:[%s17706_s0 + $0x48] sm:$0xff] }
 0x23c   :  { %v14227_v11 = vadd.f32 %v511_v3, %v510_v10  ;;  %v1005_v10 = vld [vmem:[%s17708_s2 + $0x8] sm:$0xff] }
 0x23e   :  { %13244 = vtanh.f32 %v14227_v11 }
 0x248   :  { %v13245_v13 = vpop.eup %13244 }
 0x249   :  { %v14230_v18 = vmul.f32 %v13245_v13, %v13243_v12  ;;  %v1007_v12 = vld [vmem:[%s17708_s2 + $0x18] sm:$0xff] }
 0x24b   :  { %651 = vmatmul.mubr.f32.vlgmr.msra.gmra.mrb[2].mxu0 %v14230_v18  ;;  %722 = vmatmul.mubr.f32.vlgmr.msra.gmra.mrb[6].mxu1 %v14230_v18 }
 0x24c   :  { %10941 = vmatpush1.bf16.msra.mxu0 %v13855_v8  ;;  %10973 = vmatpush1.bf16.msra.mxu1 %v14014_v56  ;;  %v787_v8 = vld [vmem:[%s17708_s2 + $0xc0] sm:$0xff] }
 0x24d   :  { %10943 = vmatprep.subr.bf16.mxu0 %v13857_v9  ;;  %10975 = vmatprep.subr.bf16.mxu1 %v14018_v57  ;;  %v791_v9 = vld [vmem:[%s17708_s2 + $0xe0] sm:$0xff] }
 0x24e   :  { %891 = vmatprep.mubr.f32.mxu0 %v13785_v0  ;;  %962 = vmatprep.mubr.f32.mxu1 %v13785_v0  ;;  %v795_v56 = vld [vmem:[%s17708_s2 + $0x100] sm:$0xff] }
 0x24f   :  { %v799_v57 = vld [vmem:[%s17708_s2 + $0x120] sm:$0xff] }
 0x250   :  { %10945 = vmatpush1.bf16.msra.mxu0 %v13874_v14  ;;  %10977 = vmatpush1.bf16.msra.mxu1 %v14035_v62  ;;  %v14263_v14 = vpack.c.bf16 %v791_v9, %v787_v8  ;;  %v14280_v62 = vpack.c.bf16 %v799_v57, %v795_v56  ;;  %v1011_v8 = vld [vmem:[%s17708_s2 + $0x38] sm:$0xff]  ;;  %v1004_v9 = vld [vmem:[%s17708_s2] sm:$0xff]  ;;  %v1006_v57 = vld [vmem:[%s17708_s2 + $0x10] sm:$0xff] }
 0x251   :  { %10947 = vmatprep.subr.bf16.mxu0 %v13878_v15  ;;  %10979 = vmatprep.subr.bf16.mxu1 %v14039_v63  ;;  %v796_v15 = vld [vmem:[%s17708_s2 + $0x108] sm:$0xff] }
 0x252   :  { %v804_v63 = vld [vmem:[%s17708_s2 + $0x148] sm:$0xff] }
 0x254   :  { %10949 = vmatpush1.bf16.msra.mxu0 %v13894_v20  ;;  %10981 = vmatpush1.bf16.msra.mxu1 %v14054_v6  ;;  %v800_v20 = vld [vmem:[%s17708_s2 + $0x128] sm:$0xff] }
 0x255   :  { %10951 = vmatprep.subr.bf16.mxu0 %v13898_v21  ;;  %10983 = vmatprep.subr.bf16.mxu1 %v14057_v7  ;;  %v14272_v21 = vpack.c.bf16 %v800_v20, %v796_v15  ;;  %v808_v6 = vld [vmem:[%s17708_s2 + $0x168] sm:$0xff]  ;;  %v803_v7 = vld [vmem:[%s17708_s2 + $0x140] sm:$0xff]  ;;  %v14380_v20 = vpack.c.bf16 %v1011_v8, %v1007_v12  ;;  %v1051_v12 = vld [vmem:[%s17708_s2 + $0x178] sm:$0xff] }
 0x256   :  { %v1008_v15 = vld [vmem:[%s17708_s2 + $0x20] sm:$0xff]  ;;  %v1046_v8 = vld [vmem:[%s17708_s2 + $0x150] sm:$0xff] }
 0x257   :  { %v14382_v56 = vpack.c.bf16 %v1008_v15, %v1004_v9  ;;  %v1050_v15 = vld [vmem:[%s17708_s2 + $0x170] sm:$0xff] }
 0x258   :  { %10985 = vmatpush1.bf16.msra.mxu1 %v14072_v16  ;;  %10953 = vmatpush1.bf16.msra.mxu0 %v14263_v14  ;;  %v14293_v16 = vpack.c.bf16 %v808_v6, %v804_v63  ;;  %v1010_v63 = vld [vmem:[%s17708_s2 + $0x30] sm:$0xff] }
 0x259   :  { %10987 = vmatprep.subr.bf16.mxu1 %v14075_v17  ;;  %10955 = vmatprep.subr.bf16.mxu0 %v14272_v21  ;;  %v807_v17 = vld [vmem:[%s17708_s2 + $0x160] sm:$0xff]  ;;  %v14391_v6 = vpack.c.bf16 %v1010_v63, %v1006_v57  ;;  %v1055_v57 = vld [vmem:[%s17708_s2 + $0x198] sm:$0xff] }
 0x25a   :  { %v1059_v63 = vld [vmem:[%s17708_s2 + $0x1b8] sm:$0xff] }
 0x25c   :  { %10989 = vmatpush1.bf16.msra.mxu1 %v14090_v24  ;;  %10957 = vmatpush1.bf16.msra.mxu0 %v14280_v62  ;;  %v812_v24 = vld [vmem:[%s17708_s2 + $0x188] sm:$0xff] }
 0x25d   :  { %10991 = vmatprep.subr.bf16.mxu1 %v14093_v25  ;;  %v816_v25 = vld [vmem:[%s17708_s2 + $0x1a8] sm:$0xff]  ;;  %10959 = vmatprep.subr.bf16.mxu0 %v14293_v16 }
 0x260   :  { %10993 = vmatpush1.bf16.msra.mxu1 %v14108_v34  ;;  %v14304_v34 = vpack.c.bf16 %v807_v17, %v803_v7  ;;  %v1013_v7 = vld [vmem:[%s17708_s2 + $0x48] sm:$0xff] }
 0x261   :  { %10995 = vmatprep.subr.bf16.mxu1 %v14111_v35  ;;  %v14306_v35 = vpack.c.bf16 %v816_v25, %v812_v24  ;;  %v1017_v17 = vld [vmem:[%s17708_s2 + $0x68] sm:$0xff]  ;;  %v1015_v24 = vld [vmem:[%s17708_s2 + $0x58] sm:$0xff] }
 0x262   :  { %10961 = vmatpush1.bf16.msra.mxu0 %v14304_v34  ;;  %v14405_v25 = vpack.c.bf16 %v1017_v17, %v1013_v7  ;;  %v14537_v7 = vpack.c.bf16 %v1050_v15, %v1046_v8  ;;  %v14540_v17 = vpack.c.bf16 %v1059_v63, %v1055_v57 }
 0x263   :  { %10963 = vmatprep.subr.bf16.mxu0 %v14306_v35 }
 0x264   :  { %10997 = vmatpush1.bf16.msra.mxu1 %v14126_v42  ;;  %v811_v42 = vld [vmem:[%s17708_s2 + $0x180] sm:$0xff] }
 0x265   :  { %10999 = vmatprep.subr.bf16.mxu1 %v14129_v43  ;;  %v815_v43 = vld [vmem:[%s17708_s2 + $0x1a0] sm:$0xff] }
 0x266   :  { %v14322_v22 = vpack.c.bf16 %v815_v43, %v811_v42  ;;  %v1019_v42 = vld [vmem:[%s17708_s2 + $0x78] sm:$0xff]  ;;  %v1012_v43 = vld [vmem:[%s17708_s2 + $0x40] sm:$0xff] }
 0x268   :  { %11001 = vmatpush1.bf16.msra.mxu1 %v14138_v48  ;;  %v820_v48 = vld [vmem:[%s17708_s2 + $0x1c8] sm:$0xff]  ;;  %10965 = vmatpush1.bf16.msra.mxu0 %v14322_v22 }
 0x269   :  { %v14325_v23 = vpack.c.bf16 %v824_v19, %v820_v48  ;;  %11035 = vmatprep.subr.bf16.mxu1 %v14380_v20  ;;  %v1016_v48 = vld [vmem:[%s17708_s2 + $0x60] sm:$0xff]  ;;  %v14416_v19 = vpack.c.bf16 %v1019_v42, %v1015_v24  ;;  %v1054_v24 = vld [vmem:[%s17708_s2 + $0x190] sm:$0xff] }
 0x26a   :  { %v14418_v28 = vpack.c.bf16 %v1016_v48, %v1012_v43  ;;  %v1058_v42 = vld [vmem:[%s17708_s2 + $0x1b0] sm:$0xff]  ;;  %v1063_v43 = vld [vmem:[%s17708_s2 + $0x1d8] sm:$0xff] }
 0x26b   :  { %10967 = vmatprep.subr.bf16.mxu0 %v14325_v23  ;;  %v1067_v48 = vld [vmem:[%s17708_s2 + $0x1f8] sm:$0xff] }
 0x26c   :  { %10969 = vmatpush1.bf16.msra.mxu0 %v14334_v30 }
 0x31e   :  { %v652_v37 = vpop.f32.mrb[2].mxu0  ;;  %v723_v40 = vpop.f32.mrb[6].mxu1 }
 0x31f   :  { %v728_v41 = vadd.f32 %v9025_v31, %v652_v37  ;;  %v654_v26 = vpop.f32.mrb[3].mxu0  ;;  %v725_v27 = vpop.f32.mrb[7].mxu1  ;;  %v730_v47 = vadd.f32 %v9027_v45, %v723_v40  ;;  %v1018_v31 = vld [vmem:[%s17708_s2 + $0x70] sm:$0xff]  ;;  %v1021_v37 = vld [vmem:[%s17708_s2 + $0x88] sm:$0xff] }
 0x320   :  { %v729_v32 = vadd.f32 %v9026_v36, %v654_v26  ;;  %v731_v44 = vadd.f32 %v9028_v39, %v725_v27  ;;  %v14427_v36 = vpack.c.bf16 %v1018_v31, %v1014_v29  ;;  %v1025_v40 = vld [vmem:[%s17708_s2 + $0xa8] sm:$0xff]  ;;  %v1027_v27 = vld [vmem:[%s17708_s2 + $0xb8] sm:$0xff]  ;;  %v1026_v45 = vld [vmem:[%s17708_s2 + $0xb0] sm:$0xff]  ;;  %v14557_v29 = vpack.c.bf16 %v1058_v42, %v1054_v24 }
 0x321   :  { %v9029_v33 = vmul.f32 -1.442695, %v728_v41  ;;  %v1023_v41 = vld [vmem:[%s17708_s2 + $0x98] sm:$0xff]  ;;  %v14441_v26 = vpack.c.bf16 %v1025_v40, %v1021_v37  ;;  %v14560_v31 = vpack.c.bf16 %v1067_v48, %v1063_v43  ;;  %v1062_v37 = vld [vmem:[%s17708_s2 + $0x1d0] sm:$0xff] }
 0x322   :  { %v9030_v38 = vmul.f32 -1.442695, %v729_v32  ;;  %v9031_v50 = vmul.f32 -1.442695, %v731_v44  ;;  %v1020_v32 = vld [vmem:[%s17708_s2 + $0x80] sm:$0xff]  ;;  %v1022_v44 = vld [vmem:[%s17708_s2 + $0x90] sm:$0xff] }
 0x323   :  { %13246 = vpow2.f32 %v9029_v33  ;;  %v1024_v33 = vld [vmem:[%s17708_s2 + $0xa0] sm:$0xff]  ;;  %v1066_v40 = vld [vmem:[%s17708_s2 + $0x1f0] sm:$0xff] }
 0x324   :  { %13248 = vpow2.f32 %v9030_v38  ;;  %v14452_v38 = vpack.c.bf16 %v1027_v27, %v1023_v41  ;;  %v14454_v39 = vpack.c.bf16 %v1024_v33, %v1020_v32  ;;  %v14571_v41 = vpack.c.bf16 %v1066_v40, %v1062_v37  ;;  %v9032_v27 = vld [vmem:[%s17706_s0 + $0x60] sm:$0xff]  ;;  %v9033_v32 = vld [vmem:[%s17706_s0 + $0x68] sm:$0xff] }
 0x325   :  { %13250 = vpow2.f32 %v9031_v50  ;;  %v14463_v50 = vpack.c.bf16 %v1026_v45, %v1022_v44 }
 0x326   :  { %13252 = vtanh.f32 %v730_v47  ;;  %v1029_v47 = vld [vmem:[%s17708_s2 + $0xc8] sm:$0xff] }
 0x32d   :  { %v13247_v4 = vpop.eup %13246 }
 0x32e   :  { %v13249_v51 = vpop.eup %13248  ;;  %v735_v49 = vadd.f32 1.0, %v13247_v4  ;;  %v1033_v4 = vld [vmem:[%s17708_s2 + $0xe8] sm:$0xff] }
 0x32f   :  { %v741_v52 = vadd.f32 1.0, %v13249_v51  ;;  %v13251_v53 = vpop.eup %13250  ;;  %v1031_v51 = vld [vmem:[%s17708_s2 + $0xd8] sm:$0xff] }
 0x330   :  { %13254 = vrcp.f32 %v735_v49  ;;  %v13253_v54 = vpop.eup %13252  ;;  %v748_v60 = vadd.f32 1.0, %v13251_v53  ;;  %v14477_v49 = vpack.c.bf16 %v1033_v4, %v1029_v47  ;;  %v1030_v53 = vld [vmem:[%s17708_s2 + $0xd0] sm:$0xff] }
 0x331   :  { %13256 = vrcp.f32 %v741_v52  ;;  %v1035_v52 = vld [vmem:[%s17708_s2 + $0xf8] sm:$0xff] }
 0x332   :  { %13258 = vrcp.f32 %v748_v60  ;;  %v1043_v60 = vld [vmem:[%s17708_s2 + $0x138] sm:$0xff] }
 0x33a   :  { %v13255_v55 = vpop.eup %13254 }
 0x33b   :  { %v13257_v58 = vpop.eup %13256  ;;  %v752_v59 = vmul.f32 %v13255_v55, %v13253_v54  ;;  %v1034_v54 = vld [vmem:[%s17708_s2 + $0xf0] sm:$0xff]  ;;  %v14488_v55 = vpack.c.bf16 %v1035_v52, %v1031_v51 }
 0x33c   :  { %v751_v61 = vmul.f32 %v13257_v58, %v14227_v11  ;;  %v13259_v2 = vpop.eup %13258  ;;  %v1009_v11 = vld [vmem:[%s17708_s2 + $0x28] sm:$0xff]  ;;  %v14490_v58 = vpack.c.bf16 %v1034_v54, %v1030_v53  ;;  %v9035_v54 = vld [vmem:[%s17706_s0 + $0x78] sm:$0xff] }
 0x33d   :  { %v14369_v13 = vpack.c.bf16 %v1009_v11, %v1005_v10  ;;  %v1047_v11 = vld [vmem:[%s17708_s2 + $0x158] sm:$0xff] }
 0x33e   :  { %v14351_v1 = vadd.f32 %v752_v59, %v751_v61  ;;  %v1039_v59 = vld [vmem:[%s17708_s2 + $0x118] sm:$0xff]  ;;  %v14524_v9 = vpack.c.bf16 %v1051_v12, %v1047_v11 }
 0x33f   :  { %11003 = vmatprep.subr.bf16.mxu0 %v14369_v13  ;;  %v14503_v61 = vpack.c.bf16 %v1043_v60, %v1039_v59  ;;  %v9034_v60 = vld [vmem:[%s17706_s0 + $0x70] sm:$0xff] }
 0x340   :  { %13260 = vtanh.f32 %v14351_v1 }
 0x34a   :  { %v13261_v3 = vpop.eup %13260 }
 0x34b   :  { %v14354_v5 = vmul.f32 %v13261_v3, %v13259_v2  ;;  %v1038_v2 = vld [vmem:[%s17708_s2 + $0x110] sm:$0xff] }
 0x34c   :  { %v1042_v3 = vld [vmem:[%s17708_s2 + $0x130] sm:$0xff] }
 0x34d   :  { %892 = vmatmul.mubr.f32.vlgmr.msra.gmra.mrb[4].mxu0 %v14354_v5  ;;  %963 = vmatmul.mubr.f32.vlgmr.msra.gmra.mrb[8].mxu1 %v14354_v5  ;;  %v14511_v10 = vpack.c.bf16 %v1042_v3, %v1038_v2 }
 0x34e   :  { %1132 = vmatprep.mubr.f32.mxu0 %v13785_v0  ;;  %1203 = vmatprep.mubr.f32.mxu1 %v13785_v0 }
 0x34f   :  { %11005 = vmatpush1.bf16.msra.mxu0 %v14382_v56  ;;  %11037 = vmatpush1.bf16.msra.mxu1 %v14391_v6 }
 0x350   :  { %11007 = vmatprep.subr.bf16.mxu0 %v14405_v25  ;;  %11039 = vmatprep.subr.bf16.mxu1 %v14416_v19 }
 0x353   :  { %11009 = vmatpush1.bf16.msra.mxu0 %v14418_v28  ;;  %11041 = vmatpush1.bf16.msra.mxu1 %v14427_v36 }
 0x354   :  { %11011 = vmatprep.subr.bf16.mxu0 %v14441_v26  ;;  %11043 = vmatprep.subr.bf16.mxu1 %v14452_v38 }
 0x357   :  { %11013 = vmatpush1.bf16.msra.mxu0 %v14454_v39  ;;  %11045 = vmatpush1.bf16.msra.mxu1 %v14463_v50 }
 0x358   :  { %11015 = vmatprep.subr.bf16.mxu0 %v14477_v49  ;;  %11047 = vmatprep.subr.bf16.mxu1 %v14488_v55 }
 0x35b   :  { %11017 = vmatpush1.bf16.msra.mxu0 %v14263_v14  ;;  %11049 = vmatpush1.bf16.msra.mxu1 %v14490_v58 }
 0x35c   :  { %11019 = vmatprep.subr.bf16.mxu0 %v14272_v21  ;;  %11051 = vmatprep.subr.bf16.mxu1 %v14503_v61 }
 0x35f   :  { %11021 = vmatpush1.bf16.msra.mxu0 %v14280_v62  ;;  %11053 = vmatpush1.bf16.msra.mxu1 %v14511_v10 }
 0x360   :  { %11023 = vmatprep.subr.bf16.mxu0 %v14293_v16  ;;  %11055 = vmatprep.subr.bf16.mxu1 %v14524_v9 }
 0x363   :  { %11025 = vmatpush1.bf16.msra.mxu0 %v14304_v34  ;;  %11057 = vmatpush1.bf16.msra.mxu1 %v14537_v7 }
 0x364   :  { %11027 = vmatprep.subr.bf16.mxu0 %v14306_v35  ;;  %11059 = vmatprep.subr.bf16.mxu1 %v14540_v17 }
 0x367   :  { %11029 = vmatpush1.bf16.msra.mxu0 %v14322_v22  ;;  %11061 = vmatpush1.bf16.msra.mxu1 %v14557_v29 }
 0x368   :  { %11031 = vmatprep.subr.bf16.mxu0 %v14325_v23  ;;  %11063 = vmatprep.subr.bf16.mxu1 %v14560_v31 }
 0x36b   :  { %11033 = vmatpush1.bf16.msra.mxu0 %v14334_v30  ;;  %11065 = vmatpush1.bf16.msra.mxu1 %v14571_v41 }
 0x36c   :  { %11067 = vmatprep.subr.bf16.mxu0 %v14369_v13  ;;  %11099 = vmatprep.subr.bf16.mxu1 %v14380_v20 }
 0x420   :  { %v893_v33 = vpop.f32.mrb[4].mxu0  ;;  %v964_v44 = vpop.f32.mrb[8].mxu1 }
 0x421   :  { %v969_v45 = vadd.f32 %v9032_v27, %v893_v33  ;;  %v895_v47 = vpop.f32.mrb[5].mxu0  ;;  %v966_v4 = vpop.f32.mrb[9].mxu1  ;;  %v971_v3 = vadd.f32 %v9034_v60, %v964_v44  ;;  %v9040_v44 = vld [vmem:[%s17706_s0 + $0x88] sm:$0xff]  ;;  %v9042_v60 = vld [vmem:[%s17706_s0 + $0x98] sm:$0xff] }
 0x422   :  { %v970_v51 = vadd.f32 %v9033_v32, %v895_v47  ;;  %v972_v59 = vadd.f32 %v9035_v54, %v966_v4 }
 0x423   :  { %v9036_v52 = vmul.f32 -1.442695, %v969_v45 }
 0x424   :  { %v9037_v53 = vmul.f32 -1.442695, %v970_v51  ;;  %v9038_v2 = vmul.f32 -1.442695, %v972_v59 }
 0x425   :  { %13262 = vpow2.f32 %v9036_v52 }
 0x426   :  { %13264 = vpow2.f32 %v9037_v53 }
 0x427   :  { %13266 = vpow2.f32 %v9038_v2 }
 0x428   :  { %13268 = vtanh.f32 %v971_v3  ;;  %v9041_v3 = vld [vmem:[%s17706_s0 + $0x90] sm:$0xff] }
 0x42f   :  { %v13263_v11 = vpop.eup %13262 }
 0x430   :  { %v13265_v12 = vpop.eup %13264  ;;  %v976_v8 = vadd.f32 1.0, %v13263_v11 }
 0x431   :  { %v982_v15 = vadd.f32 1.0, %v13265_v12  ;;  %v13267_v57 = vpop.eup %13266 }
 0x432   :  { %13270 = vrcp.f32 %v976_v8  ;;  %v13269_v63 = vpop.eup %13268  ;;  %v989_v48 = vadd.f32 1.0, %v13267_v57 }
 0x433   :  { %13272 = vrcp.f32 %v982_v15 }
 0x434   :  { %13274 = vrcp.f32 %v989_v48 }
 0x43c   :  { %v13271_v24 = vpop.eup %13270 }
 0x43d   :  { %v13273_v42 = vpop.eup %13272  ;;  %v993_v43 = vmul.f32 %v13271_v24, %v13269_v63 }
 0x43e   :  { %v992_v37 = vmul.f32 %v13273_v42, %v14351_v1  ;;  %v13275_v27 = vpop.eup %13274  ;;  %v9039_v1 = vld [vmem:[%s17706_s0 + $0x80] sm:$0xff] }
 0x440   :  { %v14591_v40 = vadd.f32 %v993_v43, %v992_v37 }
 0x442   :  { %13276 = vtanh.f32 %v14591_v40 }
 0x44c   :  { %v13277_v32 = vpop.eup %13276 }
 0x44d   :  { %v14594_v33 = vmul.f32 %v13277_v32, %v13275_v27 }
 0x44f   :  { %1133 = vmatmul.mubr.f32.vlgmr.msra.gmra.mrb[6].mxu0 %v14594_v33  ;;  %1204 = vmatmul.mubr.f32.vlgmr.msra.gmra.mrb[10].mxu1 %v14594_v33 }
 0x450   :  { %11069 = vmatpush1.bf16.msra.mxu0 %v14382_v56  ;;  %11101 = vmatpush1.bf16.msra.mxu1 %v14391_v6 }
 0x451   :  { %11071 = vmatprep.subr.bf16.mxu0 %v14405_v25  ;;  %11103 = vmatprep.subr.bf16.mxu1 %v14416_v19 }
 0x452   :  { %1373 = vmatprep.mubr.f32.mxu0 %v13785_v0  ;;  %1444 = vmatprep.mubr.f32.mxu1 %v13785_v0 }
 0x454   :  { %11073 = vmatpush1.bf16.msra.mxu0 %v14418_v28  ;;  %11105 = vmatpush1.bf16.msra.mxu1 %v14427_v36 }
 0x455   :  { %11075 = vmatprep.subr.bf16.mxu0 %v14441_v26  ;;  %11107 = vmatprep.subr.bf16.mxu1 %v14452_v38 }
 0x458   :  { %11077 = vmatpush1.bf16.msra.mxu0 %v14454_v39  ;;  %11109 = vmatpush1.bf16.msra.mxu1 %v14463_v50 }
 0x459   :  { %11079 = vmatprep.subr.bf16.mxu0 %v14477_v49  ;;  %11111 = vmatprep.subr.bf16.mxu1 %v14488_v55 }
 0x45c   :  { %11081 = vmatpush1.bf16.msra.mxu0 %v14263_v14  ;;  %11113 = vmatpush1.bf16.msra.mxu1 %v14490_v58 }
 0x45d   :  { %11083 = vmatprep.subr.bf16.mxu0 %v14272_v21  ;;  %11115 = vmatprep.subr.bf16.mxu1 %v14503_v61 }
 0x460   :  { %11085 = vmatpush1.bf16.msra.mxu0 %v14280_v62  ;;  %11117 = vmatpush1.bf16.msra.mxu1 %v14511_v10 }
 0x461   :  { %11087 = vmatprep.subr.bf16.mxu0 %v14293_v16  ;;  %11119 = vmatprep.subr.bf16.mxu1 %v14524_v9 }
 0x464   :  { %11089 = vmatpush1.bf16.msra.mxu0 %v14304_v34  ;;  %11121 = vmatpush1.bf16.msra.mxu1 %v14537_v7 }
 0x465   :  { %11091 = vmatprep.subr.bf16.mxu0 %v14306_v35  ;;  %11123 = vmatprep.subr.bf16.mxu1 %v14540_v17 }
 0x468   :  { %11093 = vmatpush1.bf16.msra.mxu0 %v14322_v22  ;;  %11125 = vmatpush1.bf16.msra.mxu1 %v14557_v29 }
 0x469   :  { %11095 = vmatprep.subr.bf16.mxu0 %v14325_v23  ;;  %11127 = vmatprep.subr.bf16.mxu1 %v14560_v31 }
 0x46c   :  { %11097 = vmatpush1.bf16.msra.mxu0 %v14334_v30  ;;  %11129 = vmatpush1.bf16.msra.mxu1 %v14571_v41 }
 0x46d   :  { %11131 = vmatprep.subr.bf16.mxu0 %v14369_v13  ;;  %11163 = vmatprep.subr.bf16.mxu1 %v14380_v20 }
 0x522   :  { %v1134_v45 = vpop.f32.mrb[6].mxu0  ;;  %v1205_v47 = vpop.f32.mrb[10].mxu1 }
 0x523   :  { %v1210_v4 = vadd.f32 %v9039_v1, %v1134_v45  ;;  %v1136_v51 = vpop.f32.mrb[7].mxu0  ;;  %v1207_v52 = vpop.f32.mrb[11].mxu1  ;;  %v1212_v12 = vadd.f32 %v9041_v3, %v1205_v47 }
 0x524   :  { %v1211_v53 = vadd.f32 %v9040_v44, %v1136_v51  ;;  %v1213_v2 = vadd.f32 %v9042_v60, %v1207_v52 }
 0x525   :  { %v9043_v54 = vmul.f32 -1.442695, %v1210_v4  ;;  %v9048_v4 = vld [vmem:[%s17706_s0 + $0xb0] sm:$0xff] }
 0x526   :  { %v9044_v59 = vmul.f32 -1.442695, %v1211_v53  ;;  %v9045_v11 = vmul.f32 -1.442695, %v1213_v2 }
 0x527   :  { %13278 = vpow2.f32 %v9043_v54 }
 0x528   :  { %13280 = vpow2.f32 %v9044_v59 }
 0x529   :  { %13282 = vpow2.f32 %v9045_v11 }
 0x52a   :  { %13284 = vtanh.f32 %v1212_v12 }
 0x531   :  { %v13279_v8 = vpop.eup %13278 }
 0x532   :  { %v13281_v15 = vpop.eup %13280  ;;  %v1217_v57 = vadd.f32 1.0, %v13279_v8 }
 0x533   :  { %v1223_v63 = vadd.f32 1.0, %v13281_v15  ;;  %v13283_v24 = vpop.eup %13282 }
 0x534   :  { %13286 = vrcp.f32 %v1217_v57  ;;  %v13285_v42 = vpop.eup %13284  ;;  %v1230_v27 = vadd.f32 1.0, %v13283_v24 }
 0x535   :  { %13288 = vrcp.f32 %v1223_v63 }
 0x536   :  { %13290 = vrcp.f32 %v1230_v27  ;;  %v1974_v27 = vld [vmem:[#allocation4 + $0x18] sm:$0xff] }
 0x53e   :  { %v13287_v43 = vpop.eup %13286 }
 0x53f   :  { %v13289_v48 = vpop.eup %13288  ;;  %v1234_v37 = vmul.f32 %v13287_v43, %v13285_v42 }
 0x540   :  { %v1233_v32 = vmul.f32 %v13289_v48, %v14591_v40  ;;  %v13291_v44 = vpop.eup %13290  ;;  %v1788_v48 = vld [vmem:[%s17708_s2 + $0x1e8] sm:$0xff] }
 0x542   :  { %v14645_v1 = vadd.f32 %v1234_v37, %v1233_v32 }
 0x544   :  { %13292 = vtanh.f32 %v14645_v1 }
 0x54e   :  { %v13293_v45 = vpop.eup %13292 }
 0x54f   :  { %v14648_v47 = vmul.f32 %v13293_v45, %v13291_v44  ;;  %v1787_v44 = vld [vmem:[%s17708_s2 + $0x1e0] sm:$0xff]  ;;  %v1978_v45 = vld [vmem:[#allocation4 + $0x38] sm:$0xff] }
 0x551   :  { %1374 = vmatmul.mubr.f32.vlgmr.msra.gmra.mrb[8].mxu0 %v14648_v47  ;;  %1445 = vmatmul.mubr.f32.vlgmr.msra.gmra.mrb[12].mxu1 %v14648_v47 }
 0x552   :  { %11133 = vmatpush1.bf16.msra.mxu0 %v14382_v56  ;;  %11165 = vmatpush1.bf16.msra.mxu1 %v14391_v6 }
 0x553   :  { %11135 = vmatprep.subr.bf16.mxu0 %v14405_v25  ;;  %11167 = vmatprep.subr.bf16.mxu1 %v14416_v19 }
 0x554   :  { %1614 = vmatprep.mubr.f32.mxu0 %v13785_v0  ;;  %1685 = vmatprep.mubr.f32.mxu1 %v13785_v0 }
 0x556   :  { %11137 = vmatpush1.bf16.msra.mxu0 %v14418_v28  ;;  %11169 = vmatpush1.bf16.msra.mxu1 %v14427_v36 }
 0x557   :  { %11139 = vmatprep.subr.bf16.mxu0 %v14441_v26  ;;  %11171 = vmatprep.subr.bf16.mxu1 %v14452_v38 }
 0x55a   :  { %11141 = vmatpush1.bf16.msra.mxu0 %v14454_v39  ;;  %11173 = vmatpush1.bf16.msra.mxu1 %v14463_v50 }
 0x55b   :  { %11143 = vmatprep.subr.bf16.mxu0 %v14477_v49  ;;  %11175 = vmatprep.subr.bf16.mxu1 %v14488_v55 }
 0x55e   :  { %11145 = vmatpush1.bf16.msra.mxu0 %v14263_v14  ;;  %11177 = vmatpush1.bf16.msra.mxu1 %v14490_v58  ;;  %v9046_v14 = vld [vmem:[%s17706_s0 + $0xa0] sm:$0xff] }
 0x55f   :  { %11147 = vmatprep.subr.bf16.mxu0 %v14272_v21  ;;  %11179 = vmatprep.subr.bf16.mxu1 %v14503_v61  ;;  %v9047_v21 = vld [vmem:[%s17706_s0 + $0xa8] sm:$0xff] }
 0x562   :  { %11149 = vmatpush1.bf16.msra.mxu0 %v14280_v62  ;;  %11181 = vmatpush1.bf16.msra.mxu1 %v14511_v10 }
 0x563   :  { %11151 = vmatprep.subr.bf16.mxu0 %v14293_v16  ;;  %11183 = vmatprep.subr.bf16.mxu1 %v14524_v9 }
 0x566   :  { %11153 = vmatpush1.bf16.msra.mxu0 %v14304_v34  ;;  %11185 = vmatpush1.bf16.msra.mxu1 %v14537_v7 }
 0x567   :  { %11155 = vmatprep.subr.bf16.mxu0 %v14306_v35  ;;  %11187 = vmatprep.subr.bf16.mxu1 %v14540_v17 }
 0x56a   :  { %11157 = vmatpush1.bf16.msra.mxu0 %v14322_v22  ;;  %11189 = vmatpush1.bf16.msra.mxu1 %v14557_v29 }
 0x56b   :  { %11159 = vmatprep.subr.bf16.mxu0 %v14325_v23  ;;  %11191 = vmatprep.subr.bf16.mxu1 %v14560_v31 }
 0x56e   :  { %11161 = vmatpush1.bf16.msra.mxu0 %v14334_v30  ;;  %11193 = vmatpush1.bf16.msra.mxu1 %v14571_v41 }
 0x56f   :  { %11195 = vmatprep.subr.bf16.mxu0 %v14369_v13  ;;  %11227 = vmatprep.subr.bf16.mxu1 %v14380_v20  ;;  %v9049_v13 = vld [vmem:[%s17706_s0 + $0xb8] sm:$0xff] }
 0x624   :  { %v1375_v62 = vpop.f32.mrb[8].mxu0  ;;  %v1446_v16 = vpop.f32.mrb[12].mxu1 }
 0x625   :  { %v1451_v34 = vadd.f32 %v9046_v14, %v1375_v62  ;;  %v1377_v35 = vpop.f32.mrb[9].mxu0  ;;  %v1448_v22 = vpop.f32.mrb[13].mxu1  ;;  %v1453_v52 = vadd.f32 %v9048_v4, %v1446_v16  ;;  %v1972_v14 = vld [vmem:[#allocation4 + $0x8] sm:$0xff]  ;;  %v11290_v62 = vpack.c.bf16 %v1978_v45, %v1974_v27 }
 0x626   :  { %v1452_v23 = vadd.f32 %v9047_v21, %v1377_v35  ;;  %v1454_v20 = vadd.f32 %v9049_v13, %v1448_v22  ;;  %v1976_v21 = vld [vmem:[#allocation4 + $0x28] sm:$0xff]  ;;  %v9053_v35 = vld [vmem:[%s17706_s0 + $0xc0] sm:$0xff] }
 0x627   :  { %v9050_v30 = vmul.f32 -1.442695, %v1451_v34  ;;  %v11258_v34 = vpack.c.bf16 %v1976_v21, %v1972_v14  ;;  %v9054_v22 = vld [vmem:[%s17706_s0 + $0xc8] sm:$0xff]  ;;  %v1987_v14 = vld [vmem:[#allocation4 + $0x80] sm:$0xff] }
 0x628   :  { %v9051_v40 = vmul.f32 -1.442695, %v1452_v23  ;;  %v9052_v51 = vmul.f32 -1.442695, %v1454_v20  ;;  %v1992_v27 = vld [vmem:[#allocation4 + $0xa8] sm:$0xff]  ;;  %v1991_v21 = vld [vmem:[#allocation4 + $0xa0] sm:$0xff] }
 0x629   :  { %13294 = vpow2.f32 %v9050_v30 }
 0x62a   :  { %13296 = vpow2.f32 %v9051_v40 }
 0x62b   :  { %13298 = vpow2.f32 %v9052_v51 }
 0x62c   :  { %13300 = vtanh.f32 %v1453_v52 }
 0x633   :  { %v13295_v53 = vpop.eup %13294 }
 0x634   :  { %v13297_v54 = vpop.eup %13296  ;;  %v1458_v59 = vadd.f32 1.0, %v13295_v53  ;;  %v9056_v53 = vld [vmem:[%s17706_s0 + $0xd8] sm:$0xff] }
 0x635   :  { %v1464_v60 = vadd.f32 1.0, %v13297_v54  ;;  %v13299_v2 = vpop.eup %13298 }
 0x636   :  { %13302 = vrcp.f32 %v1458_v59  ;;  %v13301_v3 = vpop.eup %13300  ;;  %v1471_v15 = vadd.f32 1.0, %v13299_v2  ;;  %v9055_v59 = vld [vmem:[%s17706_s0 + $0xd0] sm:$0xff] }
 0x637   :  { %13304 = vrcp.f32 %v1464_v60 }
 0x638   :  { %13306 = vrcp.f32 %v1471_v15 }
 0x640   :  { %v13303_v11 = vpop.eup %13302 }
 0x641   :  { %v13305_v12 = vpop.eup %13304  ;;  %v1475_v8 = vmul.f32 %v13303_v11, %v13301_v3 }
 0x642   :  { %v1474_v57 = vmul.f32 %v13305_v12, %v14645_v1  ;;  %v13307_v24 = vpop.eup %13306  ;;  %v1783_v1 = vld [vmem:[%s17708_s2 + $0x1c0] sm:$0xff] }
 0x643   :  { %v11224_v16 = vpack.c.bf16 %v1787_v44, %v1783_v1  ;;  %v1994_v1 = vld [vmem:[#allocation4 + $0xb8] sm:$0xff] }
 0x644   :  { %v14699_v63 = vadd.f32 %v1475_v8, %v1474_v57 }
 0x646   :  { %13308 = vtanh.f32 %v14699_v63 }
 0x650   :  { %v13309_v42 = vpop.eup %13308 }
 0x651   :  { %v14702_v43 = vmul.f32 %v13309_v42, %v13307_v24 }
 0x653   :  { %1615 = vmatmul.mubr.f32.vlgmr.msra.gmra.mrb[10].mxu0 %v14702_v43  ;;  %1686 = vmatmul.mubr.f32.vlgmr.msra.gmra.mrb[14].mxu1 %v14702_v43 }
 0x654   :  { %11197 = vmatpush1.bf16.msra.mxu0 %v14382_v56  ;;  %11229 = vmatpush1.bf16.msra.mxu1 %v14391_v6  ;;  %v1751_v56 = vld [vmem:[%s17708_s2 + $0xc0] sm:$0xff] }
 0x655   :  { %11199 = vmatprep.subr.bf16.mxu0 %v14405_v25  ;;  %11231 = vmatprep.subr.bf16.mxu1 %v14416_v19  ;;  %v1755_v6 = vld [vmem:[%s17708_s2 + $0xe0] sm:$0xff]  ;;  %v1760_v19 = vld [vmem:[%s17708_s2 + $0x108] sm:$0xff] }
 0x656   :  { %1855 = vmatprep.mubr.f32.mxu0 %v13785_v0  ;;  %1926 = vmatprep.mubr.f32.mxu1 %v13785_v0  ;;  %v11208_v25 = vpack.c.bf16 %v1755_v6, %v1751_v56 }
 0x658   :  { %11201 = vmatpush1.bf16.msra.mxu0 %v14418_v28  ;;  %11233 = vmatpush1.bf16.msra.mxu1 %v14427_v36  ;;  %v1764_v28 = vld [vmem:[%s17708_s2 + $0x128] sm:$0xff] }
 0x659   :  { %11203 = vmatprep.subr.bf16.mxu0 %v14441_v26  ;;  %11235 = vmatprep.subr.bf16.mxu1 %v14452_v38  ;;  %v11210_v36 = vpack.c.bf16 %v1764_v28, %v1760_v19  ;;  %v1759_v26 = vld [vmem:[%s17708_s2 + $0x100] sm:$0xff] }
 0x65a   :  { %v1763_v38 = vld [vmem:[%s17708_s2 + $0x120] sm:$0xff] }
 0x65b   :  { %v1971_v28 = vld [vmem:[#allocation4] sm:$0xff] }
 0x65c   :  { %11205 = vmatpush1.bf16.msra.mxu0 %v14454_v39  ;;  %11237 = vmatpush1.bf16.msra.mxu1 %v14463_v50  ;;  %v11212_v39 = vpack.c.bf16 %v1763_v38, %v1759_v26  ;;  %v1768_v50 = vld [vmem:[%s17708_s2 + $0x148] sm:$0xff]  ;;  %v1973_v26 = vld [vmem:[#allocation4 + $0x10] sm:$0xff] }
 0x65d   :  { %11207 = vmatprep.subr.bf16.mxu0 %v14477_v49  ;;  %11239 = vmatprep.subr.bf16.mxu1 %v14488_v55  ;;  %v1772_v49 = vld [vmem:[%s17708_s2 + $0x168] sm:$0xff]  ;;  %v1767_v55 = vld [vmem:[%s17708_s2 + $0x140] sm:$0xff]  ;;  %v1977_v38 = vld [vmem:[#allocation4 + $0x30] sm:$0xff] }
 0x660   :  { %11241 = vmatpush1.bf16.msra.mxu1 %v14490_v58  ;;  %11209 = vmatpush1.bf16.msra.mxu0 %v11208_v25  ;;  %v11214_v58 = vpack.c.bf16 %v1772_v49, %v1768_v50  ;;  %v1984_v50 = vld [vmem:[#allocation4 + $0x68] sm:$0xff]  ;;  %v1982_v49 = vld [vmem:[#allocation4 + $0x58] sm:$0xff] }
 0x661   :  { %11243 = vmatprep.subr.bf16.mxu1 %v14503_v61  ;;  %11211 = vmatprep.subr.bf16.mxu0 %v11210_v36  ;;  %v1771_v61 = vld [vmem:[%s17708_s2 + $0x160] sm:$0xff] }
 0x662   :  { %v1975_v36 = vld [vmem:[#allocation4 + $0x20] sm:$0xff] }
 0x664   :  { %11245 = vmatpush1.bf16.msra.mxu1 %v14511_v10  ;;  %11213 = vmatpush1.bf16.msra.mxu0 %v11212_v39  ;;  %v1776_v10 = vld [vmem:[%s17708_s2 + $0x188] sm:$0xff] }
 0x665   :  { %11247 = vmatprep.subr.bf16.mxu1 %v14524_v9  ;;  %v1780_v9 = vld [vmem:[%s17708_s2 + $0x1a8] sm:$0xff]  ;;  %11215 = vmatprep.subr.bf16.mxu0 %v11214_v58 }
 0x666   :  { %v1980_v39 = vld [vmem:[#allocation4 + $0x48] sm:$0xff] }
 0x668   :  { %11249 = vmatpush1.bf16.msra.mxu1 %v14537_v7  ;;  %v11216_v7 = vpack.c.bf16 %v1771_v61, %v1767_v55  ;;  %v1986_v55 = vld [vmem:[#allocation4 + $0x78] sm:$0xff] }
 0x669   :  { %11251 = vmatprep.subr.bf16.mxu1 %v14540_v17  ;;  %v11218_v17 = vpack.c.bf16 %v1780_v9, %v1776_v10  ;;  %v11260_v10 = vpack.c.bf16 %v1975_v36, %v1971_v28  ;;  %v11292_v9 = vpack.c.bf16 %v1977_v38, %v1973_v26  ;;  %v2016_v28 = vld [vmem:[#allocation4 + $0x168] sm:$0xff]  ;;  %v2014_v36 = vld [vmem:[#allocation4 + $0x158] sm:$0xff] }
 0x66a   :  { %11217 = vmatpush1.bf16.msra.mxu0 %v11216_v7  ;;  %v1979_v7 = vld [vmem:[#allocation4 + $0x40] sm:$0xff]  ;;  %v2018_v26 = vld [vmem:[#allocation4 + $0x178] sm:$0xff] }
 0x66b   :  { %11219 = vmatprep.subr.bf16.mxu0 %v11218_v17  ;;  %v1983_v17 = vld [vmem:[#allocation4 + $0x60] sm:$0xff] }
 0x66c   :  { %11253 = vmatpush1.bf16.msra.mxu1 %v14557_v29  ;;  %v1775_v29 = vld [vmem:[%s17708_s2 + $0x180] sm:$0xff]  ;;  %v11264_v44 = vpack.c.bf16 %v1983_v17, %v1979_v7  ;;  %v2024_v7 = vld [vmem:[#allocation4 + $0x1a8] sm:$0xff]  ;;  %v2022_v17 = vld [vmem:[#allocation4 + $0x198] sm:$0xff] }
 0x66d   :  { %11255 = vmatprep.subr.bf16.mxu1 %v14560_v31  ;;  %v1779_v31 = vld [vmem:[%s17708_s2 + $0x1a0] sm:$0xff] }
 0x66e   :  { %v11220_v37 = vpack.c.bf16 %v1779_v31, %v1775_v29  ;;  %v11262_v29 = vpack.c.bf16 %v1984_v50, %v1980_v39  ;;  %v11294_v31 = vpack.c.bf16 %v1986_v55, %v1982_v49  ;;  %v2011_v50 = vld [vmem:[#allocation4 + $0x140] sm:$0xff] }
 0x66f   :  { %v2015_v49 = vld [vmem:[#allocation4 + $0x160] sm:$0xff] }
 0x670   :  { %11257 = vmatpush1.bf16.msra.mxu1 %v14571_v41  ;;  %v1784_v41 = vld [vmem:[%s17708_s2 + $0x1c8] sm:$0xff]  ;;  %11221 = vmatpush1.bf16.msra.mxu0 %v11220_v37 }
 0x671   :  { %v11222_v32 = vpack.c.bf16 %v1788_v48, %v1784_v41  ;;  %11291 = vmatprep.subr.bf16.mxu1 %v11290_v62  ;;  %v1981_v41 = vld [vmem:[#allocation4 + $0x50] sm:$0xff]  ;;  %v1988_v37 = vld [vmem:[#allocation4 + $0x88] sm:$0xff] }
 0x672   :  { %v1985_v48 = vld [vmem:[#allocation4 + $0x70] sm:$0xff]  ;;  %v11266_v62 = vpack.c.bf16 %v1992_v27, %v1988_v37  ;;  %v2023_v37 = vld [vmem:[#allocation4 + $0x1a0] sm:$0xff] }
 0x673   :  { %11223 = vmatprep.subr.bf16.mxu0 %v11222_v32  ;;  %v1990_v32 = vld [vmem:[#allocation4 + $0x98] sm:$0xff]  ;;  %v11296_v45 = vpack.c.bf16 %v1985_v48, %v1981_v41  ;;  %v2019_v48 = vld [vmem:[#allocation4 + $0x180] sm:$0xff] }
 0x674   :  { %11225 = vmatpush1.bf16.msra.mxu0 %v11224_v16  ;;  %v11298_v16 = vpack.c.bf16 %v1994_v1, %v1990_v32  ;;  %v2021_v1 = vld [vmem:[#allocation4 + $0x190] sm:$0xff] }
 0x675   :  { %11259 = vmatprep.subr.bf16.mxu0 %v11258_v34  ;;  %v1989_v34 = vld [vmem:[#allocation4 + $0x90] sm:$0xff] }
 0x726   :  { %v1616_v23 = vpop.f32.mrb[10].mxu0  ;;  %v1687_v30 = vpop.f32.mrb[14].mxu1 }
 0x727   :  { %v1692_v40 = vadd.f32 %v9053_v35, %v1616_v23  ;;  %v1618_v13 = vpop.f32.mrb[11].mxu0  ;;  %v1689_v20 = vpop.f32.mrb[15].mxu1  ;;  %v1694_v2 = vadd.f32 %v9055_v59, %v1687_v30  ;;  %v1993_v35 = vld [vmem:[#allocation4 + $0xb0] sm:$0xff]  ;;  %v2000_v23 = vld [vmem:[#allocation4 + $0xe8] sm:$0xff]  ;;  %v1998_v30 = vld [vmem:[#allocation4 + $0xd8] sm:$0xff] }
 0x728   :  { %v1693_v4 = vadd.f32 %v9054_v22, %v1618_v13  ;;  %v1695_v54 = vadd.f32 %v9056_v53, %v1689_v20  ;;  %v1996_v22 = vld [vmem:[#allocation4 + $0xc8] sm:$0xff]  ;;  %v11268_v13 = vpack.c.bf16 %v1991_v21, %v1987_v14  ;;  %v11300_v20 = vpack.c.bf16 %v1993_v35, %v1989_v34  ;;  %v2001_v59 = vld [vmem:[#allocation4 + $0xf0] sm:$0xff]  ;;  %v2030_v21 = vld [vmem:[#allocation4 + $0x1d8] sm:$0xff] }
 0x729   :  { %v9057_v51 = vmul.f32 -1.442695, %v1692_v40  ;;  %v2002_v40 = vld [vmem:[#allocation4 + $0xf8] sm:$0xff]  ;;  %v2032_v14 = vld [vmem:[#allocation4 + $0x1e8] sm:$0xff]  ;;  %v2027_v35 = vld [vmem:[#allocation4 + $0x1c0] sm:$0xff] }
 0x72a   :  { %v9058_v52 = vmul.f32 -1.442695, %v1693_v4  ;;  %v9059_v60 = vmul.f32 -1.442695, %v1695_v54  ;;  %v1995_v4 = vld [vmem:[#allocation4 + $0xc0] sm:$0xff]  ;;  %v11302_v53 = vpack.c.bf16 %v2002_v40, %v1998_v30  ;;  %v1997_v54 = vld [vmem:[#allocation4 + $0xd0] sm:$0xff] }
 0x72b   :  { %13310 = vpow2.f32 %v9057_v51  ;;  %v1999_v51 = vld [vmem:[#allocation4 + $0xe0] sm:$0xff]  ;;  %v2029_v40 = vld [vmem:[#allocation4 + $0x1d0] sm:$0xff] }
 0x72c   :  { %13312 = vpow2.f32 %v9058_v52  ;;  %v11270_v52 = vpack.c.bf16 %v2000_v23, %v1996_v22  ;;  %v2031_v30 = vld [vmem:[#allocation4 + $0x1e0] sm:$0xff] }
 0x72d   :  { %13314 = vpow2.f32 %v9059_v60  ;;  %v2004_v60 = vld [vmem:[#allocation4 + $0x108] sm:$0xff] }
 0x72e   :  { %13316 = vtanh.f32 %v1694_v2  ;;  %v2008_v2 = vld [vmem:[#allocation4 + $0x128] sm:$0xff] }
 0x735   :  { %v13311_v3 = vpop.eup %13310 }
 0x736   :  { %v13313_v11 = vpop.eup %13312  ;;  %v1699_v12 = vadd.f32 1.0, %v13311_v3  ;;  %v2006_v3 = vld [vmem:[#allocation4 + $0x118] sm:$0xff] }
 0x737   :  { %v1705_v8 = vadd.f32 1.0, %v13313_v11  ;;  %v13315_v15 = vpop.eup %13314  ;;  %v2010_v11 = vld [vmem:[#allocation4 + $0x138] sm:$0xff] }
 0x738   :  { %13318 = vrcp.f32 %v1699_v12  ;;  %v13317_v57 = vpop.eup %13316  ;;  %v1712_v6 = vadd.f32 1.0, %v13315_v15  ;;  %v11272_v12 = vpack.c.bf16 %v1999_v51, %v1995_v4  ;;  %v2003_v15 = vld [vmem:[#allocation4 + $0x100] sm:$0xff] }
 0x739   :  { %13320 = vrcp.f32 %v1705_v8  ;;  %v11304_v8 = vpack.c.bf16 %v2001_v59, %v1997_v54  ;;  %v9073_v54 = vld [vmem:[%s17708_s2 + $0x230] sm:$0xff] }
 0x73a   :  { %13322 = vrcp.f32 %v1712_v6  ;;  %v2009_v6 = vld [vmem:[#allocation4 + $0x130] sm:$0xff] }
 0x742   :  { %v13319_v24 = vpop.eup %13318 }
 0x743   :  { %v13321_v42 = vpop.eup %13320  ;;  %v1716_v56 = vmul.f32 %v13319_v24, %v13317_v57  ;;  %v2007_v57 = vld [vmem:[#allocation4 + $0x120] sm:$0xff]  ;;  %v11274_v24 = vpack.c.bf16 %v2008_v2, %v2004_v60  ;;  %v9076_v60 = vld [vmem:[%s17708_s2 + $0x248] sm:$0xff] }
 0x744   :  { %v1715_v25 = vmul.f32 %v13321_v42, %v14699_v63  ;;  %v13323_v58 = vpop.eup %13322  ;;  %v11306_v42 = vpack.c.bf16 %v2010_v11, %v2006_v3  ;;  %v11276_v38 = vpack.c.bf16 %v2007_v57, %v2003_v15  ;;  %v9080_v2 = vld [vmem:[%s17708_s2 + $0x268] sm:$0xff]  ;;  %v9078_v3 = vld [vmem:[%s17708_s2 + $0x258] sm:$0xff] }
 0x745   :  { %v14878_v11 = vpack.c.bf16 %v9080_v2, %v9076_v60  ;;  %v9082_v15 = vld [vmem:[%s17708_s2 + $0x278] sm:$0xff]  ;;  %v9116_v2 = vld [vmem:[%s17708_s2 + $0x388] sm:$0xff] }
 0x746   :  { %v14796_v19 = vadd.f32 %v1716_v56, %v1715_v25  ;;  %v2005_v56 = vld [vmem:[#allocation4 + $0x110] sm:$0xff]  ;;  %v2012_v25 = vld [vmem:[#allocation4 + $0x148] sm:$0xff] }
 0x747   :  { %v11308_v39 = vpack.c.bf16 %v2009_v6, %v2005_v56  ;;  %v11278_v55 = vpack.c.bf16 %v2016_v28, %v2012_v25  ;;  %v9081_v56 = vld [vmem:[%s17708_s2 + $0x270] sm:$0xff]  ;;  %v9084_v25 = vld [vmem:[%s17708_s2 + $0x288] sm:$0xff] }
 0x748   :  { %13324 = vtanh.f32 %v14796_v19  ;;  %v9088_v28 = vld [vmem:[%s17708_s2 + $0x2a8] sm:$0xff] }
 0x752   :  { %v13325_v61 = vpop.eup %13324 }
 0x753   :  { %v14799_v63 = vmul.f32 %v13325_v61, %v13323_v58  ;;  %v11310_v58 = vpack.c.bf16 %v2018_v26, %v2014_v36  ;;  %v2013_v61 = vld [vmem:[#allocation4 + $0x150] sm:$0xff]  ;;  %v9086_v36 = vld [vmem:[%s17708_s2 + $0x298] sm:$0xff]  ;;  %v14914_v26 = vpack.c.bf16 %v9088_v28, %v9084_v25 }
 0x754   :  { %v9122_v25 = vld [vmem:[%s17708_s2 + $0x3b8] sm:$0xff] }
 0x755   :  { %1856 = vmatmul.mubr.f32.vlgmr.msra.gmra.mrb[12].mxu0 %v14799_v63  ;;  %1927 = vmatmul.mubr.f32.vlgmr.msra.gmra.mrb[16].mxu1 %v14799_v63 }
 0x756   :  { %11261 = vmatpush1.bf16.msra.mxu0 %v11260_v10  ;;  %11293 = vmatpush1.bf16.msra.mxu1 %v11292_v9  ;;  %v2017_v10 = vld [vmem:[#allocation4 + $0x170] sm:$0xff]  ;;  %v2020_v9 = vld [vmem:[#allocation4 + $0x188] sm:$0xff] }
 0x757   :  { %11263 = vmatprep.subr.bf16.mxu0 %v11262_v29  ;;  %11295 = vmatprep.subr.bf16.mxu1 %v11294_v31  ;;  %v2026_v29 = vld [vmem:[#allocation4 + $0x1b8] sm:$0xff]  ;;  %v11280_v31 = vpack.c.bf16 %v2015_v49, %v2011_v50  ;;  %v11312_v41 = vpack.c.bf16 %v2017_v10, %v2013_v61  ;;  %v11282_v27 = vpack.c.bf16 %v2024_v7, %v2020_v9  ;;  %v9089_v61 = vld [vmem:[%s17708_s2 + $0x2b0] sm:$0xff]  ;;  %v9092_v9 = vld [vmem:[%s17708_s2 + $0x2c8] sm:$0xff] }
 0x758   :  { %2121 = vmatprep.mubr.f32.mxu0 %v13785_v0  ;;  %2234 = vmatprep.mubr.f32.mxu1 %v13785_v0  ;;  %v11314_v32 = vpack.c.bf16 %v2026_v29, %v2022_v17  ;;  %v9090_v50 = vld [vmem:[%s17708_s2 + $0x2b8] sm:$0xff]  ;;  %v9096_v7 = vld [vmem:[%s17708_s2 + $0x2e8] sm:$0xff] }
 0x759   :  { %v9094_v17 = vld [vmem:[%s17708_s2 + $0x2d8] sm:$0xff]  ;;  %v14950_v29 = vpack.c.bf16 %v9096_v7, %v9092_v9 }
 0x75a   :  { %11265 = vmatpush1.bf16.msra.mxu0 %v11264_v44  ;;  %11297 = vmatpush1.bf16.msra.mxu1 %v11296_v45  ;;  %v2025_v44 = vld [vmem:[#allocation4 + $0x1b0] sm:$0xff]  ;;  %v2028_v45 = vld [vmem:[#allocation4 + $0x1c8] sm:$0xff]  ;;  %v9126_v7 = vld [vmem:[%s17708_s2 + $0x3d8] sm:$0xff] }
 0x75b   :  { %11267 = vmatprep.subr.bf16.mxu0 %v11266_v62  ;;  %11299 = vmatprep.subr.bf16.mxu1 %v11298_v16  ;;  %v2034_v62 = vld [vmem:[#allocation4 + $0x1f8] sm:$0xff]  ;;  %v11284_v16 = vpack.c.bf16 %v2023_v37, %v2019_v48  ;;  %v11316_v34 = vpack.c.bf16 %v2025_v44, %v2021_v1  ;;  %v11286_v22 = vpack.c.bf16 %v2032_v14, %v2028_v45  ;;  %v9097_v1 = vld [vmem:[%s17708_s2 + $0x2f0] sm:$0xff]  ;;  %v9100_v44 = vld [vmem:[%s17708_s2 + $0x308] sm:$0xff] }
 0x75c   :  { %v11318_v23 = vpack.c.bf16 %v2034_v62, %v2030_v21  ;;  %v9098_v48 = vld [vmem:[%s17708_s2 + $0x2f8] sm:$0xff]  ;;  %v9104_v14 = vld [vmem:[%s17708_s2 + $0x328] sm:$0xff]  ;;  %v9099_v21 = vld [vmem:[%s17708_s2 + $0x300] sm:$0xff] }
 0x75d   :  { %v9103_v62 = vld [vmem:[%s17708_s2 + $0x320] sm:$0xff] }
 0x75e   :  { %11269 = vmatpush1.bf16.msra.mxu0 %v11268_v13  ;;  %11301 = vmatpush1.bf16.msra.mxu1 %v11300_v20  ;;  %v2033_v13 = vld [vmem:[#allocation4 + $0x1f0] sm:$0xff]  ;;  %v11288_v20 = vpack.c.bf16 %v2031_v30, %v2027_v35  ;;  %v9102_v35 = vld [vmem:[%s17708_s2 + $0x318] sm:$0xff] }
 0x75f   :  { %11271 = vmatprep.subr.bf16.mxu0 %v11270_v52  ;;  %11303 = vmatprep.subr.bf16.mxu1 %v11302_v53  ;;  %v11320_v4 = vpack.c.bf16 %v2033_v13, %v2029_v40  ;;  %v9069_v53 = vld [vmem:[%s17708_s2 + $0x210] sm:$0xff]  ;;  %v9108_v13 = vld [vmem:[%s17708_s2 + $0x348] sm:$0xff] }
 0x760   :  { %v14864_v59 = vpack.c.bf16 %v9073_v54, %v9069_v53  ;;  %v9105_v40 = vld [vmem:[%s17708_s2 + $0x330] sm:$0xff] }
 0x761   :  { %v9113_v53 = vld [vmem:[%s17708_s2 + $0x370] sm:$0xff] }
 0x762   :  { %11273 = vmatpush1.bf16.msra.mxu0 %v11272_v12  ;;  %11305 = vmatpush1.bf16.msra.mxu1 %v11304_v8  ;;  %v9075_v12 = vld [vmem:[%s17708_s2 + $0x240] sm:$0xff] }
 0x763   :  { %11275 = vmatprep.subr.bf16.mxu0 %v11274_v24  ;;  %11307 = vmatprep.subr.bf16.mxu1 %v11306_v42  ;;  %v9079_v8 = vld [vmem:[%s17708_s2 + $0x260] sm:$0xff]  ;;  %v14891_v24 = vpack.c.bf16 %v9082_v15, %v9078_v3  ;;  %v9077_v42 = vld [vmem:[%s17708_s2 + $0x250] sm:$0xff]  ;;  %v9120_v3 = vld [vmem:[%s17708_s2 + $0x3a8] sm:$0xff] }
 0x764   :  { %v14889_v57 = vpack.c.bf16 %v9079_v8, %v9075_v12  ;;  %v14900_v6 = vpack.c.bf16 %v9081_v56, %v9077_v42  ;;  %v9115_v12 = vld [vmem:[%s17708_s2 + $0x380] sm:$0xff]  ;;  %v15055_v15 = vpack.c.bf16 %v9120_v3, %v9116_v2  ;;  %v9118_v56 = vld [vmem:[%s17708_s2 + $0x398] sm:$0xff] }
 0x765   :  { %v9119_v42 = vld [vmem:[%s17708_s2 + $0x3a0] sm:$0xff]  ;;  %v15067_v28 = vpack.c.bf16 %v9122_v25, %v9118_v56 }
 0x766   :  { %11277 = vmatpush1.bf16.msra.mxu0 %v11276_v38  ;;  %11309 = vmatpush1.bf16.msra.mxu1 %v11308_v39  ;;  %v9083_v38 = vld [vmem:[%s17708_s2 + $0x280] sm:$0xff] }
 0x767   :  { %11279 = vmatprep.subr.bf16.mxu0 %v11278_v55  ;;  %11311 = vmatprep.subr.bf16.mxu1 %v11310_v58  ;;  %v9087_v39 = vld [vmem:[%s17708_s2 + $0x2a0] sm:$0xff]  ;;  %v14927_v55 = vpack.c.bf16 %v9090_v50, %v9086_v36  ;;  %v9085_v58 = vld [vmem:[%s17708_s2 + $0x290] sm:$0xff]  ;;  %v9128_v50 = vld [vmem:[%s17708_s2 + $0x3e8] sm:$0xff] }
 0x768   :  { %v14925_v49 = vpack.c.bf16 %v9087_v39, %v9083_v38  ;;  %v14936_v10 = vpack.c.bf16 %v9089_v61, %v9085_v58  ;;  %v9117_v36 = vld [vmem:[%s17708_s2 + $0x390] sm:$0xff]  ;;  %v9124_v39 = vld [vmem:[%s17708_s2 + $0x3c8] sm:$0xff]  ;;  %v15082_v58 = vpack.c.bf16 %v9119_v42, %v9115_v12 }
 0x769   :  { %v9121_v38 = vld [vmem:[%s17708_s2 + $0x3b0] sm:$0xff]  ;;  %v15088_v9 = vpack.c.bf16 %v9128_v50, %v9124_v39 }
 0x76a   :  { %11281 = vmatpush1.bf16.msra.mxu0 %v11280_v31  ;;  %11313 = vmatpush1.bf16.msra.mxu1 %v11312_v41  ;;  %v9091_v31 = vld [vmem:[%s17708_s2 + $0x2c0] sm:$0xff]  ;;  %v15086_v61 = vpack.c.bf16 %v9121_v38, %v9117_v36 }
 0x76b   :  { %11283 = vmatprep.subr.bf16.mxu0 %v11282_v27  ;;  %11315 = vmatprep.subr.bf16.mxu1 %v11314_v32  ;;  %v9095_v41 = vld [vmem:[%s17708_s2 + $0x2e0] sm:$0xff]  ;;  %v14963_v27 = vpack.c.bf16 %v9098_v48, %v9094_v17  ;;  %v9093_v32 = vld [vmem:[%s17708_s2 + $0x2d0] sm:$0xff]  ;;  %v9130_v17 = vld [vmem:[%s17708_s2 + $0x3f8] sm:$0xff] }
 0x76c   :  { %v14961_v37 = vpack.c.bf16 %v9095_v41, %v9091_v31  ;;  %v14975_v45 = vpack.c.bf16 %v9097_v1, %v9093_v32  ;;  %v9123_v31 = vld [vmem:[%s17708_s2 + $0x3c0] sm:$0xff]  ;;  %v15106_v48 = vpack.c.bf16 %v9130_v17, %v9126_v7  ;;  %v9125_v32 = vld [vmem:[%s17708_s2 + $0x3d0] sm:$0xff] }
 0x76d   :  { %v9127_v41 = vld [vmem:[%s17708_s2 + $0x3e0] sm:$0xff] }
 0x76e   :  { %11285 = vmatpush1.bf16.msra.mxu0 %v11284_v16  ;;  %11317 = vmatpush1.bf16.msra.mxu1 %v11316_v34  ;;  %v14988_v16 = vpack.c.bf16 %v9104_v14, %v9100_v44  ;;  %v14990_v34 = vpack.c.bf16 %v9103_v62, %v9099_v21  ;;  %v15111_v1 = vpack.c.bf16 %v9127_v41, %v9123_v31  ;;  %v9129_v44 = vld [vmem:[%s17708_s2 + $0x3f0] sm:$0xff]  ;;  %v9060_v21 = vld [vmem:[%s17706_s0 + $0xe0] sm:$0xff]  ;;  %v9061_v62 = vld [vmem:[%s17706_s0 + $0xe8] sm:$0xff] }
 0x76f   :  { %11287 = vmatprep.subr.bf16.mxu0 %v11286_v22  ;;  %11319 = vmatprep.subr.bf16.mxu1 %v11318_v23  ;;  %v9106_v22 = vld [vmem:[%s17708_s2 + $0x338] sm:$0xff]  ;;  %v9101_v23 = vld [vmem:[%s17708_s2 + $0x310] sm:$0xff]  ;;  %v15117_v14 = vpack.c.bf16 %v9129_v44, %v9125_v32 }
 0x770   :  { %v15002_v30 = vpack.c.bf16 %v9106_v22, %v9102_v35 }
 0x772   :  { %11289 = vmatpush1.bf16.msra.mxu0 %v11288_v20  ;;  %11321 = vmatpush1.bf16.msra.mxu1 %v11320_v4  ;;  %v9112_v20 = vld [vmem:[%s17708_s2 + $0x368] sm:$0xff]  ;;  %v15014_v4 = vpack.c.bf16 %v9105_v40, %v9101_v23 }
 0x775   :  { %2122 = vmatmul.mubr.f32.vlgmr.msra.gmra.mrb[14].mxu0 %v14176_v46  ;;  %2235 = vmatmul.mubr.f32.vlgmr.msra.gmra.mrb[18].mxu1 %v14176_v46  ;;  %v9068_v46 = vld [vmem:[%s17708_s2 + $0x208] sm:$0xff] }
 0x776   :  { %2127 = vmatprep.mubr.f32.mxu0 %v13785_v0  ;;  %2240 = vmatprep.mubr.f32.mxu1 %v13785_v0 }
 0x779   :  { %2128 = vmatmul.mubr.f32.gmra.mrb[16].mxu0 %v14230_v18  ;;  %2241 = vmatmul.mubr.f32.gmra.mrb[20].mxu1 %v14230_v18  ;;  %v9072_v18 = vld [vmem:[%s17708_s2 + $0x228] sm:$0xff] }
 0x77a   :  { %2133 = vmatprep.mubr.f32.mxu0 %v13785_v0  ;;  %2246 = vmatprep.mubr.f32.mxu1 %v13785_v0 }
 0x77d   :  { %2134 = vmatmul.mubr.f32.gmra.mrb[18].mxu0 %v14354_v5  ;;  %2247 = vmatmul.mubr.f32.gmra.mrb[22].mxu1 %v14354_v5  ;;  %v9070_v5 = vld [vmem:[%s17708_s2 + $0x218] sm:$0xff] }
 0x77e   :  { %2139 = vmatprep.mubr.f32.mxu0 %v13785_v0  ;;  %2252 = vmatprep.mubr.f32.mxu1 %v13785_v0 }
 0x781   :  { %2140 = vmatmul.mubr.f32.gmra.mrb[20].mxu0 %v14594_v33  ;;  %2253 = vmatmul.mubr.f32.gmra.mrb[24].mxu1 %v14594_v33  ;;  %v14842_v33 = vpack.c.bf16 %v9072_v18, %v9068_v46  ;;  %v15016_v46 = vpack.c.bf16 %v9112_v20, %v9108_v13  ;;  %v9107_v18 = vld [vmem:[%s17708_s2 + $0x340] sm:$0xff] }
 0x782   :  { %2145 = vmatprep.mubr.f32.mxu0 %v13785_v0  ;;  %2258 = vmatprep.mubr.f32.mxu1 %v13785_v0 }
 0x783   :  { %11323 = vmatprep.subr.bf16.mxu0 %v14842_v33 }
 0x785   :  { %2146 = vmatmul.mubr.f32.gmra.mrb[22].mxu0 %v14648_v47  ;;  %2259 = vmatmul.mubr.f32.gmra.mrb[26].mxu1 %v14648_v47  ;;  %v9067_v47 = vld [vmem:[%s17708_s2 + $0x200] sm:$0xff] }
 0x786   :  { %2151 = vmatprep.mubr.f32.mxu0 %v13785_v0  ;;  %2264 = vmatprep.mubr.f32.mxu1 %v13785_v0 }
 0x789   :  { %2152 = vmatmul.mubr.f32.gmra.mrb[24].mxu0 %v14702_v43  ;;  %2265 = vmatmul.mubr.f32.gmra.mrb[28].mxu1 %v14702_v43  ;;  %v9071_v43 = vld [vmem:[%s17708_s2 + $0x220] sm:$0xff] }
 0x78a   :  { %2157 = vmatprep.mubr.f32.mxu0 %v13785_v0  ;;  %2270 = vmatprep.mubr.f32.mxu1 %v13785_v0  ;;  %v14853_v51 = vpack.c.bf16 %v9071_v43, %v9067_v47  ;;  %v9110_v47 = vld [vmem:[%s17708_s2 + $0x358] sm:$0xff] }
 0x78b   :  { %v9114_v43 = vld [vmem:[%s17708_s2 + $0x378] sm:$0xff] }
 0x78c   :  { %11325 = vmatpush1.bf16.msra.mxu0 %v14853_v51  ;;  %v15040_v60 = vpack.c.bf16 %v9114_v43, %v9110_v47  ;;  %v9063_v47 = vld [vmem:[%s17706_s0 + $0xf8] sm:$0xff] }
 0x78d   :  { %2158 = vmatmul.mubr.f32.gmra.mrb[26].mxu0 %v14799_v63  ;;  %2271 = vmatmul.mubr.f32.gmra.mrb[30].mxu1 %v14799_v63  ;;  %v9074_v63 = vld [vmem:[%s17708_s2 + $0x238] sm:$0xff] }
 0x78e   :  { %2163 = vmatprep.mubr.f32.mxu0 %v13785_v0  ;;  %2276 = vmatprep.mubr.f32.mxu1 %v13785_v0  ;;  %v14855_v52 = vpack.c.bf16 %v9074_v63, %v9070_v5  ;;  %v9111_v5 = vld [vmem:[%s17708_s2 + $0x360] sm:$0xff]  ;;  %v9109_v63 = vld [vmem:[%s17708_s2 + $0x350] sm:$0xff] }
 0x78f   :  { %11327 = vmatprep.subr.bf16.mxu0 %v14878_v11  ;;  %v15038_v54 = vpack.c.bf16 %v9111_v5, %v9107_v18  ;;  %v15053_v8 = vpack.c.bf16 %v9113_v53, %v9109_v63  ;;  %v9062_v63 = vld [vmem:[%s17706_s0 + $0xf0] sm:$0xff] }
 0x790   :  { %11355 = vmatprep.subr.bf16.mxu1 %v14855_v52  ;;  %11329 = vmatpush1.bf16.msra.mxu0 %v14889_v57 }
 0x791   :  { %11357 = vmatpush1.bf16.msra.mxu1 %v14864_v59  ;;  %11331 = vmatprep.subr.bf16.mxu0 %v14914_v26 }
 0x792   :  { %11359 = vmatprep.subr.bf16.mxu1 %v14891_v24 }
 0x794   :  { %11333 = vmatpush1.bf16.msra.mxu0 %v14925_v49 }
 0x795   :  { %11361 = vmatpush1.bf16.msra.mxu1 %v14900_v6  ;;  %11335 = vmatprep.subr.bf16.mxu0 %v14950_v29 }
 0x796   :  { %11363 = vmatprep.subr.bf16.mxu1 %v14927_v55 }
 0x798   :  { %11337 = vmatpush1.bf16.msra.mxu0 %v14961_v37 }
 0x799   :  { %11365 = vmatpush1.bf16.msra.mxu1 %v14936_v10  ;;  %11339 = vmatprep.subr.bf16.mxu0 %v14988_v16 }
 0x79a   :  { %11367 = vmatprep.subr.bf16.mxu1 %v14963_v27 }
 0x79c   :  { %11341 = vmatpush1.bf16.msra.mxu0 %v14990_v34 }
 0x79d   :  { %11369 = vmatpush1.bf16.msra.mxu1 %v14975_v45  ;;  %11343 = vmatprep.subr.bf16.mxu0 %v15016_v46 }
 0x79e   :  { %11371 = vmatprep.subr.bf16.mxu1 %v15002_v30 }
 0x7a0   :  { %11345 = vmatpush1.bf16.msra.mxu0 %v15038_v54 }
 0x7a1   :  { %11373 = vmatpush1.bf16.msra.mxu1 %v15014_v4  ;;  %11347 = vmatprep.subr.bf16.mxu0 %v15055_v15 }
 0x7a2   :  { %11375 = vmatprep.subr.bf16.mxu1 %v15040_v60 }
 0x7a4   :  { %11349 = vmatpush1.bf16.msra.mxu0 %v15082_v58 }
 0x7a5   :  { %11377 = vmatpush1.bf16.msra.mxu1 %v15053_v8  ;;  %11351 = vmatprep.subr.bf16.mxu0 %v15088_v9 }
 0x7a6   :  { %11379 = vmatprep.subr.bf16.mxu1 %v15067_v28 }
 0x7a8   :  { %11353 = vmatpush1.bf16.msra.mxu0 %v15111_v1 }
 0x7a9   :  { %11381 = vmatpush1.bf16.msra.mxu1 %v15086_v61  ;;  %11387 = vmatprep.subr.bf16.mxu0 %v14842_v33 }
 0x7aa   :  { %11383 = vmatprep.subr.bf16.mxu1 %v15106_v48 }
 0x7ad   :  { %11385 = vmatpush1.bf16.msra.mxu1 %v15117_v14 }
 0x7ae   :  { %11419 = vmatprep.subr.bf16.mxu1 %v14855_v52 }
 0x828   :  { %v1857_v35 = vpop.f32.mrb[12].mxu0  ;;  %v1928_v22 = vpop.f32.mrb[16].mxu1 }
 0x829   :  { %v1933_v23 = vadd.f32 %v9060_v21, %v1857_v35  ;;  %v1859_v40 = vpop.f32.mrb[13].mxu0  ;;  %v1930_v13 = vpop.f32.mrb[17].mxu1  ;;  %v1935_v2 = vadd.f32 %v9062_v63, %v1928_v22  ;;  %v2035_v35 = vld [vmem:[%s17709_s3] sm:$0xf] }
 0x82a   :  { %v1934_v20 = vadd.f32 %v9061_v62, %v1859_v40  ;;  %v1936_v43 = vadd.f32 %v9063_v47, %v1930_v13 }
 0x82b   :  { %v9064_v18 = vmul.f32 -1.442695, %v1933_v23 }
 0x82c   :  { %v9065_v5 = vmul.f32 -1.442695, %v1934_v20  ;;  %v9066_v53 = vmul.f32 -1.442695, %v1936_v43 }
 0x82d   :  { %13326 = vpow2.f32 %v9064_v18 }
 0x82e   :  { %13328 = vpow2.f32 %v9065_v5 }
 0x82f   :  { %13330 = vpow2.f32 %v9066_v53 }
 0x830   :  { %13332 = vtanh.f32 %v1935_v2 }
 0x837   :  { %v13327_v3 = vpop.eup %13326 }
 0x838   :  { %v13329_v12 = vpop.eup %13328  ;;  %v1940_v42 = vadd.f32 1.0, %v13327_v3 }
 0x839   :  { %v1946_v56 = vadd.f32 1.0, %v13329_v12  ;;  %v13331_v25 = vpop.eup %13330 }
 0x83a   :  { %13334 = vrcp.f32 %v1940_v42  ;;  %v13333_v36 = vpop.eup %13332  ;;  %v1953_v7 = vadd.f32 1.0, %v13331_v25 }
 0x83b   :  { %13336 = vrcp.f32 %v1946_v56 }
 0x83c   :  { %13338 = vrcp.f32 %v1953_v7 }
 0x844   :  { %v13335_v38 = vpop.eup %13334 }
 0x845   :  { %v13337_v39 = vpop.eup %13336  ;;  %v1957_v50 = vmul.f32 %v13335_v38, %v13333_v36 }
 0x846   :  { %v1956_v17 = vmul.f32 %v13337_v39, %v14796_v19  ;;  %v13339_v41 = vpop.eup %13338  ;;  %v2037_v19 = vlaneseq }
 0x848   :  { %v1958_v31 = vadd.f32 %v1957_v50, %v1956_v17  ;;  %v2038_v21 = vshrl.u32 %v2037_v19, 7 }
 0x84a   :  { %13340 = vtanh.f32 %v1958_v31  ;;  %v15174_v62 = vsub.s32 0, %v2038_v21  ;;  %v15179_v22 = vsub.s32 1, %v2038_v21  ;;  %v15187_v18 = vsub.s32 3, %v2038_v21 }
 0x84b   :  { %v15194_v12 = vsub.s32 2, %v2038_v21 }
 0x84c   :  { %v15182_v23 = vrot.slane %v2035_v35, %v15174_v62  ;;  %v15185_v40 = vrot.slane %v2035_v35, %v15179_v22  ;;  %v15192_v3 = vrot.slane %v2035_v35, %v15187_v18 }
 0x84d   :  { %v15198_v56 = vrot.slane %v2035_v35, %v15194_v12 }
 0x854   :  { %v13341_v32 = vpop.eup %13340 }
 0x855   :  { %v1960_v44 = vmul.f32 %v13341_v32, %v13339_v41 }
 0x857   :  { %2164 = vmatmul.mubr.f32.gmra.mrb[28].mxu0 %v1960_v44  ;;  %2277 = vmatmul.mubr.f32.gmra.mrb[32].mxu1 %v1960_v44 }
 0x858   :  { %2448 = vmatprep.mubr.f32.mxu0 %v13785_v0  ;;  %2519 = vmatprep.mubr.f32.mxu1 %v13785_v0 }
 0x85b   :  { %2449 = vmatmul.mubr.f32.vlgmr.msra.gmra.mrb[14].mxu0 %v13785_v0  ;;  %2520 = vmatmul.mubr.f32.vlgmr.msra.gmra.mrb[18].mxu1 %v13785_v0 }
 0x85c   :  { %11389 = vmatpush1.bf16.msra.mxu0 %v14853_v51  ;;  %11421 = vmatpush1.bf16.msra.mxu1 %v14864_v59 }
 0x85d   :  { %11391 = vmatprep.subr.bf16.mxu0 %v14878_v11  ;;  %11423 = vmatprep.subr.bf16.mxu1 %v14891_v24 }
 0x85e   :  { %2688 = vmatprep.mubr.f32.mxu0 %v13785_v0  ;;  %2759 = vmatprep.mubr.f32.mxu1 %v13785_v0 }
 0x860   :  { %11393 = vmatpush1.bf16.msra.mxu0 %v14889_v57  ;;  %11425 = vmatpush1.bf16.msra.mxu1 %v14900_v6 }
 0x861   :  { %11395 = vmatprep.subr.bf16.mxu0 %v14914_v26  ;;  %11427 = vmatprep.subr.bf16.mxu1 %v14927_v55 }
 0x864   :  { %11397 = vmatpush1.bf16.msra.mxu0 %v14925_v49  ;;  %11429 = vmatpush1.bf16.msra.mxu1 %v14936_v10 }
 0x865   :  { %11399 = vmatprep.subr.bf16.mxu0 %v14950_v29  ;;  %11431 = vmatprep.subr.bf16.mxu1 %v14963_v27 }
 0x868   :  { %11401 = vmatpush1.bf16.msra.mxu0 %v14961_v37  ;;  %11433 = vmatpush1.bf16.msra.mxu1 %v14975_v45 }
 0x869   :  { %11403 = vmatprep.subr.bf16.mxu0 %v14988_v16  ;;  %11435 = vmatprep.subr.bf16.mxu1 %v15002_v30 }
 0x86c   :  { %11405 = vmatpush1.bf16.msra.mxu0 %v14990_v34  ;;  %11437 = vmatpush1.bf16.msra.mxu1 %v15014_v4 }
 0x86d   :  { %11407 = vmatprep.subr.bf16.mxu0 %v15016_v46  ;;  %11439 = vmatprep.subr.bf16.mxu1 %v15040_v60 }
 0x870   :  { %11409 = vmatpush1.bf16.msra.mxu0 %v15038_v54  ;;  %11441 = vmatpush1.bf16.msra.mxu1 %v15053_v8 }
 0x871   :  { %11411 = vmatprep.subr.bf16.mxu0 %v15055_v15  ;;  %11443 = vmatprep.subr.bf16.mxu1 %v15067_v28 }
 0x874   :  { %11413 = vmatpush1.bf16.msra.mxu0 %v15082_v58  ;;  %11445 = vmatpush1.bf16.msra.mxu1 %v15086_v61 }
 0x875   :  { %11415 = vmatprep.subr.bf16.mxu0 %v15088_v9  ;;  %11447 = vmatprep.subr.bf16.mxu1 %v15106_v48 }
 0x878   :  { %11417 = vmatpush1.bf16.msra.mxu0 %v15111_v1  ;;  %11449 = vmatpush1.bf16.msra.mxu1 %v15117_v14 }
 0x879   :  { %11451 = vmatprep.subr.bf16.mxu0 %v14842_v33  ;;  %11483 = vmatprep.subr.bf16.mxu1 %v14855_v52 }
 0x92e   :  { %v2450_v13 = vpop.f32.mrb[14].mxu0  ;;  %v2521_v20 = vpop.f32.mrb[18].mxu1 }
 0x92f   :  { %v13018_v5 = vadd.f32 %v2450_v13, %v15182_v23  ;;  %v2452_v47 = vpop.f32.mrb[15].mxu0  ;;  %v2523_v43 = vpop.f32.mrb[19].mxu1  ;;  %v13034_v36 = vadd.f32 %v2521_v20, %v15198_v56 }
 0x930   :  { %v13019_v63 = vadd.f32 %v2452_v47, %v15185_v40  ;;  %v13035_v42 = vadd.f32 %v2523_v43, %v15192_v3 }
 0x931   :  { %v9131_v53 = vmul.f32 -1.442695, %v13018_v5 }
 0x932   :  { %v9132_v2 = vmul.f32 -1.442695, %v13019_v63  ;;  %v9133_v25 = vmul.f32 -1.442695, %v13035_v42 }
 0x933   :  { %13342 = vpow2.f32 %v9131_v53 }
 0x934   :  { %13344 = vpow2.f32 %v9132_v2 }
 0x935   :  { %13346 = vpow2.f32 %v9133_v25 }
 0x936   :  { %13348 = vtanh.f32 %v13034_v36 }
 0x93d   :  { %v13343_v38 = vpop.eup %13342 }
 0x93e   :  { %v13345_v39 = vpop.eup %13344  ;;  %v2533_v50 = vadd.f32 1.0, %v13343_v38 }
 0x93f   :  { %v2539_v7 = vadd.f32 1.0, %v13345_v39  ;;  %v13347_v17 = vpop.eup %13346 }
 0x940   :  { %13350 = vrcp.f32 %v2533_v50  ;;  %v13349_v31 = vpop.eup %13348  ;;  %v2546_v19 = vadd.f32 1.0, %v13347_v17 }
 0x941   :  { %13352 = vrcp.f32 %v2539_v7 }
 0x942   :  { %13354 = vrcp.f32 %v2546_v19 }
 0x94a   :  { %v13351_v41 = vpop.eup %13350 }
 0x94b   :  { %v13353_v32 = vpop.eup %13352  ;;  %v2550_v44 = vmul.f32 %v13351_v41, %v13349_v31 }
 0x94c   :  { %v2549_v21 = vmul.f32 0.0, %v13353_v32  ;;  %v13355_v13 = vpop.eup %13354 }
 0x94e   :  { %v15201_v35 = vadd.f32 %v2550_v44, %v2549_v21 }
 0x950   :  { %13356 = vtanh.f32 %v15201_v35 }
 0x95a   :  { %v13357_v20 = vpop.eup %13356 }
 0x95b   :  { %v15204_v5 = vmul.f32 %v13357_v20, %v13355_v13 }
 0x95d   :  { %2689 = vmatmul.mubr.f32.vlgmr.msra.gmra.mrb[16].mxu0 %v15204_v5  ;;  %2760 = vmatmul.mubr.f32.vlgmr.msra.gmra.mrb[20].mxu1 %v15204_v5 }
 0x95e   :  { %11453 = vmatpush1.bf16.msra.mxu0 %v14853_v51  ;;  %11485 = vmatpush1.bf16.msra.mxu1 %v14864_v59 }
 0x95f   :  { %11455 = vmatprep.subr.bf16.mxu0 %v14878_v11  ;;  %11487 = vmatprep.subr.bf16.mxu1 %v14891_v24 }
 0x960   :  { %2928 = vmatprep.mubr.f32.mxu0 %v13785_v0  ;;  %2999 = vmatprep.mubr.f32.mxu1 %v13785_v0 }
 0x962   :  { %11457 = vmatpush1.bf16.msra.mxu0 %v14889_v57  ;;  %11489 = vmatpush1.bf16.msra.mxu1 %v14900_v6 }
 0x963   :  { %11459 = vmatprep.subr.bf16.mxu0 %v14914_v26  ;;  %11491 = vmatprep.subr.bf16.mxu1 %v14927_v55 }
 0x966   :  { %11461 = vmatpush1.bf16.msra.mxu0 %v14925_v49  ;;  %11493 = vmatpush1.bf16.msra.mxu1 %v14936_v10 }
 0x967   :  { %11463 = vmatprep.subr.bf16.mxu0 %v14950_v29  ;;  %11495 = vmatprep.subr.bf16.mxu1 %v14963_v27 }
 0x96a   :  { %11465 = vmatpush1.bf16.msra.mxu0 %v14961_v37  ;;  %11497 = vmatpush1.bf16.msra.mxu1 %v14975_v45 }
 0x96b   :  { %11467 = vmatprep.subr.bf16.mxu0 %v14988_v16  ;;  %11499 = vmatprep.subr.bf16.mxu1 %v15002_v30 }
 0x96e   :  { %11469 = vmatpush1.bf16.msra.mxu0 %v14990_v34  ;;  %11501 = vmatpush1.bf16.msra.mxu1 %v15014_v4 }
 0x96f   :  { %11471 = vmatprep.subr.bf16.mxu0 %v15016_v46  ;;  %11503 = vmatprep.subr.bf16.mxu1 %v15040_v60 }
 0x972   :  { %11473 = vmatpush1.bf16.msra.mxu0 %v15038_v54  ;;  %11505 = vmatpush1.bf16.msra.mxu1 %v15053_v8 }
 0x973   :  { %11475 = vmatprep.subr.bf16.mxu0 %v15055_v15  ;;  %11507 = vmatprep.subr.bf16.mxu1 %v15067_v28 }
 0x976   :  { %11477 = vmatpush1.bf16.msra.mxu0 %v15082_v58  ;;  %11509 = vmatpush1.bf16.msra.mxu1 %v15086_v61 }
 0x977   :  { %11479 = vmatprep.subr.bf16.mxu0 %v15088_v9  ;;  %11511 = vmatprep.subr.bf16.mxu1 %v15106_v48 }
 0x97a   :  { %11481 = vmatpush1.bf16.msra.mxu0 %v15111_v1  ;;  %11513 = vmatpush1.bf16.msra.mxu1 %v15117_v14 }
 0x97b   :  { %11515 = vmatprep.subr.bf16.mxu0 %v14842_v33  ;;  %11547 = vmatprep.subr.bf16.mxu1 %v14855_v52 }
 0xa30   :  { %v2690_v47 = vpop.f32.mrb[16].mxu0  ;;  %v2761_v43 = vpop.f32.mrb[20].mxu1 }
 0xa31   :  { %v13020_v63 = vadd.f32 %v2690_v47, %v15182_v23  ;;  %v2692_v53 = vpop.f32.mrb[17].mxu0  ;;  %v2763_v2 = vpop.f32.mrb[21].mxu1  ;;  %v13036_v50 = vadd.f32 %v2761_v43, %v15198_v56 }
 0xa32   :  { %v13021_v42 = vadd.f32 %v2692_v53, %v15185_v40  ;;  %v13037_v38 = vadd.f32 %v2763_v2, %v15192_v3  ;;  %v9335_v53 = vld [vmem:[%s17708_s2 + $0x200] sm:$0xff] }
 0xa33   :  { %v9198_v25 = vmul.f32 -1.442695, %v13020_v63  ;;  %v9339_v2 = vld [vmem:[%s17708_s2 + $0x220] sm:$0xff] }
 0xa34   :  { %v9199_v36 = vmul.f32 -1.442695, %v13021_v42  ;;  %v9200_v39 = vmul.f32 -1.442695, %v13037_v38  ;;  %v9341_v38 = vld [vmem:[%s17708_s2 + $0x230] sm:$0xff] }
 0xa35   :  { %13358 = vpow2.f32 %v9198_v25  ;;  %v15322_v25 = vpack.c.bf16 %v9339_v2, %v9335_v53 }
 0xa36   :  { %13360 = vpow2.f32 %v9199_v36  ;;  %v9337_v36 = vld [vmem:[%s17708_s2 + $0x210] sm:$0xff] }
 0xa37   :  { %13362 = vpow2.f32 %v9200_v39  ;;  %v15331_v39 = vpack.c.bf16 %v9341_v38, %v9337_v36  ;;  %v9369_v36 = vld [vmem:[%s17708_s2 + $0x310] sm:$0xff] }
 0xa38   :  { %13364 = vtanh.f32 %v13036_v50  ;;  %v9344_v50 = vld [vmem:[%s17708_s2 + $0x248] sm:$0xff]  ;;  %v9373_v38 = vld [vmem:[%s17708_s2 + $0x330] sm:$0xff] }
 0xa3f   :  { %v13359_v33 = vpop.eup %13358 }
 0xa40   :  { %v13361_v7 = vpop.eup %13360  ;;  %v2773_v52 = vadd.f32 1.0, %v13359_v33  ;;  %v9348_v33 = vld [vmem:[%s17708_s2 + $0x268] sm:$0xff] }
 0xa41   :  { %v2779_v17 = vadd.f32 1.0, %v13361_v7  ;;  %v13363_v31 = vpop.eup %13362  ;;  %v9346_v7 = vld [vmem:[%s17708_s2 + $0x258] sm:$0xff] }
 0xa42   :  { %13366 = vrcp.f32 %v2773_v52  ;;  %v13365_v41 = vpop.eup %13364  ;;  %v2786_v21 = vadd.f32 1.0, %v13363_v31  ;;  %v15345_v52 = vpack.c.bf16 %v9348_v33, %v9344_v50  ;;  %v9343_v31 = vld [vmem:[%s17708_s2 + $0x240] sm:$0xff]  ;;  %v15475_v50 = vpack.c.bf16 %v9373_v38, %v9369_v36  ;;  %v9376_v33 = vld [vmem:[%s17708_s2 + $0x348] sm:$0xff] }
 0xa43   :  { %13368 = vrcp.f32 %v2779_v17  ;;  %v9350_v17 = vld [vmem:[%s17708_s2 + $0x278] sm:$0xff]  ;;  %v9391_v36 = vld [vmem:[%s17708_s2 + $0x3c0] sm:$0xff] }
 0xa44   :  { %13370 = vrcp.f32 %v2786_v21  ;;  %v9349_v21 = vld [vmem:[%s17708_s2 + $0x270] sm:$0xff] }
 0xa4c   :  { %v13367_v32 = vpop.eup %13366 }
 0xa4d   :  { %v13369_v44 = vpop.eup %13368  ;;  %v2790_v19 = vmul.f32 %v13367_v32, %v13365_v41  ;;  %v9347_v41 = vld [vmem:[%s17708_s2 + $0x260] sm:$0xff]  ;;  %v15356_v32 = vpack.c.bf16 %v9350_v17, %v9346_v7  ;;  %v9380_v7 = vld [vmem:[%s17708_s2 + $0x368] sm:$0xff]  ;;  %v9378_v17 = vld [vmem:[%s17708_s2 + $0x358] sm:$0xff] }
 0xa4e   :  { %v2789_v13 = vmul.f32 %v13369_v44, %v15201_v35  ;;  %v13371_v47 = vpop.eup %13370  ;;  %v9342_v35 = vld [vmem:[%s17708_s2 + $0x238] sm:$0xff]  ;;  %v15358_v44 = vpack.c.bf16 %v9347_v41, %v9343_v31  ;;  %v15488_v31 = vpack.c.bf16 %v9380_v7, %v9376_v33  ;;  %v9395_v33 = vld [vmem:[%s17708_s2 + $0x3e0] sm:$0xff]  ;;  %v9393_v7 = vld [vmem:[%s17708_s2 + $0x3d0] sm:$0xff] }
 0xa4f   :  { %v9382_v41 = vld [vmem:[%s17708_s2 + $0x378] sm:$0xff] }
 0xa50   :  { %v15247_v20 = vadd.f32 %v2790_v19, %v2789_v13  ;;  %v9345_v19 = vld [vmem:[%s17708_s2 + $0x250] sm:$0xff] }
 0xa51   :  { %v15367_v13 = vpack.c.bf16 %v9349_v21, %v9345_v19  ;;  %v9375_v19 = vld [vmem:[%s17708_s2 + $0x340] sm:$0xff] }
 0xa52   :  { %13372 = vtanh.f32 %v15247_v20  ;;  %v9379_v21 = vld [vmem:[%s17708_s2 + $0x360] sm:$0xff] }
 0xa5c   :  { %v13373_v43 = vpop.eup %13372 }
 0xa5d   :  { %v15250_v63 = vmul.f32 %v13373_v43, %v13371_v47  ;;  %v9356_v47 = vld [vmem:[%s17708_s2 + $0x2a8] sm:$0xff]  ;;  %v9354_v43 = vld [vmem:[%s17708_s2 + $0x298] sm:$0xff] }
 0xa5f   :  { %2929 = vmatmul.mubr.f32.vlgmr.msra.gmra.mrb[18].mxu0 %v15250_v63  ;;  %3000 = vmatmul.mubr.f32.vlgmr.msra.gmra.mrb[22].mxu1 %v15250_v63 }
 0xa60   :  { %11517 = vmatpush1.bf16.msra.mxu0 %v14853_v51  ;;  %11549 = vmatpush1.bf16.msra.mxu1 %v14864_v59 }
 0xa61   :  { %11519 = vmatprep.subr.bf16.mxu0 %v14878_v11  ;;  %11551 = vmatprep.subr.bf16.mxu1 %v14891_v24 }
 0xa62   :  { %3168 = vmatprep.mubr.f32.mxu0 %v13785_v0  ;;  %3239 = vmatprep.mubr.f32.mxu1 %v13785_v0 }
 0xa64   :  { %11521 = vmatpush1.bf16.msra.mxu0 %v14889_v57  ;;  %11553 = vmatpush1.bf16.msra.mxu1 %v14900_v6 }
 0xa65   :  { %11523 = vmatprep.subr.bf16.mxu0 %v14914_v26  ;;  %11555 = vmatprep.subr.bf16.mxu1 %v14927_v55 }
 0xa68   :  { %11525 = vmatpush1.bf16.msra.mxu0 %v14925_v49  ;;  %11557 = vmatpush1.bf16.msra.mxu1 %v14936_v10 }
 0xa69   :  { %11527 = vmatprep.subr.bf16.mxu0 %v14950_v29  ;;  %11559 = vmatprep.subr.bf16.mxu1 %v14963_v27 }
 0xa6c   :  { %11529 = vmatpush1.bf16.msra.mxu0 %v14961_v37  ;;  %11561 = vmatpush1.bf16.msra.mxu1 %v14975_v45 }
 0xa6d   :  { %11531 = vmatprep.subr.bf16.mxu0 %v14988_v16  ;;  %11563 = vmatprep.subr.bf16.mxu1 %v15002_v30 }
 0xa70   :  { %11533 = vmatpush1.bf16.msra.mxu0 %v14990_v34  ;;  %11565 = vmatpush1.bf16.msra.mxu1 %v15014_v4 }
 0xa71   :  { %11535 = vmatprep.subr.bf16.mxu0 %v15016_v46  ;;  %11567 = vmatprep.subr.bf16.mxu1 %v15040_v60 }
 0xa74   :  { %11537 = vmatpush1.bf16.msra.mxu0 %v15038_v54  ;;  %11569 = vmatpush1.bf16.msra.mxu1 %v15053_v8 }
 0xa75   :  { %11539 = vmatprep.subr.bf16.mxu0 %v15055_v15  ;;  %11571 = vmatprep.subr.bf16.mxu1 %v15067_v28 }
 0xa78   :  { %11541 = vmatpush1.bf16.msra.mxu0 %v15082_v58  ;;  %11573 = vmatpush1.bf16.msra.mxu1 %v15086_v61 }
 0xa79   :  { %11543 = vmatprep.subr.bf16.mxu0 %v15088_v9  ;;  %11575 = vmatprep.subr.bf16.mxu1 %v15106_v48  ;;  %v9336_v9 = vld [vmem:[%s17708_s2 + $0x208] sm:$0xff] }
 0xa7a   :  { %v9340_v48 = vld [vmem:[%s17708_s2 + $0x228] sm:$0xff] }
 0xa7c   :  { %11545 = vmatpush1.bf16.msra.mxu0 %v15111_v1  ;;  %11577 = vmatpush1.bf16.msra.mxu1 %v15117_v14  ;;  %v9338_v1 = vld [vmem:[%s17708_s2 + $0x218] sm:$0xff]  ;;  %v15309_v14 = vpack.c.bf16 %v9340_v48, %v9336_v9 }
 0xa7d   :  { %v15320_v42 = vpack.c.bf16 %v9342_v35, %v9338_v1  ;;  %v9374_v48 = vld [vmem:[%s17708_s2 + $0x338] sm:$0xff]  ;;  %v9367_v1 = vld [vmem:[%s17708_s2 + $0x300] sm:$0xff] }
 0xa7e   :  { %11579 = vmatprep.subr.bf16.mxu0 %v15309_v14  ;;  %v9371_v35 = vld [vmem:[%s17708_s2 + $0x320] sm:$0xff] }
 0xa7f   :  { %11611 = vmatprep.subr.bf16.mxu1 %v15320_v42  ;;  %v15466_v2 = vpack.c.bf16 %v9371_v35, %v9367_v1  ;;  %v9394_v1 = vld [vmem:[%s17708_s2 + $0x3d8] sm:$0xff] }
 0xa80   :  { %v9398_v35 = vld [vmem:[%s17708_s2 + $0x3f8] sm:$0xff] }
 0xa81   :  { %v15567_v38 = vpack.c.bf16 %v9398_v35, %v9394_v1 }
 0xb32   :  { %v2930_v51 = vpop.f32.mrb[18].mxu0  ;;  %v3001_v59 = vpop.f32.mrb[22].mxu1 }
 0xb33   :  { %v13022_v11 = vadd.f32 %v2930_v51, %v15182_v23  ;;  %v2932_v57 = vpop.f32.mrb[19].mxu0  ;;  %v3003_v24 = vpop.f32.mrb[23].mxu1  ;;  %v13038_v29 = vadd.f32 %v3001_v59, %v15198_v56  ;;  %v9358_v59 = vld [vmem:[%s17708_s2 + $0x2b8] sm:$0xff] }
 0xb34   :  { %v13023_v6 = vadd.f32 %v2932_v57, %v15185_v40  ;;  %v13039_v55 = vadd.f32 %v3003_v24, %v15192_v3  ;;  %v9355_v57 = vld [vmem:[%s17708_s2 + $0x2a0] sm:$0xff]  ;;  %v15392_v24 = vpack.c.bf16 %v9358_v59, %v9354_v43  ;;  %v9377_v43 = vld [vmem:[%s17708_s2 + $0x350] sm:$0xff] }
 0xb35   :  { %v9265_v26 = vmul.f32 -1.442695, %v13022_v11  ;;  %v9351_v11 = vld [vmem:[%s17708_s2 + $0x280] sm:$0xff]  ;;  %v9381_v59 = vld [vmem:[%s17708_s2 + $0x370] sm:$0xff] }
 0xb36   :  { %v9266_v49 = vmul.f32 -1.442695, %v13023_v6  ;;  %v9267_v10 = vmul.f32 -1.442695, %v13039_v55  ;;  %v15394_v6 = vpack.c.bf16 %v9355_v57, %v9351_v11  ;;  %v9384_v11 = vld [vmem:[%s17708_s2 + $0x388] sm:$0xff]  ;;  %v15514_v57 = vpack.c.bf16 %v9381_v59, %v9377_v43 }
 0xb37   :  { %13374 = vpow2.f32 %v9265_v26  ;;  %v9353_v26 = vld [vmem:[%s17708_s2 + $0x290] sm:$0xff] }
 0xb38   :  { %13376 = vpow2.f32 %v9266_v49  ;;  %v9357_v49 = vld [vmem:[%s17708_s2 + $0x2b0] sm:$0xff] }
 0xb39   :  { %13378 = vpow2.f32 %v9267_v10  ;;  %v15403_v55 = vpack.c.bf16 %v9357_v49, %v9353_v26  ;;  %v9360_v10 = vld [vmem:[%s17708_s2 + $0x2c8] sm:$0xff]  ;;  %v9386_v49 = vld [vmem:[%s17708_s2 + $0x398] sm:$0xff] }
 0xb3a   :  { %13380 = vtanh.f32 %v13038_v29  ;;  %v9364_v29 = vld [vmem:[%s17708_s2 + $0x2e8] sm:$0xff] }
 0xb3b   :  { %v9388_v26 = vld [vmem:[%s17708_s2 + $0x3a8] sm:$0xff] }
 0xb41   :  { %v13375_v37 = vpop.eup %13374 }
 0xb42   :  { %v13377_v27 = vpop.eup %13376  ;;  %v3013_v45 = vadd.f32 1.0, %v13375_v37  ;;  %v9362_v37 = vld [vmem:[%s17708_s2 + $0x2d8] sm:$0xff] }
 0xb43   :  { %v3019_v16 = vadd.f32 1.0, %v13377_v27  ;;  %v13379_v34 = vpop.eup %13378  ;;  %v15417_v27 = vpack.c.bf16 %v9364_v29, %v9360_v10  ;;  %v9390_v10 = vld [vmem:[%s17708_s2 + $0x3b8] sm:$0xff]  ;;  %v15526_v29 = vpack.c.bf16 %v9388_v26, %v9384_v11 }
 0xb44   :  { %13382 = vrcp.f32 %v3013_v45  ;;  %v13381_v30 = vpop.eup %13380  ;;  %v3026_v60 = vadd.f32 1.0, %v13379_v34  ;;  %v9366_v45 = vld [vmem:[%s17708_s2 + $0x2f8] sm:$0xff]  ;;  %v9363_v34 = vld [vmem:[%s17708_s2 + $0x2e0] sm:$0xff] }
 0xb45   :  { %13384 = vrcp.f32 %v3019_v16  ;;  %v9359_v16 = vld [vmem:[%s17708_s2 + $0x2c0] sm:$0xff] }
 0xb46   :  { %13386 = vrcp.f32 %v3026_v60 }
 0xb4e   :  { %v13383_v4 = vpop.eup %13382 }
 0xb4f   :  { %v13385_v46 = vpop.eup %13384  ;;  %v3030_v54 = vmul.f32 %v13383_v4, %v13381_v30  ;;  %v15428_v30 = vpack.c.bf16 %v9366_v45, %v9362_v37  ;;  %v15430_v4 = vpack.c.bf16 %v9363_v34, %v9359_v16  ;;  %v15528_v37 = vpack.c.bf16 %v9390_v10, %v9386_v49  ;;  %v9383_v45 = vld [vmem:[%s17708_s2 + $0x380] sm:$0xff]  ;;  %v9385_v34 = vld [vmem:[%s17708_s2 + $0x390] sm:$0xff] }
 0xb50   :  { %v3029_v8 = vmul.f32 %v13385_v46, %v15247_v20  ;;  %v13387_v28 = vpop.eup %13386  ;;  %v9352_v20 = vld [vmem:[%s17708_s2 + $0x288] sm:$0xff]  ;;  %v9361_v46 = vld [vmem:[%s17708_s2 + $0x2d0] sm:$0xff]  ;;  %v9387_v16 = vld [vmem:[%s17708_s2 + $0x3a0] sm:$0xff] }
 0xb51   :  { %v15381_v51 = vpack.c.bf16 %v9356_v47, %v9352_v20  ;;  %v15500_v20 = vpack.c.bf16 %v9382_v41, %v9378_v17  ;;  %v15502_v47 = vpack.c.bf16 %v9379_v21, %v9375_v19  ;;  %v9397_v17 = vld [vmem:[%s17708_s2 + $0x3f0] sm:$0xff]  ;;  %v15579_v41 = vpack.c.bf16 %v9395_v33, %v9391_v36 }
 0xb52   :  { %v15291_v15 = vadd.f32 %v3030_v54, %v3029_v8  ;;  %v9365_v54 = vld [vmem:[%s17708_s2 + $0x2f0] sm:$0xff]  ;;  %v9368_v8 = vld [vmem:[%s17708_s2 + $0x308] sm:$0xff]  ;;  %v15583_v19 = vpack.c.bf16 %v9397_v17, %v9393_v7 }
 0xb53   :  { %v15439_v60 = vpack.c.bf16 %v9365_v54, %v9361_v46  ;;  %v15540_v46 = vpack.c.bf16 %v9387_v16, %v9383_v45  ;;  %v9389_v54 = vld [vmem:[%s17708_s2 + $0x3b0] sm:$0xff] }
 0xb54   :  { %13388 = vtanh.f32 %v15291_v15 }
 0xb5e   :  { %v13389_v58 = vpop.eup %13388 }
 0xb5f   :  { %v15294_v61 = vmul.f32 %v13389_v58, %v13387_v28  ;;  %v9372_v28 = vld [vmem:[%s17708_s2 + $0x328] sm:$0xff]  ;;  %v9370_v58 = vld [vmem:[%s17708_s2 + $0x318] sm:$0xff] }
 0xb60   :  { %v15453_v9 = vpack.c.bf16 %v9372_v28, %v9368_v8  ;;  %v15464_v53 = vpack.c.bf16 %v9374_v48, %v9370_v58  ;;  %v9392_v8 = vld [vmem:[%s17708_s2 + $0x3c8] sm:$0xff]  ;;  %v15553_v58 = vpack.c.bf16 %v9389_v54, %v9385_v34 }
 0xb61   :  { %3169 = vmatmul.mubr.f32.vlgmr.msra.gmra.mrb[20].mxu0 %v15294_v61  ;;  %3240 = vmatmul.mubr.f32.vlgmr.msra.gmra.mrb[24].mxu1 %v15294_v61  ;;  %v9396_v28 = vld [vmem:[%s17708_s2 + $0x3e8] sm:$0xff] }
 0xb62   :  { %3408 = vmatprep.mubr.f32.mxu0 %v13785_v0  ;;  %3479 = vmatprep.mubr.f32.mxu1 %v13785_v0  ;;  %v15555_v48 = vpack.c.bf16 %v9396_v28, %v9392_v8 }
 0xb63   :  { %11581 = vmatpush1.bf16.msra.mxu0 %v15322_v25  ;;  %11613 = vmatpush1.bf16.msra.mxu1 %v15331_v39 }
 0xb64   :  { %11583 = vmatprep.subr.bf16.mxu0 %v15345_v52  ;;  %11615 = vmatprep.subr.bf16.mxu1 %v15356_v32 }
 0xb67   :  { %11585 = vmatpush1.bf16.msra.mxu0 %v15358_v44  ;;  %11617 = vmatpush1.bf16.msra.mxu1 %v15367_v13 }
 0xb68   :  { %11587 = vmatprep.subr.bf16.mxu0 %v15381_v51  ;;  %11619 = vmatprep.subr.bf16.mxu1 %v15392_v24 }
 0xb6b   :  { %11589 = vmatpush1.bf16.msra.mxu0 %v15394_v6  ;;  %11621 = vmatpush1.bf16.msra.mxu1 %v15403_v55 }
 0xb6c   :  { %11591 = vmatprep.subr.bf16.mxu0 %v15417_v27  ;;  %11623 = vmatprep.subr.bf16.mxu1 %v15428_v30 }
 0xb6f   :  { %11593 = vmatpush1.bf16.msra.mxu0 %v15430_v4  ;;  %11625 = vmatpush1.bf16.msra.mxu1 %v15439_v60 }
 0xb70   :  { %11595 = vmatprep.subr.bf16.mxu0 %v15453_v9  ;;  %11627 = vmatprep.subr.bf16.mxu1 %v15464_v53 }
 0xb73   :  { %11597 = vmatpush1.bf16.msra.mxu0 %v15466_v2  ;;  %11629 = vmatpush1.bf16.msra.mxu1 %v15475_v50 }
 0xb74   :  { %11599 = vmatprep.subr.bf16.mxu0 %v15488_v31  ;;  %11631 = vmatprep.subr.bf16.mxu1 %v15500_v20 }
 0xb77   :  { %11601 = vmatpush1.bf16.msra.mxu0 %v15502_v47  ;;  %11633 = vmatpush1.bf16.msra.mxu1 %v15514_v57 }
 0xb78   :  { %11603 = vmatprep.subr.bf16.mxu0 %v15526_v29  ;;  %11635 = vmatprep.subr.bf16.mxu1 %v15528_v37 }
 0xb7b   :  { %11605 = vmatpush1.bf16.msra.mxu0 %v15540_v46  ;;  %11637 = vmatpush1.bf16.msra.mxu1 %v15553_v58 }
 0xb7c   :  { %11607 = vmatprep.subr.bf16.mxu0 %v15555_v48  ;;  %11639 = vmatprep.subr.bf16.mxu1 %v15567_v38 }
 0xb7f   :  { %11609 = vmatpush1.bf16.msra.mxu0 %v15579_v41  ;;  %11641 = vmatpush1.bf16.msra.mxu1 %v15583_v19 }
 0xb80   :  { %11643 = vmatprep.subr.bf16.mxu0 %v15309_v14  ;;  %11675 = vmatprep.subr.bf16.mxu1 %v15320_v42 }
 0xc34   :  { %v3170_v21 = vpop.f32.mrb[20].mxu0  ;;  %v3241_v43 = vpop.f32.mrb[24].mxu1 }
 0xc35   :  { %v13024_v59 = vadd.f32 %v3170_v21, %v15182_v23  ;;  %v3172_v11 = vpop.f32.mrb[21].mxu0  ;;  %v3243_v26 = vpop.f32.mrb[25].mxu1  ;;  %v13040_v54 = vadd.f32 %v3241_v43, %v15198_v56 }
 0xc36   :  { %v13025_v49 = vadd.f32 %v3172_v11, %v15185_v40  ;;  %v13041_v16 = vadd.f32 %v3243_v26, %v15192_v3 }
 0xc37   :  { %v9332_v10 = vmul.f32 -1.442695, %v13024_v59 }
 0xc38   :  { %v9333_v45 = vmul.f32 -1.442695, %v13025_v49  ;;  %v9334_v34 = vmul.f32 -1.442695, %v13041_v16 }
 0xc39   :  { %13390 = vpow2.f32 %v9332_v10 }
 0xc3a   :  { %13392 = vpow2.f32 %v9333_v45 }
 0xc3b   :  { %13394 = vpow2.f32 %v9334_v34 }
 0xc3c   :  { %13396 = vtanh.f32 %v13040_v54 }
 0xc43   :  { %v13391_v8 = vpop.eup %13390 }
 0xc44   :  { %v13393_v28 = vpop.eup %13392  ;;  %v3253_v1 = vadd.f32 1.0, %v13391_v8 }
 0xc45   :  { %v3259_v35 = vadd.f32 1.0, %v13393_v28  ;;  %v13395_v36 = vpop.eup %13394 }
 0xc46   :  { %13398 = vrcp.f32 %v3253_v1  ;;  %v13397_v33 = vpop.eup %13396  ;;  %v3266_v59 = vadd.f32 1.0, %v13395_v36 }
 0xc47   :  { %13400 = vrcp.f32 %v3259_v35 }
 0xc48   :  { %13402 = vrcp.f32 %v3266_v59 }
 0xc50   :  { %v13399_v7 = vpop.eup %13398 }
 0xc51   :  { %v13401_v17 = vpop.eup %13400  ;;  %v3270_v21 = vmul.f32 %v13399_v7, %v13397_v33 }
 0xc52   :  { %v3269_v11 = vmul.f32 %v13401_v17, %v15291_v15  ;;  %v13403_v43 = vpop.eup %13402 }
 0xc54   :  { %v15595_v26 = vadd.f32 %v3270_v21, %v3269_v11 }
 0xc56   :  { %13404 = vtanh.f32 %v15595_v26 }
 0xc60   :  { %v13405_v49 = vpop.eup %13404 }
 0xc61   :  { %v15598_v10 = vmul.f32 %v13405_v49, %v13403_v43 }
 0xc63   :  { %3409 = vmatmul.mubr.f32.vlgmr.msra.gmra.mrb[22].mxu0 %v15598_v10  ;;  %3480 = vmatmul.mubr.f32.vlgmr.msra.gmra.mrb[26].mxu1 %v15598_v10 }
 0xc64   :  { %11645 = vmatpush1.bf16.msra.mxu0 %v15322_v25  ;;  %11677 = vmatpush1.bf16.msra.mxu1 %v15331_v39 }
 0xc65   :  { %11647 = vmatprep.subr.bf16.mxu0 %v15345_v52  ;;  %11679 = vmatprep.subr.bf16.mxu1 %v15356_v32 }
 0xc66   :  { %3648 = vmatprep.mubr.f32.mxu0 %v13785_v0  ;;  %3719 = vmatprep.mubr.f32.mxu1 %v13785_v0 }
 0xc68   :  { %11649 = vmatpush1.bf16.msra.mxu0 %v15358_v44  ;;  %11681 = vmatpush1.bf16.msra.mxu1 %v15367_v13 }
 0xc69   :  { %11651 = vmatprep.subr.bf16.mxu0 %v15381_v51  ;;  %11683 = vmatprep.subr.bf16.mxu1 %v15392_v24 }
 0xc6c   :  { %11653 = vmatpush1.bf16.msra.mxu0 %v15394_v6  ;;  %11685 = vmatpush1.bf16.msra.mxu1 %v15403_v55 }
 0xc6d   :  { %11655 = vmatprep.subr.bf16.mxu0 %v15417_v27  ;;  %11687 = vmatprep.subr.bf16.mxu1 %v15428_v30 }
 0xc70   :  { %11657 = vmatpush1.bf16.msra.mxu0 %v15430_v4  ;;  %11689 = vmatpush1.bf16.msra.mxu1 %v15439_v60 }
 0xc71   :  { %11659 = vmatprep.subr.bf16.mxu0 %v15453_v9  ;;  %11691 = vmatprep.subr.bf16.mxu1 %v15464_v53 }
 0xc74   :  { %11661 = vmatpush1.bf16.msra.mxu0 %v15466_v2  ;;  %11693 = vmatpush1.bf16.msra.mxu1 %v15475_v50 }
 0xc75   :  { %11663 = vmatprep.subr.bf16.mxu0 %v15488_v31  ;;  %11695 = vmatprep.subr.bf16.mxu1 %v15500_v20 }
 0xc78   :  { %11665 = vmatpush1.bf16.msra.mxu0 %v15502_v47  ;;  %11697 = vmatpush1.bf16.msra.mxu1 %v15514_v57 }
 0xc79   :  { %11667 = vmatprep.subr.bf16.mxu0 %v15526_v29  ;;  %11699 = vmatprep.subr.bf16.mxu1 %v15528_v37 }
 0xc7c   :  { %11669 = vmatpush1.bf16.msra.mxu0 %v15540_v46  ;;  %11701 = vmatpush1.bf16.msra.mxu1 %v15553_v58 }
 0xc7d   :  { %11671 = vmatprep.subr.bf16.mxu0 %v15555_v48  ;;  %11703 = vmatprep.subr.bf16.mxu1 %v15567_v38 }
 0xc80   :  { %11673 = vmatpush1.bf16.msra.mxu0 %v15579_v41  ;;  %11705 = vmatpush1.bf16.msra.mxu1 %v15583_v19 }
 0xc81   :  { %11707 = vmatprep.subr.bf16.mxu0 %v15309_v14  ;;  %11739 = vmatprep.subr.bf16.mxu1 %v15320_v42 }
 0xd36   :  { %v3410_v15 = vpop.f32.mrb[22].mxu0  ;;  %v3481_v45 = vpop.f32.mrb[26].mxu1 }
 0xd37   :  { %v13026_v16 = vadd.f32 %v3410_v15, %v15182_v23  ;;  %v3412_v34 = vpop.f32.mrb[23].mxu0  ;;  %v3483_v54 = vpop.f32.mrb[27].mxu1  ;;  %v13042_v33 = vadd.f32 %v3481_v45, %v15198_v56 }
 0xd38   :  { %v13027_v8 = vadd.f32 %v3412_v34, %v15185_v40  ;;  %v13043_v35 = vadd.f32 %v3483_v54, %v15192_v3 }
 0xd39   :  { %v9399_v28 = vmul.f32 -1.442695, %v13026_v16 }
 0xd3a   :  { %v9400_v1 = vmul.f32 -1.442695, %v13027_v8  ;;  %v9401_v36 = vmul.f32 -1.442695, %v13043_v35 }
 0xd3b   :  { %13406 = vpow2.f32 %v9399_v28 }
 0xd3c   :  { %13408 = vpow2.f32 %v9400_v1 }
 0xd3d   :  { %13410 = vpow2.f32 %v9401_v36 }
 0xd3e   :  { %13412 = vtanh.f32 %v13042_v33 }
 0xd45   :  { %v13407_v7 = vpop.eup %13406 }
 0xd46   :  { %v13409_v17 = vpop.eup %13408  ;;  %v3493_v21 = vadd.f32 1.0, %v13407_v7 }
 0xd47   :  { %v3499_v59 = vadd.f32 1.0, %v13409_v17  ;;  %v13411_v11 = vpop.eup %13410 }
 0xd48   :  { %13414 = vrcp.f32 %v3493_v21  ;;  %v13413_v43 = vpop.eup %13412  ;;  %v3506_v34 = vadd.f32 1.0, %v13411_v11 }
 0xd49   :  { %13416 = vrcp.f32 %v3499_v59 }
 0xd4a   :  { %13418 = vrcp.f32 %v3506_v34 }
 0xd52   :  { %v13415_v49 = vpop.eup %13414 }
 0xd53   :  { %v13417_v15 = vpop.eup %13416  ;;  %v3510_v16 = vmul.f32 %v13415_v49, %v13413_v43 }
 0xd54   :  { %v3509_v8 = vmul.f32 %v13417_v15, %v15595_v26  ;;  %v13419_v45 = vpop.eup %13418 }
 0xd56   :  { %v15641_v54 = vadd.f32 %v3510_v16, %v3509_v8 }
 0xd58   :  { %13420 = vtanh.f32 %v15641_v54 }
 0xd62   :  { %v13421_v28 = vpop.eup %13420 }
 0xd63   :  { %v15644_v1 = vmul.f32 %v13421_v28, %v13419_v45 }
 0xd65   :  { %3649 = vmatmul.mubr.f32.vlgmr.msra.gmra.mrb[24].mxu0 %v15644_v1  ;;  %3720 = vmatmul.mubr.f32.vlgmr.msra.gmra.mrb[28].mxu1 %v15644_v1 }
 0xd66   :  { %11709 = vmatpush1.bf16.msra.mxu0 %v15322_v25  ;;  %11741 = vmatpush1.bf16.msra.mxu1 %v15331_v39 }
 0xd67   :  { %11711 = vmatprep.subr.bf16.mxu0 %v15345_v52  ;;  %11743 = vmatprep.subr.bf16.mxu1 %v15356_v32 }
 0xd68   :  { %3888 = vmatprep.mubr.f32.mxu0 %v13785_v0  ;;  %3959 = vmatprep.mubr.f32.mxu1 %v13785_v0 }
 0xd6a   :  { %11713 = vmatpush1.bf16.msra.mxu0 %v15358_v44  ;;  %11745 = vmatpush1.bf16.msra.mxu1 %v15367_v13 }
 0xd6b   :  { %11715 = vmatprep.subr.bf16.mxu0 %v15381_v51  ;;  %11747 = vmatprep.subr.bf16.mxu1 %v15392_v24 }
 0xd6e   :  { %11717 = vmatpush1.bf16.msra.mxu0 %v15394_v6  ;;  %11749 = vmatpush1.bf16.msra.mxu1 %v15403_v55 }
 0xd6f   :  { %11719 = vmatprep.subr.bf16.mxu0 %v15417_v27  ;;  %11751 = vmatprep.subr.bf16.mxu1 %v15428_v30 }
 0xd72   :  { %11721 = vmatpush1.bf16.msra.mxu0 %v15430_v4  ;;  %11753 = vmatpush1.bf16.msra.mxu1 %v15439_v60 }
 0xd73   :  { %11723 = vmatprep.subr.bf16.mxu0 %v15453_v9  ;;  %11755 = vmatprep.subr.bf16.mxu1 %v15464_v53 }
 0xd76   :  { %11725 = vmatpush1.bf16.msra.mxu0 %v15466_v2  ;;  %11757 = vmatpush1.bf16.msra.mxu1 %v15475_v50 }
 0xd77   :  { %11727 = vmatprep.subr.bf16.mxu0 %v15488_v31  ;;  %11759 = vmatprep.subr.bf16.mxu1 %v15500_v20 }
 0xd7a   :  { %11729 = vmatpush1.bf16.msra.mxu0 %v15502_v47  ;;  %11761 = vmatpush1.bf16.msra.mxu1 %v15514_v57 }
 0xd7b   :  { %11731 = vmatprep.subr.bf16.mxu0 %v15526_v29  ;;  %11763 = vmatprep.subr.bf16.mxu1 %v15528_v37 }
 0xd7e   :  { %11733 = vmatpush1.bf16.msra.mxu0 %v15540_v46  ;;  %11765 = vmatpush1.bf16.msra.mxu1 %v15553_v58 }
 0xd7f   :  { %11735 = vmatprep.subr.bf16.mxu0 %v15555_v48  ;;  %11767 = vmatprep.subr.bf16.mxu1 %v15567_v38 }
 0xd82   :  { %11737 = vmatpush1.bf16.msra.mxu0 %v15579_v41  ;;  %11769 = vmatpush1.bf16.msra.mxu1 %v15583_v19 }
 0xd83   :  { %11771 = vmatprep.subr.bf16.mxu0 %v15309_v14  ;;  %11803 = vmatprep.subr.bf16.mxu1 %v15320_v42 }
 0xe38   :  { %v3650_v26 = vpop.f32.mrb[24].mxu0  ;;  %v3721_v35 = vpop.f32.mrb[28].mxu1 }
 0xe39   :  { %v13028_v36 = vadd.f32 %v3650_v26, %v15182_v23  ;;  %v3652_v33 = vpop.f32.mrb[25].mxu0  ;;  %v3723_v7 = vpop.f32.mrb[29].mxu1  ;;  %v13044_v49 = vadd.f32 %v3721_v35, %v15198_v56 }
 0xe3a   :  { %v13029_v17 = vadd.f32 %v3652_v33, %v15185_v40  ;;  %v13045_v11 = vadd.f32 %v3723_v7, %v15192_v3 }
 0xe3b   :  { %v9466_v21 = vmul.f32 -1.442695, %v13028_v36 }
 0xe3c   :  { %v9467_v59 = vmul.f32 -1.442695, %v13029_v17  ;;  %v9468_v43 = vmul.f32 -1.442695, %v13045_v11  ;;  %v4250_v11 = vld [vmem:[#allocation4 + $0x230] sm:$0xff] }
 0xe3d   :  { %13422 = vpow2.f32 %v9466_v21 }
 0xe3e   :  { %13424 = vpow2.f32 %v9467_v59  ;;  %v4246_v59 = vld [vmem:[#allocation4 + $0x210] sm:$0xff] }
 0xe3f   :  { %13426 = vpow2.f32 %v9468_v43  ;;  %v4253_v43 = vld [vmem:[#allocation4 + $0x248] sm:$0xff] }
 0xe40   :  { %13428 = vtanh.f32 %v13044_v49  ;;  %v4257_v49 = vld [vmem:[#allocation4 + $0x268] sm:$0xff] }
 0xe47   :  { %v13423_v14 = vpop.eup %13422 }
 0xe48   :  { %v13425_v15 = vpop.eup %13424  ;;  %v3733_v42 = vadd.f32 1.0, %v13423_v14  ;;  %v4255_v14 = vld [vmem:[#allocation4 + $0x258] sm:$0xff] }
 0xe49   :  { %v3739_v16 = vadd.f32 1.0, %v13425_v15  ;;  %v13427_v34 = vpop.eup %13426  ;;  %v4259_v15 = vld [vmem:[#allocation4 + $0x278] sm:$0xff] }
 0xe4a   :  { %13430 = vrcp.f32 %v3733_v42  ;;  %v13429_v8 = vpop.eup %13428  ;;  %v3746_v36 = vadd.f32 1.0, %v13427_v34 }
 0xe4b   :  { %13432 = vrcp.f32 %v3739_v16 }
 0xe4c   :  { %13434 = vrcp.f32 %v3746_v36  ;;  %v11838_v36 = vpack.c.bf16 %v4257_v49, %v4253_v43  ;;  %v4278_v49 = vld [vmem:[#allocation4 + $0x310] sm:$0xff] }
 0xe54   :  { %v13431_v45 = vpop.eup %13430 }
 0xe55   :  { %v13433_v28 = vpop.eup %13432  ;;  %v3750_v26 = vmul.f32 %v13431_v45, %v13429_v8  ;;  %v11868_v8 = vpack.c.bf16 %v4250_v11, %v4246_v59  ;;  %v4252_v45 = vld [vmem:[#allocation4 + $0x240] sm:$0xff] }
 0xe56   :  { %v3749_v33 = vmul.f32 %v13433_v28, %v15641_v54  ;;  %v13435_v35 = vpop.eup %13434  ;;  %v4248_v54 = vld [vmem:[#allocation4 + $0x220] sm:$0xff] }
 0xe57   :  { %v4256_v28 = vld [vmem:[#allocation4 + $0x260] sm:$0xff] }
 0xe58   :  { %v15687_v7 = vadd.f32 %v3750_v26, %v3749_v33  ;;  %v11870_v33 = vpack.c.bf16 %v4259_v15, %v4255_v14  ;;  %v4280_v59 = vld [vmem:[#allocation4 + $0x320] sm:$0xff]  ;;  %v4282_v14 = vld [vmem:[#allocation4 + $0x330] sm:$0xff]  ;;  %v4285_v15 = vld [vmem:[#allocation4 + $0x348] sm:$0xff] }
 0xe5a   :  { %13436 = vtanh.f32 %v15687_v7 }
 0xe64   :  { %v13437_v17 = vpop.eup %13436 }
 0xe65   :  { %v15690_v21 = vmul.f32 %v13437_v17, %v13435_v35  ;;  %v4258_v35 = vld [vmem:[#allocation4 + $0x270] sm:$0xff]  ;;  %v4261_v17 = vld [vmem:[#allocation4 + $0x288] sm:$0xff] }
 0xe67   :  { %3889 = vmatmul.mubr.f32.vlgmr.msra.gmra.mrb[26].mxu0 %v15690_v21  ;;  %3960 = vmatmul.mubr.f32.vlgmr.msra.gmra.mrb[30].mxu1 %v15690_v21 }
 0xe68   :  { %11773 = vmatpush1.bf16.msra.mxu0 %v15322_v25  ;;  %11805 = vmatpush1.bf16.msra.mxu1 %v15331_v39  ;;  %v4245_v25 = vld [vmem:[#allocation4 + $0x208] sm:$0xff] }
 0xe69   :  { %11775 = vmatprep.subr.bf16.mxu0 %v15345_v52  ;;  %11807 = vmatprep.subr.bf16.mxu1 %v15356_v32  ;;  %v4249_v39 = vld [vmem:[#allocation4 + $0x228] sm:$0xff]  ;;  %v4247_v52 = vld [vmem:[#allocation4 + $0x218] sm:$0xff] }
 0xe6a   :  { %4128 = vmatprep.mubr.f32.mxu0 %v13785_v0  ;;  %4199 = vmatprep.mubr.f32.mxu1 %v13785_v0  ;;  %v11834_v32 = vpack.c.bf16 %v4249_v39, %v4245_v25  ;;  %v4265_v25 = vld [vmem:[#allocation4 + $0x2a8] sm:$0xff]  ;;  %v4263_v39 = vld [vmem:[#allocation4 + $0x298] sm:$0xff] }
 0xe6c   :  { %11777 = vmatpush1.bf16.msra.mxu0 %v15358_v44  ;;  %11809 = vmatpush1.bf16.msra.mxu1 %v15367_v13  ;;  %v4251_v44 = vld [vmem:[#allocation4 + $0x238] sm:$0xff] }
 0xe6d   :  { %11779 = vmatprep.subr.bf16.mxu0 %v15381_v51  ;;  %11811 = vmatprep.subr.bf16.mxu1 %v15392_v24  ;;  %v11866_v13 = vpack.c.bf16 %v4251_v44, %v4247_v52  ;;  %v4267_v52 = vld [vmem:[#allocation4 + $0x2b8] sm:$0xff] }
 0xe70   :  { %11781 = vmatpush1.bf16.msra.mxu0 %v15394_v6  ;;  %11813 = vmatpush1.bf16.msra.mxu1 %v15403_v55 }
 0xe71   :  { %11783 = vmatprep.subr.bf16.mxu0 %v15417_v27  ;;  %11815 = vmatprep.subr.bf16.mxu1 %v15428_v30 }
 0xe74   :  { %11785 = vmatpush1.bf16.msra.mxu0 %v15430_v4  ;;  %11817 = vmatpush1.bf16.msra.mxu1 %v15439_v60 }
 0xe75   :  { %11787 = vmatprep.subr.bf16.mxu0 %v15453_v9  ;;  %11819 = vmatprep.subr.bf16.mxu1 %v15464_v53 }
 0xe78   :  { %11789 = vmatpush1.bf16.msra.mxu0 %v15466_v2  ;;  %11821 = vmatpush1.bf16.msra.mxu1 %v15475_v50 }
 0xe79   :  { %11791 = vmatprep.subr.bf16.mxu0 %v15488_v31  ;;  %11823 = vmatprep.subr.bf16.mxu1 %v15500_v20 }
 0xe7c   :  { %11793 = vmatpush1.bf16.msra.mxu0 %v15502_v47  ;;  %11825 = vmatpush1.bf16.msra.mxu1 %v15514_v57 }
 0xe7d   :  { %11795 = vmatprep.subr.bf16.mxu0 %v15526_v29  ;;  %11827 = vmatprep.subr.bf16.mxu1 %v15528_v37 }
 0xe80   :  { %11797 = vmatpush1.bf16.msra.mxu0 %v15540_v46  ;;  %11829 = vmatpush1.bf16.msra.mxu1 %v15553_v58 }
 0xe81   :  { %11799 = vmatprep.subr.bf16.mxu0 %v15555_v48  ;;  %11831 = vmatprep.subr.bf16.mxu1 %v15567_v38 }
 0xe84   :  { %11801 = vmatpush1.bf16.msra.mxu0 %v15579_v41  ;;  %11833 = vmatpush1.bf16.msra.mxu1 %v15583_v19  ;;  %v4244_v19 = vld [vmem:[#allocation4 + $0x200] sm:$0xff] }
 0xe85   :  { %11835 = vmatprep.subr.bf16.mxu0 %v11834_v32  ;;  %11867 = vmatprep.subr.bf16.mxu1 %v11866_v13  ;;  %v11836_v34 = vpack.c.bf16 %v4248_v54, %v4244_v19  ;;  %v11840_v32 = vpack.c.bf16 %v4256_v28, %v4252_v45  ;;  %v4260_v13 = vld [vmem:[#allocation4 + $0x280] sm:$0xff]  ;;  %v11884_v45 = vpack.c.bf16 %v4282_v14, %v4278_v49  ;;  %v9615_v49 = vld [vmem:[%s17708_s2 + $0x458] sm:$0xff] }
 0xe86   :  { %v4276_v54 = vld [vmem:[#allocation4 + $0x300] sm:$0xff] }
 0xe87   :  { %v4284_v28 = vld [vmem:[#allocation4 + $0x340] sm:$0xff] }
 0xf3a   :  { %v3890_v51 = vpop.f32.mrb[26].mxu0  ;;  %v3961_v24 = vpop.f32.mrb[30].mxu1 }
 0xf3b   :  { %v13030_v6 = vadd.f32 %v3890_v51, %v15182_v23  ;;  %v3892_v55 = vpop.f32.mrb[27].mxu0  ;;  %v3963_v27 = vpop.f32.mrb[31].mxu1  ;;  %v13046_v2 = vadd.f32 %v3961_v24, %v15198_v56  ;;  %v4264_v51 = vld [vmem:[#allocation4 + $0x2a0] sm:$0xff]  ;;  %v11842_v24 = vpack.c.bf16 %v4265_v25, %v4261_v17  ;;  %v4290_v17 = vld [vmem:[#allocation4 + $0x370] sm:$0xff]  ;;  %v4293_v25 = vld [vmem:[#allocation4 + $0x388] sm:$0xff] }
 0xf3c   :  { %v13031_v30 = vadd.f32 %v3892_v55, %v15185_v40  ;;  %v13047_v9 = vadd.f32 %v3963_v27, %v15192_v3  ;;  %v4262_v55 = vld [vmem:[#allocation4 + $0x290] sm:$0xff] }
 0xf3d   :  { %v9533_v4 = vmul.f32 -1.442695, %v13030_v6  ;;  %v11874_v6 = vpack.c.bf16 %v4267_v52, %v4263_v39  ;;  %v4266_v27 = vld [vmem:[#allocation4 + $0x2b0] sm:$0xff]  ;;  %v4297_v39 = vld [vmem:[#allocation4 + $0x3a8] sm:$0xff]  ;;  %v4295_v52 = vld [vmem:[#allocation4 + $0x398] sm:$0xff] }
 0xf3e   :  { %v9534_v60 = vmul.f32 -1.442695, %v13031_v30  ;;  %v9535_v53 = vmul.f32 -1.442695, %v13047_v9  ;;  %v4269_v30 = vld [vmem:[#allocation4 + $0x2c8] sm:$0xff]  ;;  %v4275_v9 = vld [vmem:[#allocation4 + $0x2f8] sm:$0xff] }
 0xf3f   :  { %13438 = vpow2.f32 %v9533_v4  ;;  %v4273_v4 = vld [vmem:[#allocation4 + $0x2e8] sm:$0xff] }
 0xf40   :  { %13440 = vpow2.f32 %v9534_v60  ;;  %v4271_v60 = vld [vmem:[#allocation4 + $0x2d8] sm:$0xff] }
 0xf41   :  { %13442 = vpow2.f32 %v9535_v53  ;;  %v11844_v53 = vpack.c.bf16 %v4264_v51, %v4260_v13  ;;  %v4292_v51 = vld [vmem:[#allocation4 + $0x380] sm:$0xff] }
 0xf42   :  { %13444 = vtanh.f32 %v13046_v2  ;;  %v11876_v2 = vpack.c.bf16 %v4266_v27, %v4262_v55  ;;  %v4294_v27 = vld [vmem:[#allocation4 + $0x390] sm:$0xff] }
 0xf49   :  { %v13439_v50 = vpop.eup %13438 }
 0xf4a   :  { %v13441_v31 = vpop.eup %13440  ;;  %v3973_v20 = vadd.f32 1.0, %v13439_v50  ;;  %v4268_v50 = vld [vmem:[#allocation4 + $0x2c0] sm:$0xff] }
 0xf4b   :  { %v3979_v47 = vadd.f32 1.0, %v13441_v31  ;;  %v13443_v57 = vpop.eup %13442  ;;  %v4272_v31 = vld [vmem:[#allocation4 + $0x2e0] sm:$0xff] }
 0xf4c   :  { %13446 = vrcp.f32 %v3973_v20  ;;  %v13445_v29 = vpop.eup %13444  ;;  %v3986_v48 = vadd.f32 1.0, %v13443_v57  ;;  %v11846_v20 = vpack.c.bf16 %v4273_v4, %v4269_v30  ;;  %v4270_v57 = vld [vmem:[#allocation4 + $0x2d0] sm:$0xff]  ;;  %v4301_v4 = vld [vmem:[#allocation4 + $0x3c8] sm:$0xff] }
 0xf4d   :  { %13448 = vrcp.f32 %v3979_v47  ;;  %v11878_v47 = vpack.c.bf16 %v4275_v9, %v4271_v60  ;;  %v4298_v30 = vld [vmem:[#allocation4 + $0x3b0] sm:$0xff]  ;;  %v4305_v60 = vld [vmem:[#allocation4 + $0x3e8] sm:$0xff]  ;;  %v4303_v9 = vld [vmem:[#allocation4 + $0x3d8] sm:$0xff] }
 0xf4e   :  { %13450 = vrcp.f32 %v3986_v48  ;;  %v4283_v48 = vld [vmem:[#allocation4 + $0x338] sm:$0xff] }
 0xf56   :  { %v13447_v37 = vpop.eup %13446 }
 0xf57   :  { %v13449_v46 = vpop.eup %13448  ;;  %v3990_v58 = vmul.f32 %v13447_v37, %v13445_v29  ;;  %v4274_v29 = vld [vmem:[#allocation4 + $0x2f0] sm:$0xff]  ;;  %v4277_v37 = vld [vmem:[#allocation4 + $0x308] sm:$0xff] }
 0xf58   :  { %v3989_v38 = vmul.f32 %v13449_v46, %v15687_v7  ;;  %v13451_v42 = vpop.eup %13450  ;;  %v4254_v7 = vld [vmem:[#allocation4 + $0x250] sm:$0xff]  ;;  %v4281_v46 = vld [vmem:[#allocation4 + $0x328] sm:$0xff]  ;;  %v11880_v19 = vpack.c.bf16 %v4274_v29, %v4270_v57  ;;  %v4304_v57 = vld [vmem:[#allocation4 + $0x3e0] sm:$0xff] }
 0xf59   :  { %v11872_v44 = vpack.c.bf16 %v4258_v35, %v4254_v7  ;;  %v11850_v11 = vpack.c.bf16 %v4281_v46, %v4277_v37  ;;  %v4286_v35 = vld [vmem:[#allocation4 + $0x350] sm:$0xff] }
 0xf5a   :  { %v15731_v41 = vadd.f32 %v3990_v58, %v3989_v38  ;;  %v4279_v58 = vld [vmem:[#allocation4 + $0x318] sm:$0xff]  ;;  %v11848_v38 = vpack.c.bf16 %v4272_v31, %v4268_v50  ;;  %v11888_v13 = vpack.c.bf16 %v4290_v17, %v4286_v35  ;;  %v11892_v50 = vpack.c.bf16 %v4298_v30, %v4294_v27  ;;  %v4300_v31 = vld [vmem:[#allocation4 + $0x3c0] sm:$0xff]  ;;  %v4302_v29 = vld [vmem:[#allocation4 + $0x3d0] sm:$0xff] }
 0xf5b   :  { %v11882_v43 = vpack.c.bf16 %v4283_v48, %v4279_v58  ;;  %v4306_v37 = vld [vmem:[#allocation4 + $0x3f0] sm:$0xff]  ;;  %v11864_v46 = vpack.c.bf16 %v4304_v57, %v4300_v31  ;;  %v9623_v35 = vld [vmem:[%s17708_s2 + $0x498] sm:$0xff]  ;;  %v9641_v57 = vld [vmem:[%s17708_s2 + $0x528] sm:$0xff] }
 0xf5c   :  { %13452 = vtanh.f32 %v15731_v41  ;;  %v11896_v58 = vpack.c.bf16 %v4306_v37, %v4302_v29  ;;  %v9631_v27 = vld [vmem:[%s17708_s2 + $0x4d8] sm:$0xff]  ;;  %v9634_v31 = vld [vmem:[%s17708_s2 + $0x4f0] sm:$0xff]  ;;  %v9636_v29 = vld [vmem:[%s17708_s2 + $0x500] sm:$0xff] }
 0xf5d   :  { %v9640_v37 = vld [vmem:[%s17708_s2 + $0x520] sm:$0xff] }
 0xf66   :  { %v13453_v16 = vpop.eup %13452 }
 0xf67   :  { %v15734_v26 = vmul.f32 %v13453_v16, %v13451_v42  ;;  %v4289_v42 = vld [vmem:[#allocation4 + $0x368] sm:$0xff]  ;;  %v4287_v16 = vld [vmem:[#allocation4 + $0x358] sm:$0xff] }
 0xf69   :  { %4129 = vmatmul.mubr.f32.vlgmr.msra.gmra.mrb[28].mxu0 %v15734_v26  ;;  %4200 = vmatmul.mubr.f32.vlgmr.msra.gmra.mrb[32].mxu1 %v15734_v26 }
 0xf6a   :  { %11837 = vmatpush1.bf16.msra.mxu0 %v11836_v34  ;;  %11869 = vmatpush1.bf16.msra.mxu1 %v11868_v8  ;;  %v4291_v34 = vld [vmem:[#allocation4 + $0x378] sm:$0xff]  ;;  %v11852_v8 = vpack.c.bf16 %v4280_v59, %v4276_v54  ;;  %v9610_v54 = vld [vmem:[%s17708_s2 + $0x430] sm:$0xff] }
 0xf6b   :  { %11839 = vmatprep.subr.bf16.mxu0 %v11838_v36  ;;  %11871 = vmatprep.subr.bf16.mxu1 %v11870_v33  ;;  %v4288_v36 = vld [vmem:[#allocation4 + $0x360] sm:$0xff]  ;;  %v11854_v33 = vpack.c.bf16 %v4289_v42, %v4285_v15  ;;  %v11886_v7 = vpack.c.bf16 %v4291_v34, %v4287_v16  ;;  %v9619_v16 = vld [vmem:[%s17708_s2 + $0x478] sm:$0xff] }
 0xf6c   :  { %4395 = vmatprep.mubr.f32.mxu0 %v13785_v0  ;;  %4508 = vmatprep.mubr.f32.mxu1 %v13785_v0  ;;  %v9612_v15 = vld [vmem:[%s17708_s2 + $0x440] sm:$0xff] }
 0xf6d   :  { %v9616_v42 = vld [vmem:[%s17708_s2 + $0x460] sm:$0xff] }
 0xf6e   :  { %11841 = vmatpush1.bf16.msra.mxu0 %v11840_v32  ;;  %11873 = vmatpush1.bf16.msra.mxu1 %v11872_v44  ;;  %v4299_v32 = vld [vmem:[#allocation4 + $0x3b8] sm:$0xff]  ;;  %v11856_v44 = vpack.c.bf16 %v4288_v36, %v4284_v28  ;;  %v15824_v34 = vpack.c.bf16 %v9616_v42, %v9612_v15  ;;  %v9618_v28 = vld [vmem:[%s17708_s2 + $0x470] sm:$0xff] }
 0xf6f   :  { %11843 = vmatprep.subr.bf16.mxu0 %v11842_v24  ;;  %11875 = vmatprep.subr.bf16.mxu1 %v11874_v6  ;;  %v4296_v24 = vld [vmem:[#allocation4 + $0x3a0] sm:$0xff]  ;;  %v11858_v6 = vpack.c.bf16 %v4297_v39, %v4293_v25  ;;  %v11890_v55 = vpack.c.bf16 %v4299_v32, %v4295_v52  ;;  %v9627_v52 = vld [vmem:[%s17708_s2 + $0x4b8] sm:$0xff] }
 0xf70   :  { %v9620_v25 = vld [vmem:[%s17708_s2 + $0x480] sm:$0xff]  ;;  %v9647_v15 = vld [vmem:[%s17708_s2 + $0x558] sm:$0xff] }
 0xf71   :  { %v9624_v39 = vld [vmem:[%s17708_s2 + $0x4a0] sm:$0xff]  ;;  %v9651_v42 = vld [vmem:[%s17708_s2 + $0x578] sm:$0xff] }
 0xf72   :  { %11845 = vmatpush1.bf16.msra.mxu0 %v11844_v53  ;;  %11877 = vmatpush1.bf16.msra.mxu1 %v11876_v2  ;;  %v4307_v53 = vld [vmem:[#allocation4 + $0x3f8] sm:$0xff]  ;;  %v11860_v2 = vpack.c.bf16 %v4296_v24, %v4292_v51  ;;  %v15860_v32 = vpack.c.bf16 %v9624_v39, %v9620_v25  ;;  %v9626_v51 = vld [vmem:[%s17708_s2 + $0x4b0] sm:$0xff]  ;;  %v9652_v25 = vld [vmem:[%s17708_s2 + $0x580] sm:$0xff] }
 0xf73   :  { %11847 = vmatprep.subr.bf16.mxu0 %v11846_v20  ;;  %11879 = vmatprep.subr.bf16.mxu1 %v11878_v47  ;;  %v11862_v20 = vpack.c.bf16 %v4305_v60, %v4301_v4  ;;  %v11894_v47 = vpack.c.bf16 %v4307_v53, %v4303_v9  ;;  %v9628_v4 = vld [vmem:[%s17708_s2 + $0x4c0] sm:$0xff]  ;;  %v9635_v9 = vld [vmem:[%s17708_s2 + $0x4f8] sm:$0xff] }
 0xf74   :  { %v9632_v60 = vld [vmem:[%s17708_s2 + $0x4e0] sm:$0xff] }
 0xf75   :  { %v15896_v53 = vpack.c.bf16 %v9632_v60, %v9628_v4  ;;  %v9658_v4 = vld [vmem:[%s17708_s2 + $0x5b0] sm:$0xff]  ;;  %v9661_v60 = vld [vmem:[%s17708_s2 + $0x5c8] sm:$0xff] }
 0xf76   :  { %11849 = vmatpush1.bf16.msra.mxu0 %v11848_v38  ;;  %11881 = vmatpush1.bf16.msra.mxu1 %v11880_v19  ;;  %v9606_v19 = vld [vmem:[%s17708_s2 + $0x410] sm:$0xff] }
 0xf77   :  { %11851 = vmatprep.subr.bf16.mxu0 %v11850_v11  ;;  %11883 = vmatprep.subr.bf16.mxu1 %v11882_v43  ;;  %v15799_v59 = vpack.c.bf16 %v9610_v54, %v9606_v19  ;;  %v9613_v11 = vld [vmem:[%s17708_s2 + $0x448] sm:$0xff] }
 0xf78   :  { %v9617_v43 = vld [vmem:[%s17708_s2 + $0x468] sm:$0xff] }
 0xf79   :  { %v15813_v14 = vpack.c.bf16 %v9617_v43, %v9613_v11  ;;  %v9649_v19 = vld [vmem:[%s17708_s2 + $0x568] sm:$0xff]  ;;  %v9644_v43 = vld [vmem:[%s17708_s2 + $0x540] sm:$0xff] }
 0xf7a   :  { %11853 = vmatpush1.bf16.msra.mxu0 %v11852_v8  ;;  %11885 = vmatpush1.bf16.msra.mxu1 %v11884_v45  ;;  %v15826_v8 = vpack.c.bf16 %v9619_v16, %v9615_v49  ;;  %v9614_v45 = vld [vmem:[%s17708_s2 + $0x450] sm:$0xff]  ;;  %v9648_v49 = vld [vmem:[%s17708_s2 + $0x560] sm:$0xff] }
 0xf7b   :  { %11855 = vmatprep.subr.bf16.mxu0 %v11854_v33  ;;  %11887 = vmatprep.subr.bf16.mxu1 %v11886_v7  ;;  %v15835_v36 = vpack.c.bf16 %v9618_v28, %v9614_v45  ;;  %v9621_v33 = vld [vmem:[%s17708_s2 + $0x488] sm:$0xff]  ;;  %v9646_v16 = vld [vmem:[%s17708_s2 + $0x550] sm:$0xff]  ;;  %v15973_v28 = vpack.c.bf16 %v9648_v49, %v9644_v43 }
 0xf7c   :  { %v9625_v7 = vld [vmem:[%s17708_s2 + $0x4a8] sm:$0xff]  ;;  %v9650_v45 = vld [vmem:[%s17708_s2 + $0x570] sm:$0xff] }
 0xf7d   :  { %v15849_v17 = vpack.c.bf16 %v9625_v7, %v9621_v33  ;;  %v15975_v33 = vpack.c.bf16 %v9651_v42, %v9647_v15  ;;  %v9653_v7 = vld [vmem:[%s17708_s2 + $0x588] sm:$0xff]  ;;  %v15988_v39 = vpack.c.bf16 %v9650_v45, %v9646_v16 }
 0xf7e   :  { %11857 = vmatpush1.bf16.msra.mxu0 %v11856_v44  ;;  %11889 = vmatpush1.bf16.msra.mxu1 %v11888_v13  ;;  %v15862_v44 = vpack.c.bf16 %v9627_v52, %v9623_v35  ;;  %v9622_v13 = vld [vmem:[%s17708_s2 + $0x490] sm:$0xff]  ;;  %v9657_v35 = vld [vmem:[%s17708_s2 + $0x5a8] sm:$0xff] }
 0xf7f   :  { %11859 = vmatprep.subr.bf16.mxu0 %v11858_v6  ;;  %11891 = vmatprep.subr.bf16.mxu1 %v11890_v55  ;;  %v15871_v24 = vpack.c.bf16 %v9626_v51, %v9622_v13  ;;  %v9629_v6 = vld [vmem:[%s17708_s2 + $0x4c8] sm:$0xff]  ;;  %v15990_v52 = vpack.c.bf16 %v9657_v35, %v9653_v7  ;;  %v9656_v13 = vld [vmem:[%s17708_s2 + $0x5a0] sm:$0xff]  ;;  %v9655_v51 = vld [vmem:[%s17708_s2 + $0x598] sm:$0xff] }
 0xf80   :  { %v9633_v55 = vld [vmem:[%s17708_s2 + $0x4e8] sm:$0xff] }
 0xf81   :  { %v15885_v30 = vpack.c.bf16 %v9633_v55, %v9629_v6  ;;  %v9659_v6 = vld [vmem:[%s17708_s2 + $0x5b8] sm:$0xff] }
 0xf82   :  { %11861 = vmatpush1.bf16.msra.mxu0 %v11860_v2  ;;  %11893 = vmatpush1.bf16.msra.mxu1 %v11892_v50  ;;  %v15898_v2 = vpack.c.bf16 %v9635_v9, %v9631_v27  ;;  %v9630_v50 = vld [vmem:[%s17708_s2 + $0x4d0] sm:$0xff]  ;;  %v16002_v55 = vpack.c.bf16 %v9659_v6, %v9655_v51  ;;  %v9665_v9 = vld [vmem:[%s17708_s2 + $0x5e8] sm:$0xff] }
 0xf83   :  { %11863 = vmatprep.subr.bf16.mxu0 %v11862_v20  ;;  %11895 = vmatprep.subr.bf16.mxu1 %v11894_v47  ;;  %v9637_v20 = vld [vmem:[%s17708_s2 + $0x508] sm:$0xff]  ;;  %v15910_v47 = vpack.c.bf16 %v9634_v31, %v9630_v50  ;;  %v9654_v27 = vld [vmem:[%s17708_s2 + $0x590] sm:$0xff]  ;;  %v16017_v50 = vpack.c.bf16 %v9656_v13, %v9652_v25 }
 0xf84   :  { %v16021_v31 = vpack.c.bf16 %v9658_v4, %v9654_v27 }
 0xf86   :  { %11865 = vmatpush1.bf16.msra.mxu0 %v11864_v46  ;;  %11897 = vmatpush1.bf16.msra.mxu1 %v11896_v58  ;;  %v15923_v46 = vpack.c.bf16 %v9641_v57, %v9637_v20  ;;  %v15925_v58 = vpack.c.bf16 %v9640_v37, %v9636_v29  ;;  %v16023_v20 = vpack.c.bf16 %v9665_v9, %v9661_v60  ;;  %v9663_v57 = vld [vmem:[%s17708_s2 + $0x5d8] sm:$0xff]  ;;  %v9660_v37 = vld [vmem:[%s17708_s2 + $0x5c0] sm:$0xff] }
 0xf87   :  { %v9667_v29 = vld [vmem:[%s17708_s2 + $0x5f8] sm:$0xff] }
 0xf89   :  { %4396 = vmatmul.mubr.f32.vlgmr.msra.gmra.mrb[30].mxu0 %v15204_v5  ;;  %4509 = vmatmul.mubr.f32.vlgmr.msra.gmra.mrb[34].mxu1 %v15204_v5  ;;  %v9605_v5 = vld [vmem:[%s17708_s2 + $0x408] sm:$0xff] }
 0xf8a   :  { %4401 = vmatprep.mubr.f32.mxu0 %v13785_v0  ;;  %4514 = vmatprep.mubr.f32.mxu1 %v13785_v0 }
 0xf8d   :  { %4402 = vmatmul.mubr.f32.gmra.mrb[32].mxu0 %v15250_v63  ;;  %4515 = vmatmul.mubr.f32.gmra.mrb[36].mxu1 %v15250_v63  ;;  %v9609_v63 = vld [vmem:[%s17708_s2 + $0x428] sm:$0xff] }
 0xf8e   :  { %4407 = vmatprep.mubr.f32.mxu0 %v13785_v0  ;;  %4520 = vmatprep.mubr.f32.mxu1 %v13785_v0 }
 0xf91   :  { %4408 = vmatmul.mubr.f32.gmra.mrb[34].mxu0 %v15294_v61  ;;  %4521 = vmatmul.mubr.f32.gmra.mrb[38].mxu1 %v15294_v61  ;;  %v9607_v61 = vld [vmem:[%s17708_s2 + $0x418] sm:$0xff] }
 0xf92   :  { %4413 = vmatprep.mubr.f32.mxu0 %v13785_v0  ;;  %4526 = vmatprep.mubr.f32.mxu1 %v13785_v0 }
 0xf95   :  { %4414 = vmatmul.mubr.f32.gmra.mrb[36].mxu0 %v15598_v10  ;;  %4527 = vmatmul.mubr.f32.gmra.mrb[40].mxu1 %v15598_v10  ;;  %v15777_v10 = vpack.c.bf16 %v9609_v63, %v9605_v5  ;;  %v9639_v5 = vld [vmem:[%s17708_s2 + $0x518] sm:$0xff] }
 0xf96   :  { %4419 = vmatprep.mubr.f32.mxu0 %v13785_v0  ;;  %4532 = vmatprep.mubr.f32.mxu1 %v13785_v0  ;;  %v9643_v63 = vld [vmem:[%s17708_s2 + $0x538] sm:$0xff] }
 0xf97   :  { %11899 = vmatprep.subr.bf16.mxu0 %v15777_v10 }
 0xf99   :  { %4420 = vmatmul.mubr.f32.gmra.mrb[38].mxu0 %v15644_v1  ;;  %4533 = vmatmul.mubr.f32.gmra.mrb[42].mxu1 %v15644_v1  ;;  %v9604_v1 = vld [vmem:[%s17708_s2 + $0x400] sm:$0xff] }
 0xf9a   :  { %4425 = vmatprep.mubr.f32.mxu0 %v13785_v0  ;;  %4538 = vmatprep.mubr.f32.mxu1 %v13785_v0 }
 0xf9d   :  { %4426 = vmatmul.mubr.f32.gmra.mrb[40].mxu0 %v15690_v21  ;;  %4539 = vmatmul.mubr.f32.gmra.mrb[44].mxu1 %v15690_v21  ;;  %v9608_v21 = vld [vmem:[%s17708_s2 + $0x420] sm:$0xff] }
 0xf9e   :  { %4431 = vmatprep.mubr.f32.mxu0 %v13785_v0  ;;  %4544 = vmatprep.mubr.f32.mxu1 %v13785_v0  ;;  %v15788_v48 = vpack.c.bf16 %v9608_v21, %v9604_v1  ;;  %v15937_v1 = vpack.c.bf16 %v9643_v63, %v9639_v5  ;;  %v9642_v21 = vld [vmem:[%s17708_s2 + $0x530] sm:$0xff]  ;;  %v9664_v5 = vld [vmem:[%s17708_s2 + $0x5e0] sm:$0xff]  ;;  %v16041_v63 = vpack.c.bf16 %v9667_v29, %v9663_v57 }
 0xfa0   :  { %11901 = vmatpush1.bf16.msra.mxu0 %v15788_v48 }
 0xfa1   :  { %4432 = vmatmul.mubr.f32.gmra.mrb[42].mxu0 %v15734_v26  ;;  %4545 = vmatmul.mubr.f32.gmra.mrb[46].mxu1 %v15734_v26  ;;  %v9611_v26 = vld [vmem:[%s17708_s2 + $0x438] sm:$0xff] }
 0xfa2   :  { %4437 = vmatprep.mubr.f32.mxu0 %v13785_v0  ;;  %4550 = vmatprep.mubr.f32.mxu1 %v13785_v0  ;;  %v15790_v38 = vpack.c.bf16 %v9611_v26, %v9607_v61  ;;  %v9638_v61 = vld [vmem:[%s17708_s2 + $0x510] sm:$0xff]  ;;  %v9645_v26 = vld [vmem:[%s17708_s2 + $0x548] sm:$0xff] }
 0xfa3   :  { %11903 = vmatprep.subr.bf16.mxu0 %v15813_v14  ;;  %v15949_v54 = vpack.c.bf16 %v9642_v21, %v9638_v61  ;;  %v15951_v11 = vpack.c.bf16 %v9649_v19, %v9645_v26  ;;  %v9662_v61 = vld [vmem:[%s17708_s2 + $0x5d0] sm:$0xff]  ;;  %v16046_v21 = vpack.c.bf16 %v9664_v5, %v9660_v37 }
 0xfa4   :  { %11931 = vmatprep.subr.bf16.mxu1 %v15790_v38  ;;  %11905 = vmatpush1.bf16.msra.mxu0 %v15824_v34  ;;  %v9666_v26 = vld [vmem:[%s17708_s2 + $0x5f0] sm:$0xff] }
 0xfa5   :  { %11933 = vmatpush1.bf16.msra.mxu1 %v15799_v59  ;;  %11907 = vmatprep.subr.bf16.mxu0 %v15849_v17  ;;  %v16052_v19 = vpack.c.bf16 %v9666_v26, %v9662_v61 }
 0xfa6   :  { %11935 = vmatprep.subr.bf16.mxu1 %v15826_v8 }
 0xfa8   :  { %11909 = vmatpush1.bf16.msra.mxu0 %v15860_v32 }
 0xfa9   :  { %11937 = vmatpush1.bf16.msra.mxu1 %v15835_v36  ;;  %11911 = vmatprep.subr.bf16.mxu0 %v15885_v30 }
 0xfaa   :  { %11939 = vmatprep.subr.bf16.mxu1 %v15862_v44 }
 0xfac   :  { %11913 = vmatpush1.bf16.msra.mxu0 %v15896_v53 }
 0xfad   :  { %11941 = vmatpush1.bf16.msra.mxu1 %v15871_v24  ;;  %11915 = vmatprep.subr.bf16.mxu0 %v15923_v46 }
 0xfae   :  { %11943 = vmatprep.subr.bf16.mxu1 %v15898_v2 }
 0xfb0   :  { %11917 = vmatpush1.bf16.msra.mxu0 %v15925_v58 }
 0xfb1   :  { %11945 = vmatpush1.bf16.msra.mxu1 %v15910_v47  ;;  %11919 = vmatprep.subr.bf16.mxu0 %v15951_v11 }
 0xfb2   :  { %11947 = vmatprep.subr.bf16.mxu1 %v15937_v1 }
 0xfb4   :  { %11921 = vmatpush1.bf16.msra.mxu0 %v15973_v28 }
 0xfb5   :  { %11949 = vmatpush1.bf16.msra.mxu1 %v15949_v54  ;;  %11923 = vmatprep.subr.bf16.mxu0 %v15990_v52 }
 0xfb6   :  { %11951 = vmatprep.subr.bf16.mxu1 %v15975_v33 }
 0xfb8   :  { %11925 = vmatpush1.bf16.msra.mxu0 %v16017_v50 }
 0xfb9   :  { %11953 = vmatpush1.bf16.msra.mxu1 %v15988_v39  ;;  %11927 = vmatprep.subr.bf16.mxu0 %v16023_v20 }
 0xfba   :  { %11955 = vmatprep.subr.bf16.mxu1 %v16002_v55 }
 0xfbc   :  { %11929 = vmatpush1.bf16.msra.mxu0 %v16046_v21 }
 0xfbd   :  { %11957 = vmatpush1.bf16.msra.mxu1 %v16021_v31  ;;  %11963 = vmatprep.subr.bf16.mxu0 %v15777_v10 }
 0xfbe   :  { %11959 = vmatprep.subr.bf16.mxu1 %v16041_v63 }
 0xfc1   :  { %11961 = vmatpush1.bf16.msra.mxu1 %v16052_v19 }
 0xfc2   :  { %11995 = vmatprep.subr.bf16.mxu1 %v15790_v38 }
0x103c   :  { %v4130_v43 = vpop.f32.mrb[28].mxu0  ;;  %v4201_v49 = vpop.f32.mrb[32].mxu1 }
0x103d   :  { %v13032_v15 = vadd.f32 %v4130_v43, %v15182_v23  ;;  %v4132_v42 = vpop.f32.mrb[29].mxu0  ;;  %v4203_v16 = vpop.f32.mrb[33].mxu1  ;;  %v13048_v51 = vadd.f32 %v4201_v49, %v15198_v56 }
0x103e   :  { %v13033_v45 = vadd.f32 %v4132_v42, %v15185_v40  ;;  %v13049_v25 = vadd.f32 %v4203_v16, %v15192_v3 }
0x103f   :  { %v9600_v7 = vmul.f32 -1.442695, %v13032_v15 }
0x1040   :  { %v9601_v35 = vmul.f32 -1.442695, %v13033_v45  ;;  %v9602_v13 = vmul.f32 -1.442695, %v13049_v25 }
0x1041   :  { %13454 = vpow2.f32 %v9600_v7 }
0x1042   :  { %13456 = vpow2.f32 %v9601_v35 }
0x1043   :  { %13458 = vpow2.f32 %v9602_v13 }
0x1044   :  { %13460 = vtanh.f32 %v13048_v51 }
0x104b   :  { %v13455_v6 = vpop.eup %13454 }
0x104c   :  { %v13457_v27 = vpop.eup %13456  ;;  %v4213_v4 = vadd.f32 1.0, %v13455_v6 }
0x104d   :  { %v4219_v60 = vadd.f32 1.0, %v13457_v27  ;;  %v13459_v23 = vpop.eup %13458 }
0x104e   :  { %13462 = vrcp.f32 %v4213_v4  ;;  %v13461_v9 = vpop.eup %13460  ;;  %v4226_v37 = vadd.f32 1.0, %v13459_v23 }
0x104f   :  { %13464 = vrcp.f32 %v4219_v60 }
0x1050   :  { %13466 = vrcp.f32 %v4226_v37 }
0x1058   :  { %v13463_v40 = vpop.eup %13462 }
0x1059   :  { %v13465_v57 = vpop.eup %13464  ;;  %v4230_v29 = vmul.f32 %v13463_v40, %v13461_v9 }
0x105a   :  { %v4229_v5 = vmul.f32 %v13465_v57, %v15731_v41  ;;  %v13467_v56 = vpop.eup %13466  ;;  %v9603_v41 = vld [vmem:[%s17709_s3 + $0x4] sm:$0xf] }
0x105b   :  { %v16105_v43 = vrot.slane %v9603_v41, %v15174_v62  ;;  %v16108_v49 = vrot.slane %v9603_v41, %v15179_v22  ;;  %v16113_v51 = vrot.slane %v9603_v41, %v15187_v18  ;;  %v16117_v27 = vrot.slane %v9603_v41, %v15194_v12 }
0x105c   :  { %v4231_v3 = vadd.f32 %v4230_v29, %v4229_v5 }
0x105e   :  { %13468 = vtanh.f32 %v4231_v3 }
0x1068   :  { %v13469_v61 = vpop.eup %13468 }
0x1069   :  { %v4233_v26 = vmul.f32 %v13469_v61, %v13467_v56 }
0x106b   :  { %4438 = vmatmul.mubr.f32.gmra.mrb[44].mxu0 %v4233_v26  ;;  %4551 = vmatmul.mubr.f32.gmra.mrb[48].mxu1 %v4233_v26 }
0x106c   :  { %4722 = vmatprep.mubr.f32.mxu0 %v13785_v0  ;;  %4793 = vmatprep.mubr.f32.mxu1 %v13785_v0 }
0x106f   :  { %4723 = vmatmul.mubr.f32.vlgmr.msra.gmra.mrb[30].mxu0 %v13785_v0  ;;  %4794 = vmatmul.mubr.f32.vlgmr.msra.gmra.mrb[34].mxu1 %v13785_v0 }
0x1070   :  { %11965 = vmatpush1.bf16.msra.mxu0 %v15788_v48  ;;  %11997 = vmatpush1.bf16.msra.mxu1 %v15799_v59 }
0x1071   :  { %11967 = vmatprep.subr.bf16.mxu0 %v15813_v14  ;;  %11999 = vmatprep.subr.bf16.mxu1 %v15826_v8 }
0x1072   :  { %4961 = vmatprep.mubr.f32.mxu0 %v13785_v0  ;;  %5032 = vmatprep.mubr.f32.mxu1 %v13785_v0 }
0x1074   :  { %11969 = vmatpush1.bf16.msra.mxu0 %v15824_v34  ;;  %12001 = vmatpush1.bf16.msra.mxu1 %v15835_v36 }
0x1075   :  { %11971 = vmatprep.subr.bf16.mxu0 %v15849_v17  ;;  %12003 = vmatprep.subr.bf16.mxu1 %v15862_v44 }
0x1078   :  { %11973 = vmatpush1.bf16.msra.mxu0 %v15860_v32  ;;  %12005 = vmatpush1.bf16.msra.mxu1 %v15871_v24 }
0x1079   :  { %11975 = vmatprep.subr.bf16.mxu0 %v15885_v30  ;;  %12007 = vmatprep.subr.bf16.mxu1 %v15898_v2 }
0x107c   :  { %11977 = vmatpush1.bf16.msra.mxu0 %v15896_v53  ;;  %12009 = vmatpush1.bf16.msra.mxu1 %v15910_v47 }
0x107d   :  { %11979 = vmatprep.subr.bf16.mxu0 %v15923_v46  ;;  %12011 = vmatprep.subr.bf16.mxu1 %v15937_v1 }
0x1080   :  { %11981 = vmatpush1.bf16.msra.mxu0 %v15925_v58  ;;  %12013 = vmatpush1.bf16.msra.mxu1 %v15949_v54 }
0x1081   :  { %11983 = vmatprep.subr.bf16.mxu0 %v15951_v11  ;;  %12015 = vmatprep.subr.bf16.mxu1 %v15975_v33 }
0x1084   :  { %11985 = vmatpush1.bf16.msra.mxu0 %v15973_v28  ;;  %12017 = vmatpush1.bf16.msra.mxu1 %v15988_v39 }
0x1085   :  { %11987 = vmatprep.subr.bf16.mxu0 %v15990_v52  ;;  %12019 = vmatprep.subr.bf16.mxu1 %v16002_v55 }
0x1088   :  { %11989 = vmatpush1.bf16.msra.mxu0 %v16017_v50  ;;  %12021 = vmatpush1.bf16.msra.mxu1 %v16021_v31 }
0x1089   :  { %11991 = vmatprep.subr.bf16.mxu0 %v16023_v20  ;;  %12023 = vmatprep.subr.bf16.mxu1 %v16041_v63 }
0x108c   :  { %11993 = vmatpush1.bf16.msra.mxu0 %v16046_v21  ;;  %12025 = vmatpush1.bf16.msra.mxu1 %v16052_v19 }
0x108d   :  { %12027 = vmatprep.subr.bf16.mxu0 %v15777_v10  ;;  %12059 = vmatprep.subr.bf16.mxu1 %v15790_v38 }
0x1142   :  { %v4724_v15 = vpop.f32.mrb[30].mxu0  ;;  %v4795_v42 = vpop.f32.mrb[34].mxu1 }
0x1143   :  { %v13050_v16 = vadd.f32 %v4724_v15, %v16105_v43  ;;  %v4726_v45 = vpop.f32.mrb[31].mxu0  ;;  %v4797_v7 = vpop.f32.mrb[35].mxu1  ;;  %v13066_v60 = vadd.f32 %v4795_v42, %v16117_v27 }
0x1144   :  { %v13051_v35 = vadd.f32 %v4726_v45, %v16108_v49  ;;  %v13067_v6 = vadd.f32 %v4797_v7, %v16113_v51 }
0x1145   :  { %v9668_v25 = vmul.f32 -1.442695, %v13050_v16 }
0x1146   :  { %v9669_v13 = vmul.f32 -1.442695, %v13051_v35  ;;  %v9670_v4 = vmul.f32 -1.442695, %v13067_v6 }
0x1147   :  { %13470 = vpow2.f32 %v9668_v25 }
0x1148   :  { %13472 = vpow2.f32 %v9669_v13 }
0x1149   :  { %13474 = vpow2.f32 %v9670_v4 }
0x114a   :  { %13476 = vtanh.f32 %v13066_v60 }
0x1151   :  { %v13471_v23 = vpop.eup %13470 }
0x1152   :  { %v13473_v9 = vpop.eup %13472  ;;  %v4807_v40 = vadd.f32 1.0, %v13471_v23 }
0x1153   :  { %v4813_v57 = vadd.f32 1.0, %v13473_v9  ;;  %v13475_v29 = vpop.eup %13474 }
0x1154   :  { %13478 = vrcp.f32 %v4807_v40  ;;  %v13477_v37 = vpop.eup %13476  ;;  %v4820_v61 = vadd.f32 1.0, %v13475_v29 }
0x1155   :  { %13480 = vrcp.f32 %v4813_v57 }
0x1156   :  { %13482 = vrcp.f32 %v4820_v61 }
0x115e   :  { %v13479_v5 = vpop.eup %13478 }
0x115f   :  { %v13481_v3 = vpop.eup %13480  ;;  %v4824_v56 = vmul.f32 %v13479_v5, %v13477_v37 }
0x1160   :  { %v4823_v26 = vmul.f32 0.0, %v13481_v3  ;;  %v13483_v15 = vpop.eup %13482 }
0x1162   :  { %v16120_v41 = vadd.f32 %v4824_v56, %v4823_v26 }
0x1164   :  { %13484 = vtanh.f32 %v16120_v41 }
0x116e   :  { %v13485_v42 = vpop.eup %13484 }
0x116f   :  { %v16123_v16 = vmul.f32 %v13485_v42, %v13483_v15 }
0x1171   :  { %4962 = vmatmul.mubr.f32.vlgmr.msra.gmra.mrb[32].mxu0 %v16123_v16  ;;  %5033 = vmatmul.mubr.f32.vlgmr.msra.gmra.mrb[36].mxu1 %v16123_v16 }
0x1172   :  { %12029 = vmatpush1.bf16.msra.mxu0 %v15788_v48  ;;  %12061 = vmatpush1.bf16.msra.mxu1 %v15799_v59 }
0x1173   :  { %12031 = vmatprep.subr.bf16.mxu0 %v15813_v14  ;;  %12063 = vmatprep.subr.bf16.mxu1 %v15826_v8 }
0x1174   :  { %5200 = vmatprep.mubr.f32.mxu0 %v13785_v0  ;;  %5271 = vmatprep.mubr.f32.mxu1 %v13785_v0 }
0x1176   :  { %12033 = vmatpush1.bf16.msra.mxu0 %v15824_v34  ;;  %12065 = vmatpush1.bf16.msra.mxu1 %v15835_v36 }
0x1177   :  { %12035 = vmatprep.subr.bf16.mxu0 %v15849_v17  ;;  %12067 = vmatprep.subr.bf16.mxu1 %v15862_v44 }
0x117a   :  { %12037 = vmatpush1.bf16.msra.mxu0 %v15860_v32  ;;  %12069 = vmatpush1.bf16.msra.mxu1 %v15871_v24 }
0x117b   :  { %12039 = vmatprep.subr.bf16.mxu0 %v15885_v30  ;;  %12071 = vmatprep.subr.bf16.mxu1 %v15898_v2 }
0x117e   :  { %12041 = vmatpush1.bf16.msra.mxu0 %v15896_v53  ;;  %12073 = vmatpush1.bf16.msra.mxu1 %v15910_v47 }
0x117f   :  { %12043 = vmatprep.subr.bf16.mxu0 %v15923_v46  ;;  %12075 = vmatprep.subr.bf16.mxu1 %v15937_v1 }
0x1182   :  { %12045 = vmatpush1.bf16.msra.mxu0 %v15925_v58  ;;  %12077 = vmatpush1.bf16.msra.mxu1 %v15949_v54 }
0x1183   :  { %12047 = vmatprep.subr.bf16.mxu0 %v15951_v11  ;;  %12079 = vmatprep.subr.bf16.mxu1 %v15975_v33 }
0x1186   :  { %12049 = vmatpush1.bf16.msra.mxu0 %v15973_v28  ;;  %12081 = vmatpush1.bf16.msra.mxu1 %v15988_v39 }
0x1187   :  { %12051 = vmatprep.subr.bf16.mxu0 %v15990_v52  ;;  %12083 = vmatprep.subr.bf16.mxu1 %v16002_v55 }
0x118a   :  { %12053 = vmatpush1.bf16.msra.mxu0 %v16017_v50  ;;  %12085 = vmatpush1.bf16.msra.mxu1 %v16021_v31 }
0x118b   :  { %12055 = vmatprep.subr.bf16.mxu0 %v16023_v20  ;;  %12087 = vmatprep.subr.bf16.mxu1 %v16041_v63 }
0x118e   :  { %12057 = vmatpush1.bf16.msra.mxu0 %v16046_v21  ;;  %12089 = vmatpush1.bf16.msra.mxu1 %v16052_v19 }
0x118f   :  { %12091 = vmatprep.subr.bf16.mxu0 %v15777_v10  ;;  %12123 = vmatprep.subr.bf16.mxu1 %v15790_v38 }
0x1244   :  { %v4963_v45 = vpop.f32.mrb[32].mxu0  ;;  %v5034_v7 = vpop.f32.mrb[36].mxu1 }
0x1245   :  { %v13052_v35 = vadd.f32 %v4963_v45, %v16105_v43  ;;  %v4965_v25 = vpop.f32.mrb[33].mxu0  ;;  %v5036_v13 = vpop.f32.mrb[37].mxu1  ;;  %v13068_v40 = vadd.f32 %v5034_v7, %v16117_v27 }
0x1246   :  { %v13053_v6 = vadd.f32 %v4965_v25, %v16108_v49  ;;  %v13069_v23 = vadd.f32 %v5036_v13, %v16113_v51  ;;  %v9872_v25 = vld [vmem:[%s17708_s2 + $0x400] sm:$0xff] }
0x1247   :  { %v9735_v4 = vmul.f32 -1.442695, %v13052_v35  ;;  %v9876_v13 = vld [vmem:[%s17708_s2 + $0x420] sm:$0xff] }
0x1248   :  { %v9736_v60 = vmul.f32 -1.442695, %v13053_v6  ;;  %v9737_v9 = vmul.f32 -1.442695, %v13069_v23  ;;  %v9878_v23 = vld [vmem:[%s17708_s2 + $0x430] sm:$0xff] }
0x1249   :  { %13486 = vpow2.f32 %v9735_v4  ;;  %v16241_v4 = vpack.c.bf16 %v9876_v13, %v9872_v25 }
0x124a   :  { %13488 = vpow2.f32 %v9736_v60  ;;  %v9874_v60 = vld [vmem:[%s17708_s2 + $0x410] sm:$0xff] }
0x124b   :  { %13490 = vpow2.f32 %v9737_v9  ;;  %v16250_v9 = vpack.c.bf16 %v9878_v23, %v9874_v60  ;;  %v9906_v60 = vld [vmem:[%s17708_s2 + $0x510] sm:$0xff] }
0x124c   :  { %13492 = vtanh.f32 %v13068_v40  ;;  %v9881_v40 = vld [vmem:[%s17708_s2 + $0x448] sm:$0xff]  ;;  %v9910_v23 = vld [vmem:[%s17708_s2 + $0x530] sm:$0xff] }
0x1253   :  { %v13487_v10 = vpop.eup %13486 }
0x1254   :  { %v13489_v57 = vpop.eup %13488  ;;  %v5046_v38 = vadd.f32 1.0, %v13487_v10  ;;  %v9885_v10 = vld [vmem:[%s17708_s2 + $0x468] sm:$0xff] }
0x1255   :  { %v5052_v29 = vadd.f32 1.0, %v13489_v57  ;;  %v13491_v37 = vpop.eup %13490  ;;  %v9883_v57 = vld [vmem:[%s17708_s2 + $0x458] sm:$0xff] }
0x1256   :  { %13494 = vrcp.f32 %v5046_v38  ;;  %v13493_v5 = vpop.eup %13492  ;;  %v5059_v26 = vadd.f32 1.0, %v13491_v37  ;;  %v16264_v38 = vpack.c.bf16 %v9885_v10, %v9881_v40  ;;  %v9880_v37 = vld [vmem:[%s17708_s2 + $0x440] sm:$0xff]  ;;  %v16394_v40 = vpack.c.bf16 %v9910_v23, %v9906_v60  ;;  %v9913_v10 = vld [vmem:[%s17708_s2 + $0x548] sm:$0xff] }
0x1257   :  { %13496 = vrcp.f32 %v5052_v29  ;;  %v9887_v29 = vld [vmem:[%s17708_s2 + $0x478] sm:$0xff]  ;;  %v9928_v60 = vld [vmem:[%s17708_s2 + $0x5c0] sm:$0xff] }
0x1258   :  { %13498 = vrcp.f32 %v5059_v26  ;;  %v9886_v26 = vld [vmem:[%s17708_s2 + $0x470] sm:$0xff] }
0x1260   :  { %v13495_v3 = vpop.eup %13494 }
0x1261   :  { %v13497_v56 = vpop.eup %13496  ;;  %v5063_v61 = vmul.f32 %v13495_v3, %v13493_v5  ;;  %v9884_v5 = vld [vmem:[%s17708_s2 + $0x460] sm:$0xff]  ;;  %v16275_v3 = vpack.c.bf16 %v9887_v29, %v9883_v57  ;;  %v9917_v57 = vld [vmem:[%s17708_s2 + $0x568] sm:$0xff]  ;;  %v9915_v29 = vld [vmem:[%s17708_s2 + $0x558] sm:$0xff] }
0x1262   :  { %v5062_v15 = vmul.f32 %v13497_v56, %v16120_v41  ;;  %v13499_v45 = vpop.eup %13498  ;;  %v9879_v41 = vld [vmem:[%s17708_s2 + $0x438] sm:$0xff]  ;;  %v16277_v56 = vpack.c.bf16 %v9884_v5, %v9880_v37  ;;  %v16407_v37 = vpack.c.bf16 %v9917_v57, %v9913_v10  ;;  %v9932_v10 = vld [vmem:[%s17708_s2 + $0x5e0] sm:$0xff]  ;;  %v9930_v57 = vld [vmem:[%s17708_s2 + $0x5d0] sm:$0xff] }
0x1263   :  { %v9919_v5 = vld [vmem:[%s17708_s2 + $0x578] sm:$0xff] }
0x1264   :  { %v16166_v42 = vadd.f32 %v5063_v61, %v5062_v15  ;;  %v9882_v61 = vld [vmem:[%s17708_s2 + $0x450] sm:$0xff] }
0x1265   :  { %v16286_v15 = vpack.c.bf16 %v9886_v26, %v9882_v61  ;;  %v9912_v61 = vld [vmem:[%s17708_s2 + $0x540] sm:$0xff] }
0x1266   :  { %13500 = vtanh.f32 %v16166_v42  ;;  %v9916_v26 = vld [vmem:[%s17708_s2 + $0x560] sm:$0xff] }
0x1270   :  { %v13501_v7 = vpop.eup %13500 }
0x1271   :  { %v16169_v35 = vmul.f32 %v13501_v7, %v13499_v45  ;;  %v9893_v45 = vld [vmem:[%s17708_s2 + $0x4a8] sm:$0xff]  ;;  %v9891_v7 = vld [vmem:[%s17708_s2 + $0x498] sm:$0xff] }
0x1273   :  { %5201 = vmatmul.mubr.f32.vlgmr.msra.gmra.mrb[34].mxu0 %v16169_v35  ;;  %5272 = vmatmul.mubr.f32.vlgmr.msra.gmra.mrb[38].mxu1 %v16169_v35 }
0x1274   :  { %12093 = vmatpush1.bf16.msra.mxu0 %v15788_v48  ;;  %12125 = vmatpush1.bf16.msra.mxu1 %v15799_v59 }
0x1275   :  { %12095 = vmatprep.subr.bf16.mxu0 %v15813_v14  ;;  %12127 = vmatprep.subr.bf16.mxu1 %v15826_v8 }
0x1276   :  { %5439 = vmatprep.mubr.f32.mxu0 %v13785_v0  ;;  %5510 = vmatprep.mubr.f32.mxu1 %v13785_v0 }
0x1278   :  { %12097 = vmatpush1.bf16.msra.mxu0 %v15824_v34  ;;  %12129 = vmatpush1.bf16.msra.mxu1 %v15835_v36 }
0x1279   :  { %12099 = vmatprep.subr.bf16.mxu0 %v15849_v17  ;;  %12131 = vmatprep.subr.bf16.mxu1 %v15862_v44 }
0x127c   :  { %12101 = vmatpush1.bf16.msra.mxu0 %v15860_v32  ;;  %12133 = vmatpush1.bf16.msra.mxu1 %v15871_v24 }
0x127d   :  { %12103 = vmatprep.subr.bf16.mxu0 %v15885_v30  ;;  %12135 = vmatprep.subr.bf16.mxu1 %v15898_v2 }
0x1280   :  { %12105 = vmatpush1.bf16.msra.mxu0 %v15896_v53  ;;  %12137 = vmatpush1.bf16.msra.mxu1 %v15910_v47 }
0x1281   :  { %12107 = vmatprep.subr.bf16.mxu0 %v15923_v46  ;;  %12139 = vmatprep.subr.bf16.mxu1 %v15937_v1 }
0x1284   :  { %12109 = vmatpush1.bf16.msra.mxu0 %v15925_v58  ;;  %12141 = vmatpush1.bf16.msra.mxu1 %v15949_v54 }
0x1285   :  { %12111 = vmatprep.subr.bf16.mxu0 %v15951_v11  ;;  %12143 = vmatprep.subr.bf16.mxu1 %v15975_v33 }
0x1288   :  { %12113 = vmatpush1.bf16.msra.mxu0 %v15973_v28  ;;  %12145 = vmatpush1.bf16.msra.mxu1 %v15988_v39 }
0x1289   :  { %12115 = vmatprep.subr.bf16.mxu0 %v15990_v52  ;;  %12147 = vmatprep.subr.bf16.mxu1 %v16002_v55 }
0x128c   :  { %12117 = vmatpush1.bf16.msra.mxu0 %v16017_v50  ;;  %12149 = vmatpush1.bf16.msra.mxu1 %v16021_v31 }
0x128d   :  { %12119 = vmatprep.subr.bf16.mxu0 %v16023_v20  ;;  %12151 = vmatprep.subr.bf16.mxu1 %v16041_v63  ;;  %v9873_v20 = vld [vmem:[%s17708_s2 + $0x408] sm:$0xff] }
0x128e   :  { %v9877_v63 = vld [vmem:[%s17708_s2 + $0x428] sm:$0xff] }
0x1290   :  { %12121 = vmatpush1.bf16.msra.mxu0 %v16046_v21  ;;  %12153 = vmatpush1.bf16.msra.mxu1 %v16052_v19  ;;  %v9875_v21 = vld [vmem:[%s17708_s2 + $0x418] sm:$0xff]  ;;  %v16228_v19 = vpack.c.bf16 %v9877_v63, %v9873_v20 }
0x1291   :  { %v16239_v6 = vpack.c.bf16 %v9879_v41, %v9875_v21  ;;  %v9911_v63 = vld [vmem:[%s17708_s2 + $0x538] sm:$0xff]  ;;  %v9904_v21 = vld [vmem:[%s17708_s2 + $0x500] sm:$0xff] }
0x1292   :  { %12155 = vmatprep.subr.bf16.mxu0 %v16228_v19  ;;  %v9908_v41 = vld [vmem:[%s17708_s2 + $0x520] sm:$0xff] }
0x1293   :  { %12187 = vmatprep.subr.bf16.mxu1 %v16239_v6  ;;  %v16385_v13 = vpack.c.bf16 %v9908_v41, %v9904_v21  ;;  %v9931_v21 = vld [vmem:[%s17708_s2 + $0x5d8] sm:$0xff] }
0x1294   :  { %v9935_v41 = vld [vmem:[%s17708_s2 + $0x5f8] sm:$0xff] }
0x1295   :  { %v16486_v23 = vpack.c.bf16 %v9935_v41, %v9931_v21 }
0x1346   :  { %v5202_v48 = vpop.f32.mrb[34].mxu0  ;;  %v5273_v59 = vpop.f32.mrb[38].mxu1 }
0x1347   :  { %v13054_v14 = vadd.f32 %v5202_v48, %v16105_v43  ;;  %v5204_v34 = vpop.f32.mrb[35].mxu0  ;;  %v5275_v8 = vpop.f32.mrb[39].mxu1  ;;  %v13070_v30 = vadd.f32 %v5273_v59, %v16117_v27  ;;  %v9895_v59 = vld [vmem:[%s17708_s2 + $0x4b8] sm:$0xff] }
0x1348   :  { %v13055_v36 = vadd.f32 %v5204_v34, %v16108_v49  ;;  %v13071_v44 = vadd.f32 %v5275_v8, %v16113_v51  ;;  %v9892_v34 = vld [vmem:[%s17708_s2 + $0x4a0] sm:$0xff]  ;;  %v16311_v8 = vpack.c.bf16 %v9895_v59, %v9891_v7  ;;  %v9914_v7 = vld [vmem:[%s17708_s2 + $0x550] sm:$0xff] }
0x1349   :  { %v9802_v17 = vmul.f32 -1.442695, %v13054_v14  ;;  %v9888_v14 = vld [vmem:[%s17708_s2 + $0x480] sm:$0xff]  ;;  %v9918_v59 = vld [vmem:[%s17708_s2 + $0x570] sm:$0xff] }
0x134a   :  { %v9803_v32 = vmul.f32 -1.442695, %v13055_v36  ;;  %v9804_v24 = vmul.f32 -1.442695, %v13071_v44  ;;  %v16313_v36 = vpack.c.bf16 %v9892_v34, %v9888_v14  ;;  %v9921_v14 = vld [vmem:[%s17708_s2 + $0x588] sm:$0xff]  ;;  %v16433_v34 = vpack.c.bf16 %v9918_v59, %v9914_v7 }
0x134b   :  { %13502 = vpow2.f32 %v9802_v17  ;;  %v9890_v17 = vld [vmem:[%s17708_s2 + $0x490] sm:$0xff] }
0x134c   :  { %13504 = vpow2.f32 %v9803_v32  ;;  %v9894_v32 = vld [vmem:[%s17708_s2 + $0x4b0] sm:$0xff] }
0x134d   :  { %13506 = vpow2.f32 %v9804_v24  ;;  %v16322_v44 = vpack.c.bf16 %v9894_v32, %v9890_v17  ;;  %v9897_v24 = vld [vmem:[%s17708_s2 + $0x4c8] sm:$0xff]  ;;  %v9923_v32 = vld [vmem:[%s17708_s2 + $0x598] sm:$0xff] }
0x134e   :  { %13508 = vtanh.f32 %v13070_v30  ;;  %v9901_v30 = vld [vmem:[%s17708_s2 + $0x4e8] sm:$0xff] }
0x134f   :  { %v9925_v17 = vld [vmem:[%s17708_s2 + $0x5a8] sm:$0xff] }
0x1355   :  { %v13503_v53 = vpop.eup %13502 }
0x1356   :  { %v13505_v2 = vpop.eup %13504  ;;  %v5285_v47 = vadd.f32 1.0, %v13503_v53  ;;  %v9899_v53 = vld [vmem:[%s17708_s2 + $0x4d8] sm:$0xff] }
0x1357   :  { %v5291_v46 = vadd.f32 1.0, %v13505_v2  ;;  %v13507_v58 = vpop.eup %13506  ;;  %v16336_v2 = vpack.c.bf16 %v9901_v30, %v9897_v24  ;;  %v9927_v24 = vld [vmem:[%s17708_s2 + $0x5b8] sm:$0xff]  ;;  %v16445_v30 = vpack.c.bf16 %v9925_v17, %v9921_v14 }
0x1358   :  { %13510 = vrcp.f32 %v5285_v47  ;;  %v13509_v1 = vpop.eup %13508  ;;  %v5298_v33 = vadd.f32 1.0, %v13507_v58  ;;  %v9903_v47 = vld [vmem:[%s17708_s2 + $0x4f8] sm:$0xff]  ;;  %v9900_v58 = vld [vmem:[%s17708_s2 + $0x4e0] sm:$0xff] }
0x1359   :  { %13512 = vrcp.f32 %v5291_v46  ;;  %v9896_v46 = vld [vmem:[%s17708_s2 + $0x4c0] sm:$0xff] }
0x135a   :  { %13514 = vrcp.f32 %v5298_v33 }
0x1362   :  { %v13511_v54 = vpop.eup %13510 }
0x1363   :  { %v13513_v11 = vpop.eup %13512  ;;  %v5302_v28 = vmul.f32 %v13511_v54, %v13509_v1  ;;  %v16347_v1 = vpack.c.bf16 %v9903_v47, %v9899_v53  ;;  %v16349_v54 = vpack.c.bf16 %v9900_v58, %v9896_v46  ;;  %v16447_v53 = vpack.c.bf16 %v9927_v24, %v9923_v32  ;;  %v9920_v47 = vld [vmem:[%s17708_s2 + $0x580] sm:$0xff]  ;;  %v9922_v58 = vld [vmem:[%s17708_s2 + $0x590] sm:$0xff] }
0x1364   :  { %v5301_v39 = vmul.f32 %v13513_v11, %v16166_v42  ;;  %v13515_v55 = vpop.eup %13514  ;;  %v9889_v42 = vld [vmem:[%s17708_s2 + $0x488] sm:$0xff]  ;;  %v9898_v11 = vld [vmem:[%s17708_s2 + $0x4d0] sm:$0xff]  ;;  %v9924_v46 = vld [vmem:[%s17708_s2 + $0x5a0] sm:$0xff] }
0x1365   :  { %v16300_v48 = vpack.c.bf16 %v9893_v45, %v9889_v42  ;;  %v16419_v42 = vpack.c.bf16 %v9919_v5, %v9915_v29  ;;  %v16421_v45 = vpack.c.bf16 %v9916_v26, %v9912_v61  ;;  %v9934_v29 = vld [vmem:[%s17708_s2 + $0x5f0] sm:$0xff]  ;;  %v16498_v5 = vpack.c.bf16 %v9932_v10, %v9928_v60 }
0x1366   :  { %v16210_v52 = vadd.f32 %v5302_v28, %v5301_v39  ;;  %v9902_v28 = vld [vmem:[%s17708_s2 + $0x4f0] sm:$0xff]  ;;  %v9905_v39 = vld [vmem:[%s17708_s2 + $0x508] sm:$0xff]  ;;  %v16502_v61 = vpack.c.bf16 %v9934_v29, %v9930_v57 }
0x1367   :  { %v16358_v33 = vpack.c.bf16 %v9902_v28, %v9898_v11  ;;  %v16459_v11 = vpack.c.bf16 %v9924_v46, %v9920_v47  ;;  %v9926_v28 = vld [vmem:[%s17708_s2 + $0x5b0] sm:$0xff] }
0x1368   :  { %13516 = vtanh.f32 %v16210_v52 }
0x1372   :  { %v13517_v50 = vpop.eup %13516 }
0x1373   :  { %v16213_v31 = vmul.f32 %v13517_v50, %v13515_v55  ;;  %v9909_v55 = vld [vmem:[%s17708_s2 + $0x528] sm:$0xff]  ;;  %v9907_v50 = vld [vmem:[%s17708_s2 + $0x518] sm:$0xff] }
0x1374   :  { %v16372_v20 = vpack.c.bf16 %v9909_v55, %v9905_v39  ;;  %v16383_v25 = vpack.c.bf16 %v9911_v63, %v9907_v50  ;;  %v9929_v39 = vld [vmem:[%s17708_s2 + $0x5c8] sm:$0xff]  ;;  %v16472_v50 = vpack.c.bf16 %v9926_v28, %v9922_v58 }
0x1375   :  { %5440 = vmatmul.mubr.f32.vlgmr.msra.gmra.mrb[36].mxu0 %v16213_v31  ;;  %5511 = vmatmul.mubr.f32.vlgmr.msra.gmra.mrb[40].mxu1 %v16213_v31  ;;  %v9933_v55 = vld [vmem:[%s17708_s2 + $0x5e8] sm:$0xff] }
0x1376   :  { %5678 = vmatprep.mubr.f32.mxu0 %v13785_v0  ;;  %5749 = vmatprep.mubr.f32.mxu1 %v13785_v0  ;;  %v16474_v63 = vpack.c.bf16 %v9933_v55, %v9929_v39 }
0x1377   :  { %12157 = vmatpush1.bf16.msra.mxu0 %v16241_v4  ;;  %12189 = vmatpush1.bf16.msra.mxu1 %v16250_v9 }
0x1378   :  { %12159 = vmatprep.subr.bf16.mxu0 %v16264_v38  ;;  %12191 = vmatprep.subr.bf16.mxu1 %v16275_v3 }
0x137b   :  { %12161 = vmatpush1.bf16.msra.mxu0 %v16277_v56  ;;  %12193 = vmatpush1.bf16.msra.mxu1 %v16286_v15 }
0x137c   :  { %12163 = vmatprep.subr.bf16.mxu0 %v16300_v48  ;;  %12195 = vmatprep.subr.bf16.mxu1 %v16311_v8 }
0x137f   :  { %12165 = vmatpush1.bf16.msra.mxu0 %v16313_v36  ;;  %12197 = vmatpush1.bf16.msra.mxu1 %v16322_v44 }
0x1380   :  { %12167 = vmatprep.subr.bf16.mxu0 %v16336_v2  ;;  %12199 = vmatprep.subr.bf16.mxu1 %v16347_v1 }
0x1383   :  { %12169 = vmatpush1.bf16.msra.mxu0 %v16349_v54  ;;  %12201 = vmatpush1.bf16.msra.mxu1 %v16358_v33 }
0x1384   :  { %12171 = vmatprep.subr.bf16.mxu0 %v16372_v20  ;;  %12203 = vmatprep.subr.bf16.mxu1 %v16383_v25 }
0x1387   :  { %12173 = vmatpush1.bf16.msra.mxu0 %v16385_v13  ;;  %12205 = vmatpush1.bf16.msra.mxu1 %v16394_v40 }
0x1388   :  { %12175 = vmatprep.subr.bf16.mxu0 %v16407_v37  ;;  %12207 = vmatprep.subr.bf16.mxu1 %v16419_v42 }
0x138b   :  { %12177 = vmatpush1.bf16.msra.mxu0 %v16421_v45  ;;  %12209 = vmatpush1.bf16.msra.mxu1 %v16433_v34 }
0x138c   :  { %12179 = vmatprep.subr.bf16.mxu0 %v16445_v30  ;;  %12211 = vmatprep.subr.bf16.mxu1 %v16447_v53 }
0x138f   :  { %12181 = vmatpush1.bf16.msra.mxu0 %v16459_v11  ;;  %12213 = vmatpush1.bf16.msra.mxu1 %v16472_v50 }
0x1390   :  { %12183 = vmatprep.subr.bf16.mxu0 %v16474_v63  ;;  %12215 = vmatprep.subr.bf16.mxu1 %v16486_v23 }
0x1393   :  { %12185 = vmatpush1.bf16.msra.mxu0 %v16498_v5  ;;  %12217 = vmatpush1.bf16.msra.mxu1 %v16502_v61 }
0x1394   :  { %12219 = vmatprep.subr.bf16.mxu0 %v16228_v19  ;;  %12251 = vmatprep.subr.bf16.mxu1 %v16239_v6 }
0x1448   :  { %v5441_v26 = vpop.f32.mrb[36].mxu0  ;;  %v5512_v7 = vpop.f32.mrb[40].mxu1 }
0x1449   :  { %v13056_v59 = vadd.f32 %v5441_v26, %v16105_v43  ;;  %v5443_v14 = vpop.f32.mrb[37].mxu0  ;;  %v5514_v17 = vpop.f32.mrb[41].mxu1  ;;  %v13072_v28 = vadd.f32 %v5512_v7, %v16117_v27 }
0x144a   :  { %v13057_v32 = vadd.f32 %v5443_v14, %v16108_v49  ;;  %v13073_v46 = vadd.f32 %v5514_v17, %v16113_v51 }
0x144b   :  { %v9869_v24 = vmul.f32 -1.442695, %v13056_v59 }
0x144c   :  { %v9870_v47 = vmul.f32 -1.442695, %v13057_v32  ;;  %v9871_v58 = vmul.f32 -1.442695, %v13073_v46 }
0x144d   :  { %13518 = vpow2.f32 %v9869_v24 }
0x144e   :  { %13520 = vpow2.f32 %v9870_v47 }
0x144f   :  { %13522 = vpow2.f32 %v9871_v58 }
0x1450   :  { %13524 = vtanh.f32 %v13072_v28 }
0x1457   :  { %v13519_v39 = vpop.eup %13518 }
0x1458   :  { %v13521_v55 = vpop.eup %13520  ;;  %v5524_v21 = vadd.f32 1.0, %v13519_v39 }
0x1459   :  { %v5530_v41 = vadd.f32 1.0, %v13521_v55  ;;  %v13523_v60 = vpop.eup %13522 }
0x145a   :  { %13526 = vrcp.f32 %v5524_v21  ;;  %v13525_v10 = vpop.eup %13524  ;;  %v5537_v59 = vadd.f32 1.0, %v13523_v60 }
0x145b   :  { %13528 = vrcp.f32 %v5530_v41 }
0x145c   :  { %13530 = vrcp.f32 %v5537_v59 }
0x1464   :  { %v13527_v57 = vpop.eup %13526 }
0x1465   :  { %v13529_v29 = vpop.eup %13528  ;;  %v5541_v26 = vmul.f32 %v13527_v57, %v13525_v10 }
0x1466   :  { %v5540_v14 = vmul.f32 %v13529_v29, %v16210_v52  ;;  %v13531_v7 = vpop.eup %13530 }
0x1468   :  { %v16514_v17 = vadd.f32 %v5541_v26, %v5540_v14 }
0x146a   :  { %13532 = vtanh.f32 %v16514_v17 }
0x1474   :  { %v13533_v32 = vpop.eup %13532 }
0x1475   :  { %v16517_v24 = vmul.f32 %v13533_v32, %v13531_v7 }
0x1477   :  { %5679 = vmatmul.mubr.f32.vlgmr.msra.gmra.mrb[38].mxu0 %v16517_v24  ;;  %5750 = vmatmul.mubr.f32.vlgmr.msra.gmra.mrb[42].mxu1 %v16517_v24 }
0x1478   :  { %12221 = vmatpush1.bf16.msra.mxu0 %v16241_v4  ;;  %12253 = vmatpush1.bf16.msra.mxu1 %v16250_v9 }
0x1479   :  { %12223 = vmatprep.subr.bf16.mxu0 %v16264_v38  ;;  %12255 = vmatprep.subr.bf16.mxu1 %v16275_v3 }
0x147a   :  { %5917 = vmatprep.mubr.f32.mxu0 %v13785_v0  ;;  %5988 = vmatprep.mubr.f32.mxu1 %v13785_v0 }
0x147c   :  { %12225 = vmatpush1.bf16.msra.mxu0 %v16277_v56  ;;  %12257 = vmatpush1.bf16.msra.mxu1 %v16286_v15 }
0x147d   :  { %12227 = vmatprep.subr.bf16.mxu0 %v16300_v48  ;;  %12259 = vmatprep.subr.bf16.mxu1 %v16311_v8 }
0x1480   :  { %12229 = vmatpush1.bf16.msra.mxu0 %v16313_v36  ;;  %12261 = vmatpush1.bf16.msra.mxu1 %v16322_v44 }
0x1481   :  { %12231 = vmatprep.subr.bf16.mxu0 %v16336_v2  ;;  %12263 = vmatprep.subr.bf16.mxu1 %v16347_v1 }
0x1484   :  { %12233 = vmatpush1.bf16.msra.mxu0 %v16349_v54  ;;  %12265 = vmatpush1.bf16.msra.mxu1 %v16358_v33 }
0x1485   :  { %12235 = vmatprep.subr.bf16.mxu0 %v16372_v20  ;;  %12267 = vmatprep.subr.bf16.mxu1 %v16383_v25 }
0x1488   :  { %12237 = vmatpush1.bf16.msra.mxu0 %v16385_v13  ;;  %12269 = vmatpush1.bf16.msra.mxu1 %v16394_v40 }
0x1489   :  { %12239 = vmatprep.subr.bf16.mxu0 %v16407_v37  ;;  %12271 = vmatprep.subr.bf16.mxu1 %v16419_v42 }
0x148c   :  { %12241 = vmatpush1.bf16.msra.mxu0 %v16421_v45  ;;  %12273 = vmatpush1.bf16.msra.mxu1 %v16433_v34 }
0x148d   :  { %12243 = vmatprep.subr.bf16.mxu0 %v16445_v30  ;;  %12275 = vmatprep.subr.bf16.mxu1 %v16447_v53 }
0x1490   :  { %12245 = vmatpush1.bf16.msra.mxu0 %v16459_v11  ;;  %12277 = vmatpush1.bf16.msra.mxu1 %v16472_v50 }
0x1491   :  { %12247 = vmatprep.subr.bf16.mxu0 %v16474_v63  ;;  %12279 = vmatprep.subr.bf16.mxu1 %v16486_v23 }
0x1494   :  { %12249 = vmatpush1.bf16.msra.mxu0 %v16498_v5  ;;  %12281 = vmatpush1.bf16.msra.mxu1 %v16502_v61 }
0x1495   :  { %12283 = vmatprep.subr.bf16.mxu0 %v16228_v19  ;;  %12315 = vmatprep.subr.bf16.mxu1 %v16239_v6 }
0x154a   :  { %v5680_v52 = vpop.f32.mrb[38].mxu0  ;;  %v5751_v47 = vpop.f32.mrb[42].mxu1 }
0x154b   :  { %v13058_v46 = vadd.f32 %v5680_v52, %v16105_v43  ;;  %v5682_v58 = vpop.f32.mrb[39].mxu0  ;;  %v5753_v28 = vpop.f32.mrb[43].mxu1  ;;  %v13074_v10 = vadd.f32 %v5751_v47, %v16117_v27 }
0x154c   :  { %v13059_v39 = vadd.f32 %v5682_v58, %v16108_v49  ;;  %v13075_v41 = vadd.f32 %v5753_v28, %v16113_v51 }
0x154d   :  { %v9936_v55 = vmul.f32 -1.442695, %v13058_v46 }
0x154e   :  { %v9937_v21 = vmul.f32 -1.442695, %v13059_v39  ;;  %v9938_v60 = vmul.f32 -1.442695, %v13075_v41 }
0x154f   :  { %13534 = vpow2.f32 %v9936_v55 }
0x1550   :  { %13536 = vpow2.f32 %v9937_v21 }
0x1551   :  { %13538 = vpow2.f32 %v9938_v60 }
0x1552   :  { %13540 = vtanh.f32 %v13074_v10 }
0x1559   :  { %v13535_v57 = vpop.eup %13534 }
0x155a   :  { %v13537_v29 = vpop.eup %13536  ;;  %v5763_v26 = vadd.f32 1.0, %v13535_v57 }
0x155b   :  { %v5769_v59 = vadd.f32 1.0, %v13537_v29  ;;  %v13539_v14 = vpop.eup %13538 }
0x155c   :  { %13542 = vrcp.f32 %v5763_v26  ;;  %v13541_v7 = vpop.eup %13540  ;;  %v5776_v58 = vadd.f32 1.0, %v13539_v14 }
0x155d   :  { %13544 = vrcp.f32 %v5769_v59 }
0x155e   :  { %13546 = vrcp.f32 %v5776_v58 }
0x1566   :  { %v13543_v32 = vpop.eup %13542 }
0x1567   :  { %v13545_v52 = vpop.eup %13544  ;;  %v5780_v46 = vmul.f32 %v13543_v32, %v13541_v7 }
0x1568   :  { %v5779_v39 = vmul.f32 %v13545_v52, %v16514_v17  ;;  %v13547_v47 = vpop.eup %13546 }
0x156a   :  { %v16560_v28 = vadd.f32 %v5780_v46, %v5779_v39 }
0x156c   :  { %13548 = vtanh.f32 %v16560_v28 }
0x1576   :  { %v13549_v55 = vpop.eup %13548 }
0x1577   :  { %v16563_v21 = vmul.f32 %v13549_v55, %v13547_v47 }
0x1579   :  { %5918 = vmatmul.mubr.f32.vlgmr.msra.gmra.mrb[40].mxu0 %v16563_v21  ;;  %5989 = vmatmul.mubr.f32.vlgmr.msra.gmra.mrb[44].mxu1 %v16563_v21 }
0x157a   :  { %12285 = vmatpush1.bf16.msra.mxu0 %v16241_v4  ;;  %12317 = vmatpush1.bf16.msra.mxu1 %v16250_v9 }
0x157b   :  { %12287 = vmatprep.subr.bf16.mxu0 %v16264_v38  ;;  %12319 = vmatprep.subr.bf16.mxu1 %v16275_v3 }
0x157c   :  { %6156 = vmatprep.mubr.f32.mxu0 %v13785_v0  ;;  %6227 = vmatprep.mubr.f32.mxu1 %v13785_v0 }
0x157e   :  { %12289 = vmatpush1.bf16.msra.mxu0 %v16277_v56  ;;  %12321 = vmatpush1.bf16.msra.mxu1 %v16286_v15 }
0x157f   :  { %12291 = vmatprep.subr.bf16.mxu0 %v16300_v48  ;;  %12323 = vmatprep.subr.bf16.mxu1 %v16311_v8 }
0x1582   :  { %12293 = vmatpush1.bf16.msra.mxu0 %v16313_v36  ;;  %12325 = vmatpush1.bf16.msra.mxu1 %v16322_v44 }
0x1583   :  { %12295 = vmatprep.subr.bf16.mxu0 %v16336_v2  ;;  %12327 = vmatprep.subr.bf16.mxu1 %v16347_v1 }
0x1586   :  { %12297 = vmatpush1.bf16.msra.mxu0 %v16349_v54  ;;  %12329 = vmatpush1.bf16.msra.mxu1 %v16358_v33 }
0x1587   :  { %12299 = vmatprep.subr.bf16.mxu0 %v16372_v20  ;;  %12331 = vmatprep.subr.bf16.mxu1 %v16383_v25 }
0x158a   :  { %12301 = vmatpush1.bf16.msra.mxu0 %v16385_v13  ;;  %12333 = vmatpush1.bf16.msra.mxu1 %v16394_v40 }
0x158b   :  { %12303 = vmatprep.subr.bf16.mxu0 %v16407_v37  ;;  %12335 = vmatprep.subr.bf16.mxu1 %v16419_v42 }
0x158e   :  { %12305 = vmatpush1.bf16.msra.mxu0 %v16421_v45  ;;  %12337 = vmatpush1.bf16.msra.mxu1 %v16433_v34 }
0x158f   :  { %12307 = vmatprep.subr.bf16.mxu0 %v16445_v30  ;;  %12339 = vmatprep.subr.bf16.mxu1 %v16447_v53 }
0x1592   :  { %12309 = vmatpush1.bf16.msra.mxu0 %v16459_v11  ;;  %12341 = vmatpush1.bf16.msra.mxu1 %v16472_v50 }
0x1593   :  { %12311 = vmatprep.subr.bf16.mxu0 %v16474_v63  ;;  %12343 = vmatprep.subr.bf16.mxu1 %v16486_v23 }
0x1596   :  { %12313 = vmatpush1.bf16.msra.mxu0 %v16498_v5  ;;  %12345 = vmatpush1.bf16.msra.mxu1 %v16502_v61 }
0x1597   :  { %12347 = vmatprep.subr.bf16.mxu0 %v16228_v19  ;;  %12379 = vmatprep.subr.bf16.mxu1 %v16239_v6 }
0x164c   :  { %v5919_v17 = vpop.f32.mrb[40].mxu0  ;;  %v5990_v41 = vpop.f32.mrb[44].mxu1 }
0x164d   :  { %v13060_v60 = vadd.f32 %v5919_v17, %v16105_v43  ;;  %v5921_v10 = vpop.f32.mrb[41].mxu0  ;;  %v5992_v57 = vpop.f32.mrb[45].mxu1  ;;  %v13076_v32 = vadd.f32 %v5990_v41, %v16117_v27 }
0x164e   :  { %v13061_v29 = vadd.f32 %v5921_v10, %v16108_v49  ;;  %v13077_v14 = vadd.f32 %v5992_v57, %v16113_v51 }
0x164f   :  { %v10003_v26 = vmul.f32 -1.442695, %v13060_v60 }
0x1650   :  { %v10004_v59 = vmul.f32 -1.442695, %v13061_v29  ;;  %v10005_v7 = vmul.f32 -1.442695, %v13077_v14  ;;  %v6517_v14 = vld [vmem:[#allocation4 + $0x430] sm:$0xff] }
0x1651   :  { %13550 = vpow2.f32 %v10003_v26 }
0x1652   :  { %13552 = vpow2.f32 %v10004_v59  ;;  %v6513_v59 = vld [vmem:[#allocation4 + $0x410] sm:$0xff] }
0x1653   :  { %13554 = vpow2.f32 %v10005_v7  ;;  %v6520_v7 = vld [vmem:[#allocation4 + $0x448] sm:$0xff] }
0x1654   :  { %13556 = vtanh.f32 %v13076_v32  ;;  %v6524_v32 = vld [vmem:[#allocation4 + $0x468] sm:$0xff] }
0x165b   :  { %v13551_v19 = vpop.eup %13550 }
0x165c   :  { %v13553_v52 = vpop.eup %13552  ;;  %v6002_v6 = vadd.f32 1.0, %v13551_v19  ;;  %v6522_v19 = vld [vmem:[#allocation4 + $0x458] sm:$0xff] }
0x165d   :  { %v6008_v46 = vadd.f32 1.0, %v13553_v52  ;;  %v13555_v58 = vpop.eup %13554  ;;  %v6526_v52 = vld [vmem:[#allocation4 + $0x478] sm:$0xff] }
0x165e   :  { %13558 = vrcp.f32 %v6002_v6  ;;  %v13557_v39 = vpop.eup %13556  ;;  %v6015_v60 = vadd.f32 1.0, %v13555_v58 }
0x165f   :  { %13560 = vrcp.f32 %v6008_v46 }
0x1660   :  { %13562 = vrcp.f32 %v6015_v60  ;;  %v12414_v60 = vpack.c.bf16 %v6524_v32, %v6520_v7  ;;  %v6545_v32 = vld [vmem:[#allocation4 + $0x510] sm:$0xff] }
0x1668   :  { %v13559_v47 = vpop.eup %13558 }
0x1669   :  { %v13561_v55 = vpop.eup %13560  ;;  %v6019_v17 = vmul.f32 %v13559_v47, %v13557_v39  ;;  %v12444_v39 = vpack.c.bf16 %v6517_v14, %v6513_v59  ;;  %v6519_v47 = vld [vmem:[#allocation4 + $0x440] sm:$0xff] }
0x166a   :  { %v6018_v10 = vmul.f32 %v13561_v55, %v16560_v28  ;;  %v13563_v41 = vpop.eup %13562  ;;  %v6515_v28 = vld [vmem:[#allocation4 + $0x420] sm:$0xff] }
0x166b   :  { %v6523_v55 = vld [vmem:[#allocation4 + $0x460] sm:$0xff] }
0x166c   :  { %v16606_v57 = vadd.f32 %v6019_v17, %v6018_v10  ;;  %v12446_v10 = vpack.c.bf16 %v6526_v52, %v6522_v19  ;;  %v6547_v59 = vld [vmem:[#allocation4 + $0x520] sm:$0xff]  ;;  %v6549_v19 = vld [vmem:[#allocation4 + $0x530] sm:$0xff]  ;;  %v6552_v52 = vld [vmem:[#allocation4 + $0x548] sm:$0xff] }
0x166e   :  { %13564 = vtanh.f32 %v16606_v57 }
0x1678   :  { %v13565_v29 = vpop.eup %13564 }
0x1679   :  { %v16609_v26 = vmul.f32 %v13565_v29, %v13563_v41  ;;  %v6525_v41 = vld [vmem:[#allocation4 + $0x470] sm:$0xff]  ;;  %v6528_v29 = vld [vmem:[#allocation4 + $0x488] sm:$0xff] }
0x167b   :  { %6157 = vmatmul.mubr.f32.vlgmr.msra.gmra.mrb[42].mxu0 %v16609_v26  ;;  %6228 = vmatmul.mubr.f32.vlgmr.msra.gmra.mrb[46].mxu1 %v16609_v26 }
0x167c   :  { %12349 = vmatpush1.bf16.msra.mxu0 %v16241_v4  ;;  %12381 = vmatpush1.bf16.msra.mxu1 %v16250_v9  ;;  %v6512_v4 = vld [vmem:[#allocation4 + $0x408] sm:$0xff] }
0x167d   :  { %12351 = vmatprep.subr.bf16.mxu0 %v16264_v38  ;;  %12383 = vmatprep.subr.bf16.mxu1 %v16275_v3  ;;  %v6516_v9 = vld [vmem:[#allocation4 + $0x428] sm:$0xff]  ;;  %v6514_v38 = vld [vmem:[#allocation4 + $0x418] sm:$0xff] }
0x167e   :  { %6395 = vmatprep.mubr.f32.mxu0 %v13785_v0  ;;  %6466 = vmatprep.mubr.f32.mxu1 %v13785_v0  ;;  %v12410_v3 = vpack.c.bf16 %v6516_v9, %v6512_v4  ;;  %v6532_v4 = vld [vmem:[#allocation4 + $0x4a8] sm:$0xff]  ;;  %v6530_v9 = vld [vmem:[#allocation4 + $0x498] sm:$0xff] }
0x1680   :  { %12353 = vmatpush1.bf16.msra.mxu0 %v16277_v56  ;;  %12385 = vmatpush1.bf16.msra.mxu1 %v16286_v15  ;;  %v6518_v56 = vld [vmem:[#allocation4 + $0x438] sm:$0xff] }
0x1681   :  { %12355 = vmatprep.subr.bf16.mxu0 %v16300_v48  ;;  %12387 = vmatprep.subr.bf16.mxu1 %v16311_v8  ;;  %v12442_v15 = vpack.c.bf16 %v6518_v56, %v6514_v38  ;;  %v6534_v38 = vld [vmem:[#allocation4 + $0x4b8] sm:$0xff] }
0x1684   :  { %12357 = vmatpush1.bf16.msra.mxu0 %v16313_v36  ;;  %12389 = vmatpush1.bf16.msra.mxu1 %v16322_v44 }
0x1685   :  { %12359 = vmatprep.subr.bf16.mxu0 %v16336_v2  ;;  %12391 = vmatprep.subr.bf16.mxu1 %v16347_v1 }
0x1688   :  { %12361 = vmatpush1.bf16.msra.mxu0 %v16349_v54  ;;  %12393 = vmatpush1.bf16.msra.mxu1 %v16358_v33 }
0x1689   :  { %12363 = vmatprep.subr.bf16.mxu0 %v16372_v20  ;;  %12395 = vmatprep.subr.bf16.mxu1 %v16383_v25 }
0x168c   :  { %12365 = vmatpush1.bf16.msra.mxu0 %v16385_v13  ;;  %12397 = vmatpush1.bf16.msra.mxu1 %v16394_v40 }
0x168d   :  { %12367 = vmatprep.subr.bf16.mxu0 %v16407_v37  ;;  %12399 = vmatprep.subr.bf16.mxu1 %v16419_v42 }
0x1690   :  { %12369 = vmatpush1.bf16.msra.mxu0 %v16421_v45  ;;  %12401 = vmatpush1.bf16.msra.mxu1 %v16433_v34 }
0x1691   :  { %12371 = vmatprep.subr.bf16.mxu0 %v16445_v30  ;;  %12403 = vmatprep.subr.bf16.mxu1 %v16447_v53 }
0x1694   :  { %12373 = vmatpush1.bf16.msra.mxu0 %v16459_v11  ;;  %12405 = vmatpush1.bf16.msra.mxu1 %v16472_v50 }
0x1695   :  { %12375 = vmatprep.subr.bf16.mxu0 %v16474_v63  ;;  %12407 = vmatprep.subr.bf16.mxu1 %v16486_v23 }
0x1698   :  { %12377 = vmatpush1.bf16.msra.mxu0 %v16498_v5  ;;  %12409 = vmatpush1.bf16.msra.mxu1 %v16502_v61  ;;  %v6511_v61 = vld [vmem:[#allocation4 + $0x400] sm:$0xff] }
0x1699   :  { %12411 = vmatprep.subr.bf16.mxu0 %v12410_v3  ;;  %12443 = vmatprep.subr.bf16.mxu1 %v12442_v15  ;;  %v12412_v58 = vpack.c.bf16 %v6515_v28, %v6511_v61  ;;  %v12416_v3 = vpack.c.bf16 %v6523_v55, %v6519_v47  ;;  %v6527_v15 = vld [vmem:[#allocation4 + $0x480] sm:$0xff]  ;;  %v12460_v47 = vpack.c.bf16 %v6549_v19, %v6545_v32  ;;  %v10152_v32 = vld [vmem:[%s17708_s2 + $0x658] sm:$0xff] }
0x169a   :  { %v6543_v28 = vld [vmem:[#allocation4 + $0x500] sm:$0xff] }
0x169b   :  { %v6551_v55 = vld [vmem:[#allocation4 + $0x540] sm:$0xff] }
0x174e   :  { %v6158_v48 = vpop.f32.mrb[42].mxu0  ;;  %v6229_v8 = vpop.f32.mrb[46].mxu1 }
0x174f   :  { %v13062_v36 = vadd.f32 %v6158_v48, %v16105_v43  ;;  %v6160_v44 = vpop.f32.mrb[43].mxu0  ;;  %v6231_v2 = vpop.f32.mrb[47].mxu1  ;;  %v13078_v13 = vadd.f32 %v6229_v8, %v16117_v27  ;;  %v6531_v48 = vld [vmem:[#allocation4 + $0x4a0] sm:$0xff]  ;;  %v12418_v8 = vpack.c.bf16 %v6532_v4, %v6528_v29  ;;  %v6557_v29 = vld [vmem:[#allocation4 + $0x570] sm:$0xff]  ;;  %v6560_v4 = vld [vmem:[#allocation4 + $0x588] sm:$0xff] }
0x1750   :  { %v13063_v1 = vadd.f32 %v6160_v44, %v16108_v49  ;;  %v13079_v20 = vadd.f32 %v6231_v2, %v16113_v51  ;;  %v6529_v44 = vld [vmem:[#allocation4 + $0x490] sm:$0xff] }
0x1751   :  { %v10070_v54 = vmul.f32 -1.442695, %v13062_v36  ;;  %v12450_v36 = vpack.c.bf16 %v6534_v38, %v6530_v9  ;;  %v6533_v2 = vld [vmem:[#allocation4 + $0x4b0] sm:$0xff]  ;;  %v6564_v9 = vld [vmem:[#allocation4 + $0x5a8] sm:$0xff]  ;;  %v6562_v38 = vld [vmem:[#allocation4 + $0x598] sm:$0xff] }
0x1752   :  { %v10071_v33 = vmul.f32 -1.442695, %v13063_v1  ;;  %v10072_v25 = vmul.f32 -1.442695, %v13079_v20  ;;  %v6536_v1 = vld [vmem:[#allocation4 + $0x4c8] sm:$0xff]  ;;  %v6542_v20 = vld [vmem:[#allocation4 + $0x4f8] sm:$0xff] }
0x1753   :  { %13566 = vpow2.f32 %v10070_v54  ;;  %v6540_v54 = vld [vmem:[#allocation4 + $0x4e8] sm:$0xff] }
0x1754   :  { %13568 = vpow2.f32 %v10071_v33  ;;  %v6538_v33 = vld [vmem:[#allocation4 + $0x4d8] sm:$0xff] }
0x1755   :  { %13570 = vpow2.f32 %v10072_v25  ;;  %v12420_v25 = vpack.c.bf16 %v6531_v48, %v6527_v15  ;;  %v6559_v48 = vld [vmem:[#allocation4 + $0x580] sm:$0xff] }
0x1756   :  { %13572 = vtanh.f32 %v13078_v13  ;;  %v12452_v13 = vpack.c.bf16 %v6533_v2, %v6529_v44  ;;  %v6561_v2 = vld [vmem:[#allocation4 + $0x590] sm:$0xff] }
0x175d   :  { %v13567_v40 = vpop.eup %13566 }
0x175e   :  { %v13569_v37 = vpop.eup %13568  ;;  %v6241_v42 = vadd.f32 1.0, %v13567_v40  ;;  %v6535_v40 = vld [vmem:[#allocation4 + $0x4c0] sm:$0xff] }
0x175f   :  { %v6247_v45 = vadd.f32 1.0, %v13569_v37  ;;  %v13571_v34 = vpop.eup %13570  ;;  %v6539_v37 = vld [vmem:[#allocation4 + $0x4e0] sm:$0xff] }
0x1760   :  { %13574 = vrcp.f32 %v6241_v42  ;;  %v13573_v30 = vpop.eup %13572  ;;  %v6254_v63 = vadd.f32 1.0, %v13571_v34  ;;  %v12422_v42 = vpack.c.bf16 %v6540_v54, %v6536_v1  ;;  %v6537_v34 = vld [vmem:[#allocation4 + $0x4d0] sm:$0xff]  ;;  %v6568_v54 = vld [vmem:[#allocation4 + $0x5c8] sm:$0xff] }
0x1761   :  { %13576 = vrcp.f32 %v6247_v45  ;;  %v12454_v45 = vpack.c.bf16 %v6542_v20, %v6538_v33  ;;  %v6565_v1 = vld [vmem:[#allocation4 + $0x5b0] sm:$0xff]  ;;  %v6572_v33 = vld [vmem:[#allocation4 + $0x5e8] sm:$0xff]  ;;  %v6570_v20 = vld [vmem:[#allocation4 + $0x5d8] sm:$0xff] }
0x1762   :  { %13578 = vrcp.f32 %v6254_v63  ;;  %v6550_v63 = vld [vmem:[#allocation4 + $0x538] sm:$0xff] }
0x176a   :  { %v13575_v53 = vpop.eup %13574 }
0x176b   :  { %v13577_v11 = vpop.eup %13576  ;;  %v6258_v50 = vmul.f32 %v13575_v53, %v13573_v30  ;;  %v6541_v30 = vld [vmem:[#allocation4 + $0x4f0] sm:$0xff]  ;;  %v6544_v53 = vld [vmem:[#allocation4 + $0x508] sm:$0xff] }
0x176c   :  { %v6257_v23 = vmul.f32 %v13577_v11, %v16606_v57  ;;  %v13579_v6 = vpop.eup %13578  ;;  %v6521_v57 = vld [vmem:[#allocation4 + $0x450] sm:$0xff]  ;;  %v6548_v11 = vld [vmem:[#allocation4 + $0x528] sm:$0xff]  ;;  %v12456_v61 = vpack.c.bf16 %v6541_v30, %v6537_v34  ;;  %v6571_v34 = vld [vmem:[#allocation4 + $0x5e0] sm:$0xff] }
0x176d   :  { %v12448_v56 = vpack.c.bf16 %v6525_v41, %v6521_v57  ;;  %v12426_v14 = vpack.c.bf16 %v6548_v11, %v6544_v53  ;;  %v6553_v41 = vld [vmem:[#allocation4 + $0x550] sm:$0xff] }
0x176e   :  { %v16650_v5 = vadd.f32 %v6258_v50, %v6257_v23  ;;  %v6546_v50 = vld [vmem:[#allocation4 + $0x518] sm:$0xff]  ;;  %v12424_v23 = vpack.c.bf16 %v6539_v37, %v6535_v40  ;;  %v12464_v15 = vpack.c.bf16 %v6557_v29, %v6553_v41  ;;  %v12468_v40 = vpack.c.bf16 %v6565_v1, %v6561_v2  ;;  %v6567_v37 = vld [vmem:[#allocation4 + $0x5c0] sm:$0xff]  ;;  %v6569_v30 = vld [vmem:[#allocation4 + $0x5d0] sm:$0xff] }
0x176f   :  { %v12458_v7 = vpack.c.bf16 %v6550_v63, %v6546_v50  ;;  %v6573_v53 = vld [vmem:[#allocation4 + $0x5f0] sm:$0xff]  ;;  %v12440_v11 = vpack.c.bf16 %v6571_v34, %v6567_v37  ;;  %v10160_v41 = vld [vmem:[%s17708_s2 + $0x698] sm:$0xff]  ;;  %v10178_v34 = vld [vmem:[%s17708_s2 + $0x728] sm:$0xff] }
0x1770   :  { %13580 = vtanh.f32 %v16650_v5  ;;  %v12472_v50 = vpack.c.bf16 %v6573_v53, %v6569_v30  ;;  %v10168_v2 = vld [vmem:[%s17708_s2 + $0x6d8] sm:$0xff]  ;;  %v10171_v37 = vld [vmem:[%s17708_s2 + $0x6f0] sm:$0xff]  ;;  %v10173_v30 = vld [vmem:[%s17708_s2 + $0x700] sm:$0xff] }
0x1771   :  { %v10177_v53 = vld [vmem:[%s17708_s2 + $0x720] sm:$0xff] }
0x177a   :  { %v13581_v46 = vpop.eup %13580 }
0x177b   :  { %v16653_v17 = vmul.f32 %v13581_v46, %v13579_v6  ;;  %v6556_v6 = vld [vmem:[#allocation4 + $0x568] sm:$0xff]  ;;  %v6554_v46 = vld [vmem:[#allocation4 + $0x558] sm:$0xff] }
0x177d   :  { %6396 = vmatmul.mubr.f32.vlgmr.msra.gmra.mrb[44].mxu0 %v16653_v17  ;;  %6467 = vmatmul.mubr.f32.vlgmr.msra.gmra.mrb[48].mxu1 %v16653_v17 }
0x177e   :  { %12413 = vmatpush1.bf16.msra.mxu0 %v12412_v58  ;;  %12445 = vmatpush1.bf16.msra.mxu1 %v12444_v39  ;;  %v6558_v58 = vld [vmem:[#allocation4 + $0x578] sm:$0xff]  ;;  %v12428_v39 = vpack.c.bf16 %v6547_v59, %v6543_v28  ;;  %v10147_v28 = vld [vmem:[%s17708_s2 + $0x630] sm:$0xff] }
0x177f   :  { %12415 = vmatprep.subr.bf16.mxu0 %v12414_v60  ;;  %12447 = vmatprep.subr.bf16.mxu1 %v12446_v10  ;;  %v6555_v60 = vld [vmem:[#allocation4 + $0x560] sm:$0xff]  ;;  %v12430_v10 = vpack.c.bf16 %v6556_v6, %v6552_v52  ;;  %v12462_v57 = vpack.c.bf16 %v6558_v58, %v6554_v46  ;;  %v10156_v46 = vld [vmem:[%s17708_s2 + $0x678] sm:$0xff] }
0x1780   :  { %6662 = vmatprep.mubr.f32.mxu0 %v13785_v0  ;;  %6775 = vmatprep.mubr.f32.mxu1 %v13785_v0  ;;  %v10149_v52 = vld [vmem:[%s17708_s2 + $0x640] sm:$0xff] }
0x1781   :  { %v10153_v6 = vld [vmem:[%s17708_s2 + $0x660] sm:$0xff] }
0x1782   :  { %12417 = vmatpush1.bf16.msra.mxu0 %v12416_v3  ;;  %12449 = vmatpush1.bf16.msra.mxu1 %v12448_v56  ;;  %v6566_v3 = vld [vmem:[#allocation4 + $0x5b8] sm:$0xff]  ;;  %v12432_v56 = vpack.c.bf16 %v6555_v60, %v6551_v55  ;;  %v16743_v58 = vpack.c.bf16 %v10153_v6, %v10149_v52  ;;  %v10155_v55 = vld [vmem:[%s17708_s2 + $0x670] sm:$0xff] }
0x1783   :  { %12419 = vmatprep.subr.bf16.mxu0 %v12418_v8  ;;  %12451 = vmatprep.subr.bf16.mxu1 %v12450_v36  ;;  %v6563_v8 = vld [vmem:[#allocation4 + $0x5a0] sm:$0xff]  ;;  %v12434_v36 = vpack.c.bf16 %v6564_v9, %v6560_v4  ;;  %v12466_v44 = vpack.c.bf16 %v6566_v3, %v6562_v38  ;;  %v10164_v38 = vld [vmem:[%s17708_s2 + $0x6b8] sm:$0xff] }
0x1784   :  { %v10157_v4 = vld [vmem:[%s17708_s2 + $0x680] sm:$0xff]  ;;  %v10184_v52 = vld [vmem:[%s17708_s2 + $0x758] sm:$0xff] }
0x1785   :  { %v10161_v9 = vld [vmem:[%s17708_s2 + $0x6a0] sm:$0xff]  ;;  %v10188_v6 = vld [vmem:[%s17708_s2 + $0x778] sm:$0xff] }
0x1786   :  { %12421 = vmatpush1.bf16.msra.mxu0 %v12420_v25  ;;  %12453 = vmatpush1.bf16.msra.mxu1 %v12452_v13  ;;  %v6574_v25 = vld [vmem:[#allocation4 + $0x5f8] sm:$0xff]  ;;  %v12436_v13 = vpack.c.bf16 %v6563_v8, %v6559_v48  ;;  %v16779_v3 = vpack.c.bf16 %v10161_v9, %v10157_v4  ;;  %v10163_v48 = vld [vmem:[%s17708_s2 + $0x6b0] sm:$0xff]  ;;  %v10189_v4 = vld [vmem:[%s17708_s2 + $0x780] sm:$0xff] }
0x1787   :  { %12423 = vmatprep.subr.bf16.mxu0 %v12422_v42  ;;  %12455 = vmatprep.subr.bf16.mxu1 %v12454_v45  ;;  %v12438_v42 = vpack.c.bf16 %v6572_v33, %v6568_v54  ;;  %v12470_v45 = vpack.c.bf16 %v6574_v25, %v6570_v20  ;;  %v10165_v54 = vld [vmem:[%s17708_s2 + $0x6c0] sm:$0xff]  ;;  %v10172_v20 = vld [vmem:[%s17708_s2 + $0x6f8] sm:$0xff] }
0x1788   :  { %v10169_v33 = vld [vmem:[%s17708_s2 + $0x6e0] sm:$0xff] }
0x1789   :  { %v16815_v25 = vpack.c.bf16 %v10169_v33, %v10165_v54  ;;  %v10195_v54 = vld [vmem:[%s17708_s2 + $0x7b0] sm:$0xff]  ;;  %v10198_v33 = vld [vmem:[%s17708_s2 + $0x7c8] sm:$0xff] }
0x178a   :  { %12425 = vmatpush1.bf16.msra.mxu0 %v12424_v23  ;;  %12457 = vmatpush1.bf16.msra.mxu1 %v12456_v61  ;;  %v10143_v61 = vld [vmem:[%s17708_s2 + $0x610] sm:$0xff] }
0x178b   :  { %12427 = vmatprep.subr.bf16.mxu0 %v12426_v14  ;;  %12459 = vmatprep.subr.bf16.mxu1 %v12458_v7  ;;  %v16718_v59 = vpack.c.bf16 %v10147_v28, %v10143_v61  ;;  %v10150_v14 = vld [vmem:[%s17708_s2 + $0x648] sm:$0xff] }
0x178c   :  { %v10154_v7 = vld [vmem:[%s17708_s2 + $0x668] sm:$0xff] }
0x178d   :  { %v16732_v19 = vpack.c.bf16 %v10154_v7, %v10150_v14  ;;  %v10186_v61 = vld [vmem:[%s17708_s2 + $0x768] sm:$0xff]  ;;  %v10181_v7 = vld [vmem:[%s17708_s2 + $0x740] sm:$0xff] }
0x178e   :  { %12429 = vmatpush1.bf16.msra.mxu0 %v12428_v39  ;;  %12461 = vmatpush1.bf16.msra.mxu1 %v12460_v47  ;;  %v16745_v39 = vpack.c.bf16 %v10156_v46, %v10152_v32  ;;  %v10151_v47 = vld [vmem:[%s17708_s2 + $0x650] sm:$0xff]  ;;  %v10185_v32 = vld [vmem:[%s17708_s2 + $0x760] sm:$0xff] }
0x178f   :  { %12431 = vmatprep.subr.bf16.mxu0 %v12430_v10  ;;  %12463 = vmatprep.subr.bf16.mxu1 %v12462_v57  ;;  %v16754_v60 = vpack.c.bf16 %v10155_v55, %v10151_v47  ;;  %v10158_v10 = vld [vmem:[%s17708_s2 + $0x688] sm:$0xff]  ;;  %v10183_v46 = vld [vmem:[%s17708_s2 + $0x750] sm:$0xff]  ;;  %v16892_v55 = vpack.c.bf16 %v10185_v32, %v10181_v7 }
0x1790   :  { %v10162_v57 = vld [vmem:[%s17708_s2 + $0x6a8] sm:$0xff]  ;;  %v10187_v47 = vld [vmem:[%s17708_s2 + $0x770] sm:$0xff] }
0x1791   :  { %v16768_v29 = vpack.c.bf16 %v10162_v57, %v10158_v10  ;;  %v16894_v10 = vpack.c.bf16 %v10188_v6, %v10184_v52  ;;  %v10190_v57 = vld [vmem:[%s17708_s2 + $0x788] sm:$0xff]  ;;  %v16907_v9 = vpack.c.bf16 %v10187_v47, %v10183_v46 }
0x1792   :  { %12433 = vmatpush1.bf16.msra.mxu0 %v12432_v56  ;;  %12465 = vmatpush1.bf16.msra.mxu1 %v12464_v15  ;;  %v16781_v56 = vpack.c.bf16 %v10164_v38, %v10160_v41  ;;  %v10159_v15 = vld [vmem:[%s17708_s2 + $0x690] sm:$0xff]  ;;  %v10194_v41 = vld [vmem:[%s17708_s2 + $0x7a8] sm:$0xff] }
0x1793   :  { %12435 = vmatprep.subr.bf16.mxu0 %v12434_v36  ;;  %12467 = vmatprep.subr.bf16.mxu1 %v12466_v44  ;;  %v16790_v8 = vpack.c.bf16 %v10163_v48, %v10159_v15  ;;  %v10166_v36 = vld [vmem:[%s17708_s2 + $0x6c8] sm:$0xff]  ;;  %v16909_v38 = vpack.c.bf16 %v10194_v41, %v10190_v57  ;;  %v10193_v15 = vld [vmem:[%s17708_s2 + $0x7a0] sm:$0xff]  ;;  %v10192_v48 = vld [vmem:[%s17708_s2 + $0x798] sm:$0xff] }
0x1794   :  { %v10170_v44 = vld [vmem:[%s17708_s2 + $0x6e8] sm:$0xff] }
0x1795   :  { %v16804_v1 = vpack.c.bf16 %v10170_v44, %v10166_v36  ;;  %v10196_v36 = vld [vmem:[%s17708_s2 + $0x7b8] sm:$0xff] }
0x1796   :  { %12437 = vmatpush1.bf16.msra.mxu0 %v12436_v13  ;;  %12469 = vmatpush1.bf16.msra.mxu1 %v12468_v40  ;;  %v16817_v13 = vpack.c.bf16 %v10172_v20, %v10168_v2  ;;  %v10167_v40 = vld [vmem:[%s17708_s2 + $0x6d0] sm:$0xff]  ;;  %v16921_v44 = vpack.c.bf16 %v10196_v36, %v10192_v48  ;;  %v10202_v20 = vld [vmem:[%s17708_s2 + $0x7e8] sm:$0xff] }
0x1797   :  { %12439 = vmatprep.subr.bf16.mxu0 %v12438_v42  ;;  %12471 = vmatprep.subr.bf16.mxu1 %v12470_v45  ;;  %v10174_v42 = vld [vmem:[%s17708_s2 + $0x708] sm:$0xff]  ;;  %v16829_v45 = vpack.c.bf16 %v10171_v37, %v10167_v40  ;;  %v10191_v2 = vld [vmem:[%s17708_s2 + $0x790] sm:$0xff]  ;;  %v16936_v40 = vpack.c.bf16 %v10193_v15, %v10189_v4 }
0x1798   :  { %v16940_v37 = vpack.c.bf16 %v10195_v54, %v10191_v2 }
0x179a   :  { %12441 = vmatpush1.bf16.msra.mxu0 %v12440_v11  ;;  %12473 = vmatpush1.bf16.msra.mxu1 %v12472_v50  ;;  %v16842_v11 = vpack.c.bf16 %v10178_v34, %v10174_v42  ;;  %v16844_v50 = vpack.c.bf16 %v10177_v53, %v10173_v30  ;;  %v16942_v42 = vpack.c.bf16 %v10202_v20, %v10198_v33  ;;  %v10200_v34 = vld [vmem:[%s17708_s2 + $0x7d8] sm:$0xff]  ;;  %v10197_v53 = vld [vmem:[%s17708_s2 + $0x7c0] sm:$0xff] }
0x179b   :  { %v10204_v30 = vld [vmem:[%s17708_s2 + $0x7f8] sm:$0xff] }
0x179d   :  { %6663 = vmatmul.mubr.f32.vlgmr.msra.gmra.mrb[46].mxu0 %v16123_v16  ;;  %6776 = vmatmul.mubr.f32.vlgmr.msra.gmra.mrb[50].mxu1 %v16123_v16  ;;  %v10142_v16 = vld [vmem:[%s17708_s2 + $0x608] sm:$0xff] }
0x179e   :  { %6668 = vmatprep.mubr.f32.mxu0 %v13785_v0  ;;  %6781 = vmatprep.mubr.f32.mxu1 %v13785_v0 }
0x17a1   :  { %6669 = vmatmul.mubr.f32.gmra.mrb[48].mxu0 %v16169_v35  ;;  %6782 = vmatmul.mubr.f32.gmra.mrb[52].mxu1 %v16169_v35  ;;  %v10146_v35 = vld [vmem:[%s17708_s2 + $0x628] sm:$0xff] }
0x17a2   :  { %6674 = vmatprep.mubr.f32.mxu0 %v13785_v0  ;;  %6787 = vmatprep.mubr.f32.mxu1 %v13785_v0 }
0x17a5   :  { %6675 = vmatmul.mubr.f32.gmra.mrb[50].mxu0 %v16213_v31  ;;  %6788 = vmatmul.mubr.f32.gmra.mrb[54].mxu1 %v16213_v31  ;;  %v10144_v31 = vld [vmem:[%s17708_s2 + $0x618] sm:$0xff] }
0x17a6   :  { %6680 = vmatprep.mubr.f32.mxu0 %v13785_v0  ;;  %6793 = vmatprep.mubr.f32.mxu1 %v13785_v0 }
0x17a9   :  { %6681 = vmatmul.mubr.f32.gmra.mrb[52].mxu0 %v16517_v24  ;;  %6794 = vmatmul.mubr.f32.gmra.mrb[56].mxu1 %v16517_v24  ;;  %v16696_v24 = vpack.c.bf16 %v10146_v35, %v10142_v16  ;;  %v10176_v16 = vld [vmem:[%s17708_s2 + $0x718] sm:$0xff] }
0x17aa   :  { %6686 = vmatprep.mubr.f32.mxu0 %v13785_v0  ;;  %6799 = vmatprep.mubr.f32.mxu1 %v13785_v0  ;;  %v10180_v35 = vld [vmem:[%s17708_s2 + $0x738] sm:$0xff] }
0x17ab   :  { %12475 = vmatprep.subr.bf16.mxu0 %v16696_v24 }
0x17ad   :  { %6687 = vmatmul.mubr.f32.gmra.mrb[54].mxu0 %v16563_v21  ;;  %6800 = vmatmul.mubr.f32.gmra.mrb[58].mxu1 %v16563_v21  ;;  %v10141_v21 = vld [vmem:[%s17708_s2 + $0x600] sm:$0xff] }
0x17ae   :  { %6692 = vmatprep.mubr.f32.mxu0 %v13785_v0  ;;  %6805 = vmatprep.mubr.f32.mxu1 %v13785_v0 }
0x17b1   :  { %6693 = vmatmul.mubr.f32.gmra.mrb[56].mxu0 %v16609_v26  ;;  %6806 = vmatmul.mubr.f32.gmra.mrb[60].mxu1 %v16609_v26  ;;  %v10145_v26 = vld [vmem:[%s17708_s2 + $0x620] sm:$0xff] }
0x17b2   :  { %6698 = vmatprep.mubr.f32.mxu0 %v13785_v0  ;;  %6811 = vmatprep.mubr.f32.mxu1 %v13785_v0  ;;  %v16707_v63 = vpack.c.bf16 %v10145_v26, %v10141_v21  ;;  %v16856_v21 = vpack.c.bf16 %v10180_v35, %v10176_v16  ;;  %v10179_v26 = vld [vmem:[%s17708_s2 + $0x730] sm:$0xff]  ;;  %v10201_v16 = vld [vmem:[%s17708_s2 + $0x7e0] sm:$0xff]  ;;  %v16960_v35 = vpack.c.bf16 %v10204_v30, %v10200_v34 }
0x17b4   :  { %12477 = vmatpush1.bf16.msra.mxu0 %v16707_v63 }
0x17b5   :  { %6699 = vmatmul.mubr.f32.gmra.mrb[58].mxu0 %v16653_v17  ;;  %6812 = vmatmul.mubr.f32.gmra.mrb[62].mxu1 %v16653_v17  ;;  %v10148_v17 = vld [vmem:[%s17708_s2 + $0x638] sm:$0xff] }
0x17b6   :  { %6704 = vmatprep.mubr.f32.mxu0 %v13785_v0  ;;  %6817 = vmatprep.mubr.f32.mxu1 %v13785_v0  ;;  %v16709_v23 = vpack.c.bf16 %v10148_v17, %v10144_v31  ;;  %v10175_v31 = vld [vmem:[%s17708_s2 + $0x710] sm:$0xff]  ;;  %v10182_v17 = vld [vmem:[%s17708_s2 + $0x748] sm:$0xff] }
0x17b7   :  { %12479 = vmatprep.subr.bf16.mxu0 %v16732_v19  ;;  %v16868_v28 = vpack.c.bf16 %v10179_v26, %v10175_v31  ;;  %v16870_v14 = vpack.c.bf16 %v10186_v61, %v10182_v17  ;;  %v10199_v31 = vld [vmem:[%s17708_s2 + $0x7d0] sm:$0xff]  ;;  %v16965_v26 = vpack.c.bf16 %v10201_v16, %v10197_v53 }
0x17b8   :  { %12507 = vmatprep.subr.bf16.mxu1 %v16709_v23  ;;  %12481 = vmatpush1.bf16.msra.mxu0 %v16743_v58  ;;  %v10203_v17 = vld [vmem:[%s17708_s2 + $0x7f0] sm:$0xff] }
0x17b9   :  { %12509 = vmatpush1.bf16.msra.mxu1 %v16718_v59  ;;  %12483 = vmatprep.subr.bf16.mxu0 %v16768_v29  ;;  %v16971_v61 = vpack.c.bf16 %v10203_v17, %v10199_v31 }
0x17ba   :  { %12511 = vmatprep.subr.bf16.mxu1 %v16745_v39 }
0x17bc   :  { %12485 = vmatpush1.bf16.msra.mxu0 %v16779_v3 }
0x17bd   :  { %12513 = vmatpush1.bf16.msra.mxu1 %v16754_v60  ;;  %12487 = vmatprep.subr.bf16.mxu0 %v16804_v1 }
0x17be   :  { %12515 = vmatprep.subr.bf16.mxu1 %v16781_v56 }
0x17c0   :  { %12489 = vmatpush1.bf16.msra.mxu0 %v16815_v25 }
0x17c1   :  { %12517 = vmatpush1.bf16.msra.mxu1 %v16790_v8  ;;  %12491 = vmatprep.subr.bf16.mxu0 %v16842_v11 }
0x17c2   :  { %12519 = vmatprep.subr.bf16.mxu1 %v16817_v13 }
0x17c4   :  { %12493 = vmatpush1.bf16.msra.mxu0 %v16844_v50 }
0x17c5   :  { %12521 = vmatpush1.bf16.msra.mxu1 %v16829_v45  ;;  %12495 = vmatprep.subr.bf16.mxu0 %v16870_v14 }
0x17c6   :  { %12523 = vmatprep.subr.bf16.mxu1 %v16856_v21 }
0x17c8   :  { %12497 = vmatpush1.bf16.msra.mxu0 %v16892_v55 }
0x17c9   :  { %12525 = vmatpush1.bf16.msra.mxu1 %v16868_v28  ;;  %12499 = vmatprep.subr.bf16.mxu0 %v16909_v38 }
0x17ca   :  { %12527 = vmatprep.subr.bf16.mxu1 %v16894_v10 }
0x17cc   :  { %12501 = vmatpush1.bf16.msra.mxu0 %v16936_v40 }
0x17cd   :  { %12529 = vmatpush1.bf16.msra.mxu1 %v16907_v9  ;;  %12503 = vmatprep.subr.bf16.mxu0 %v16942_v42 }
0x17ce   :  { %12531 = vmatprep.subr.bf16.mxu1 %v16921_v44 }
0x17d0   :  { %12505 = vmatpush1.bf16.msra.mxu0 %v16965_v26 }
0x17d1   :  { %12533 = vmatpush1.bf16.msra.mxu1 %v16940_v37  ;;  %12539 = vmatprep.subr.bf16.mxu0 %v16696_v24 }
0x17d2   :  { %12535 = vmatprep.subr.bf16.mxu1 %v16960_v35 }
0x17d5   :  { %12537 = vmatpush1.bf16.msra.mxu1 %v16971_v61 }
0x17d6   :  { %12571 = vmatprep.subr.bf16.mxu1 %v16709_v23 }
0x1850   :  { %v6397_v7 = vpop.f32.mrb[44].mxu0  ;;  %v6468_v32 = vpop.f32.mrb[48].mxu1 }
0x1851   :  { %v13064_v52 = vadd.f32 %v6397_v7, %v16105_v43  ;;  %v6399_v6 = vpop.f32.mrb[45].mxu0  ;;  %v6470_v46 = vpop.f32.mrb[49].mxu1  ;;  %v13080_v48 = vadd.f32 %v6468_v32, %v16117_v27 }
0x1852   :  { %v13065_v47 = vadd.f32 %v6399_v6, %v16108_v49  ;;  %v13081_v4 = vadd.f32 %v6470_v46, %v16113_v51 }
0x1853   :  { %v10137_v57 = vmul.f32 -1.442695, %v13064_v52 }
0x1854   :  { %v10138_v41 = vmul.f32 -1.442695, %v13065_v47  ;;  %v10139_v15 = vmul.f32 -1.442695, %v13081_v4 }
0x1855   :  { %13582 = vpow2.f32 %v10137_v57 }
0x1856   :  { %13584 = vpow2.f32 %v10138_v41 }
0x1857   :  { %13586 = vpow2.f32 %v10139_v15 }
0x1858   :  { %13588 = vtanh.f32 %v13080_v48 }
0x185f   :  { %v13583_v36 = vpop.eup %13582 }
0x1860   :  { %v13585_v2 = vpop.eup %13584  ;;  %v6480_v54 = vadd.f32 1.0, %v13583_v36 }
0x1861   :  { %v6486_v33 = vadd.f32 1.0, %v13585_v2  ;;  %v13587_v43 = vpop.eup %13586 }
0x1862   :  { %13590 = vrcp.f32 %v6480_v54  ;;  %v13589_v20 = vpop.eup %13588  ;;  %v6493_v53 = vadd.f32 1.0, %v13587_v43 }
0x1863   :  { %13592 = vrcp.f32 %v6486_v33 }
0x1864   :  { %13594 = vrcp.f32 %v6493_v53 }
0x186c   :  { %v13591_v49 = vpop.eup %13590 }
0x186d   :  { %v13593_v34 = vpop.eup %13592  ;;  %v6497_v30 = vmul.f32 %v13591_v49, %v13589_v20 }
0x186e   :  { %v6496_v16 = vmul.f32 %v13593_v34, %v16650_v5  ;;  %v13595_v27 = vpop.eup %13594  ;;  %v10140_v5 = vld [vmem:[%s17709_s3 + $0x8] sm:$0xf] }
0x186f   :  { %v17024_v7 = vrot.slane %v10140_v5, %v15174_v62  ;;  %v17027_v32 = vrot.slane %v10140_v5, %v15179_v22  ;;  %v17032_v48 = vrot.slane %v10140_v5, %v15187_v18  ;;  %v17036_v22 = vrot.slane %v10140_v5, %v15194_v12 }
0x1870   :  { %v6498_v51 = vadd.f32 %v6497_v30, %v6496_v16 }
0x1872   :  { %13596 = vtanh.f32 %v6498_v51 }
0x187c   :  { %v13597_v31 = vpop.eup %13596 }
0x187d   :  { %v6500_v17 = vmul.f32 %v13597_v31, %v13595_v27 }
0x187f   :  { %6705 = vmatmul.mubr.f32.gmra.mrb[60].mxu0 %v6500_v17  ;;  %6818 = vmatmul.mubr.f32.gmra.mrb[64].mxu1 %v6500_v17 }
0x1880   :  { %6989 = vmatprep.mubr.f32.mxu0 %v13785_v0  ;;  %7060 = vmatprep.mubr.f32.mxu1 %v13785_v0 }
0x1883   :  { %6990 = vmatmul.mubr.f32.vlgmr.msra.gmra.mrb[46].mxu0 %v13785_v0  ;;  %7061 = vmatmul.mubr.f32.vlgmr.msra.gmra.mrb[50].mxu1 %v13785_v0 }
0x1884   :  { %12541 = vmatpush1.bf16.msra.mxu0 %v16707_v63  ;;  %12573 = vmatpush1.bf16.msra.mxu1 %v16718_v59 }
0x1885   :  { %12543 = vmatprep.subr.bf16.mxu0 %v16732_v19  ;;  %12575 = vmatprep.subr.bf16.mxu1 %v16745_v39 }
0x1886   :  { %7228 = vmatprep.mubr.f32.mxu0 %v13785_v0  ;;  %7299 = vmatprep.mubr.f32.mxu1 %v13785_v0 }
0x1888   :  { %12545 = vmatpush1.bf16.msra.mxu0 %v16743_v58  ;;  %12577 = vmatpush1.bf16.msra.mxu1 %v16754_v60 }
0x1889   :  { %12547 = vmatprep.subr.bf16.mxu0 %v16768_v29  ;;  %12579 = vmatprep.subr.bf16.mxu1 %v16781_v56 }
0x188c   :  { %12549 = vmatpush1.bf16.msra.mxu0 %v16779_v3  ;;  %12581 = vmatpush1.bf16.msra.mxu1 %v16790_v8 }
0x188d   :  { %12551 = vmatprep.subr.bf16.mxu0 %v16804_v1  ;;  %12583 = vmatprep.subr.bf16.mxu1 %v16817_v13 }
0x1890   :  { %12553 = vmatpush1.bf16.msra.mxu0 %v16815_v25  ;;  %12585 = vmatpush1.bf16.msra.mxu1 %v16829_v45 }
0x1891   :  { %12555 = vmatprep.subr.bf16.mxu0 %v16842_v11  ;;  %12587 = vmatprep.subr.bf16.mxu1 %v16856_v21 }
0x1894   :  { %12557 = vmatpush1.bf16.msra.mxu0 %v16844_v50  ;;  %12589 = vmatpush1.bf16.msra.mxu1 %v16868_v28 }
0x1895   :  { %12559 = vmatprep.subr.bf16.mxu0 %v16870_v14  ;;  %12591 = vmatprep.subr.bf16.mxu1 %v16894_v10 }
0x1898   :  { %12561 = vmatpush1.bf16.msra.mxu0 %v16892_v55  ;;  %12593 = vmatpush1.bf16.msra.mxu1 %v16907_v9 }
0x1899   :  { %12563 = vmatprep.subr.bf16.mxu0 %v16909_v38  ;;  %12595 = vmatprep.subr.bf16.mxu1 %v16921_v44 }
0x189c   :  { %12565 = vmatpush1.bf16.msra.mxu0 %v16936_v40  ;;  %12597 = vmatpush1.bf16.msra.mxu1 %v16940_v37 }
0x189d   :  { %12567 = vmatprep.subr.bf16.mxu0 %v16942_v42  ;;  %12599 = vmatprep.subr.bf16.mxu1 %v16960_v35 }
0x18a0   :  { %12569 = vmatpush1.bf16.msra.mxu0 %v16965_v26  ;;  %12601 = vmatpush1.bf16.msra.mxu1 %v16971_v61 }
0x18a1   :  { %12603 = vmatprep.subr.bf16.mxu0 %v16696_v24  ;;  %12635 = vmatprep.subr.bf16.mxu1 %v16709_v23 }
0x1956   :  { %v6991_v52 = vpop.f32.mrb[46].mxu0  ;;  %v7062_v6 = vpop.f32.mrb[50].mxu1 }
0x1957   :  { %v13082_v46 = vadd.f32 %v6991_v52, %v17024_v7  ;;  %v6993_v47 = vpop.f32.mrb[47].mxu0  ;;  %v7064_v57 = vpop.f32.mrb[51].mxu1  ;;  %v13098_v2 = vadd.f32 %v7062_v6, %v17036_v22 }
0x1958   :  { %v13083_v41 = vadd.f32 %v6993_v47, %v17027_v32  ;;  %v13099_v62 = vadd.f32 %v7064_v57, %v17032_v48 }
0x1959   :  { %v10205_v4 = vmul.f32 -1.442695, %v13082_v46 }
0x195a   :  { %v10206_v15 = vmul.f32 -1.442695, %v13083_v41  ;;  %v10207_v36 = vmul.f32 -1.442695, %v13099_v62 }
0x195b   :  { %13598 = vpow2.f32 %v10205_v4 }
0x195c   :  { %13600 = vpow2.f32 %v10206_v15 }
0x195d   :  { %13602 = vpow2.f32 %v10207_v36 }
0x195e   :  { %13604 = vtanh.f32 %v13098_v2 }
0x1965   :  { %v13599_v54 = vpop.eup %13598 }
0x1966   :  { %v13601_v33 = vpop.eup %13600  ;;  %v7074_v43 = vadd.f32 1.0, %v13599_v54 }
0x1967   :  { %v7080_v20 = vadd.f32 1.0, %v13601_v33  ;;  %v13603_v18 = vpop.eup %13602 }
0x1968   :  { %13606 = vrcp.f32 %v7074_v43  ;;  %v13605_v49 = vpop.eup %13604  ;;  %v7087_v16 = vadd.f32 1.0, %v13603_v18 }
0x1969   :  { %13608 = vrcp.f32 %v7080_v20 }
0x196a   :  { %13610 = vrcp.f32 %v7087_v16 }
0x1972   :  { %v13607_v34 = vpop.eup %13606 }
0x1973   :  { %v13609_v30 = vpop.eup %13608  ;;  %v7091_v53 = vmul.f32 %v13607_v34, %v13605_v49 }
0x1974   :  { %v7090_v51 = vmul.f32 0.0, %v13609_v30  ;;  %v13611_v27 = vpop.eup %13610 }
0x1976   :  { %v17039_v12 = vadd.f32 %v7091_v53, %v7090_v51 }
0x1978   :  { %13612 = vtanh.f32 %v17039_v12 }
0x1982   :  { %v13613_v31 = vpop.eup %13612 }
0x1983   :  { %v17042_v17 = vmul.f32 %v13613_v31, %v13611_v27  ;;  %v10409_v31 = vld [vmem:[%s17708_s2 + $0x600] sm:$0xff] }
0x1985   :  { %7229 = vmatmul.mubr.f32.vlgmr.msra.gmra.mrb[48].mxu0 %v17042_v17  ;;  %7300 = vmatmul.mubr.f32.vlgmr.msra.gmra.mrb[52].mxu1 %v17042_v17 }
0x1986   :  { %12605 = vmatpush1.bf16.msra.mxu0 %v16707_v63  ;;  %12637 = vmatpush1.bf16.msra.mxu1 %v16718_v59 }
0x1987   :  { %12607 = vmatprep.subr.bf16.mxu0 %v16732_v19  ;;  %12639 = vmatprep.subr.bf16.mxu1 %v16745_v39 }
0x1988   :  { %7467 = vmatprep.mubr.f32.mxu0 %v13785_v0  ;;  %7538 = vmatprep.mubr.f32.mxu1 %v13785_v0 }
0x198a   :  { %12609 = vmatpush1.bf16.msra.mxu0 %v16743_v58  ;;  %12641 = vmatpush1.bf16.msra.mxu1 %v16754_v60 }
0x198b   :  { %12611 = vmatprep.subr.bf16.mxu0 %v16768_v29  ;;  %12643 = vmatprep.subr.bf16.mxu1 %v16781_v56 }
0x198e   :  { %12613 = vmatpush1.bf16.msra.mxu0 %v16779_v3  ;;  %12645 = vmatpush1.bf16.msra.mxu1 %v16790_v8 }
0x198f   :  { %12615 = vmatprep.subr.bf16.mxu0 %v16804_v1  ;;  %12647 = vmatprep.subr.bf16.mxu1 %v16817_v13 }
0x1992   :  { %12617 = vmatpush1.bf16.msra.mxu0 %v16815_v25  ;;  %12649 = vmatpush1.bf16.msra.mxu1 %v16829_v45 }
0x1993   :  { %12619 = vmatprep.subr.bf16.mxu0 %v16842_v11  ;;  %12651 = vmatprep.subr.bf16.mxu1 %v16856_v21 }
0x1996   :  { %12621 = vmatpush1.bf16.msra.mxu0 %v16844_v50  ;;  %12653 = vmatpush1.bf16.msra.mxu1 %v16868_v28 }
0x1997   :  { %12623 = vmatprep.subr.bf16.mxu0 %v16870_v14  ;;  %12655 = vmatprep.subr.bf16.mxu1 %v16894_v10 }
0x199a   :  { %12625 = vmatpush1.bf16.msra.mxu0 %v16892_v55  ;;  %12657 = vmatpush1.bf16.msra.mxu1 %v16907_v9 }
0x199b   :  { %12627 = vmatprep.subr.bf16.mxu0 %v16909_v38  ;;  %12659 = vmatprep.subr.bf16.mxu1 %v16921_v44 }
0x199e   :  { %12629 = vmatpush1.bf16.msra.mxu0 %v16936_v40  ;;  %12661 = vmatpush1.bf16.msra.mxu1 %v16940_v37 }
0x199f   :  { %12631 = vmatprep.subr.bf16.mxu0 %v16942_v42  ;;  %12663 = vmatprep.subr.bf16.mxu1 %v16960_v35 }
0x19a2   :  { %12633 = vmatpush1.bf16.msra.mxu0 %v16965_v26  ;;  %12665 = vmatpush1.bf16.msra.mxu1 %v16971_v61 }
0x19a3   :  { %12667 = vmatprep.subr.bf16.mxu0 %v16696_v24  ;;  %12699 = vmatprep.subr.bf16.mxu1 %v16709_v23 }
0x1a58   :  { %v7230_v5 = vpop.f32.mrb[48].mxu0  ;;  %v7301_v52 = vpop.f32.mrb[52].mxu1 }
0x1a59   :  { %v13084_v6 = vadd.f32 %v7230_v5, %v17024_v7  ;;  %v7232_v46 = vpop.f32.mrb[49].mxu0  ;;  %v7303_v47 = vpop.f32.mrb[53].mxu1  ;;  %v13100_v36 = vadd.f32 %v7301_v52, %v17036_v22  ;;  %v10413_v5 = vld [vmem:[%s17708_s2 + $0x620] sm:$0xff] }
0x1a5a   :  { %v13085_v57 = vadd.f32 %v7232_v46, %v17027_v32  ;;  %v13101_v15 = vadd.f32 %v7303_v47, %v17032_v48  ;;  %v10411_v46 = vld [vmem:[%s17708_s2 + $0x610] sm:$0xff] }
0x1a5b   :  { %v10272_v41 = vmul.f32 -1.442695, %v13084_v6  ;;  %v17160_v6 = vpack.c.bf16 %v10413_v5, %v10409_v31  ;;  %v10415_v47 = vld [vmem:[%s17708_s2 + $0x630] sm:$0xff]  ;;  %v10450_v5 = vld [vmem:[%s17708_s2 + $0x748] sm:$0xff] }
0x1a5c   :  { %v10273_v4 = vmul.f32 -1.442695, %v13085_v57  ;;  %v10274_v62 = vmul.f32 -1.442695, %v13101_v15  ;;  %v17169_v57 = vpack.c.bf16 %v10415_v47, %v10411_v46  ;;  %v10420_v15 = vld [vmem:[%s17708_s2 + $0x658] sm:$0xff]  ;;  %v10454_v46 = vld [vmem:[%s17708_s2 + $0x768] sm:$0xff] }
0x1a5d   :  { %13614 = vpow2.f32 %v10272_v41  ;;  %v10418_v41 = vld [vmem:[%s17708_s2 + $0x648] sm:$0xff]  ;;  %v10452_v47 = vld [vmem:[%s17708_s2 + $0x758] sm:$0xff] }
0x1a5e   :  { %13616 = vpow2.f32 %v10273_v4  ;;  %v10422_v4 = vld [vmem:[%s17708_s2 + $0x668] sm:$0xff] }
0x1a5f   :  { %13618 = vpow2.f32 %v10274_v62  ;;  %v17183_v62 = vpack.c.bf16 %v10422_v4, %v10418_v41  ;;  %v17326_v41 = vpack.c.bf16 %v10454_v46, %v10450_v5  ;;  %v10456_v4 = vld [vmem:[%s17708_s2 + $0x778] sm:$0xff] }
0x1a60   :  { %13620 = vtanh.f32 %v13100_v36  ;;  %v10424_v36 = vld [vmem:[%s17708_s2 + $0x678] sm:$0xff] }
0x1a67   :  { %v13615_v24 = vpop.eup %13614 }
0x1a68   :  { %v13617_v2 = vpop.eup %13616  ;;  %v7313_v23 = vadd.f32 1.0, %v13615_v24  ;;  %v10417_v24 = vld [vmem:[%s17708_s2 + $0x640] sm:$0xff] }
0x1a69   :  { %v7319_v54 = vadd.f32 1.0, %v13617_v2  ;;  %v13619_v33 = vpop.eup %13618  ;;  %v10421_v2 = vld [vmem:[%s17708_s2 + $0x660] sm:$0xff] }
0x1a6a   :  { %13622 = vrcp.f32 %v7313_v23  ;;  %v13621_v43 = vpop.eup %13620  ;;  %v7326_v34 = vadd.f32 1.0, %v13619_v33  ;;  %v17194_v23 = vpack.c.bf16 %v10424_v36, %v10420_v15  ;;  %v10419_v33 = vld [vmem:[%s17708_s2 + $0x650] sm:$0xff]  ;;  %v10449_v15 = vld [vmem:[%s17708_s2 + $0x740] sm:$0xff] }
0x1a6b   :  { %13624 = vrcp.f32 %v7319_v54  ;;  %v17196_v54 = vpack.c.bf16 %v10421_v2, %v10417_v24  ;;  %v10453_v36 = vld [vmem:[%s17708_s2 + $0x760] sm:$0xff]  ;;  %v17338_v24 = vpack.c.bf16 %v10456_v4, %v10452_v47 }
0x1a6c   :  { %13626 = vrcp.f32 %v7326_v34  ;;  %v10428_v34 = vld [vmem:[%s17708_s2 + $0x698] sm:$0xff]  ;;  %v17340_v2 = vpack.c.bf16 %v10453_v36, %v10449_v15 }
0x1a74   :  { %v13623_v20 = vpop.eup %13622 }
0x1a75   :  { %v13625_v18 = vpop.eup %13624  ;;  %v7330_v49 = vmul.f32 %v13623_v20, %v13621_v43  ;;  %v10423_v43 = vld [vmem:[%s17708_s2 + $0x670] sm:$0xff] }
0x1a76   :  { %v7329_v30 = vmul.f32 %v13625_v18, %v17039_v12  ;;  %v13627_v16 = vpop.eup %13626  ;;  %v10416_v12 = vld [vmem:[%s17708_s2 + $0x638] sm:$0xff]  ;;  %v17205_v20 = vpack.c.bf16 %v10423_v43, %v10419_v33  ;;  %v10426_v18 = vld [vmem:[%s17708_s2 + $0x688] sm:$0xff]  ;;  %v10451_v33 = vld [vmem:[%s17708_s2 + $0x750] sm:$0xff] }
0x1a77   :  { %v10455_v43 = vld [vmem:[%s17708_s2 + $0x770] sm:$0xff] }
0x1a78   :  { %v17085_v53 = vadd.f32 %v7330_v49, %v7329_v30  ;;  %v10430_v49 = vld [vmem:[%s17708_s2 + $0x6a8] sm:$0xff] }
0x1a79   :  { %v17219_v30 = vpack.c.bf16 %v10430_v49, %v10426_v18  ;;  %v10458_v18 = vld [vmem:[%s17708_s2 + $0x788] sm:$0xff]  ;;  %v17352_v49 = vpack.c.bf16 %v10455_v43, %v10451_v33 }
0x1a7a   :  { %13628 = vtanh.f32 %v17085_v53 }
0x1a84   :  { %v13629_v51 = vpop.eup %13628 }
0x1a85   :  { %v17088_v27 = vmul.f32 %v13629_v51, %v13627_v16  ;;  %v10425_v16 = vld [vmem:[%s17708_s2 + $0x680] sm:$0xff] }
0x1a86   :  { %v10429_v51 = vld [vmem:[%s17708_s2 + $0x6a0] sm:$0xff] }
0x1a87   :  { %7468 = vmatmul.mubr.f32.vlgmr.msra.gmra.mrb[50].mxu0 %v17088_v27  ;;  %7539 = vmatmul.mubr.f32.vlgmr.msra.gmra.mrb[54].mxu1 %v17088_v27 }
0x1a88   :  { %12669 = vmatpush1.bf16.msra.mxu0 %v16707_v63  ;;  %12701 = vmatpush1.bf16.msra.mxu1 %v16718_v59 }
0x1a89   :  { %12671 = vmatprep.subr.bf16.mxu0 %v16732_v19  ;;  %12703 = vmatprep.subr.bf16.mxu1 %v16745_v39 }
0x1a8a   :  { %7706 = vmatprep.mubr.f32.mxu0 %v13785_v0  ;;  %7777 = vmatprep.mubr.f32.mxu1 %v13785_v0 }
0x1a8c   :  { %12673 = vmatpush1.bf16.msra.mxu0 %v16743_v58  ;;  %12705 = vmatpush1.bf16.msra.mxu1 %v16754_v60 }
0x1a8d   :  { %12675 = vmatprep.subr.bf16.mxu0 %v16768_v29  ;;  %12707 = vmatprep.subr.bf16.mxu1 %v16781_v56 }
0x1a90   :  { %12677 = vmatpush1.bf16.msra.mxu0 %v16779_v3  ;;  %12709 = vmatpush1.bf16.msra.mxu1 %v16790_v8 }
0x1a91   :  { %12679 = vmatprep.subr.bf16.mxu0 %v16804_v1  ;;  %12711 = vmatprep.subr.bf16.mxu1 %v16817_v13 }
0x1a94   :  { %12681 = vmatpush1.bf16.msra.mxu0 %v16815_v25  ;;  %12713 = vmatpush1.bf16.msra.mxu1 %v16829_v45 }
0x1a95   :  { %12683 = vmatprep.subr.bf16.mxu0 %v16842_v11  ;;  %12715 = vmatprep.subr.bf16.mxu1 %v16856_v21 }
0x1a98   :  { %12685 = vmatpush1.bf16.msra.mxu0 %v16844_v50  ;;  %12717 = vmatpush1.bf16.msra.mxu1 %v16868_v28 }
0x1a99   :  { %12687 = vmatprep.subr.bf16.mxu0 %v16870_v14  ;;  %12719 = vmatprep.subr.bf16.mxu1 %v16894_v10 }
0x1a9c   :  { %12689 = vmatpush1.bf16.msra.mxu0 %v16892_v55  ;;  %12721 = vmatpush1.bf16.msra.mxu1 %v16907_v9 }
0x1a9d   :  { %12691 = vmatprep.subr.bf16.mxu0 %v16909_v38  ;;  %12723 = vmatprep.subr.bf16.mxu1 %v16921_v44 }
0x1aa0   :  { %12693 = vmatpush1.bf16.msra.mxu0 %v16936_v40  ;;  %12725 = vmatpush1.bf16.msra.mxu1 %v16940_v37 }
0x1aa1   :  { %12695 = vmatprep.subr.bf16.mxu0 %v16942_v42  ;;  %12727 = vmatprep.subr.bf16.mxu1 %v16960_v35  ;;  %v10410_v42 = vld [vmem:[%s17708_s2 + $0x608] sm:$0xff] }
0x1aa2   :  { %v10414_v35 = vld [vmem:[%s17708_s2 + $0x628] sm:$0xff] }
0x1aa4   :  { %12697 = vmatpush1.bf16.msra.mxu0 %v16965_v26  ;;  %12729 = vmatpush1.bf16.msra.mxu1 %v16971_v61  ;;  %v10412_v26 = vld [vmem:[%s17708_s2 + $0x618] sm:$0xff]  ;;  %v17147_v61 = vpack.c.bf16 %v10414_v35, %v10410_v42 }
0x1aa5   :  { %v17158_v52 = vpack.c.bf16 %v10416_v12, %v10412_v26  ;;  %v10443_v26 = vld [vmem:[%s17708_s2 + $0x710] sm:$0xff] }
0x1aa6   :  { %12731 = vmatprep.subr.bf16.mxu0 %v17147_v61  ;;  %v10447_v12 = vld [vmem:[%s17708_s2 + $0x730] sm:$0xff] }
0x1aa7   :  { %12763 = vmatprep.subr.bf16.mxu1 %v17158_v52  ;;  %v17313_v31 = vpack.c.bf16 %v10447_v12, %v10443_v26  ;;  %v10471_v26 = vld [vmem:[%s17708_s2 + $0x7f0] sm:$0xff] }
0x1b5a   :  { %v7469_v63 = vpop.f32.mrb[50].mxu0  ;;  %v7540_v59 = vpop.f32.mrb[54].mxu1 }
0x1b5b   :  { %v13086_v19 = vadd.f32 %v7469_v63, %v17024_v7  ;;  %v7471_v58 = vpop.f32.mrb[51].mxu0  ;;  %v7542_v39 = vpop.f32.mrb[55].mxu1  ;;  %v13102_v1 = vadd.f32 %v7540_v59, %v17036_v22  ;;  %v17232_v59 = vpack.c.bf16 %v10429_v51, %v10425_v16  ;;  %v10464_v16 = vld [vmem:[%s17708_s2 + $0x7b8] sm:$0xff] }
0x1b5c   :  { %v13087_v60 = vadd.f32 %v7471_v58, %v17027_v32  ;;  %v13103_v56 = vadd.f32 %v7542_v39, %v17032_v48  ;;  %v10431_v58 = vld [vmem:[%s17708_s2 + $0x6b0] sm:$0xff] }
0x1b5d   :  { %v10339_v29 = vmul.f32 -1.442695, %v13086_v19  ;;  %v10427_v19 = vld [vmem:[%s17708_s2 + $0x690] sm:$0xff] }
0x1b5e   :  { %v10340_v3 = vmul.f32 -1.442695, %v13087_v60  ;;  %v10341_v8 = vmul.f32 -1.442695, %v13103_v56  ;;  %v17241_v39 = vpack.c.bf16 %v10431_v58, %v10427_v19  ;;  %v10434_v60 = vld [vmem:[%s17708_s2 + $0x6c8] sm:$0xff]  ;;  %v10457_v58 = vld [vmem:[%s17708_s2 + $0x780] sm:$0xff] }
0x1b5f   :  { %13630 = vpow2.f32 %v10339_v29  ;;  %v10438_v29 = vld [vmem:[%s17708_s2 + $0x6e8] sm:$0xff] }
0x1b60   :  { %13632 = vpow2.f32 %v10340_v3  ;;  %v10436_v3 = vld [vmem:[%s17708_s2 + $0x6d8] sm:$0xff]  ;;  %v17255_v56 = vpack.c.bf16 %v10438_v29, %v10434_v60  ;;  %v10461_v60 = vld [vmem:[%s17708_s2 + $0x7a0] sm:$0xff]  ;;  %v10459_v29 = vld [vmem:[%s17708_s2 + $0x790] sm:$0xff] }
0x1b61   :  { %13634 = vpow2.f32 %v10341_v8  ;;  %v10440_v8 = vld [vmem:[%s17708_s2 + $0x6f8] sm:$0xff] }
0x1b62   :  { %13636 = vtanh.f32 %v13102_v1  ;;  %v10433_v1 = vld [vmem:[%s17708_s2 + $0x6c0] sm:$0xff] }
0x1b69   :  { %v13631_v25 = vpop.eup %13630 }
0x1b6a   :  { %v13633_v13 = vpop.eup %13632  ;;  %v7552_v45 = vadd.f32 1.0, %v13631_v25  ;;  %v10437_v25 = vld [vmem:[%s17708_s2 + $0x6e0] sm:$0xff] }
0x1b6b   :  { %v7558_v11 = vadd.f32 1.0, %v13633_v13  ;;  %v13635_v50 = vpop.eup %13634  ;;  %v17266_v13 = vpack.c.bf16 %v10440_v8, %v10436_v3  ;;  %v17378_v3 = vpack.c.bf16 %v10461_v60, %v10457_v58  ;;  %v10463_v8 = vld [vmem:[%s17708_s2 + $0x7b0] sm:$0xff] }
0x1b6c   :  { %13638 = vrcp.f32 %v7552_v45  ;;  %v13637_v21 = vpop.eup %13636  ;;  %v7565_v10 = vadd.f32 1.0, %v13635_v50  ;;  %v17268_v45 = vpack.c.bf16 %v10437_v25, %v10433_v1  ;;  %v10439_v50 = vld [vmem:[%s17708_s2 + $0x6f0] sm:$0xff]  ;;  %v10466_v1 = vld [vmem:[%s17708_s2 + $0x7c8] sm:$0xff] }
0x1b6d   :  { %13640 = vrcp.f32 %v7558_v11  ;;  %v10435_v11 = vld [vmem:[%s17708_s2 + $0x6d0] sm:$0xff]  ;;  %v10470_v25 = vld [vmem:[%s17708_s2 + $0x7e8] sm:$0xff] }
0x1b6e   :  { %13642 = vrcp.f32 %v7565_v10 }
0x1b76   :  { %v13639_v28 = vpop.eup %13638 }
0x1b77   :  { %v13641_v14 = vpop.eup %13640  ;;  %v7569_v55 = vmul.f32 %v13639_v28, %v13637_v21  ;;  %v17277_v21 = vpack.c.bf16 %v10439_v50, %v10435_v11  ;;  %v10442_v28 = vld [vmem:[%s17708_s2 + $0x708] sm:$0xff]  ;;  %v17391_v11 = vpack.c.bf16 %v10463_v8, %v10459_v29  ;;  %v17393_v50 = vpack.c.bf16 %v10470_v25, %v10466_v1 }
0x1b78   :  { %v7568_v9 = vmul.f32 %v13641_v14, %v17085_v53  ;;  %v13643_v44 = vpop.eup %13642  ;;  %v10432_v53 = vld [vmem:[%s17708_s2 + $0x6b8] sm:$0xff]  ;;  %v10446_v14 = vld [vmem:[%s17708_s2 + $0x728] sm:$0xff] }
0x1b79   :  { %v17230_v63 = vpack.c.bf16 %v10432_v53, %v10428_v34  ;;  %v17291_v10 = vpack.c.bf16 %v10446_v14, %v10442_v28  ;;  %v10462_v34 = vld [vmem:[%s17708_s2 + $0x7a8] sm:$0xff]  ;;  %v10460_v53 = vld [vmem:[%s17708_s2 + $0x798] sm:$0xff] }
0x1b7a   :  { %v17129_v38 = vadd.f32 %v7569_v55, %v7568_v9  ;;  %v10444_v55 = vld [vmem:[%s17708_s2 + $0x718] sm:$0xff]  ;;  %v17364_v51 = vpack.c.bf16 %v10462_v34, %v10458_v18  ;;  %v17366_v19 = vpack.c.bf16 %v10464_v16, %v10460_v53 }
0x1b7b   :  { %v10448_v9 = vld [vmem:[%s17708_s2 + $0x738] sm:$0xff] }
0x1b7c   :  { %13644 = vtanh.f32 %v17129_v38  ;;  %v17302_v42 = vpack.c.bf16 %v10448_v9, %v10444_v55  ;;  %v10468_v28 = vld [vmem:[%s17708_s2 + $0x7d8] sm:$0xff]  ;;  %v10465_v55 = vld [vmem:[%s17708_s2 + $0x7c0] sm:$0xff] }
0x1b7d   :  { %v10472_v14 = vld [vmem:[%s17708_s2 + $0x7f8] sm:$0xff] }
0x1b7e   :  { %v17405_v9 = vpack.c.bf16 %v10472_v14, %v10468_v28 }
0x1b86   :  { %v13645_v40 = vpop.eup %13644 }
0x1b87   :  { %v17132_v37 = vmul.f32 %v13645_v40, %v13643_v44  ;;  %v10441_v44 = vld [vmem:[%s17708_s2 + $0x700] sm:$0xff] }
0x1b88   :  { %v10445_v40 = vld [vmem:[%s17708_s2 + $0x720] sm:$0xff] }
0x1b89   :  { %7707 = vmatmul.mubr.f32.vlgmr.msra.gmra.mrb[52].mxu0 %v17132_v37  ;;  %7778 = vmatmul.mubr.f32.vlgmr.msra.gmra.mrb[56].mxu1 %v17132_v37  ;;  %v17304_v35 = vpack.c.bf16 %v10445_v40, %v10441_v44  ;;  %v10469_v44 = vld [vmem:[%s17708_s2 + $0x7e0] sm:$0xff]  ;;  %v10467_v40 = vld [vmem:[%s17708_s2 + $0x7d0] sm:$0xff] }
0x1b8a   :  { %7945 = vmatprep.mubr.f32.mxu0 %v13785_v0  ;;  %8016 = vmatprep.mubr.f32.mxu1 %v13785_v0  ;;  %v17417_v12 = vpack.c.bf16 %v10469_v44, %v10465_v55  ;;  %v17421_v5 = vpack.c.bf16 %v10471_v26, %v10467_v40 }
0x1b8b   :  { %12733 = vmatpush1.bf16.msra.mxu0 %v17160_v6  ;;  %12765 = vmatpush1.bf16.msra.mxu1 %v17169_v57 }
0x1b8c   :  { %12735 = vmatprep.subr.bf16.mxu0 %v17183_v62  ;;  %12767 = vmatprep.subr.bf16.mxu1 %v17194_v23 }
0x1b8f   :  { %12737 = vmatpush1.bf16.msra.mxu0 %v17196_v54  ;;  %12769 = vmatpush1.bf16.msra.mxu1 %v17205_v20 }
0x1b90   :  { %12739 = vmatprep.subr.bf16.mxu0 %v17219_v30  ;;  %12771 = vmatprep.subr.bf16.mxu1 %v17230_v63 }
0x1b93   :  { %12741 = vmatpush1.bf16.msra.mxu0 %v17232_v59  ;;  %12773 = vmatpush1.bf16.msra.mxu1 %v17241_v39 }
0x1b94   :  { %12743 = vmatprep.subr.bf16.mxu0 %v17255_v56  ;;  %12775 = vmatprep.subr.bf16.mxu1 %v17266_v13 }
0x1b97   :  { %12745 = vmatpush1.bf16.msra.mxu0 %v17268_v45  ;;  %12777 = vmatpush1.bf16.msra.mxu1 %v17277_v21 }
0x1b98   :  { %12747 = vmatprep.subr.bf16.mxu0 %v17291_v10  ;;  %12779 = vmatprep.subr.bf16.mxu1 %v17302_v42 }
0x1b9b   :  { %12749 = vmatpush1.bf16.msra.mxu0 %v17304_v35  ;;  %12781 = vmatpush1.bf16.msra.mxu1 %v17313_v31 }
0x1b9c   :  { %12751 = vmatprep.subr.bf16.mxu0 %v17326_v41  ;;  %12783 = vmatprep.subr.bf16.mxu1 %v17338_v24 }
0x1b9f   :  { %12753 = vmatpush1.bf16.msra.mxu0 %v17340_v2  ;;  %12785 = vmatpush1.bf16.msra.mxu1 %v17352_v49 }
0x1ba0   :  { %12755 = vmatprep.subr.bf16.mxu0 %v17364_v51  ;;  %12787 = vmatprep.subr.bf16.mxu1 %v17366_v19 }
0x1ba3   :  { %12757 = vmatpush1.bf16.msra.mxu0 %v17378_v3  ;;  %12789 = vmatpush1.bf16.msra.mxu1 %v17391_v11 }
0x1ba4   :  { %12759 = vmatprep.subr.bf16.mxu0 %v17393_v50  ;;  %12791 = vmatprep.subr.bf16.mxu1 %v17405_v9 }
0x1ba7   :  { %12761 = vmatpush1.bf16.msra.mxu0 %v17417_v12  ;;  %12793 = vmatpush1.bf16.msra.mxu1 %v17421_v5 }
0x1ba8   :  { %12795 = vmatprep.subr.bf16.mxu0 %v17147_v61  ;;  %12827 = vmatprep.subr.bf16.mxu1 %v17158_v52 }
0x1c5c   :  { %v7708_v46 = vpop.f32.mrb[52].mxu0  ;;  %v7779_v47 = vpop.f32.mrb[56].mxu1 }
0x1c5d   :  { %v13088_v4 = vadd.f32 %v7708_v46, %v17024_v7  ;;  %v7710_v15 = vpop.f32.mrb[53].mxu0  ;;  %v7781_v36 = vpop.f32.mrb[57].mxu1  ;;  %v13104_v16 = vadd.f32 %v7779_v47, %v17036_v22 }
0x1c5e   :  { %v13089_v33 = vadd.f32 %v7710_v15, %v17027_v32  ;;  %v13105_v34 = vadd.f32 %v7781_v36, %v17032_v48 }
0x1c5f   :  { %v10406_v43 = vmul.f32 -1.442695, %v13088_v4 }
0x1c60   :  { %v10407_v18 = vmul.f32 -1.442695, %v13089_v33  ;;  %v10408_v53 = vmul.f32 -1.442695, %v13105_v34 }
0x1c61   :  { %13646 = vpow2.f32 %v10406_v43 }
0x1c62   :  { %13648 = vpow2.f32 %v10407_v18 }
0x1c63   :  { %13650 = vpow2.f32 %v10408_v53 }
0x1c64   :  { %13652 = vtanh.f32 %v13104_v16 }
0x1c6b   :  { %v13647_v58 = vpop.eup %13646 }
0x1c6c   :  { %v13649_v60 = vpop.eup %13648  ;;  %v7791_v29 = vadd.f32 1.0, %v13647_v58 }
0x1c6d   :  { %v7797_v8 = vadd.f32 1.0, %v13649_v60  ;;  %v13651_v1 = vpop.eup %13650 }
0x1c6e   :  { %13654 = vrcp.f32 %v7791_v29  ;;  %v13653_v25 = vpop.eup %13652  ;;  %v7804_v44 = vadd.f32 1.0, %v13651_v1 }
0x1c6f   :  { %13656 = vrcp.f32 %v7797_v8 }
0x1c70   :  { %13658 = vrcp.f32 %v7804_v44 }
0x1c78   :  { %v13655_v28 = vpop.eup %13654 }
0x1c79   :  { %v13657_v14 = vpop.eup %13656  ;;  %v7808_v55 = vmul.f32 %v13655_v28, %v13653_v25 }
0x1c7a   :  { %v7807_v40 = vmul.f32 %v13657_v14, %v17129_v38  ;;  %v13659_v46 = vpop.eup %13658 }
0x1c7c   :  { %v17433_v26 = vadd.f32 %v7808_v55, %v7807_v40 }
0x1c7e   :  { %13660 = vtanh.f32 %v17433_v26 }
0x1c88   :  { %v13661_v47 = vpop.eup %13660 }
0x1c89   :  { %v17436_v4 = vmul.f32 %v13661_v47, %v13659_v46 }
0x1c8b   :  { %7946 = vmatmul.mubr.f32.vlgmr.msra.gmra.mrb[54].mxu0 %v17436_v4  ;;  %8017 = vmatmul.mubr.f32.vlgmr.msra.gmra.mrb[58].mxu1 %v17436_v4 }
0x1c8c   :  { %12797 = vmatpush1.bf16.msra.mxu0 %v17160_v6  ;;  %12829 = vmatpush1.bf16.msra.mxu1 %v17169_v57 }
0x1c8d   :  { %12799 = vmatprep.subr.bf16.mxu0 %v17183_v62  ;;  %12831 = vmatprep.subr.bf16.mxu1 %v17194_v23 }
0x1c8e   :  { %8184 = vmatprep.mubr.f32.mxu0 %v13785_v0  ;;  %8255 = vmatprep.mubr.f32.mxu1 %v13785_v0 }
0x1c90   :  { %12801 = vmatpush1.bf16.msra.mxu0 %v17196_v54  ;;  %12833 = vmatpush1.bf16.msra.mxu1 %v17205_v20 }
0x1c91   :  { %12803 = vmatprep.subr.bf16.mxu0 %v17219_v30  ;;  %12835 = vmatprep.subr.bf16.mxu1 %v17230_v63 }
0x1c94   :  { %12805 = vmatpush1.bf16.msra.mxu0 %v17232_v59  ;;  %12837 = vmatpush1.bf16.msra.mxu1 %v17241_v39 }
0x1c95   :  { %12807 = vmatprep.subr.bf16.mxu0 %v17255_v56  ;;  %12839 = vmatprep.subr.bf16.mxu1 %v17266_v13 }
0x1c98   :  { %12809 = vmatpush1.bf16.msra.mxu0 %v17268_v45  ;;  %12841 = vmatpush1.bf16.msra.mxu1 %v17277_v21 }
0x1c99   :  { %12811 = vmatprep.subr.bf16.mxu0 %v17291_v10  ;;  %12843 = vmatprep.subr.bf16.mxu1 %v17302_v42 }
0x1c9c   :  { %12813 = vmatpush1.bf16.msra.mxu0 %v17304_v35  ;;  %12845 = vmatpush1.bf16.msra.mxu1 %v17313_v31 }
0x1c9d   :  { %12815 = vmatprep.subr.bf16.mxu0 %v17326_v41  ;;  %12847 = vmatprep.subr.bf16.mxu1 %v17338_v24 }
0x1ca0   :  { %12817 = vmatpush1.bf16.msra.mxu0 %v17340_v2  ;;  %12849 = vmatpush1.bf16.msra.mxu1 %v17352_v49 }
0x1ca1   :  { %12819 = vmatprep.subr.bf16.mxu0 %v17364_v51  ;;  %12851 = vmatprep.subr.bf16.mxu1 %v17366_v19 }
0x1ca4   :  { %12821 = vmatpush1.bf16.msra.mxu0 %v17378_v3  ;;  %12853 = vmatpush1.bf16.msra.mxu1 %v17391_v11 }
0x1ca5   :  { %12823 = vmatprep.subr.bf16.mxu0 %v17393_v50  ;;  %12855 = vmatprep.subr.bf16.mxu1 %v17405_v9 }
0x1ca8   :  { %12825 = vmatpush1.bf16.msra.mxu0 %v17417_v12  ;;  %12857 = vmatpush1.bf16.msra.mxu1 %v17421_v5 }
0x1ca9   :  { %12859 = vmatprep.subr.bf16.mxu0 %v17147_v61  ;;  %12891 = vmatprep.subr.bf16.mxu1 %v17158_v52 }
0x1d5e   :  { %v7947_v38 = vpop.f32.mrb[54].mxu0  ;;  %v8018_v15 = vpop.f32.mrb[58].mxu1 }
0x1d5f   :  { %v13090_v36 = vadd.f32 %v7947_v38, %v17024_v7  ;;  %v7949_v33 = vpop.f32.mrb[55].mxu0  ;;  %v8020_v43 = vpop.f32.mrb[59].mxu1  ;;  %v13106_v60 = vadd.f32 %v8018_v15, %v17036_v22 }
0x1d60   :  { %v13091_v18 = vadd.f32 %v7949_v33, %v17027_v32  ;;  %v13107_v16 = vadd.f32 %v8020_v43, %v17032_v48 }
0x1d61   :  { %v10473_v34 = vmul.f32 -1.442695, %v13090_v36 }
0x1d62   :  { %v10474_v53 = vmul.f32 -1.442695, %v13091_v18  ;;  %v10475_v58 = vmul.f32 -1.442695, %v13107_v16 }
0x1d63   :  { %13662 = vpow2.f32 %v10473_v34 }
0x1d64   :  { %13664 = vpow2.f32 %v10474_v53 }
0x1d65   :  { %13666 = vpow2.f32 %v10475_v58 }
0x1d66   :  { %13668 = vtanh.f32 %v13106_v60 }
0x1d6d   :  { %v13663_v29 = vpop.eup %13662 }
0x1d6e   :  { %v13665_v8 = vpop.eup %13664  ;;  %v8030_v1 = vadd.f32 1.0, %v13663_v29 }
0x1d6f   :  { %v8036_v25 = vadd.f32 1.0, %v13665_v8  ;;  %v13667_v28 = vpop.eup %13666 }
0x1d70   :  { %13670 = vrcp.f32 %v8030_v1  ;;  %v13669_v14 = vpop.eup %13668  ;;  %v8043_v46 = vadd.f32 1.0, %v13667_v28 }
0x1d71   :  { %13672 = vrcp.f32 %v8036_v25 }
0x1d72   :  { %13674 = vrcp.f32 %v8043_v46 }
0x1d7a   :  { %v13671_v55 = vpop.eup %13670 }
0x1d7b   :  { %v13673_v44 = vpop.eup %13672  ;;  %v8047_v40 = vmul.f32 %v13671_v55, %v13669_v14 }
0x1d7c   :  { %v8046_v47 = vmul.f32 %v13673_v44, %v17433_v26  ;;  %v13675_v15 = vpop.eup %13674 }
0x1d7e   :  { %v17479_v38 = vadd.f32 %v8047_v40, %v8046_v47 }
0x1d80   :  { %13676 = vtanh.f32 %v17479_v38 }
0x1d8a   :  { %v13677_v36 = vpop.eup %13676 }
0x1d8b   :  { %v17482_v33 = vmul.f32 %v13677_v36, %v13675_v15 }
0x1d8d   :  { %8185 = vmatmul.mubr.f32.vlgmr.msra.gmra.mrb[56].mxu0 %v17482_v33  ;;  %8256 = vmatmul.mubr.f32.vlgmr.msra.gmra.mrb[60].mxu1 %v17482_v33 }
0x1d8e   :  { %12861 = vmatpush1.bf16.msra.mxu0 %v17160_v6  ;;  %12893 = vmatpush1.bf16.msra.mxu1 %v17169_v57 }
0x1d8f   :  { %12863 = vmatprep.subr.bf16.mxu0 %v17183_v62  ;;  %12895 = vmatprep.subr.bf16.mxu1 %v17194_v23 }
0x1d90   :  { %8423 = vmatprep.mubr.f32.mxu0 %v13785_v0  ;;  %8494 = vmatprep.mubr.f32.mxu1 %v13785_v0 }
0x1d92   :  { %12865 = vmatpush1.bf16.msra.mxu0 %v17196_v54  ;;  %12897 = vmatpush1.bf16.msra.mxu1 %v17205_v20 }
0x1d93   :  { %12867 = vmatprep.subr.bf16.mxu0 %v17219_v30  ;;  %12899 = vmatprep.subr.bf16.mxu1 %v17230_v63 }
0x1d96   :  { %12869 = vmatpush1.bf16.msra.mxu0 %v17232_v59  ;;  %12901 = vmatpush1.bf16.msra.mxu1 %v17241_v39 }
0x1d97   :  { %12871 = vmatprep.subr.bf16.mxu0 %v17255_v56  ;;  %12903 = vmatprep.subr.bf16.mxu1 %v17266_v13 }
0x1d9a   :  { %12873 = vmatpush1.bf16.msra.mxu0 %v17268_v45  ;;  %12905 = vmatpush1.bf16.msra.mxu1 %v17277_v21 }
0x1d9b   :  { %12875 = vmatprep.subr.bf16.mxu0 %v17291_v10  ;;  %12907 = vmatprep.subr.bf16.mxu1 %v17302_v42 }
0x1d9e   :  { %12877 = vmatpush1.bf16.msra.mxu0 %v17304_v35  ;;  %12909 = vmatpush1.bf16.msra.mxu1 %v17313_v31 }
0x1d9f   :  { %12879 = vmatprep.subr.bf16.mxu0 %v17326_v41  ;;  %12911 = vmatprep.subr.bf16.mxu1 %v17338_v24 }
0x1da2   :  { %12881 = vmatpush1.bf16.msra.mxu0 %v17340_v2  ;;  %12913 = vmatpush1.bf16.msra.mxu1 %v17352_v49 }
0x1da3   :  { %12883 = vmatprep.subr.bf16.mxu0 %v17364_v51  ;;  %12915 = vmatprep.subr.bf16.mxu1 %v17366_v19 }
0x1da6   :  { %12885 = vmatpush1.bf16.msra.mxu0 %v17378_v3  ;;  %12917 = vmatpush1.bf16.msra.mxu1 %v17391_v11 }
0x1da7   :  { %12887 = vmatprep.subr.bf16.mxu0 %v17393_v50  ;;  %12919 = vmatprep.subr.bf16.mxu1 %v17405_v9 }
0x1daa   :  { %12889 = vmatpush1.bf16.msra.mxu0 %v17417_v12  ;;  %12921 = vmatpush1.bf16.msra.mxu1 %v17421_v5 }
0x1dab   :  { %12923 = vmatprep.subr.bf16.mxu0 %v17147_v61  ;;  %12955 = vmatprep.subr.bf16.mxu1 %v17158_v52 }
0x1e60   :  { %v8186_v26 = vpop.f32.mrb[56].mxu0  ;;  %v8257_v43 = vpop.f32.mrb[60].mxu1 }
0x1e61   :  { %v13092_v18 = vadd.f32 %v8186_v26, %v17024_v7  ;;  %v8188_v34 = vpop.f32.mrb[57].mxu0  ;;  %v8259_v53 = vpop.f32.mrb[61].mxu1  ;;  %v13108_v1 = vadd.f32 %v8257_v43, %v17036_v22 }
0x1e62   :  { %v13093_v16 = vadd.f32 %v8188_v34, %v17027_v32  ;;  %v13109_v29 = vadd.f32 %v8259_v53, %v17032_v48  ;;  %v8781_v34 = vld [vmem:[%s17710_s4 + $0x20] sm:$0xff]  ;;  %v8782_v53 = vld [vmem:[%s17710_s4 + $0x28] sm:$0xff] }
0x1e63   :  { %v10540_v58 = vmul.f32 -1.442695, %v13092_v18 }
0x1e64   :  { %v10541_v60 = vmul.f32 -1.442695, %v13093_v16  ;;  %v10542_v8 = vmul.f32 -1.442695, %v13109_v29  ;;  %v12994_v16 = vpack.c.bf16 %v8782_v53, %v8781_v34 }
0x1e65   :  { %13678 = vpow2.f32 %v10540_v58  ;;  %v8783_v58 = vld [vmem:[%s17710_s4 + $0x30] sm:$0xff] }
0x1e66   :  { %13680 = vpow2.f32 %v10541_v60  ;;  %v8784_v60 = vld [vmem:[%s17710_s4 + $0x38] sm:$0xff] }
0x1e67   :  { %13682 = vpow2.f32 %v10542_v8  ;;  %v12998_v29 = vpack.c.bf16 %v8784_v60, %v8783_v58  ;;  %v8785_v8 = vld [vmem:[%s17710_s4 + $0x40] sm:$0xff] }
0x1e68   :  { %13684 = vtanh.f32 %v13108_v1 }
0x1e6f   :  { %v13679_v61 = vpop.eup %13678 }
0x1e70   :  { %v13681_v25 = vpop.eup %13680  ;;  %v8269_v52 = vadd.f32 1.0, %v13679_v61  ;;  %v8787_v61 = vld [vmem:[%s17710_s4 + $0x50] sm:$0xff] }
0x1e71   :  { %v8275_v28 = vadd.f32 1.0, %v13681_v25  ;;  %v13683_v14 = vpop.eup %13682  ;;  %v8788_v25 = vld [vmem:[%s17710_s4 + $0x58] sm:$0xff] }
0x1e72   :  { %13686 = vrcp.f32 %v8269_v52  ;;  %v13685_v55 = vpop.eup %13684  ;;  %v8282_v47 = vadd.f32 1.0, %v13683_v14  ;;  %v13006_v52 = vpack.c.bf16 %v8788_v25, %v8787_v61  ;;  %v8790_v14 = vld [vmem:[%s17710_s4 + $0x68] sm:$0xff] }
0x1e73   :  { %13688 = vrcp.f32 %v8275_v28  ;;  %v8789_v28 = vld [vmem:[%s17710_s4 + $0x60] sm:$0xff] }
0x1e74   :  { %13690 = vrcp.f32 %v8282_v47 }
0x1e7c   :  { %v13687_v44 = vpop.eup %13686 }
0x1e7d   :  { %v13689_v40 = vpop.eup %13688  ;;  %v8286_v46 = vmul.f32 %v13687_v44, %v13685_v55  ;;  %v13010_v55 = vpack.c.bf16 %v8790_v14, %v8789_v28  ;;  %v8791_v44 = vld [vmem:[%s17710_s4 + $0x70] sm:$0xff] }
0x1e7e   :  { %v8285_v15 = vmul.f32 %v13689_v40, %v17479_v38  ;;  %v13691_v26 = vpop.eup %13690  ;;  %v8792_v40 = vld [vmem:[%s17710_s4 + $0x78] sm:$0xff] }
0x1e80   :  { %v17525_v36 = vadd.f32 %v8286_v46, %v8285_v15  ;;  %v13014_v46 = vpack.c.bf16 %v8792_v40, %v8791_v44 }
0x1e82   :  { %13692 = vtanh.f32 %v17525_v36 }
0x1e8c   :  { %v13693_v43 = vpop.eup %13692 }
0x1e8d   :  { %v17528_v18 = vmul.f32 %v13693_v43, %v13691_v26 }
0x1e8f   :  { %8424 = vmatmul.mubr.f32.vlgmr.msra.gmra.mrb[58].mxu0 %v17528_v18  ;;  %8495 = vmatmul.mubr.f32.vlgmr.msra.gmra.mrb[62].mxu1 %v17528_v18 }
0x1e90   :  { %12925 = vmatpush1.bf16.msra.mxu0 %v17160_v6  ;;  %12957 = vmatpush1.bf16.msra.mxu1 %v17169_v57  ;;  %v8778_v6 = vld [vmem:[%s17710_s4 + $0x8] sm:$0xff] }
0x1e91   :  { %12927 = vmatprep.subr.bf16.mxu0 %v17183_v62  ;;  %12959 = vmatprep.subr.bf16.mxu1 %v17194_v23 }
0x1e92   :  { %8662 = vmatprep.mubr.f32.mxu0 %v13785_v0  ;;  %8733 = vmatprep.mubr.f32.mxu1 %v13785_v0  ;;  %v8777_v0 = vld [vmem:[%s17710_s4] sm:$0xff] }
0x1e93   :  { %v12986_v57 = vpack.c.bf16 %v8778_v6, %v8777_v0 }
0x1e94   :  { %12929 = vmatpush1.bf16.msra.mxu0 %v17196_v54  ;;  %12961 = vmatpush1.bf16.msra.mxu1 %v17205_v20 }
0x1e95   :  { %12931 = vmatprep.subr.bf16.mxu0 %v17219_v30  ;;  %12963 = vmatprep.subr.bf16.mxu1 %v17230_v63 }
0x1e98   :  { %12933 = vmatpush1.bf16.msra.mxu0 %v17232_v59  ;;  %12965 = vmatpush1.bf16.msra.mxu1 %v17241_v39 }
0x1e99   :  { %12935 = vmatprep.subr.bf16.mxu0 %v17255_v56  ;;  %12967 = vmatprep.subr.bf16.mxu1 %v17266_v13 }
0x1e9c   :  { %12937 = vmatpush1.bf16.msra.mxu0 %v17268_v45  ;;  %12969 = vmatpush1.bf16.msra.mxu1 %v17277_v21 }
0x1e9d   :  { %12939 = vmatprep.subr.bf16.mxu0 %v17291_v10  ;;  %12971 = vmatprep.subr.bf16.mxu1 %v17302_v42 }
0x1ea0   :  { %12941 = vmatpush1.bf16.msra.mxu0 %v17304_v35  ;;  %12973 = vmatpush1.bf16.msra.mxu1 %v17313_v31 }
0x1ea1   :  { %12943 = vmatprep.subr.bf16.mxu0 %v17326_v41  ;;  %12975 = vmatprep.subr.bf16.mxu1 %v17338_v24 }
0x1ea4   :  { %12945 = vmatpush1.bf16.msra.mxu0 %v17340_v2  ;;  %12977 = vmatpush1.bf16.msra.mxu1 %v17352_v49 }
0x1ea5   :  { %12947 = vmatprep.subr.bf16.mxu0 %v17364_v51  ;;  %12979 = vmatprep.subr.bf16.mxu1 %v17366_v19 }
0x1ea8   :  { %12949 = vmatpush1.bf16.msra.mxu0 %v17378_v3  ;;  %12981 = vmatpush1.bf16.msra.mxu1 %v17391_v11  ;;  %v8779_v11 = vld [vmem:[%s17710_s4 + $0x10] sm:$0xff] }
0x1ea9   :  { %12951 = vmatprep.subr.bf16.mxu0 %v17393_v50  ;;  %12983 = vmatprep.subr.bf16.mxu1 %v17405_v9  ;;  %v8780_v50 = vld [vmem:[%s17710_s4 + $0x18] sm:$0xff] }
0x1eaa   :  { %v12990_v38 = vpack.c.bf16 %v8780_v50, %v8779_v11 }
0x1eac   :  { %12953 = vmatpush1.bf16.msra.mxu0 %v17417_v12  ;;  %12985 = vmatpush1.bf16.msra.mxu1 %v17421_v5 }
0x1ead   :  { %12987 = vmatprep.subr.bf16.mxu0 %v12986_v57 }
0x1f62   :  { %v8425_v62 = vpop.f32.mrb[58].mxu0  ;;  %v8496_v23 = vpop.f32.mrb[62].mxu1 }
0x1f63   :  { %v13094_v54 = vadd.f32 %v8425_v62, %v17024_v7  ;;  %v8427_v20 = vpop.f32.mrb[59].mxu0  ;;  %v8498_v30 = vpop.f32.mrb[63].mxu1  ;;  %v13110_v45 = vadd.f32 %v8496_v23, %v17036_v22 }
0x1f64   :  { %v13095_v63 = vadd.f32 %v8427_v20, %v17027_v32  ;;  %v13111_v56 = vadd.f32 %v8498_v30, %v17032_v48 }
0x1f65   :  { %v10607_v59 = vmul.f32 -1.442695, %v13094_v54 }
0x1f66   :  { %v10608_v39 = vmul.f32 -1.442695, %v13095_v63  ;;  %v10609_v13 = vmul.f32 -1.442695, %v13111_v56 }
0x1f67   :  { %13694 = vpow2.f32 %v10607_v59 }
0x1f68   :  { %13696 = vpow2.f32 %v10608_v39 }
0x1f69   :  { %13698 = vpow2.f32 %v10609_v13 }
0x1f6a   :  { %13700 = vtanh.f32 %v13110_v45 }
0x1f71   :  { %v13695_v21 = vpop.eup %13694 }
0x1f72   :  { %v13697_v10 = vpop.eup %13696  ;;  %v8508_v42 = vadd.f32 1.0, %v13695_v21 }
0x1f73   :  { %v8514_v35 = vadd.f32 1.0, %v13697_v10  ;;  %v13699_v31 = vpop.eup %13698 }
0x1f74   :  { %13702 = vrcp.f32 %v8508_v42  ;;  %v13701_v41 = vpop.eup %13700  ;;  %v8521_v51 = vadd.f32 1.0, %v13699_v31 }
0x1f75   :  { %13704 = vrcp.f32 %v8514_v35 }
0x1f76   :  { %13706 = vrcp.f32 %v8521_v51 }
0x1f7e   :  { %v13703_v24 = vpop.eup %13702 }
0x1f7f   :  { %v13705_v2 = vpop.eup %13704  ;;  %v8525_v49 = vmul.f32 %v13703_v24, %v13701_v41 }
0x1f80   :  { %v8524_v19 = vmul.f32 %v13705_v2, %v17525_v36  ;;  %v13707_v9 = vpop.eup %13706 }
0x1f82   :  { %v17575_v3 = vadd.f32 %v8525_v49, %v8524_v19 }
0x1f84   :  { %13708 = vtanh.f32 %v17575_v3 }
0x1f8e   :  { %v13709_v12 = vpop.eup %13708 }
0x1f8f   :  { %v8528_v5 = vmul.f32 %v13709_v12, %v13707_v9 }
0x1f91   :  { %8663 = vmatmul.mubr.f32.vlgmr.msra.gmra.mrb[60].mxu0 %v8528_v5  ;;  %8734 = vmatmul.mubr.f32.vlgmr.msra.gmra.mrb[64].mxu1 %v8528_v5 }
0x1f92   :  { %12989 = vmatpush3.bf16.msra.mxu0 %v12986_v57  ;;  %10734 = vmatprep.mubr.f32.mxu0 %v17042_v17  ;;  %v8786_v17 = vld [vmem:[%s17710_s4 + $0x48] sm:$0xff] }
0x1f93   :  { %12991 = vmatprep.subr.bf16.mxu0 %v12990_v38  ;;  %v13002_v1 = vpack.c.bf16 %v8786_v17, %v8785_v8 }
0x1f96   :  { %12993 = vmatpush3.bf16.msra.mxu0 %v12990_v38 }
0x1f97   :  { %12995 = vmatprep.subr.bf16.mxu0 %v12994_v16 }
0x1f9a   :  { %12997 = vmatpush3.bf16.msra.mxu0 %v12994_v16 }
0x1f9b   :  { %12999 = vmatprep.subr.bf16.mxu0 %v12998_v29 }
0x1f9e   :  { %13001 = vmatpush3.bf16.msra.mxu0 %v12998_v29 }
0x1f9f   :  { %13003 = vmatprep.subr.bf16.mxu0 %v13002_v1 }
0x1fa2   :  { %13005 = vmatpush3.bf16.msra.mxu0 %v13002_v1 }
0x1fa3   :  { %13007 = vmatprep.subr.bf16.mxu0 %v13006_v52 }
0x1fa6   :  { %13009 = vmatpush3.bf16.msra.mxu0 %v13006_v52 }
0x1fa7   :  { %13011 = vmatprep.subr.bf16.mxu0 %v13010_v55 }
0x1faa   :  { %13013 = vmatpush3.bf16.msra.mxu0 %v13010_v55 }
0x1fab   :  { %13015 = vmatprep.subr.bf16.mxu0 %v13014_v46 }
0x1fae   :  { %13017 = vmatpush3.bf16.msra.mxu0 %v13014_v46 }
0x1fb1   :  { %10735 = vmatmul.mubr.f32.vlgmr.msra.gmra.mrb[62].mxu0 %v17088_v27 }
0x1fb2   :  { %10737 = vmatprep.mubr.f32.mxu0 %v17132_v37 }
0x1fb5   :  { %10738 = vmatmul.mubr.f32.gmra.mrb[64].mxu0 %v17436_v4 }
0x1fb6   :  { %10740 = vmatprep.mubr.f32.mxu0 %v17482_v33 }
0x1fb9   :  { %10741 = vmatmul.mubr.f32.gmra.mrb[66].mxu0 %v17528_v18 }
0x1fba   :  { %10743 = vmatprep.mubr.f32.mxu0 %v8528_v5 }
0x2064   :  { %v8664_v47 = vpop.f32.mrb[60].mxu0  ;;  %v8735_v15 = vpop.f32.mrb[64].mxu1 }
0x2065   :  { %v13096_v36 = vadd.f32 %v8664_v47, %v17024_v7  ;;  %v8666_v26 = vpop.f32.mrb[61].mxu0  ;;  %v8737_v43 = vpop.f32.mrb[65].mxu1  ;;  %v13112_v4 = vadd.f32 %v8735_v15, %v17036_v22 }
0x2066   :  { %v13097_v0 = vadd.f32 %v8666_v26, %v17027_v32  ;;  %v13113_v27 = vadd.f32 %v8737_v43, %v17032_v48  ;;  %v10677_v48 = vld [vmem:[%s17711_s5] ss:$0 sm:$0xff] }
0x2067   :  { %v10674_v6 = vmul.f32 -1.442695, %v13096_v36 }
0x2068   :  { %v10675_v57 = vmul.f32 -1.442695, %v13097_v0  ;;  %v10676_v37 = vmul.f32 -1.442695, %v13113_v27 }
0x2069   :  { %13710 = vpow2.f32 %v10674_v6 }
0x206a   :  { %13712 = vpow2.f32 %v10675_v57 }
0x206b   :  { %13714 = vpow2.f32 %v10676_v37 }
0x206c   :  { %13716 = vtanh.f32 %v13112_v4 }
0x2073   :  { %v13711_v33 = vpop.eup %13710 }
0x2074   :  { %v13713_v18 = vpop.eup %13712  ;;  %v8747_v62 = vadd.f32 1.0, %v13711_v33 }
0x2075   :  { %v8753_v23 = vadd.f32 1.0, %v13713_v18  ;;  %v13715_v7 = vpop.eup %13714 }
0x2076   :  { %13718 = vrcp.f32 %v8747_v62  ;;  %v13717_v54 = vpop.eup %13716  ;;  %v8760_v63 = vadd.f32 1.0, %v13715_v7 }
0x2077   :  { %13720 = vrcp.f32 %v8753_v23 }
0x2078   :  { %13722 = vrcp.f32 %v8760_v63 }
0x2080   :  { %v13719_v32 = vpop.eup %13718 }
0x2081   :  { %v13721_v20 = vpop.eup %13720  ;;  %v8764_v30 = vmul.f32 %v13719_v32, %v13717_v54 }
0x2082   :  { %v8763_v59 = vmul.f32 %v13721_v20, %v17575_v3  ;;  %v13723_v19 = vpop.eup %13722 }
0x2084   :  { %v10736_v22 = vpop.f32.mrb[62].mxu0  ;;  %v8765_v39 = vadd.f32 %v8764_v30, %v8763_v59 }
0x2085   :  { %v8872_v56 = vadd.f32 %v10736_v22, %v10677_v48  ;;  %v8866_v13 = vpop.f32.mrb[63].mxu0 }
0x2086   :  { %13724 = vtanh.f32 %v8765_v39  ;;  %v8867_v45 = vadd.f32 %v10677_v48, %v8866_v13 }
0x2087   :  { %v8909_v21 = vsel %vm8905_vm0, %v8872_v56, -inf }
0x2088   :  { %8910 = vmax.xlane.f32.xlu0 %v8909_v21  ;;  %v10739_v10 = vpop.f32.mrb[64].mxu0  ;;  %v8906_v24 = vsel %vm8905_vm0, %v8867_v45, -inf }
0x2089   :  { %v8882_v42 = vadd.f32 %v10739_v10, %v10677_v48  ;;  %v8876_v35 = vpop.f32.mrb[65].mxu0 }
0x208a   :  { %v8877_v31 = vadd.f32 %v10677_v48, %v8876_v35 }
0x208b   :  { %v8915_v41 = vsel %vm8905_vm0, %v8882_v42, -inf }
0x208c   :  { %8916 = vmax.xlane.f32.xlu1 %v8915_v41  ;;  %v10742_v2 = vpop.f32.mrb[66].mxu0  ;;  %8907 = vmax.xlane.f32.xlu0 %v8906_v24  ;;  %v8912_v11 = vsel %vm8905_vm0, %v8877_v31, -inf }
0x208d   :  { %v8886_v49 = vpop.f32.mrb[67].mxu0  ;;  %v8892_v3 = vadd.f32 %v10742_v2, %v10677_v48 }
0x208e   :  { %v8887_v51 = vadd.f32 %v10677_v48, %v8886_v49 }
0x208f   :  { %v8921_v5 = vsel %vm8905_vm0, %v8892_v3, -inf }
0x2090   :  { %v13725_v50 = vpop.eup %13724  ;;  %8913 = vmax.xlane.f32.xlu1 %v8912_v11  ;;  %v8918_v9 = vsel %vm8905_vm0, %v8887_v51, -inf }
0x2091   :  { %8919 = vmax.xlane.f32.xlu0 %v8918_v9  ;;  %v8767_v12 = vmul.f32 %v13725_v50, %v13723_v19 }
0x2093   :  { %10744 = vmatmul.mubr.f32.gmra.mrb[68].mxu0 %v8767_v12 }
0x2094   :  { %8922 = vmax.xlane.f32.xlu1 %v8921_v5 }
0x2115   :  { %v8911_v38 = vpop.xlane.xlu0 %8910 }
0x2116   :  { %v17640_v58 = vsub.f32 %v8872_v56, %v8911_v38 }
0x2118   :  { %v8940_v29 = vmul.f32 1.442695, %v17640_v58 }
0x2119   :  { %v8917_v34 = vpop.xlane.xlu1 %8916  ;;  %v8908_v53 = vpop.xlane.xlu0 %8907 }
0x211a   :  { %v17642_v60 = vsub.f32 %v8867_v45, %v8908_v53  ;;  %v17645_v8 = vsub.f32 %v8882_v42, %v8917_v34  ;;  %13726 = vpow2.f32 %v8940_v29 }
0x211c   :  { %v8938_v17 = vmul.f32 1.442695, %v17642_v60  ;;  %v8944_v52 = vmul.f32 1.442695, %v17645_v8 }
0x211d   :  { %v8914_v16 = vpop.xlane.xlu1 %8913 }
0x211e   :  { %v17648_v1 = vsub.f32 %v8877_v31, %v8914_v16  ;;  %v8920_v25 = vpop.xlane.xlu0 %8919  ;;  %13728 = vpow2.f32 %v8938_v17 }
0x211f   :  { %v17654_v55 = vsub.f32 %v8887_v51, %v8920_v25  ;;  %13730 = vpow2.f32 %v8944_v52 }
0x2120   :  { %v8942_v14 = vmul.f32 1.442695, %v17648_v1 }
0x2121   :  { %v8923_v61 = vpop.xlane.xlu1 %8922  ;;  %v8946_v40 = vmul.f32 1.442695, %v17654_v55 }
0x2122   :  { %v17651_v28 = vsub.f32 %v8892_v3, %v8923_v61  ;;  %13732 = vpow2.f32 %v8942_v14 }
0x2124   :  { %v8948_v44 = vmul.f32 1.442695, %v17651_v28  ;;  %v13727_v43 = vpop.eup %13726 }
0x2125   :  { %v8957_v57 = vsel %vm8905_vm0, %v13727_v43, 0.0 }
0x2126   :  { %13734 = vpow2.f32 %v8948_v44 }
0x2127   :  { %13736 = vpow2.f32 %v8946_v40 }
0x2128   :  { %v13729_v6 = vpop.eup %13728 }
0x2129   :  { %v13731_v27 = vpop.eup %13730  ;;  %v8954_v37 = vsel %vm8905_vm0, %v13729_v6, 0.0 }
0x212a   :  { %v8963_v33 = vsel %vm8905_vm0, %v13731_v27, 0.0 }
0x212c   :  { %v13733_v4 = vpop.eup %13732 }
0x212d   :  { %v8960_v62 = vsel %vm8905_vm0, %v13733_v4, 0.0 }
0x2130   :  { %v13735_v18 = vpop.eup %13734 }
0x2131   :  { %v13737_v23 = vpop.eup %13736  ;;  %v8969_v7 = vsel %vm8905_vm0, %v13735_v18, 0.0 }
0x2132   :  { %v8966_v54 = vsel %vm8905_vm0, %v13737_v23, 0.0 }
0x2166   :  { %v10745_v46 = vpop.f32.mrb[68].mxu0 }
0x2167   :  { %v8902_v47 = vadd.f32 %v10745_v46, %v10677_v48  ;;  %v8896_v15 = vpop.f32.mrb[69].mxu0 }
0x2168   :  { %v8897_v36 = vadd.f32 %v10677_v48, %v8896_v15 }
0x2169   :  { %v8927_v26 = vsel %vm8905_vm0, %v8902_v47, -inf }
0x216a   :  { %8928 = vmax.xlane.f32.xlu1 %v8927_v26  ;;  %v8924_v0 = vsel %vm8905_vm0, %v8897_v36, -inf }
0x216b   :  { %8925 = vmax.xlane.f32.xlu0 %v8924_v0 }
0x216e   :  { %8958 = vadd.xlane.f32.xlu1 %v8957_v57 }
0x216f   :  { %8955 = vadd.xlane.f32.xlu0 %v8954_v37 }
0x2172   :  { %8964 = vadd.xlane.f32.xlu1 %v8963_v33 }
0x2173   :  { %8961 = vadd.xlane.f32.xlu0 %v8960_v62 }
0x2176   :  { %8970 = vadd.xlane.f32.xlu1 %v8969_v7 }
0x2177   :  { %8967 = vadd.xlane.f32.xlu0 %v8966_v54 }
0x21f7   :  { %v8929_v32 = vpop.xlane.xlu1 %8928 }
0x21f8   :  { %v8937_v20 = vsub.f32 %v8902_v47, %v8929_v32  ;;  %v8926_v30 = vpop.xlane.xlu0 %8925 }
0x21f9   :  { %v8936_v63 = vsub.f32 %v8897_v36, %v8926_v30 }
0x21fa   :  { %v8952_v59 = vmul.f32 1.442695, %v8937_v20 }
0x21fb   :  { %v8950_v48 = vmul.f32 1.442695, %v8936_v63  ;;  %v8959_v22 = vpop.xlane.xlu1 %8958 }
0x21fc   :  { %13738 = vpow2.f32 %v8952_v59  ;;  %v8956_v39 = vpop.xlane.xlu0 %8955 }
0x21fd   :  { %13740 = vpow2.f32 %v8950_v48 }
0x21fe   :  { %13742 = vlog2.f32 %v8959_v22 }
0x21ff   :  { %13744 = vlog2.f32 %v8956_v39  ;;  %v8965_v56 = vpop.xlane.xlu1 %8964 }
0x2200   :  { %13746 = vlog2.f32 %v8965_v56  ;;  %v8962_v13 = vpop.xlane.xlu0 %8961 }
0x2201   :  { %13748 = vlog2.f32 %v8962_v13 }
0x2203   :  { %v8971_v45 = vpop.xlane.xlu1 %8970 }
0x2204   :  { %13750 = vlog2.f32 %v8971_v45  ;;  %v8968_v21 = vpop.xlane.xlu0 %8967 }
0x2205   :  { %13752 = vlog2.f32 %v8968_v21 }
0x2206   :  { %v13739_v10 = vpop.eup %13738 }
0x2207   :  { %v13741_v42 = vpop.eup %13740  ;;  %v8975_v35 = vsel %vm8905_vm0, %v13739_v10, 0.0 }
0x2208   :  { %v13743_v31 = vpop.eup %13742  ;;  %8976 = vadd.xlane.f32.xlu1 %v8975_v35  ;;  %v8972_v41 = vsel %vm8905_vm0, %v13741_v42, 0.0 }
0x2209   :  { %v13745_v24 = vpop.eup %13744  ;;  %v8981_v2 = vmul.f32 0.6931472, %v13743_v31  ;;  %8973 = vadd.xlane.f32.xlu0 %v8972_v41 }
0x220a   :  { %v13747_v49 = vpop.eup %13746  ;;  %v8979_v51 = vmul.f32 0.6931472, %v13745_v24 }
0x220b   :  { %v13749_v19 = vpop.eup %13748  ;;  %v8995_v3 = vsub.f32 %v17640_v58, %v8981_v2  ;;  %v8985_v11 = vmul.f32 0.6931472, %v13747_v49 }
0x220c   :  { %v8994_v50 = vsub.f32 %v17642_v60, %v8979_v51  ;;  %v8983_v9 = vmul.f32 0.6931472, %v13749_v19 }
0x220d   :  { %9003 = vst.msk [vmem:[%s17712_s6 + $0x8] sm:$0xff] %vm8905_vm0, %v8995_v3  ;;  %v8997_v12 = vsub.f32 %v17645_v8, %v8985_v11 }
0x220e   :  { %v13751_v5 = vpop.eup %13750  ;;  %9002 = vst.msk [vmem:[%s17712_s6] sm:$0xff] %vm8905_vm0, %v8994_v50  ;;  %v8996_v38 = vsub.f32 %v17648_v1, %v8983_v9 }
0x220f   :  { %v13753_v34 = vpop.eup %13752  ;;  %9005 = vst.msk [vmem:[%s17712_s6 + $0x18] sm:$0xff] %vm8905_vm0, %v8997_v12  ;;  %v8989_v53 = vmul.f32 0.6931472, %v13751_v5 }
0x2210   :  { %9004 = vst.msk [vmem:[%s17712_s6 + $0x10] sm:$0xff] %vm8905_vm0, %v8996_v38  ;;  %v8987_v16 = vmul.f32 0.6931472, %v13753_v34 }
0x2211   :  { %v8999_v58 = vsub.f32 %v17651_v28, %v8989_v53 }
0x2212   :  { %v8998_v60 = vsub.f32 %v17654_v55, %v8987_v16 }
0x2213   :  { %9007 = vst.msk [vmem:[%s17712_s6 + $0x28] sm:$0xff] %vm8905_vm0, %v8999_v58 }
0x2214   :  { %9006 = vst.msk [vmem:[%s17712_s6 + $0x20] sm:$0xff] %vm8905_vm0, %v8998_v60 }
0x2295   :  { %v8977_v29 = vpop.xlane.xlu1 %8976 }
0x2296   :  { %13754 = vlog2.f32 %v8977_v29  ;;  %v8974_v8 = vpop.xlane.xlu0 %8973 }
0x2297   :  { %13756 = vlog2.f32 %v8974_v8 }
0x22a0   :  { %v13755_v17 = vpop.eup %13754 }
0x22a1   :  { %v13757_v1 = vpop.eup %13756  ;;  %v8993_v61 = vmul.f32 0.6931472, %v13755_v17 }
0x22a2   :  { %v8991_v25 = vmul.f32 0.6931472, %v13757_v1 }
0x22a3   :  { %v9001_v52 = vsub.f32 %v8937_v20, %v8993_v61 }
0x22a4   :  { %v9000_v28 = vsub.f32 %v8936_v63, %v8991_v25 }
0x22a5   :  { %9009 = vst.msk [vmem:[%s17712_s6 + $0x38] sm:$0xff] %vm8905_vm0, %v9001_v52 }
0x22a6   :  { %9008 = vst.msk [vmem:[%s17712_s6 + $0x30] sm:$0xff] %vm8905_vm0, %v9000_v28 }
0x22a7   :  { %9014 = vsyncpa [#allocation5], 1 }

</bundles_post_ra>
